<compile_context>
chip_gen: v5e
topology: v5e:2x2
jax: 0.10.0
libtpu: 0.0.40
codegen_flags: <defaults>
</compile_context>

<pallas_src>
import functools

import jax
import jax.numpy as jnp
from jax.experimental import pallas as pl
from jax.experimental.pallas import tpu as pltpu

D_MODEL = 384
NUM_HEADS = 6
HEAD_SIZE = D_MODEL // NUM_HEADS  # 64
FF_HIDDEN = 4 * D_MODEL           # 1536
LN_EPS = 1e-5
NEG_BIG = -1e30                   # additive causal mask value (== -inf after exp)


def _layernorm(x, gamma, beta):
    mu = jnp.mean(x, axis=-1, keepdims=True)
    var = jnp.mean((x - mu) ** 2, axis=-1, keepdims=True)
    return (x - mu) * jax.lax.rsqrt(var + LN_EPS) * gamma + beta


def _mm(a, w):
    # MXU matmul; LHS cast to the weight dtype (bf16 fast path), fp32 accumulation.
    return jnp.dot(a.astype(w.dtype), w, preferred_element_type=jnp.float32)


def block_kernel(x_ref,
                 g1_ref, b1_ref,            # LayerNorm1 gamma/beta           (1, C)
                 wqkv_ref,                  # fused q|k|v projection          (C, 3C)
                 wp_ref, bp_ref,            # output projection               (C, C), (1, C)
                 g2_ref, b2_ref,            # LayerNorm2 gamma/beta           (1, C)
                 w1_ref, fb1_ref,           # FFN first linear                (C, 4C), (1, 4C)
                 w2_ref, fb2_ref,           # FFN second linear               (4C, C), (1, C)
                 o_ref,
                 ctx_ref,                   # VMEM scratch: per-head context slab (R, C)
                 *, batch_block, seq_len, compute_dtype, approx_recip):
    Bt, T, C, hs = batch_block, seq_len, D_MODEL, HEAD_SIZE
    R = Bt * T

    # Fold the batch block into the matmul M dimension (R = Bt*T rows).
    x = x_ref[...].reshape(R, C)                                   # (R, C) fp32

    # ---- LayerNorm 1 (fp32 element-wise) ----
    xn = _layernorm(x, g1_ref[...], b1_ref[...])

    # ---- fused QKV projection: one MXU push, N = 3C ----
    # sqrt(head_size) (the reference's `/ hs**-0.5`) is pre-folded into the wq columns.
    qkv = _mm(xn, wqkv_ref[...])                                   # (R, 3C) fp32
    qkv_c = qkv.astype(compute_dtype)                              # matmul-operand dtype

    # ---- additive causal mask, built once per grid step ----
    row = jax.lax.broadcasted_iota(jnp.int32, (1, T, T), 1)
    col = jax.lax.broadcasted_iota(jnp.int32, (1, T, T), 2)
    mask_add = jnp.where(col <= row, 0.0, NEG_BIG).astype(jnp.float32)

    # ---- multi-head causal self-attention ----
    # Per-head score / P@V einsums (single batch dim = Bt); contexts are written into
    # the (R, C) scratch slab so the output projection is ONE K=C matmul.
    for h in range(NUM_HEADS):
        lo = h * hs
        qh = qkv_c[:, lo:lo + hs].reshape(Bt, T, hs)
        kh = qkv_c[:, C + lo:C + lo + hs].reshape(Bt, T, hs)
        vh = qkv_c[:, 2 * C + lo:2 * C + lo + hs].reshape(Bt, T, hs)

        s = jnp.einsum('bqd,bkd->bqk', qh, kh,
                       preferred_element_type=jnp.float32) + mask_add   # (Bt, T, T)

        # hand-rolled softmax: EUP reciprocal on the bf16 fast path, exact on fp32
        m = jnp.max(s, axis=-1, keepdims=True)
        e = jnp.exp(s - m)
        denom = jnp.sum(e, axis=-1, keepdims=True)
        if approx_recip:
            inv = pl.reciprocal(denom, approx=True)
        else:
            inv = 1.0 / denom
        p = (e * inv).astype(compute_dtype)

        ctx_h = jnp.einsum('bqk,bkd->bqd', p, vh,
                           preferred_element_type=jnp.float32)          # (Bt, T, hs)
        ctx_ref[:, lo:lo + hs] = ctx_h.reshape(R, hs)

    # ---- ONE full-depth output projection (K = C = 384) ----
    attn = _mm(ctx_ref[...], wp_ref[...]) + bp_ref[...]
    x1 = x + attn                                                  # residual 1

    # ---- LayerNorm 2 + FeedForward ----
    x1n = _layernorm(x1, g2_ref[...], b2_ref[...])
    h1 = jnp.maximum(_mm(x1n, w1_ref[...]) + fb1_ref[...], 0.0)    # ReLU
    ff = _mm(h1, w2_ref[...]) + fb2_ref[...]

    o_ref[...] = (x1 + ff).reshape(Bt, T, C)                       # residual 2


def _choose_batch_block(B, T, target_rows=512):
    """Pick batch elements per grid step: pack ~target_rows rows into the matmul M
    dimension, preferring a divisor of B that yields an EVEN number of grid steps so
    both v7x TensorCores get equal work."""
    want = max(1, -(-target_rows // T))                 # ceil(target_rows / T)
    divisors = [d for d in range(1, B + 1) if B % d == 0]
    cands = [d for d in divisors if d <= want] or [1]
    even = [d for d in cands if (B // d) % 2 == 0]
    return max(even) if even else max(cands)


def _pick_vmem_limit():
    """Per-generation scoped-VMEM limit: 64 MiB on v5e/v6e (128 MiB physical),
    48 MiB on v7x (64 MiB physical), conservative 32 MiB otherwise."""
    try:
        kind = jax.devices()[0].device_kind.lower()
    except Exception:
        return 32 << 20
    if "v5" in kind or "v6" in kind:
        return 64 << 20
    if "v7" in kind:
        return 48 << 20
    return 32 << 20


def block_forward(x, params, *, compute_dtype=jnp.float32, target_rows=512):
    B, T, C = x.shape
    assert C == D_MODEL
    # TODO(synk): support T not a multiple of 8 (needed for the in-kernel row fold).
    assert T % 8 == 0, "sequence length must be a multiple of 8"

    Bt = _choose_batch_block(B, T, target_rows)
    grid = (B // Bt,)
    R = Bt * T

    # Trace-time weight prep (free): fold sqrt(head_size) into wq (exact power-of-2
    # scale), fuse q|k|v into one (C, 3C) weight, optionally cast matmul weights to
    # bf16 (v5e/v6e/v7x MXU headline rate; also halves resident weight VMEM on v7x).
    # Element-wise params (LN, biases) stay fp32.
    wq_scaled = params["wq"] * jnp.float32(float(HEAD_SIZE) ** 0.5)
    wqkv = jnp.concatenate([wq_scaled, params["wk"], params["wv"]], axis=1)
    wqkv = wqkv.astype(compute_dtype)
    wproj = params["wproj"].astype(compute_dtype)
    w1 = params["w1"].astype(compute_dtype)
    w2 = params["w2"].astype(compute_dtype)

    ordered = [params["ln1_g"], params["ln1_b"],
               wqkv,
               wproj, params["bproj"],
               params["ln2_g"], params["ln2_b"],
               w1, params["b1"],
               w2, params["b2"]]

    def const_spec(arr):
        return pl.BlockSpec(arr.shape, lambda b: (0, 0))

    in_specs = [pl.BlockSpec((Bt, T, C), lambda b: (b, 0, 0))]
    in_specs += [const_spec(p) for p in ordered]

    kernel = functools.partial(
        block_kernel,
        batch_block=Bt, seq_len=T,
        compute_dtype=compute_dtype,
        approx_recip=(compute_dtype != jnp.float32))

    return pl.pallas_call(
        kernel,
        out_shape=jax.ShapeDtypeStruct((B, T, C), jnp.float32),
        grid_spec=pltpu.PrefetchScalarGridSpec(
            num_scalar_prefetch=0,
            grid=grid,
            in_specs=in_specs,
            out_specs=pl.BlockSpec((Bt, T, C), lambda b: (b, 0, 0)),
            scratch_shapes=[pltpu.VMEM((R, D_MODEL), jnp.float32)],  # per-head ctx slab
        ),
        compiler_params=pltpu.CompilerParams(
            dimension_semantics=("parallel",),
            vmem_limit_bytes=_pick_vmem_limit(),
        ),
    )(x, *ordered)


def init_params(key):
    ks = jax.random.split(key, 8)
    scale = 0.02
    return {
        "ln1_g": jnp.ones((1, D_MODEL), jnp.float32),
        "ln1_b": jnp.zeros((1, D_MODEL), jnp.float32),
        # per-head q/k/v weights stacked along the output axis -> (C, n_heads*head_size)
        "wq": scale * jax.random.normal(ks[0], (D_MODEL, NUM_HEADS * HEAD_SIZE), jnp.float32),
        "wk": scale * jax.random.normal(ks[1], (D_MODEL, NUM_HEADS * HEAD_SIZE), jnp.float32),
        "wv": scale * jax.random.normal(ks[2], (D_MODEL, NUM_HEADS * HEAD_SIZE), jnp.float32),
        "wproj": scale * jax.random.normal(ks[3], (D_MODEL, D_MODEL), jnp.float32),
        "bproj": scale * jax.random.normal(ks[4], (1, D_MODEL), jnp.float32),
        "ln2_g": jnp.ones((1, D_MODEL), jnp.float32),
        "ln2_b": jnp.zeros((1, D_MODEL), jnp.float32),
        "w1": scale * jax.random.normal(ks[5], (D_MODEL, FF_HIDDEN), jnp.float32),
        "b1": scale * jax.random.normal(ks[6], (1, FF_HIDDEN), jnp.float32),
        "w2": scale * jax.random.normal(ks[7], (FF_HIDDEN, D_MODEL), jnp.float32),
        "b2": jnp.zeros((1, D_MODEL), jnp.float32),
    }


def block_reference(x, p):
    """Pure-JAX reference mirroring the PyTorch module (eval mode)."""
    def ln(y, g, b):
        mu = jnp.mean(y, axis=-1, keepdims=True)
        var = jnp.mean((y - mu) ** 2, axis=-1, keepdims=True)
        return (y - mu) * jax.lax.rsqrt(var + LN_EPS) * g + b

    B, T, C = x.shape
    xn = ln(x, p["ln1_g"], p["ln1_b"])
    q = xn @ p["wq"]; k = xn @ p["wk"]; v = xn @ p["wv"]
    qh = q.reshape(B, T, NUM_HEADS, HEAD_SIZE).transpose(0, 2, 1, 3)
    kh = k.reshape(B, T, NUM_HEADS, HEAD_SIZE).transpose(0, 2, 1, 3)
    vh = v.reshape(B, T, NUM_HEADS, HEAD_SIZE).transpose(0, 2, 1, 3)
    wei = jnp.einsum("bhqd,bhkd->bhqk", qh, kh) / (float(HEAD_SIZE) ** -0.5)
    mask = jnp.tril(jnp.ones((T, T), bool))
    wei = jnp.where(mask, wei, -jnp.inf)
    wei = jax.nn.softmax(wei, axis=-1)
    o = jnp.einsum("bhqk,bhkd->bhqd", wei, vh).transpose(0, 2, 1, 3).reshape(B, T, C)
    attn = o @ p["wproj"] + p["bproj"]
    x1 = x + attn
    x1n = ln(x1, p["ln2_g"], p["ln2_b"])
    ff = jnp.maximum(x1n @ p["w1"] + p["b1"], 0.0) @ p["w2"] + p["b2"]
    return x1 + ff


if __name__ == "__main__":
    key = jax.random.PRNGKey(0)
    k_x, k_p = jax.random.split(key)

    B, T = 4, 16  # T <= context_size (100), multiple of 8
    x = jax.random.normal(k_x, (B, T, D_MODEL), jnp.float32)
    params = init_params(k_p)

    ref = block_reference(x, params)

    # fp32 path: exact semantics, checked tightly against the pure-JAX reference.
    out = jax.block_until_ready(block_forward(x, params))
    assert out.shape == (B, T, D_MODEL)
    assert jnp.allclose(out, ref, atol=2e-4, rtol=2e-4), "mismatch vs fp32 reference"

    # bf16 matmul-operand fast path (v5e/v6e/v7x MXU headline rate): loose-tolerance
    # regression check against the same fp32 reference.
    out_bf16 = jax.block_until_ready(
        block_forward(x, params, compute_dtype=jnp.bfloat16))
    assert out_bf16.shape == (B, T, D_MODEL)
    assert bool(jnp.all(jnp.isfinite(out_bf16)))
    assert jnp.allclose(out_bf16, ref, atol=1e-1, rtol=1e-1), "bf16 fast path drifted"

    print("KERNEL_OK")
</pallas_src>

<mosaic_0001>
module attributes {stable_mosaic.version = 11 : i64} {
  func.func @block_kernel(%arg0: i32, %arg1: memref<2x16x384xf32, #tpu.memory_space<vmem>>, %arg2: memref<1x384xf32, #tpu.memory_space<vmem>>, %arg3: memref<1x384xf32, #tpu.memory_space<vmem>>, %arg4: memref<384x1152xf32, #tpu.memory_space<vmem>>, %arg5: memref<384x384xf32, #tpu.memory_space<vmem>>, %arg6: memref<1x384xf32, #tpu.memory_space<vmem>>, %arg7: memref<1x384xf32, #tpu.memory_space<vmem>>, %arg8: memref<1x384xf32, #tpu.memory_space<vmem>>, %arg9: memref<384x1536xf32, #tpu.memory_space<vmem>>, %arg10: memref<1x1536xf32, #tpu.memory_space<vmem>>, %arg11: memref<1536x384xf32, #tpu.memory_space<vmem>>, %arg12: memref<1x384xf32, #tpu.memory_space<vmem>>, %arg13: memref<2x16x384xf32, #tpu.memory_space<vmem>>, %arg14: memref<32x384xf32, #tpu.memory_space<vmem>>) attributes {dimension_semantics = [#tpu.dimension_semantics<parallel>], iteration_bounds = array<i64: 2>, scalar_prefetch = 0 : i64, scratch_operands = 1 : i64, tpu.core_type = #tpu.core_type<tc>, window_params = [{transform_indices = @transform_0, window_bounds = array<i64: 2, 16, 384>}, {pipeline_mode = #tpu.pipeline_mode<synchronous>, transform_indices = @transform_1, window_bounds = array<i64: 1, 384>}, {pipeline_mode = #tpu.pipeline_mode<synchronous>, transform_indices = @transform_2, window_bounds = array<i64: 1, 384>}, {pipeline_mode = #tpu.pipeline_mode<synchronous>, transform_indices = @transform_3, window_bounds = array<i64: 384, 1152>}, {pipeline_mode = #tpu.pipeline_mode<synchronous>, transform_indices = @transform_4, window_bounds = array<i64: 384, 384>}, {pipeline_mode = #tpu.pipeline_mode<synchronous>, transform_indices = @transform_5, window_bounds = array<i64: 1, 384>}, {pipeline_mode = #tpu.pipeline_mode<synchronous>, transform_indices = @transform_6, window_bounds = array<i64: 1, 384>}, {pipeline_mode = #tpu.pipeline_mode<synchronous>, transform_indices = @transform_7, window_bounds = array<i64: 1, 384>}, {pipeline_mode = #tpu.pipeline_mode<synchronous>, transform_indices = @transform_8, window_bounds = array<i64: 384, 1536>}, {pipeline_mode = #tpu.pipeline_mode<synchronous>, transform_indices = @transform_9, window_bounds = array<i64: 1, 1536>}, {pipeline_mode = #tpu.pipeline_mode<synchronous>, transform_indices = @transform_10, window_bounds = array<i64: 1536, 384>}, {pipeline_mode = #tpu.pipeline_mode<synchronous>, transform_indices = @transform_11, window_bounds = array<i64: 1, 384>}, {transform_indices = @transform_12, window_bounds = array<i64: 2, 16, 384>}]} {
    %c0 = arith.constant 0 : index
    %c0_0 = arith.constant 0 : index
    %c0_1 = arith.constant 0 : index
    %0 = vector.load %arg1[%c0, %c0_0, %c0_1] : memref<2x16x384xf32, #tpu.memory_space<vmem>>, vector<2x16x384xf32>
    %1 = vector.shape_cast %0 : vector<2x16x384xf32> to vector<32x384xf32>
    %c0_2 = arith.constant 0 : index
    %c0_3 = arith.constant 0 : index
    %2 = vector.load %arg2[%c0_2, %c0_3] : memref<1x384xf32, #tpu.memory_space<vmem>>, vector<1x384xf32>
    %c0_4 = arith.constant 0 : index
    %c0_5 = arith.constant 0 : index
    %3 = vector.load %arg3[%c0_4, %c0_5] : memref<1x384xf32, #tpu.memory_space<vmem>>, vector<1x384xf32>
    %cst = arith.constant dense<0.000000e+00> : vector<32xf32>
    %4 = vector.multi_reduction <add>, %1, %cst [1] : vector<32x384xf32> to vector<32xf32>
    %5 = vector.shape_cast %4 : vector<32xf32> to vector<32x1xf32>
    %cst_6 = arith.constant 3.840000e+02 : f32
    %6 = vector.broadcast %cst_6 : f32 to vector<32x1xf32>
    %7 = arith.divf %5, %6 : vector<32x1xf32>
    %8 = vector.broadcast %7 : vector<32x1xf32> to vector<32x384xf32>
    %9 = arith.subf %1, %8 : vector<32x384xf32>
    %10 = arith.mulf %9, %9 : vector<32x384xf32>
    %cst_7 = arith.constant dense<0.000000e+00> : vector<32xf32>
    %11 = vector.multi_reduction <add>, %10, %cst_7 [1] : vector<32x384xf32> to vector<32xf32>
    %12 = vector.shape_cast %11 : vector<32xf32> to vector<32x1xf32>
    %cst_8 = arith.constant 3.840000e+02 : f32
    %13 = vector.broadcast %cst_8 : f32 to vector<32x1xf32>
    %14 = arith.divf %12, %13 : vector<32x1xf32>
    %15 = vector.broadcast %7 : vector<32x1xf32> to vector<32x384xf32>
    %16 = arith.subf %1, %15 : vector<32x384xf32>
    %cst_9 = arith.constant 9.99999974E-6 : f32
    %17 = vector.broadcast %cst_9 : f32 to vector<32x1xf32>
    %18 = arith.addf %14, %17 : vector<32x1xf32>
    %19 = math.rsqrt %18 : vector<32x1xf32>
    %20 = vector.broadcast %19 : vector<32x1xf32> to vector<32x384xf32>
    %21 = arith.mulf %16, %20 : vector<32x384xf32>
    %22 = vector.broadcast %2 : vector<1x384xf32> to vector<32x384xf32>
    %23 = arith.mulf %21, %22 : vector<32x384xf32>
    %24 = vector.broadcast %3 : vector<1x384xf32> to vector<32x384xf32>
    %25 = arith.addf %23, %24 : vector<32x384xf32>
    %c0_10 = arith.constant 0 : index
    %c0_11 = arith.constant 0 : index
    %26 = vector.load %arg4[%c0_10, %c0_11] : memref<384x1152xf32, #tpu.memory_space<vmem>>, vector<384x1152xf32>
    %cst_12 = arith.constant dense<0.000000e+00> : vector<32x1152xf32>
    %27 = tpu.matmul %25, %26, %cst_12 {dimension_numbers = #tpu.dot_dimension_numbers<[1], [0], [0], [1], [0, 0, 1, 1], [], []>} : vector<32x384xf32>, vector<384x1152xf32>, vector<32x1152xf32> -> vector<32x1152xf32>
    %28 = tpu.iota {dimensions = array<i32: 1>} : vector<1x16x16xi32>
    %29 = tpu.iota {dimensions = array<i32: 2>} : vector<1x16x16xi32>
    %30 = arith.cmpi sle, %29, %28 : vector<1x16x16xi32>
    %cst_13 = arith.constant 0.000000e+00 : f32
    %cst_14 = arith.constant -1.000000e+30 : f32
    %31 = vector.broadcast %cst_13 : f32 to vector<1x16x16xf32>
    %32 = vector.broadcast %cst_14 : f32 to vector<1x16x16xf32>
    %33 = arith.select %30, %31, %32 : vector<1x16x16xi1>, vector<1x16x16xf32>
    %34 = vector.extract_strided_slice %27 {offsets = [0, 0], sizes = [32, 64], strides = [1, 1]} : vector<32x1152xf32> to vector<32x64xf32>
    %35 = vector.shape_cast %34 : vector<32x64xf32> to vector<2x16x64xf32>
    %36 = vector.extract_strided_slice %27 {offsets = [0, 384], sizes = [32, 64], strides = [1, 1]} : vector<32x1152xf32> to vector<32x64xf32>
    %37 = vector.shape_cast %36 : vector<32x64xf32> to vector<2x16x64xf32>
    %38 = vector.extract_strided_slice %27 {offsets = [0, 768], sizes = [32, 64], strides = [1, 1]} : vector<32x1152xf32> to vector<32x64xf32>
    %39 = vector.shape_cast %38 : vector<32x64xf32> to vector<2x16x64xf32>
    "tpu.trace_start"() <{level = 10 : i32, message = "bqd,bkd->bqk"}> : () -> ()
    %cst_15 = arith.constant dense<0.000000e+00> : vector<2x16x16xf32>
    %40 = tpu.matmul %35, %37, %cst_15 {dimension_numbers = #tpu.dot_dimension_numbers<[2], [2], [1], [1], [0, 0, 0, 1, 1, 1], [0], [0]>} : vector<2x16x64xf32>, vector<2x16x64xf32>, vector<2x16x16xf32> -> vector<2x16x16xf32>
    "tpu.trace_stop"() : () -> ()
    %41 = vector.broadcast %33 : vector<1x16x16xf32> to vector<2x16x16xf32>
    %42 = arith.addf %40, %41 : vector<2x16x16xf32>
    %cst_16 = arith.constant dense<0xFF800000> : vector<2x16xf32>
    %43 = vector.multi_reduction <maximumf>, %42, %cst_16 [2] : vector<2x16x16xf32> to vector<2x16xf32>
    %44 = vector.shape_cast %43 : vector<2x16xf32> to vector<2x16x1xf32>
    %45 = vector.broadcast %44 : vector<2x16x1xf32> to vector<2x16x16xf32>
    %46 = arith.subf %42, %45 : vector<2x16x16xf32>
    %47 = math.exp %46 : vector<2x16x16xf32>
    %cst_17 = arith.constant dense<0.000000e+00> : vector<2x16xf32>
    %48 = vector.multi_reduction <add>, %47, %cst_17 [2] : vector<2x16x16xf32> to vector<2x16xf32>
    %49 = vector.shape_cast %48 : vector<2x16xf32> to vector<2x16x1xf32>
    %cst_18 = arith.constant 1.000000e+00 : f32
    %50 = vector.broadcast %cst_18 : f32 to vector<2x16x1xf32>
    %51 = arith.divf %50, %49 : vector<2x16x1xf32>
    %52 = vector.broadcast %51 : vector<2x16x1xf32> to vector<2x16x16xf32>
    %53 = arith.mulf %47, %52 : vector<2x16x16xf32>
    "tpu.trace_start"() <{level = 10 : i32, message = "bqk,bkd->bqd"}> : () -> ()
    %cst_19 = arith.constant dense<0.000000e+00> : vector<2x16x64xf32>
    %54 = tpu.matmul %53, %39, %cst_19 {dimension_numbers = #tpu.dot_dimension_numbers<[2], [1], [1], [2], [0, 0, 0, 1, 1, 2], [0], [0]>} : vector<2x16x16xf32>, vector<2x16x64xf32>, vector<2x16x64xf32> -> vector<2x16x64xf32>
    "tpu.trace_stop"() : () -> ()
    %55 = vector.shape_cast %54 : vector<2x16x64xf32> to vector<32x64xf32>
    %c0_20 = arith.constant 0 : index
    %c0_21 = arith.constant 0 : index
    %56 = vector.load %arg14[%c0_20, %c0_21] : memref<32x384xf32, #tpu.memory_space<vmem>>, vector<32x64xf32>
    tpu.vector_store %arg14[%c0_20, %c0_21], %55 {strides = array<i32>} : memref<32x384xf32, #tpu.memory_space<vmem>>, vector<32x64xf32>,
    %57 = vector.extract_strided_slice %27 {offsets = [0, 64], sizes = [32, 64], strides = [1, 1]} : vector<32x1152xf32> to vector<32x64xf32>
    %58 = vector.shape_cast %57 : vector<32x64xf32> to vector<2x16x64xf32>
    %59 = vector.extract_strided_slice %27 {offsets = [0, 448], sizes = [32, 64], strides = [1, 1]} : vector<32x1152xf32> to vector<32x64xf32>
    %60 = vector.shape_cast %59 : vector<32x64xf32> to vector<2x16x64xf32>
    %61 = vector.extract_strided_slice %27 {offsets = [0, 832], sizes = [32, 64], strides = [1, 1]} : vector<32x1152xf32> to vector<32x64xf32>
    %62 = vector.shape_cast %61 : vector<32x64xf32> to vector<2x16x64xf32>
    "tpu.trace_start"() <{level = 10 : i32, message = "bqd,bkd->bqk"}> : () -> ()
    %cst_22 = arith.constant dense<0.000000e+00> : vector<2x16x16xf32>
    %63 = tpu.matmul %58, %60, %cst_22 {dimension_numbers = #tpu.dot_dimension_numbers<[2], [2], [1], [1], [0, 0, 0, 1, 1, 1], [0], [0]>} : vector<2x16x64xf32>, vector<2x16x64xf32>, vector<2x16x16xf32> -> vector<2x16x16xf32>
    "tpu.trace_stop"() : () -> ()
    %64 = vector.broadcast %33 : vector<1x16x16xf32> to vector<2x16x16xf32>
    %65 = arith.addf %63, %64 : vector<2x16x16xf32>
    %cst_23 = arith.constant dense<0xFF800000> : vector<2x16xf32>
    %66 = vector.multi_reduction <maximumf>, %65, %cst_23 [2] : vector<2x16x16xf32> to vector<2x16xf32>
    %67 = vector.shape_cast %66 : vector<2x16xf32> to vector<2x16x1xf32>
    %68 = vector.broadcast %67 : vector<2x16x1xf32> to vector<2x16x16xf32>
    %69 = arith.subf %65, %68 : vector<2x16x16xf32>
    %70 = math.exp %69 : vector<2x16x16xf32>
    %cst_24 = arith.constant dense<0.000000e+00> : vector<2x16xf32>
    %71 = vector.multi_reduction <add>, %70, %cst_24 [2] : vector<2x16x16xf32> to vector<2x16xf32>
    %72 = vector.shape_cast %71 : vector<2x16xf32> to vector<2x16x1xf32>
    %cst_25 = arith.constant 1.000000e+00 : f32
    %73 = vector.broadcast %cst_25 : f32 to vector<2x16x1xf32>
    %74 = arith.divf %73, %72 : vector<2x16x1xf32>
    %75 = vector.broadcast %74 : vector<2x16x1xf32> to vector<2x16x16xf32>
    %76 = arith.mulf %70, %75 : vector<2x16x16xf32>
    "tpu.trace_start"() <{level = 10 : i32, message = "bqk,bkd->bqd"}> : () -> ()
    %cst_26 = arith.constant dense<0.000000e+00> : vector<2x16x64xf32>
    %77 = tpu.matmul %76, %62, %cst_26 {dimension_numbers = #tpu.dot_dimension_numbers<[2], [1], [1], [2], [0, 0, 0, 1, 1, 2], [0], [0]>} : vector<2x16x16xf32>, vector<2x16x64xf32>, vector<2x16x64xf32> -> vector<2x16x64xf32>
    "tpu.trace_stop"() : () -> ()
    %78 = vector.shape_cast %77 : vector<2x16x64xf32> to vector<32x64xf32>
    %c0_27 = arith.constant 0 : index
    %c64 = arith.constant 64 : index
    %79 = vector.load %arg14[%c0_27, %c64] : memref<32x384xf32, #tpu.memory_space<vmem>>, vector<32x64xf32>
    tpu.vector_store %arg14[%c0_27, %c64], %78 {strides = array<i32>} : memref<32x384xf32, #tpu.memory_space<vmem>>, vector<32x64xf32>,
    %80 = vector.extract_strided_slice %27 {offsets = [0, 128], sizes = [32, 64], strides = [1, 1]} : vector<32x1152xf32> to vector<32x64xf32>
    %81 = vector.shape_cast %80 : vector<32x64xf32> to vector<2x16x64xf32>
    %82 = vector.extract_strided_slice %27 {offsets = [0, 512], sizes = [32, 64], strides = [1, 1]} : vector<32x1152xf32> to vector<32x64xf32>
    %83 = vector.shape_cast %82 : vector<32x64xf32> to vector<2x16x64xf32>
    %84 = vector.extract_strided_slice %27 {offsets = [0, 896], sizes = [32, 64], strides = [1, 1]} : vector<32x1152xf32> to vector<32x64xf32>
    %85 = vector.shape_cast %84 : vector<32x64xf32> to vector<2x16x64xf32>
    "tpu.trace_start"() <{level = 10 : i32, message = "bqd,bkd->bqk"}> : () -> ()
    %cst_28 = arith.constant dense<0.000000e+00> : vector<2x16x16xf32>
    %86 = tpu.matmul %81, %83, %cst_28 {dimension_numbers = #tpu.dot_dimension_numbers<[2], [2], [1], [1], [0, 0, 0, 1, 1, 1], [0], [0]>} : vector<2x16x64xf32>, vector<2x16x64xf32>, vector<2x16x16xf32> -> vector<2x16x16xf32>
    "tpu.trace_stop"() : () -> ()
    %87 = vector.broadcast %33 : vector<1x16x16xf32> to vector<2x16x16xf32>
    %88 = arith.addf %86, %87 : vector<2x16x16xf32>
    %cst_29 = arith.constant dense<0xFF800000> : vector<2x16xf32>
    %89 = vector.multi_reduction <maximumf>, %88, %cst_29 [2] : vector<2x16x16xf32> to vector<2x16xf32>
    %90 = vector.shape_cast %89 : vector<2x16xf32> to vector<2x16x1xf32>
    %91 = vector.broadcast %90 : vector<2x16x1xf32> to vector<2x16x16xf32>
    %92 = arith.subf %88, %91 : vector<2x16x16xf32>
    %93 = math.exp %92 : vector<2x16x16xf32>
    %cst_30 = arith.constant dense<0.000000e+00> : vector<2x16xf32>
    %94 = vector.multi_reduction <add>, %93, %cst_30 [2] : vector<2x16x16xf32> to vector<2x16xf32>
    %95 = vector.shape_cast %94 : vector<2x16xf32> to vector<2x16x1xf32>
    %cst_31 = arith.constant 1.000000e+00 : f32
    %96 = vector.broadcast %cst_31 : f32 to vector<2x16x1xf32>
    %97 = arith.divf %96, %95 : vector<2x16x1xf32>
    %98 = vector.broadcast %97 : vector<2x16x1xf32> to vector<2x16x16xf32>
    %99 = arith.mulf %93, %98 : vector<2x16x16xf32>
    "tpu.trace_start"() <{level = 10 : i32, message = "bqk,bkd->bqd"}> : () -> ()
    %cst_32 = arith.constant dense<0.000000e+00> : vector<2x16x64xf32>
    %100 = tpu.matmul %99, %85, %cst_32 {dimension_numbers = #tpu.dot_dimension_numbers<[2], [1], [1], [2], [0, 0, 0, 1, 1, 2], [0], [0]>} : vector<2x16x16xf32>, vector<2x16x64xf32>, vector<2x16x64xf32> -> vector<2x16x64xf32>
    "tpu.trace_stop"() : () -> ()
    %101 = vector.shape_cast %100 : vector<2x16x64xf32> to vector<32x64xf32>
    %c0_33 = arith.constant 0 : index
    %c128 = arith.constant 128 : index
    %102 = vector.load %arg14[%c0_33, %c128] : memref<32x384xf32, #tpu.memory_space<vmem>>, vector<32x64xf32>
    tpu.vector_store %arg14[%c0_33, %c128], %101 {strides = array<i32>} : memref<32x384xf32, #tpu.memory_space<vmem>>, vector<32x64xf32>,
    %103 = vector.extract_strided_slice %27 {offsets = [0, 192], sizes = [32, 64], strides = [1, 1]} : vector<32x1152xf32> to vector<32x64xf32>
    %104 = vector.shape_cast %103 : vector<32x64xf32> to vector<2x16x64xf32>
    %105 = vector.extract_strided_slice %27 {offsets = [0, 576], sizes = [32, 64], strides = [1, 1]} : vector<32x1152xf32> to vector<32x64xf32>
    %106 = vector.shape_cast %105 : vector<32x64xf32> to vector<2x16x64xf32>
    %107 = vector.extract_strided_slice %27 {offsets = [0, 960], sizes = [32, 64], strides = [1, 1]} : vector<32x1152xf32> to vector<32x64xf32>
    %108 = vector.shape_cast %107 : vector<32x64xf32> to vector<2x16x64xf32>
    "tpu.trace_start"() <{level = 10 : i32, message = "bqd,bkd->bqk"}> : () -> ()
    %cst_34 = arith.constant dense<0.000000e+00> : vector<2x16x16xf32>
    %109 = tpu.matmul %104, %106, %cst_34 {dimension_numbers = #tpu.dot_dimension_numbers<[2], [2], [1], [1], [0, 0, 0, 1, 1, 1], [0], [0]>} : vector<2x16x64xf32>, vector<2x16x64xf32>, vector<2x16x16xf32> -> vector<2x16x16xf32>
    "tpu.trace_stop"() : () -> ()
    %110 = vector.broadcast %33 : vector<1x16x16xf32> to vector<2x16x16xf32>
    %111 = arith.addf %109, %110 : vector<2x16x16xf32>
    %cst_35 = arith.constant dense<0xFF800000> : vector<2x16xf32>
    %112 = vector.multi_reduction <maximumf>, %111, %cst_35 [2] : vector<2x16x16xf32> to vector<2x16xf32>
    %113 = vector.shape_cast %112 : vector<2x16xf32> to vector<2x16x1xf32>
    %114 = vector.broadcast %113 : vector<2x16x1xf32> to vector<2x16x16xf32>
    %115 = arith.subf %111, %114 : vector<2x16x16xf32>
    %116 = math.exp %115 : vector<2x16x16xf32>
    %cst_36 = arith.constant dense<0.000000e+00> : vector<2x16xf32>
    %117 = vector.multi_reduction <add>, %116, %cst_36 [2] : vector<2x16x16xf32> to vector<2x16xf32>
    %118 = vector.shape_cast %117 : vector<2x16xf32> to vector<2x16x1xf32>
    %cst_37 = arith.constant 1.000000e+00 : f32
    %119 = vector.broadcast %cst_37 : f32 to vector<2x16x1xf32>
    %120 = arith.divf %119, %118 : vector<2x16x1xf32>
    %121 = vector.broadcast %120 : vector<2x16x1xf32> to vector<2x16x16xf32>
    %122 = arith.mulf %116, %121 : vector<2x16x16xf32>
    "tpu.trace_start"() <{level = 10 : i32, message = "bqk,bkd->bqd"}> : () -> ()
    %cst_38 = arith.constant dense<0.000000e+00> : vector<2x16x64xf32>
    %123 = tpu.matmul %122, %108, %cst_38 {dimension_numbers = #tpu.dot_dimension_numbers<[2], [1], [1], [2], [0, 0, 0, 1, 1, 2], [0], [0]>} : vector<2x16x16xf32>, vector<2x16x64xf32>, vector<2x16x64xf32> -> vector<2x16x64xf32>
    "tpu.trace_stop"() : () -> ()
    %124 = vector.shape_cast %123 : vector<2x16x64xf32> to vector<32x64xf32>
    %c0_39 = arith.constant 0 : index
    %c192 = arith.constant 192 : index
    %125 = vector.load %arg14[%c0_39, %c192] : memref<32x384xf32, #tpu.memory_space<vmem>>, vector<32x64xf32>
    tpu.vector_store %arg14[%c0_39, %c192], %124 {strides = array<i32>} : memref<32x384xf32, #tpu.memory_space<vmem>>, vector<32x64xf32>,
    %126 = vector.extract_strided_slice %27 {offsets = [0, 256], sizes = [32, 64], strides = [1, 1]} : vector<32x1152xf32> to vector<32x64xf32>
    %127 = vector.shape_cast %126 : vector<32x64xf32> to vector<2x16x64xf32>
    %128 = vector.extract_strided_slice %27 {offsets = [0, 640], sizes = [32, 64], strides = [1, 1]} : vector<32x1152xf32> to vector<32x64xf32>
    %129 = vector.shape_cast %128 : vector<32x64xf32> to vector<2x16x64xf32>
    %130 = vector.extract_strided_slice %27 {offsets = [0, 1024], sizes = [32, 64], strides = [1, 1]} : vector<32x1152xf32> to vector<32x64xf32>
    %131 = vector.shape_cast %130 : vector<32x64xf32> to vector<2x16x64xf32>
    "tpu.trace_start"() <{level = 10 : i32, message = "bqd,bkd->bqk"}> : () -> ()
    %cst_40 = arith.constant dense<0.000000e+00> : vector<2x16x16xf32>
    %132 = tpu.matmul %127, %129, %cst_40 {dimension_numbers = #tpu.dot_dimension_numbers<[2], [2], [1], [1], [0, 0, 0, 1, 1, 1], [0], [0]>} : vector<2x16x64xf32>, vector<2x16x64xf32>, vector<2x16x16xf32> -> vector<2x16x16xf32>
    "tpu.trace_stop"() : () -> ()
    %133 = vector.broadcast %33 : vector<1x16x16xf32> to vector<2x16x16xf32>
    %134 = arith.addf %132, %133 : vector<2x16x16xf32>
    %cst_41 = arith.constant dense<0xFF800000> : vector<2x16xf32>
    %135 = vector.multi_reduction <maximumf>, %134, %cst_41 [2] : vector<2x16x16xf32> to vector<2x16xf32>
    %136 = vector.shape_cast %135 : vector<2x16xf32> to vector<2x16x1xf32>
    %137 = vector.broadcast %136 : vector<2x16x1xf32> to vector<2x16x16xf32>
    %138 = arith.subf %134, %137 : vector<2x16x16xf32>
    %139 = math.exp %138 : vector<2x16x16xf32>
    %cst_42 = arith.constant dense<0.000000e+00> : vector<2x16xf32>
    %140 = vector.multi_reduction <add>, %139, %cst_42 [2] : vector<2x16x16xf32> to vector<2x16xf32>
    %141 = vector.shape_cast %140 : vector<2x16xf32> to vector<2x16x1xf32>
    %cst_43 = arith.constant 1.000000e+00 : f32
    %142 = vector.broadcast %cst_43 : f32 to vector<2x16x1xf32>
    %143 = arith.divf %142, %141 : vector<2x16x1xf32>
    %144 = vector.broadcast %143 : vector<2x16x1xf32> to vector<2x16x16xf32>
    %145 = arith.mulf %139, %144 : vector<2x16x16xf32>
    "tpu.trace_start"() <{level = 10 : i32, message = "bqk,bkd->bqd"}> : () -> ()
    %cst_44 = arith.constant dense<0.000000e+00> : vector<2x16x64xf32>
    %146 = tpu.matmul %145, %131, %cst_44 {dimension_numbers = #tpu.dot_dimension_numbers<[2], [1], [1], [2], [0, 0, 0, 1, 1, 2], [0], [0]>} : vector<2x16x16xf32>, vector<2x16x64xf32>, vector<2x16x64xf32> -> vector<2x16x64xf32>
    "tpu.trace_stop"() : () -> ()
    %147 = vector.shape_cast %146 : vector<2x16x64xf32> to vector<32x64xf32>
    %c0_45 = arith.constant 0 : index
    %c256 = arith.constant 256 : index
    %148 = vector.load %arg14[%c0_45, %c256] : memref<32x384xf32, #tpu.memory_space<vmem>>, vector<32x64xf32>
    tpu.vector_store %arg14[%c0_45, %c256], %147 {strides = array<i32>} : memref<32x384xf32, #tpu.memory_space<vmem>>, vector<32x64xf32>,
    %149 = vector.extract_strided_slice %27 {offsets = [0, 320], sizes = [32, 64], strides = [1, 1]} : vector<32x1152xf32> to vector<32x64xf32>
    %150 = vector.shape_cast %149 : vector<32x64xf32> to vector<2x16x64xf32>
    %151 = vector.extract_strided_slice %27 {offsets = [0, 704], sizes = [32, 64], strides = [1, 1]} : vector<32x1152xf32> to vector<32x64xf32>
    %152 = vector.shape_cast %151 : vector<32x64xf32> to vector<2x16x64xf32>
    %153 = vector.extract_strided_slice %27 {offsets = [0, 1088], sizes = [32, 64], strides = [1, 1]} : vector<32x1152xf32> to vector<32x64xf32>
    %154 = vector.shape_cast %153 : vector<32x64xf32> to vector<2x16x64xf32>
    "tpu.trace_start"() <{level = 10 : i32, message = "bqd,bkd->bqk"}> : () -> ()
    %cst_46 = arith.constant dense<0.000000e+00> : vector<2x16x16xf32>
    %155 = tpu.matmul %150, %152, %cst_46 {dimension_numbers = #tpu.dot_dimension_numbers<[2], [2], [1], [1], [0, 0, 0, 1, 1, 1], [0], [0]>} : vector<2x16x64xf32>, vector<2x16x64xf32>, vector<2x16x16xf32> -> vector<2x16x16xf32>
    "tpu.trace_stop"() : () -> ()
    %156 = vector.broadcast %33 : vector<1x16x16xf32> to vector<2x16x16xf32>
    %157 = arith.addf %155, %156 : vector<2x16x16xf32>
    %cst_47 = arith.constant dense<0xFF800000> : vector<2x16xf32>
    %158 = vector.multi_reduction <maximumf>, %157, %cst_47 [2] : vector<2x16x16xf32> to vector<2x16xf32>
    %159 = vector.shape_cast %158 : vector<2x16xf32> to vector<2x16x1xf32>
    %160 = vector.broadcast %159 : vector<2x16x1xf32> to vector<2x16x16xf32>
    %161 = arith.subf %157, %160 : vector<2x16x16xf32>
    %162 = math.exp %161 : vector<2x16x16xf32>
    %cst_48 = arith.constant dense<0.000000e+00> : vector<2x16xf32>
    %163 = vector.multi_reduction <add>, %162, %cst_48 [2] : vector<2x16x16xf32> to vector<2x16xf32>
    %164 = vector.shape_cast %163 : vector<2x16xf32> to vector<2x16x1xf32>
    %cst_49 = arith.constant 1.000000e+00 : f32
    %165 = vector.broadcast %cst_49 : f32 to vector<2x16x1xf32>
    %166 = arith.divf %165, %164 : vector<2x16x1xf32>
    %167 = vector.broadcast %166 : vector<2x16x1xf32> to vector<2x16x16xf32>
    %168 = arith.mulf %162, %167 : vector<2x16x16xf32>
    "tpu.trace_start"() <{level = 10 : i32, message = "bqk,bkd->bqd"}> : () -> ()
    %cst_50 = arith.constant dense<0.000000e+00> : vector<2x16x64xf32>
    %169 = tpu.matmul %168, %154, %cst_50 {dimension_numbers = #tpu.dot_dimension_numbers<[2], [1], [1], [2], [0, 0, 0, 1, 1, 2], [0], [0]>} : vector<2x16x16xf32>, vector<2x16x64xf32>, vector<2x16x64xf32> -> vector<2x16x64xf32>
    "tpu.trace_stop"() : () -> ()
    %170 = vector.shape_cast %169 : vector<2x16x64xf32> to vector<32x64xf32>
    %c0_51 = arith.constant 0 : index
    %c320 = arith.constant 320 : index
    %171 = vector.load %arg14[%c0_51, %c320] : memref<32x384xf32, #tpu.memory_space<vmem>>, vector<32x64xf32>
    tpu.vector_store %arg14[%c0_51, %c320], %170 {strides = array<i32>} : memref<32x384xf32, #tpu.memory_space<vmem>>, vector<32x64xf32>,
    %c0_52 = arith.constant 0 : index
    %c0_53 = arith.constant 0 : index
    %172 = vector.load %arg14[%c0_52, %c0_53] : memref<32x384xf32, #tpu.memory_space<vmem>>, vector<32x384xf32>
    %c0_54 = arith.constant 0 : index
    %c0_55 = arith.constant 0 : index
    %173 = vector.load %arg5[%c0_54, %c0_55] : memref<384x384xf32, #tpu.memory_space<vmem>>, vector<384x384xf32>
    %cst_56 = arith.constant dense<0.000000e+00> : vector<32x384xf32>
    %174 = tpu.matmul %172, %173, %cst_56 {dimension_numbers = #tpu.dot_dimension_numbers<[1], [0], [0], [1], [0, 0, 1, 1], [], []>} : vector<32x384xf32>, vector<384x384xf32>, vector<32x384xf32> -> vector<32x384xf32>
    %c0_57 = arith.constant 0 : index
    %c0_58 = arith.constant 0 : index
    %175 = vector.load %arg6[%c0_57, %c0_58] : memref<1x384xf32, #tpu.memory_space<vmem>>, vector<1x384xf32>
    %176 = vector.broadcast %175 : vector<1x384xf32> to vector<32x384xf32>
    %177 = arith.addf %174, %176 : vector<32x384xf32>
    %178 = arith.addf %1, %177 : vector<32x384xf32>
    %c0_59 = arith.constant 0 : index
    %c0_60 = arith.constant 0 : index
    %179 = vector.load %arg7[%c0_59, %c0_60] : memref<1x384xf32, #tpu.memory_space<vmem>>, vector<1x384xf32>
    %c0_61 = arith.constant 0 : index
    %c0_62 = arith.constant 0 : index
    %180 = vector.load %arg8[%c0_61, %c0_62] : memref<1x384xf32, #tpu.memory_space<vmem>>, vector<1x384xf32>
    %cst_63 = arith.constant dense<0.000000e+00> : vector<32xf32>
    %181 = vector.multi_reduction <add>, %178, %cst_63 [1] : vector<32x384xf32> to vector<32xf32>
    %182 = vector.shape_cast %181 : vector<32xf32> to vector<32x1xf32>
    %cst_64 = arith.constant 3.840000e+02 : f32
    %183 = vector.broadcast %cst_64 : f32 to vector<32x1xf32>
    %184 = arith.divf %182, %183 : vector<32x1xf32>
    %185 = vector.broadcast %184 : vector<32x1xf32> to vector<32x384xf32>
    %186 = arith.subf %178, %185 : vector<32x384xf32>
    %187 = arith.mulf %186, %186 : vector<32x384xf32>
    %cst_65 = arith.constant dense<0.000000e+00> : vector<32xf32>
    %188 = vector.multi_reduction <add>, %187, %cst_65 [1] : vector<32x384xf32> to vector<32xf32>
    %189 = vector.shape_cast %188 : vector<32xf32> to vector<32x1xf32>
    %cst_66 = arith.constant 3.840000e+02 : f32
    %190 = vector.broadcast %cst_66 : f32 to vector<32x1xf32>
    %191 = arith.divf %189, %190 : vector<32x1xf32>
    %192 = vector.broadcast %184 : vector<32x1xf32> to vector<32x384xf32>
    %193 = arith.subf %178, %192 : vector<32x384xf32>
    %cst_67 = arith.constant 9.99999974E-6 : f32
    %194 = vector.broadcast %cst_67 : f32 to vector<32x1xf32>
    %195 = arith.addf %191, %194 : vector<32x1xf32>
    %196 = math.rsqrt %195 : vector<32x1xf32>
    %197 = vector.broadcast %196 : vector<32x1xf32> to vector<32x384xf32>
    %198 = arith.mulf %193, %197 : vector<32x384xf32>
    %199 = vector.broadcast %179 : vector<1x384xf32> to vector<32x384xf32>
    %200 = arith.mulf %198, %199 : vector<32x384xf32>
    %201 = vector.broadcast %180 : vector<1x384xf32> to vector<32x384xf32>
    %202 = arith.addf %200, %201 : vector<32x384xf32>
    %c0_68 = arith.constant 0 : index
    %c0_69 = arith.constant 0 : index
    %203 = vector.load %arg9[%c0_68, %c0_69] : memref<384x1536xf32, #tpu.memory_space<vmem>>, vector<384x1536xf32>
    %cst_70 = arith.constant dense<0.000000e+00> : vector<32x1536xf32>
    %204 = tpu.matmul %202, %203, %cst_70 {dimension_numbers = #tpu.dot_dimension_numbers<[1], [0], [0], [1], [0, 0, 1, 1], [], []>} : vector<32x384xf32>, vector<384x1536xf32>, vector<32x1536xf32> -> vector<32x1536xf32>
    %c0_71 = arith.constant 0 : index
    %c0_72 = arith.constant 0 : index
    %205 = vector.load %arg10[%c0_71, %c0_72] : memref<1x1536xf32, #tpu.memory_space<vmem>>, vector<1x1536xf32>
    %206 = vector.broadcast %205 : vector<1x1536xf32> to vector<32x1536xf32>
    %207 = arith.addf %204, %206 : vector<32x1536xf32>
    %cst_73 = arith.constant 0.000000e+00 : f32
    %208 = vector.broadcast %cst_73 : f32 to vector<32x1536xf32>
    %209 = arith.maximumf %207, %208 : vector<32x1536xf32>
    %c0_74 = arith.constant 0 : index
    %c0_75 = arith.constant 0 : index
    %210 = vector.load %arg11[%c0_74, %c0_75] : memref<1536x384xf32, #tpu.memory_space<vmem>>, vector<1536x384xf32>
    %cst_76 = arith.constant dense<0.000000e+00> : vector<32x384xf32>
    %211 = tpu.matmul %209, %210, %cst_76 {dimension_numbers = #tpu.dot_dimension_numbers<[1], [0], [0], [1], [0, 0, 1, 1], [], []>} : vector<32x1536xf32>, vector<1536x384xf32>, vector<32x384xf32> -> vector<32x384xf32>
    %c0_77 = arith.constant 0 : index
    %c0_78 = arith.constant 0 : index
    %212 = vector.load %arg12[%c0_77, %c0_78] : memref<1x384xf32, #tpu.memory_space<vmem>>, vector<1x384xf32>
    %213 = vector.broadcast %212 : vector<1x384xf32> to vector<32x384xf32>
    %214 = arith.addf %211, %213 : vector<32x384xf32>
    %215 = arith.addf %178, %214 : vector<32x384xf32>
    %216 = vector.shape_cast %215 : vector<32x384xf32> to vector<2x16x384xf32>
    %c0_79 = arith.constant 0 : index
    %c0_80 = arith.constant 0 : index
    %c0_81 = arith.constant 0 : index
    %217 = vector.load %arg13[%c0_79, %c0_80, %c0_81] : memref<2x16x384xf32, #tpu.memory_space<vmem>>, vector<2x16x384xf32>
    tpu.vector_store %arg13[%c0_79, %c0_80, %c0_81], %216 {strides = array<i32>} : memref<2x16x384xf32, #tpu.memory_space<vmem>>, vector<2x16x384xf32>,
    return
  }
  func.func @transform_0(%arg0: i32) -> (i32, i32, i32) {
    %c0_i32 = arith.constant 0 : i32
    %c0_i32_0 = arith.constant 0 : i32
    %c0_i32_1 = arith.constant 0 : i32
    return %arg0, %c0_i32, %c0_i32_0 : i32, i32, i32
  }
  func.func @transform_1(%arg0: i32) -> (i32, i32) {
    %c0_i32 = arith.constant 0 : i32
    %c0_i32_0 = arith.constant 0 : i32
    %c0_i32_1 = arith.constant 0 : i32
    return %c0_i32, %c0_i32_0 : i32, i32
  }
  func.func @transform_2(%arg0: i32) -> (i32, i32) {
    %c0_i32 = arith.constant 0 : i32
    %c0_i32_0 = arith.constant 0 : i32
    %c0_i32_1 = arith.constant 0 : i32
    return %c0_i32, %c0_i32_0 : i32, i32
  }
  func.func @transform_3(%arg0: i32) -> (i32, i32) {
    %c0_i32 = arith.constant 0 : i32
    %c0_i32_0 = arith.constant 0 : i32
    %c0_i32_1 = arith.constant 0 : i32
    return %c0_i32, %c0_i32_0 : i32, i32
  }
  func.func @transform_4(%arg0: i32) -> (i32, i32) {
    %c0_i32 = arith.constant 0 : i32
    %c0_i32_0 = arith.constant 0 : i32
    %c0_i32_1 = arith.constant 0 : i32
    return %c0_i32, %c0_i32_0 : i32, i32
  }
  func.func @transform_5(%arg0: i32) -> (i32, i32) {
    %c0_i32 = arith.constant 0 : i32
    %c0_i32_0 = arith.constant 0 : i32
    %c0_i32_1 = arith.constant 0 : i32
    return %c0_i32, %c0_i32_0 : i32, i32
  }
  func.func @transform_6(%arg0: i32) -> (i32, i32) {
    %c0_i32 = arith.constant 0 : i32
    %c0_i32_0 = arith.constant 0 : i32
    %c0_i32_1 = arith.constant 0 : i32
    return %c0_i32, %c0_i32_0 : i32, i32
  }
  func.func @transform_7(%arg0: i32) -> (i32, i32) {
    %c0_i32 = arith.constant 0 : i32
    %c0_i32_0 = arith.constant 0 : i32
    %c0_i32_1 = arith.constant 0 : i32
    return %c0_i32, %c0_i32_0 : i32, i32
  }
  func.func @transform_8(%arg0: i32) -> (i32, i32) {
    %c0_i32 = arith.constant 0 : i32
    %c0_i32_0 = arith.constant 0 : i32
    %c0_i32_1 = arith.constant 0 : i32
    return %c0_i32, %c0_i32_0 : i32, i32
  }
  func.func @transform_9(%arg0: i32) -> (i32, i32) {
    %c0_i32 = arith.constant 0 : i32
    %c0_i32_0 = arith.constant 0 : i32
    %c0_i32_1 = arith.constant 0 : i32
    return %c0_i32, %c0_i32_0 : i32, i32
  }
  func.func @transform_10(%arg0: i32) -> (i32, i32) {
    %c0_i32 = arith.constant 0 : i32
    %c0_i32_0 = arith.constant 0 : i32
    %c0_i32_1 = arith.constant 0 : i32
    return %c0_i32, %c0_i32_0 : i32, i32
  }
  func.func @transform_11(%arg0: i32) -> (i32, i32) {
    %c0_i32 = arith.constant 0 : i32
    %c0_i32_0 = arith.constant 0 : i32
    %c0_i32_1 = arith.constant 0 : i32
    return %c0_i32, %c0_i32_0 : i32, i32
  }
  func.func @transform_12(%arg0: i32) -> (i32, i32, i32) {
    %c0_i32 = arith.constant 0 : i32
    %c0_i32_0 = arith.constant 0 : i32
    %c0_i32_1 = arith.constant 0 : i32
    return %arg0, %c0_i32, %c0_i32_0 : i32, i32, i32
  }
}

</mosaic_0001>

<bundles_post_ra>
// kernel: tpu_custom_call.1
= control target key start
LH: loop header
LB: loop body
LE: loop exit
PB: predicated region body
PF: predicated region fallthrough
CT: control target
= control target key end

     0   :  { %s11414_s0 = inlined_call_operand.hbm [shape: f32[4,16,384], index: 0, kind: input, shape index: {}]   ;;  %s11415_s1 = inlined_call_operand.hbm [shape: f32[1,384], index: 1, kind: input, shape index: {}]   ;;  %s11416_s2 = inlined_call_operand.hbm [shape: f32[1,384], index: 2, kind: input, shape index: {}]   ;;  %s11417_s3 = inlined_call_operand.hbm [shape: f32[384,1152], index: 3, kind: input, shape index: {}]   ;;  %s11418_s4 = inlined_call_operand.hbm [shape: f32[384,384], index: 4, kind: input, shape index: {}]   ;;  %s11419_s5 = inlined_call_operand.hbm [shape: f32[1,384], index: 5, kind: input, shape index: {}]   ;;  %s11420_s6 = inlined_call_operand.hbm [shape: f32[1,384], index: 6, kind: input, shape index: {}]   ;;  %s11421_s7 = inlined_call_operand.hbm [shape: f32[1,384], index: 7, kind: input, shape index: {}]   ;;  %s11422_s8 = inlined_call_operand.hbm [shape: f32[384,1536], index: 8, kind: input, shape index: {}]   ;;  %s11423_s9 = inlined_call_operand.hbm [shape: f32[1,1536], index: 9, kind: input, shape index: {}]   ;;  %s11424_s10 = inlined_call_operand.hbm [shape: f32[1536,384], index: 10, kind: input, shape index: {}]   ;;  %s11425_s11 = inlined_call_operand.hbm [shape: f32[1,384], index: 11, kind: input, shape index: {}]   ;;  %s11426_s12 = inlined_call_operand.hbm [shape: f32[4,16,384], index: 12, kind: output, shape index: {}]  }
   0x1   :  { %11483 = sst [smem:[#allocation94_spill]] %s11415_s1 }
   0x2   :  { %11484 = sst [smem:[#allocation95_spill]] %s11416_s2 }
   0x3   :  { %11485 = sst [smem:[#allocation96_spill]] %s11417_s3 }
   0x4   :  { %11486 = sst [smem:[#allocation97_spill]] %s11418_s4 }
   0x5   :  { %11487 = sst [smem:[#allocation98_spill]] %s11419_s5 }
   0x6   :  { %11488 = sst [smem:[#allocation99_spill]] %s11420_s6 }
   0x7   :  { %11489 = sst [smem:[#allocation100_spill]] %s11421_s7 }
   0x8   :  { %11490 = sst [smem:[#allocation101_spill]] %s11426_s12 }
   0x9   :  { %17 = vsyncpa [#allocation4], 0 }
   0xa   :  { %19 = vsyncpa [#allocation4 + $0x1], 0 }
   0xb   :  { %20 = vsyncpa [#allocation7], 0 }
   0xc   :  { %21 = vsyncpa [#allocation10], 0 }
   0xd   :  { %22 = vsyncpa [#allocation13], 0 }
   0xe   :  { %23 = vsyncpa [#allocation16], 0 }
   0xf   :  { %24 = vsyncpa [#allocation19], 0 }
  0x10   :  { %25 = vsyncpa [#allocation22], 0 }
  0x11   :  { %26 = vsyncpa [#allocation5], 0 }
  0x12   :  { %28 = vsyncpa [#allocation5 + $0x1], 0  ;;  %s8653_s21 = smov 0   ;;  %s8655_s22 = smov 0  }
  0x13   :  { %s8657_s23 = smov 0   ;;  %s8659_s24 = smov 0  }
  0x14 LB: > { %s11491_s1 = sld [smem:[#allocation94_spill]]  ;;  %s8677_s28 = sadd.s32 4294967295, %s8564_s24   ;;  %s8564_s24 = sphi %s8659_s24, %s11709_s24   ;;  %s8560_s23 = sphi %s8657_s23, %s11708_s23   ;;  %s8556_s22 = sphi %s8655_s22, %s11707_s22   ;;  %s8552_s21 = sphi %s8653_s21, %s11706_s21  }
  0x15   : > { %p7664_p0 = scmp.ge.s32.totalorder %s8564_s24, 1  ;;  %p55_p1 = scmp.eq.s32.totalorder %s8677_s28, 0 }
  0x16   : > { %p322_p2 = scmp.lt.s32.totalorder %s8564_s24, 3  ;;  %s8566_s30 = smov [#allocation6]  }
  0x17   : > { %s336_s13 = sshll.u32 %s8566_s30, 4  ;;  %s11494_s3 = sld [smem:[#allocation96_spill]]  ;;  %s337_s13 = int_to_ptr.vmem [resolvable:$true] %s336_s13 }
  0x18   : > { %p8682_p3 = pnand %p7664_p0, %p322_p2  ;;  %s8567_s18 = smov [#allocation9]  }
  0x19   : > { %s359_s19 = sshll.u32 %s8567_s18, 4  ;;  %s8568_s20 = smov 1152   ;;  %s360_s19 = int_to_ptr.vmem [resolvable:$true] %s359_s19 }
  0x1a   : > { %s334_s27 = sshll.u32 %s11491_s1, 4  ;;  %p7837_p5 = pneg %p8682_p3  ;;  %s335_s27 = int_to_ptr.hbm [resolvable:$true] %s334_s27 }
  0x1b   : > { %s11492_s29 = scalar_select %p8682_p3, 1, 0 }
  0x1c   : > { %p8694_p6 = pnand %p7837_p5, %p55_p1  ;;  %s8569_s25 = smov 72  }
  0x1d   : > { %11493 = sst [smem:[#allocation32_spill]] %s11492_s29  ;;  %s357_s16 = sshll.u32 %s11494_s3, 4  ;;  %s358_s16 = int_to_ptr.hbm [resolvable:$true] %s357_s16 }
  0x1e   : > { %7840 = dma.hbm_to_vmem [thread:$0]  (!%p8694_p6), %s335_s27, 48, %s337_s13, [#allocation7]  }
  0x1f   : > { %7846 = dma.hbm_to_vmem [thread:$0]  (!%p8694_p6), %s358_s16, 55296, %s360_s19, [#allocation10], %s8568_s20, %s8568_s20, %s8569_s25  }
  0x20   : > { %s11496_s5 = sld [smem:[#allocation98_spill]]  ;;  %s8570_s15 = smov [#allocation12]  }
  0x21   : > { %s388_s1 = sshll.u32 %s8570_s15, 4  ;;  %s11497_s7 = sld [smem:[#allocation100_spill]]  ;;  %s389_s1 = int_to_ptr.vmem [resolvable:$true] %s388_s1 }
  0x22   : > { %s8571_s27 = smov [#allocation15]   ;;  %s436_s19 = sshll.u32 %s11423_s9, 4  ;;  %s437_s19 = int_to_ptr.hbm [resolvable:$true] %s436_s19 }
  0x23   : > { %s412_s13 = sshll.u32 %s8571_s27, 4  ;;  %s11498_s2 = sld [smem:[#allocation95_spill]]  ;;  %s413_s13 = int_to_ptr.vmem [resolvable:$true] %s412_s13 }
  0x24   : > { %s8572_s3 = smov [#allocation18]   ;;  %s11499_s4 = sld [smem:[#allocation97_spill]] }
  0x25   : > { %s438_s12 = sshll.u32 %s8572_s3, 4  ;;  %s11500_s6 = sld [smem:[#allocation99_spill]]  ;;  %s439_s12 = int_to_ptr.vmem [resolvable:$true] %s438_s12 }
  0x26   : > { %s386_s14 = sshll.u32 %s11496_s5, 4  ;;  %s11429_s25 = smov 384   ;;  %s387_s14 = int_to_ptr.hbm [resolvable:$true] %s386_s14 }
  0x27   : > { %s410_s18 = sshll.u32 %s11497_s7, 4  ;;  %s8577_s3 = smov [#allocation14]   ;;  %s411_s18 = int_to_ptr.hbm [resolvable:$true] %s410_s18 }
  0x28   : > { %7852 = dma.hbm_to_vmem [thread:$0]  (!%p8694_p6), %s387_s14, 48, %s389_s1, [#allocation13]  }
  0x29   : > { %7858 = dma.hbm_to_vmem [thread:$0]  (!%p8694_p6), %s411_s18, 48, %s413_s13, [#allocation16]  }
  0x2a   : > { %s346_s26 = sshll.u32 %s11498_s2, 4  ;;  %s8573_s1 = smov [#allocation8]   ;;  %s347_s26 = int_to_ptr.hbm [resolvable:$true] %s346_s26 }
  0x2b   : > { %7864 = dma.hbm_to_vmem [thread:$0]  (!%p8694_p6), %s437_s19, 192, %s439_s12, [#allocation19]  }
  0x2c   : > { %s348_s30 = sshll.u32 %s8573_s1, 4  ;;  %s371_s15 = sshll.u32 %s11499_s4, 4  ;;  %s349_s30 = int_to_ptr.vmem [resolvable:$true] %s348_s30  ;;  %s372_s15 = int_to_ptr.hbm [resolvable:$true] %s371_s15 }
  0x2d   : > { %7843 = dma.hbm_to_vmem [thread:$0]  (!%p8694_p6), %s347_s26, 48, %s349_s30, [#allocation7]  }
  0x2e   : > { %s8574_s18 = smov [#allocation11]   ;;  %s398_s20 = sshll.u32 %s11500_s6, 4  ;;  %s399_s20 = int_to_ptr.hbm [resolvable:$true] %s398_s20 }
  0x2f   : > { %s373_s27 = sshll.u32 %s8574_s18, 4  ;;  %s11430_s19 = smov 24   ;;  %s374_s27 = int_to_ptr.vmem [resolvable:$true] %s373_s27 }
  0x30   : > { %7849 = dma.hbm_to_vmem [thread:$0]  (!%p8694_p6), %s372_s15, 18432, %s374_s27, [#allocation10], %s11429_s25, %s11429_s25, %s11430_s19  }
  0x31   : > { %s400_s12 = sshll.u32 %s8577_s3, 4  ;;  %s421_s30 = sshll.u32 %s11422_s8, 4  ;;  %s401_s12 = int_to_ptr.vmem [resolvable:$true] %s400_s12  ;;  %s422_s30 = int_to_ptr.hbm [resolvable:$true] %s421_s30 }
  0x32   : > { %7855 = dma.hbm_to_vmem [thread:$0]  (!%p8694_p6), %s399_s20, 48, %s401_s12, [#allocation13]  }
  0x33   : > { %s8578_s29 = smov [#allocation17]   ;;  %s447_s15 = sshll.u32 %s11424_s10, 4  ;;  %s448_s15 = int_to_ptr.hbm [resolvable:$true] %s447_s15 }
  0x34   : > { %s423_s14 = sshll.u32 %s8578_s29, 4  ;;  %s8579_s27 = smov 1536   ;;  %s424_s14 = int_to_ptr.vmem [resolvable:$true] %s423_s14 }
  0x35   : > { %s8580_s16 = smov 96   ;;  %s8581_s20 = smov [#allocation20]  }
  0x36   : > { %7861 = dma.hbm_to_vmem [thread:$0]  (!%p8694_p6), %s422_s30, 73728, %s424_s14, [#allocation16], %s8579_s27, %s8579_s27, %s8580_s16  }
  0x37   : > { %s449_s3 = sshll.u32 %s8581_s20, 4  ;;  %s462_s26 = sshll.u32 %s11425_s11, 4  ;;  %s450_s3 = int_to_ptr.vmem [resolvable:$true] %s449_s3  ;;  %s463_s26 = int_to_ptr.hbm [resolvable:$true] %s462_s26 }
  0x38   : > { %7867 = dma.hbm_to_vmem [thread:$0]  (!%p8694_p6), %s448_s15, 73728, %s450_s3, [#allocation19], %s11429_s25, %s11429_s25, %s11430_s19  }
  0x39   : > { %s8582_s30 = smov [#allocation21]   ;;  %s7663_s14 = sadd.s32 4294967294, %s8564_s24  }
  0x3a   : > { %s464_s29 = sshll.u32 %s8582_s30, 4  ;;  %s8755_s18 = sadd.s32 1, %s8564_s24   ;;  %s465_s29 = int_to_ptr.vmem [resolvable:$true] %s464_s29 }
  0x3b   : > { %7870 = dma.hbm_to_vmem [thread:$0]  (!%p8694_p6), %s463_s26, 48, %s465_s29, [#allocation22]  }
  0x3c   : > { %s41_s13 = sadd.s32 1, %s8560_s23  ;;  %s38_s27 = ssub.s32 %s8564_s24, %s8755_s18 }
  0x3d   : > { %p48_p7 = scmp.ne.s32.totalorder %s8560_s23, %s8556_s22  ;;  %p39_p8 = scmp.eq.s32.totalorder %s38_s27, 0 }
  0x3e   : > { %p49_p9 = scmp.eq.s32.totalorder %s8564_s24, 0  ;;  %p54_p10 = scmp.ne.s32.totalorder %s8556_s22, %s8552_s21 }
  0x3f   : > { %p309_p11 = scmp.eq.s32.totalorder %s8677_s28, 1  ;;  %p315_p2 = scmp.eq.s32.totalorder %s7663_s14, 1 }
  0x40   : > { %s8767_s15 = scalar_select %p39_p8, %s8560_s23, %s41_s13  }
  0x41   : > { %p50_p12 = por %p49_p9, %p48_p7  ;;  %p8771_p13 = por %p55_p1, %p54_p10 }
  0x42   : > { %p8775_p0 = por %p309_p11, %p48_p7  ;;  %p7890_p5 = scmp.lt.s32.totalorder %s8564_s24, 2 }
  0x43   : > { %s475_s20 = sand.u32 1, %s8560_s23   ;;  %p8781_p6 = por %p315_p2, %p54_p10 }
  0x44   : > { %s7785_s12 = smul.u32 96, %s475_s20  ;;  %p8785_p8 = pnand %p7890_p5, %p50_p12 }
  0x45   : > { %s7786_s26 = smul.u32 96, %s8564_s24  ;;  %s476_s19 = scalar_lea.sflag [#allocation4], %s475_s20 }
  0x46   : > { %s479_s27 = scalar_lea.vmem [#allocation3], %s7785_s12  ;;  %p8448_p9 = pneg %p8785_p8 }
  0x47   : > { %s485_s13 = scalar_lea.hbm %s11414_s0, %s7786_s26  ;;  %s488_s25 = sshll.u32 %s479_s27, 4  ;;  %s489_s25 = int_to_ptr.vmem [resolvable:$true] %s488_s25 }
  0x48   : > { %s486_s14 = sshll.u32 %s485_s13, 4  ;;  %s8451_s7 = scalar_lea.hbm %s11414_s0, 192  ;;  %s487_s14 = int_to_ptr.hbm [resolvable:$true] %s486_s14 }
  0x49   : > { %s8444_s2 = sshra.s32 %s487_s14, 4  ;;  %s8445_s2 = int_to_ptr.hbm [resolvable:$true] %s8444_s2 }
  0x4a   : > { %s8446_s4 = scalar_lea.hbm %s8445_s2, 96  ;;  %p8452_p12 = scmp.lt.s32.totalorder %s8445_s2, %s11414_s0 }
  0x4b   : > { %p8447_p7 = scmp.ne.s32.totalorder %s8445_s2, %s8446_s4  ;;  %p8453_p2 = scmp.lt.s32.totalorder %s8451_s7, %s8446_s4 }
  0x4d   : > { %p8449_p10 = pnand %p8448_p9, %p8447_p7  ;;  %p8454_p5 = por %p8453_p2, %p8452_p12 }
  0x4f   : > { %p8450_p11 = pneg %p8449_p10 }
  0x51   : > { %p8455_p4 = pnand %p8454_p5, %p8450_p11 }
  0x53   : > { %8458 = shalt.err (!%p8455_p4)
}
  0x54   : > { %s11505_s20 = smov 24   ;;  %s11506_s12 = smov 384  }
  0x55   : > { %7874 = dma.hbm_to_vmem [thread:$0]  (!%p8785_p8), %s487_s14, 1536, %s489_s25, %s476_s19, %s11506_s12, %s11506_s12, %s11505_s20  }
  0x56   : > { %500 = sbr.rel (%p8682_p3) target bundleno = 2775 (0xad7), region = 68 }
  0x5b   : > { %s8809_s5 = sand.u32 1, %s8556_s22  }
  0x5c   : > { %s7787_s2 = smul.u32 96, %s8809_s5  ;;  %s503_s4 = scalar_lea.sflag [#allocation4], %s8809_s5 }
  0x5e   : > { %s8815_s6 = scalar_lea.vmem [#allocation3], %s7787_s2 }
  0x5f   : > { %8519 = dma.done.wait (%p8771_p13), %s503_s4, 1536  }
  0x60   : > { %8521 = vsyncadd (%p8771_p13), %s503_s4, 4294965760 }
  0x61   : > { %8523 = dma.done.wait (%p55_p1), [#allocation7], 96  }
  0x62   : > { %8525 = vsyncadd (%p55_p1), [#allocation7], 4294967200 }
  0x63   : > { %8527 = dma.done.wait (%p55_p1), [#allocation10], 73728  }
  0x64   : > { %8529 = vsyncadd (%p55_p1), [#allocation10], 4294893568 }
  0x65   : > { %8531 = dma.done.wait (%p55_p1), [#allocation13], 96  }
  0x66   : > { %8533 = vsyncadd (%p55_p1), [#allocation13], 4294967200 }
  0x67   : > { %8535 = dma.done.wait (%p55_p1), [#allocation16], 73776  }
  0x68   : > { %8537 = vsyncadd (%p55_p1), [#allocation16], 4294893520 }
  0x69   : > { %8539 = dma.done.wait (%p55_p1), [#allocation19], 73920  }
  0x6a   : > { %8541 = vsyncadd (%p55_p1), [#allocation19], 4294893376 }
  0x6b   : > { %8543 = dma.done.wait (%p55_p1), [#allocation22], 48  }
  0x6c   : > { %8545 = vsyncadd (%p55_p1), [#allocation22], 4294967248  ;;  %v611_v0 = vld [vmem:[%s8815_s6 + $0x30] sm:$0xff]  ;;  %v612_v1 = vld [vmem:[%s8815_s6 + $0x38] sm:$0xff]  ;;  %v8583_v20 = vmov 384.0   ;;  %s8584_s7 = smov 64  }
  0x6d   : > { %v613_v2 = vld [vmem:[%s8815_s6 + $0x40] sm:$0xff]  ;;  %v627_v3 = vadd.f32 %v612_v1, %v611_v0  ;;  %v606_v5 = vld [vmem:[%s8815_s6 + $0x8] sm:$0xff]  ;;  %v607_v6 = vld [vmem:[%s8815_s6 + $0x10] sm:$0xff]  ;;  %7987 = vrcp.f32 %v8583_v20  ;;  %vm2008_vm13 = vcmask 523264   ;;  %vm2079_vm15 = vcmask 130048   ;;  %s11198_s25 = scalar_lea.vmem [#allocation23], %s7787_s2 }
  0x6e   : > { %v605_v4 = vld [vmem:[%s8815_s6] sm:$0xff]  ;;  %v8852_v8 = vld [vmem:[%s8815_s6 + $0x48] sm:$0xff]  ;;  %v8855_v9 = vld [vmem:[%s8815_s6 + $0x50] sm:$0xff]  ;;  %s7788_s19 = smul.u32 96, %s8677_s28  ;;  %s11703_s13 = sld [smem:[#allocation101_spill]] }
  0x6f   : > { %v619_v7 = vadd.f32 %v606_v5, %v605_v4  ;;  %v628_v10 = vadd.f32 %v627_v3, %v613_v2  ;;  %v8858_v11 = vld [vmem:[%s8815_s6 + $0x18] sm:$0xff]  ;;  %v8861_v12 = vld [vmem:[%s8815_s6 + $0x20] sm:$0xff]  ;;  %v631_v14 = vadd.f32 %v8855_v9, %v8852_v8  ;;  %v610_v17 = vld [vmem:[%s8815_s6 + $0x28] sm:$0xff]  ;;  %s7482_s14 = sshll.u32 %s11198_s25, 4  ;;  %s7469_s28 = scalar_lea.sflag [#allocation5], %s8809_s5  ;;  %s7483_s14 = int_to_ptr.vmem [resolvable:$true] %s7482_s14 }
  0x70   : > { %v616_v15 = vld [vmem:[%s8815_s6 + $0x58] sm:$0xff]  ;;  %v623_v16 = vadd.f32 %v8861_v12, %v8858_v11  ;;  %v919_v24 = vld [vmem:[#allocation9 + $0x438] sm:$0xff]  ;;  %v920_v27 = vld [vmem:[#allocation9 + $0x440] sm:$0xff] }
  0x71   : > { %v620_v13 = vadd.f32 %v619_v7, %v607_v6  ;;  %629 = vadd.xlane.f32.xlu1 %v628_v10  ;;  %v632_v18 = vadd.f32 %v631_v14, %v616_v15  ;;  %v1063_v25 = vld [vmem:[#allocation9 + $0x8b8] sm:$0xff]  ;;  %1216 = vmatpush.msra.mxu0 %v919_v24  ;;  %v910_v28 = vld [vmem:[#allocation9 + $0x3f0] sm:$0xff] }
  0x72   : > { %v624_v19 = vadd.f32 %v623_v16, %v610_v17  ;;  %v1207_v26 = vld [vmem:[#allocation9 + $0xd38] sm:$0xff]  ;;  %1245 = vmatpush.msra.mxu1 %v1063_v25  ;;  %v1054_v29 = vld [vmem:[#allocation9 + $0x870] sm:$0xff]  ;;  %1303 = vmatpush.msra.mxu3 %v920_v27  ;;  %v1036_v16 = vld [vmem:[#allocation9 + $0x7e0] sm:$0xff] }
  0x73   : > { %621 = vadd.xlane.f32.xlu0 %v620_v13  ;;  %v7988_v21 = vpop.eup %7987  ;;  %1274 = vmatpush.msra.mxu2 %v1207_v26  ;;  %v1198_v31 = vld [vmem:[#allocation9 + $0xcf0] sm:$0xff]  ;;  %v911_v32 = vld [vmem:[#allocation9 + $0x3f8] sm:$0xff]  ;;  %v1189_v13 = vld [vmem:[#allocation9 + $0xca8] sm:$0xff] }
  0x74   : > { %v636_v22 = vmul.f32 384.0, %v7988_v21  ;;  %1217 = vmatpush.msra.mxu0 %v910_v28  ;;  %1246 = vmatpush.msra.mxu1 %v1054_v29  ;;  %vm640_vm0 = vweird.f32 %v7988_v21  ;;  %v902_v14 = vld [vmem:[#allocation9 + $0x3b0] sm:$0xff]  ;;  %v1027_v20 = vld [vmem:[#allocation9 + $0x798] sm:$0xff]  ;;  %v865_v27 = vld [vmem:[#allocation9 + $0x288] sm:$0xff]  ;;  %s7481_s27 = scalar_lea.hbm %s11703_s13, %s7788_s19  ;;  %s8494_s2 = scalar_lea.hbm %s11703_s13, 192 }
  0x75   : > { %1275 = vmatpush.msra.mxu2 %v1198_v31  ;;  %1304 = vmatpush.msra.mxu3 %v911_v32  ;;  %v1018_v24 = vld [vmem:[#allocation9 + $0x750] sm:$0xff]  ;;  %v875_v26 = vld [vmem:[#allocation9 + $0x2d8] sm:$0xff]  ;;  %v1009_v28 = vld [vmem:[#allocation9 + $0x708] sm:$0xff]  ;;  %s7484_s30 = sshll.u32 %s7481_s27, 4  ;;  %s7485_s30 = int_to_ptr.hbm [resolvable:$true] %s7484_s30 }
  0x76   : > { %v637_v23 = vsub.f32 1.0, %v636_v22  ;;  %v884_v22 = vld [vmem:[#allocation9 + $0x320] sm:$0xff]  ;;  %v1162_v25 = vld [vmem:[#allocation9 + $0xbd0] sm:$0xff]  ;;  %v1153_v29 = vld [vmem:[#allocation9 + $0xb88] sm:$0xff]  ;;  %s8488_s26 = sshra.s32 %s7485_s30, 4  ;;  %s8489_s26 = int_to_ptr.hbm [resolvable:$true] %s8488_s26 }
  0x77   : > { %1276 = vmatpush.msra.mxu2 %v1189_v13  ;;  %1305 = vmatpush.msra.mxu3 %v902_v14  ;;  %v856_v31 = vld [vmem:[#allocation9 + $0x240] sm:$0xff]  ;;  %s8490_s20 = scalar_lea.hbm %s8489_s26, 96  ;;  %p8495_p13 = scmp.lt.s32.totalorder %s8489_s26, %s11703_s13 }
  0x78   : > { %v638_v30 = vmul.f32 %v7988_v21, %v637_v23  ;;  %v874_v23 = vld [vmem:[#allocation9 + $0x2d0] sm:$0xff]  ;;  %v1000_v32 = vld [vmem:[#allocation9 + $0x6c0] sm:$0xff]  ;;  %p8491_p1 = scmp.ne.s32.totalorder %s8489_s26, %s8490_s20  ;;  %p8496_p8 = scmp.lt.s32.totalorder %s8494_s2, %s8490_s20 }
  0x79   : > { %633 = vadd.xlane.f32.xlu1 %v632_v18  ;;  %v893_v18 = vld [vmem:[#allocation9 + $0x368] sm:$0xff]  ;;  %v928_v13 = vld [vmem:[#allocation9 + $0x480] sm:$0xff] }
  0x7a   : > { %v639_v33 = vadd.f32 %v7988_v21, %v638_v30  ;;  %1306 = vmatpush.msra.mxu3 %v893_v18  ;;  %v866_v30 = vld [vmem:[#allocation9 + $0x290] sm:$0xff]  ;;  %v1072_v14 = vld [vmem:[#allocation9 + $0x900] sm:$0xff]  ;;  %p8492_p3 = pnand %p8491_p1, %p8775_p0  ;;  %p8497_p7 = por %p8496_p8, %p8495_p13 }
  0x7b   : > { %625 = vadd.xlane.f32.xlu0 %v624_v19  ;;  %v883_v19 = vld [vmem:[#allocation9 + $0x318] sm:$0xff]  ;;  %v1208_v18 = vld [vmem:[#allocation9 + $0xd40] sm:$0xff] }
  0x7c   : > { %v8869_v34 = vsel %vm640_vm0, %v7988_v21, %v639_v33  ;;  %v1171_v21 = vld [vmem:[#allocation9 + $0xc18] sm:$0xff]  ;;  %1307 = vmatpush.msra.mxu3 %v884_v22  ;;  %v1144_v33 = vld [vmem:[#allocation9 + $0xb40] sm:$0xff]  ;;  %v1065_v22 = vld [vmem:[#allocation9 + $0x8c8] sm:$0xff]  ;;  %p8493_p4 = pneg %p8492_p3 }
  0x7d   : > { %11508 = vst [vmem:[#allocation33_spill] sm:$0xff] %v8869_v34 }
  0x7e   : > { %1308 = vmatpush.msra.mxu3 %v875_v26  ;;  %v912_v26 = vld [vmem:[#allocation9 + $0x400] sm:$0xff]  ;;  %p8498_p9 = pnand %p8497_p7, %p8493_p4 }
  0x80   : > { %1309 = vmatpush.msra.mxu3 %v866_v30  ;;  %v1046_v30 = vld [vmem:[#allocation9 + $0x830] sm:$0xff] }
  0xe4   : > { %v630_v35 = vpop.xlane.xlu1 %629 }
  0xe5   : > { %v644_v36 = vmul.f32 %v8869_v34, %v630_v35  ;;  %v857_v35 = vld [vmem:[#allocation9 + $0x248] sm:$0xff] }
  0xe6   : > { %v622_v37 = vpop.xlane.xlu0 %621  ;;  %1310 = vmatpush.msra.mxu3 %v857_v35  ;;  %v1037_v35 = vld [vmem:[#allocation9 + $0x7e8] sm:$0xff] }
  0xe7   : > { %v642_v38 = vmul.f32 %v8869_v34, %v622_v37  ;;  %v8873_v39 = vsub.f32 %v611_v0, %v644_v36  ;;  %v8875_v40 = vsub.f32 %v612_v1, %v644_v36  ;;  %v8877_v41 = vsub.f32 %v613_v2, %v644_v36  ;;  %v847_v36 = vld [vmem:[#allocation9 + $0x1f8] sm:$0xff] }
  0xe8   : > { %v991_v37 = vld [vmem:[#allocation9 + $0x678] sm:$0xff] }
  0xe9   : > { %v8879_v42 = vsub.f32 %v605_v4, %v642_v38  ;;  %v8881_v43 = vsub.f32 %v606_v5, %v642_v38  ;;  %v8883_v44 = vsub.f32 %v607_v6, %v642_v38  ;;  %v664_v45 = vmul.f32 %v8873_v39, %v8873_v39  ;;  %v1135_v38 = vld [vmem:[#allocation9 + $0xaf8] sm:$0xff] }
  0xea   : > { %v665_v46 = vmul.f32 %v8875_v40, %v8875_v40  ;;  %v666_v47 = vmul.f32 %v8877_v41, %v8877_v41 }
  0xeb   : > { %v658_v48 = vmul.f32 %v8879_v42, %v8879_v42  ;;  %v659_v49 = vmul.f32 %v8881_v43, %v8881_v43  ;;  %v660_v52 = vmul.f32 %v8883_v44, %v8883_v44 }
  0xec   : > { %v678_v50 = vadd.f32 %v665_v46, %v664_v45  ;;  %v634_v51 = vpop.xlane.xlu1 %633  ;;  %v848_v45 = vld [vmem:[#allocation9 + $0x200] sm:$0xff]  ;;  %v838_v46 = vld [vmem:[#allocation9 + $0x1b0] sm:$0xff] }
  0xed   : > { %v670_v53 = vadd.f32 %v659_v49, %v658_v48  ;;  %v645_v54 = vmul.f32 %v8869_v34, %v634_v51  ;;  %1311 = vmatpush.msra.mxu3 %v848_v45  ;;  %v1126_v48 = vld [vmem:[#allocation9 + $0xab0] sm:$0xff]  ;;  %v839_v49 = vld [vmem:[#allocation9 + $0x1b8] sm:$0xff]  ;;  %v973_v51 = vld [vmem:[#allocation9 + $0x5e8] sm:$0xff] }
  0xee   : > { %v626_v55 = vpop.xlane.xlu0 %625  ;;  %v679_v56 = vadd.f32 %v678_v50, %v666_v47  ;;  %v982_v47 = vld [vmem:[#allocation9 + $0x630] sm:$0xff]  ;;  %v829_v50 = vld [vmem:[#allocation9 + $0x168] sm:$0xff] }
  0xef   : > { %v643_v57 = vmul.f32 %v8869_v34, %v626_v55  ;;  %v671_v58 = vadd.f32 %v670_v53, %v660_v52  ;;  %v8900_v59 = vsub.f32 %v8852_v8, %v645_v54  ;;  %v8903_v60 = vsub.f32 %v8855_v9, %v645_v54  ;;  %1312 = vmatpush.msra.mxu3 %v839_v49  ;;  %v1117_v52 = vld [vmem:[#allocation9 + $0xa68] sm:$0xff]  ;;  %v830_v53 = vld [vmem:[#allocation9 + $0x170] sm:$0xff]  ;;  %v964_v55 = vld [vmem:[#allocation9 + $0x5a0] sm:$0xff] }
  0xf0   : > { %v8905_v61 = vsub.f32 %v616_v15, %v645_v54  ;;  %680 = vadd.xlane.f32.xlu0 %v679_v56  ;;  %v892_v15 = vld [vmem:[#allocation9 + $0x360] sm:$0xff] }
  0xf1   : > { %v8908_v62 = vsub.f32 %v8858_v11, %v643_v57  ;;  %v8911_v63 = vsub.f32 %v8861_v12, %v643_v57  ;;  %v8913_v0 = vsub.f32 %v610_v17, %v643_v57  ;;  %672 = vadd.xlane.f32.xlu2 %v671_v58  ;;  %v667_v1 = vmul.f32 %v8900_v59, %v8900_v59  ;;  %v901_v11 = vld [vmem:[#allocation9 + $0x3a8] sm:$0xff]  ;;  %v1180_v17 = vld [vmem:[#allocation9 + $0xc60] sm:$0xff]  ;;  %v811_v58 = vld [vmem:[#allocation9 + $0xd8] sm:$0xff] }
  0xf2   : > { %v668_v2 = vmul.f32 %v8903_v60, %v8903_v60  ;;  %v669_v3 = vmul.f32 %v8905_v61, %v8905_v61  ;;  %v1045_v12 = vld [vmem:[#allocation9 + $0x828] sm:$0xff]  ;;  %1218 = vmatpush.msra.mxu0 %v901_v11  ;;  %1277 = vmatpush.msra.mxu2 %v1180_v17  ;;  %v820_v54 = vld [vmem:[#allocation9 + $0x120] sm:$0xff]  ;;  %v794_v11 = vld [vmem:[#allocation9 + $0x50] sm:$0xff] }
  0xf3   : > { %v661_v4 = vmul.f32 %v8908_v62, %v8908_v62  ;;  %v662_v5 = vmul.f32 %v8911_v63, %v8911_v63  ;;  %v663_v7 = vmul.f32 %v8913_v0, %v8913_v0  ;;  %1247 = vmatpush.msra.mxu1 %v1045_v12  ;;  %1313 = vmatpush.msra.mxu3 %v830_v53  ;;  %v1108_v56 = vld [vmem:[#allocation9 + $0xa20] sm:$0xff]  ;;  %v821_v57 = vld [vmem:[#allocation9 + $0x128] sm:$0xff]  ;;  %v1019_v53 = vld [vmem:[#allocation9 + $0x758] sm:$0xff] }
  0xf4   : > { %v682_v6 = vadd.f32 %v668_v2, %v667_v1  ;;  %1219 = vmatpush.msra.mxu0 %v892_v15  ;;  %1278 = vmatpush.msra.mxu2 %v1171_v21  ;;  %v955_v1 = vld [vmem:[#allocation9 + $0x558] sm:$0xff]  ;;  %v784_v12 = vld [vmem:[#allocation9] sm:$0xff]  ;;  %v785_v15 = vld [vmem:[#allocation9 + $0x8] sm:$0xff] }
  0xf5   : > { %v674_v8 = vadd.f32 %v662_v5, %v661_v4  ;;  %1248 = vmatpush.msra.mxu1 %v1036_v16  ;;  %1314 = vmatpush.msra.mxu3 %v821_v57  ;;  %v1099_v2 = vld [vmem:[#allocation9 + $0x9d8] sm:$0xff]  ;;  %v802_v4 = vld [vmem:[#allocation9 + $0x90] sm:$0xff]  ;;  %v1064_v17 = vld [vmem:[#allocation9 + $0x8c0] sm:$0xff] }
  0xf6   : > { %v683_v9 = vadd.f32 %v682_v6, %v669_v3  ;;  %1220 = vmatpush.msra.mxu0 %v883_v19  ;;  %1279 = vmatpush.msra.mxu2 %v1162_v25  ;;  %v812_v3 = vld [vmem:[#allocation9 + $0xe0] sm:$0xff]  ;;  %v946_v5 = vld [vmem:[#allocation9 + $0x510] sm:$0xff]  ;;  %v921_v19 = vld [vmem:[#allocation9 + $0x448] sm:$0xff] }
  0xf7   : > { %v675_v10 = vadd.f32 %v674_v8, %v663_v7  ;;  %1249 = vmatpush.msra.mxu1 %v1027_v20  ;;  %1315 = vmatpush.msra.mxu3 %v812_v3  ;;  %v1090_v6 = vld [vmem:[#allocation9 + $0x990] sm:$0xff]  ;;  %v803_v7 = vld [vmem:[#allocation9 + $0x98] sm:$0xff]  ;;  %v793_v8 = vld [vmem:[#allocation9 + $0x48] sm:$0xff] }
  0xf8   : > { %684 = vadd.xlane.f32.xlu1 %v683_v9  ;;  %1221 = vmatpush.msra.mxu0 %v874_v23  ;;  %v937_v9 = vld [vmem:[#allocation9 + $0x4c8] sm:$0xff]  ;;  %v1199_v25 = vld [vmem:[#allocation9 + $0xcf8] sm:$0xff]  ;;  %v1172_v49 = vld [vmem:[#allocation9 + $0xc20] sm:$0xff] }
  0xf9   : > { %676 = vadd.xlane.f32.xlu2 %v675_v10  ;;  %1250 = vmatpush.msra.mxu1 %v1018_v24  ;;  %v1081_v10 = vld [vmem:[#allocation9 + $0x948] sm:$0xff]  ;;  %v1055_v24 = vld [vmem:[#allocation9 + $0x878] sm:$0xff]  ;;  %v876_v57 = vld [vmem:[#allocation9 + $0x2e0] sm:$0xff] }
  0xfa   : > { %1222 = vmatpush.msra.mxu0 %v865_v27  ;;  %1280 = vmatpush.msra.mxu2 %v1153_v29 }
  0xfb   : > { %1251 = vmatpush.msra.mxu1 %v1009_v28  ;;  %1316 = vmatpush.msra.mxu3 %v803_v7  ;;  %v1056_v28 = vld [vmem:[#allocation9 + $0x880] sm:$0xff] }
  0xfc   : > { %1223 = vmatpush.msra.mxu0 %v856_v31  ;;  %1281 = vmatpush.msra.mxu2 %v1144_v33  ;;  %v1190_v31 = vld [vmem:[#allocation9 + $0xcb0] sm:$0xff]  ;;  %v1047_v33 = vld [vmem:[#allocation9 + $0x838] sm:$0xff] }
  0xfd   : > { %1252 = vmatpush.msra.mxu1 %v1000_v32  ;;  %1317 = vmatpush.msra.mxu3 %v794_v11  ;;  %v903_v32 = vld [vmem:[#allocation9 + $0x3b8] sm:$0xff]  ;;  %v858_v11 = vld [vmem:[#allocation9 + $0x250] sm:$0xff] }
  0xfe   : > { %1224 = vmatpush.msra.mxu0 %v847_v36  ;;  %1282 = vmatpush.msra.mxu2 %v1135_v38  ;;  %v1181_v36 = vld [vmem:[#allocation9 + $0xc68] sm:$0xff]  ;;  %v1038_v38 = vld [vmem:[#allocation9 + $0x7f0] sm:$0xff] }
  0xff   : > { %1253 = vmatpush.msra.mxu1 %v991_v37  ;;  %1318 = vmatpush.msra.mxu3 %v785_v15  ;;  %v894_v37 = vld [vmem:[#allocation9 + $0x370] sm:$0xff] }
 0x100   : > { %1225 = vmatpush.msra.mxu0 %v838_v46  ;;  %1283 = vmatpush.msra.mxu2 %v1126_v48  ;;  %v1028_v48 = vld [vmem:[#allocation9 + $0x7a0] sm:$0xff] }
 0x101   : > { %1254 = vmatpush.msra.mxu1 %v982_v47  ;;  %1419 = vmatpush.msrb.mxu3 %v1065_v22  ;;  %v1127_v22 = vld [vmem:[#allocation9 + $0xab8] sm:$0xff] }
 0x102   : > { %1226 = vmatpush.msra.mxu0 %v829_v50  ;;  %1284 = vmatpush.msra.mxu2 %v1117_v52  ;;  %v885_v50 = vld [vmem:[#allocation9 + $0x328] sm:$0xff] }
 0x103   : > { %1255 = vmatpush.msra.mxu1 %v973_v51  ;;  %1420 = vmatpush.msrb.mxu3 %v1056_v28  ;;  %v1029_v52 = vld [vmem:[#allocation9 + $0x7a8] sm:$0xff]  ;;  %v974_v28 = vld [vmem:[#allocation9 + $0x5f0] sm:$0xff] }
 0x104   : > { %1227 = vmatpush.msra.mxu0 %v820_v54  ;;  %1285 = vmatpush.msra.mxu2 %v1108_v56  ;;  %v1163_v54 = vld [vmem:[#allocation9 + $0xbd8] sm:$0xff] }
 0x105   : > { %1256 = vmatpush.msra.mxu1 %v964_v55  ;;  %1421 = vmatpush.msrb.mxu3 %v1047_v33  ;;  %v831_v33 = vld [vmem:[#allocation9 + $0x178] sm:$0xff] }
 0x106   : > { %1228 = vmatpush.msra.mxu0 %v811_v58  ;;  %1286 = vmatpush.msra.mxu2 %v1099_v2  ;;  %v1020_v58 = vld [vmem:[#allocation9 + $0x760] sm:$0xff] }
 0x107   : > { %1257 = vmatpush.msra.mxu1 %v955_v1  ;;  %1422 = vmatpush.msrb.mxu3 %v1038_v38  ;;  %v1010_v1 = vld [vmem:[#allocation9 + $0x710] sm:$0xff]  ;;  %v975_v38 = vld [vmem:[#allocation9 + $0x5f8] sm:$0xff] }
 0x108   : > { %1229 = vmatpush.msra.mxu0 %v802_v4  ;;  %1287 = vmatpush.msra.mxu2 %v1090_v6  ;;  %v1154_v4 = vld [vmem:[#allocation9 + $0xb90] sm:$0xff]  ;;  %v1011_v6 = vld [vmem:[#allocation9 + $0x718] sm:$0xff] }
 0x109   : > { %1258 = vmatpush.msra.mxu1 %v946_v5  ;;  %1423 = vmatpush.msrb.mxu3 %v1029_v52  ;;  %v867_v5 = vld [vmem:[#allocation9 + $0x298] sm:$0xff] }
 0x10a   : > { %1230 = vmatpush.msra.mxu0 %v793_v8  ;;  %1288 = vmatpush.msra.mxu2 %v1081_v10  ;;  %v1145_v10 = vld [vmem:[#allocation9 + $0xb48] sm:$0xff] }
 0x10b   : > { %1259 = vmatpush.msra.mxu1 %v937_v9  ;;  %1424 = vmatpush.msrb.mxu3 %v1020_v58  ;;  %v1001_v9 = vld [vmem:[#allocation9 + $0x6c8] sm:$0xff] }
 0x10c   : > { %1231 = vmatpush.msra.mxu0 %v784_v12  ;;  %1289 = vmatpush.msra.mxu2 %v1072_v14  ;;  %v1002_v12 = vld [vmem:[#allocation9 + $0x6d0] sm:$0xff]  ;;  %v617_v14 = vld [vmem:[#allocation6] sm:$0x7] }
 0x10d   : > { %1260 = vmatpush.msra.mxu1 %v928_v13  ;;  %1425 = vmatpush.msrb.mxu3 %v1011_v6 }
 0x10e   : > { %1332 = vmatpush.msrb.mxu0 %v1064_v17  ;;  %1390 = vmatpush.msrb.mxu2 %v921_v19  ;;  %v992_v17 = vld [vmem:[#allocation9 + $0x680] sm:$0xff]  ;;  %v849_v19 = vld [vmem:[#allocation9 + $0x208] sm:$0xff] }
 0x10f   : > { %1361 = vmatpush.msrb.mxu1 %v1208_v18  ;;  %1426 = vmatpush.msrb.mxu3 %v1002_v12  ;;  %v1136_v18 = vld [vmem:[#allocation9 + $0xb00] sm:$0xff] }
 0x110   : > { %1333 = vmatpush.msrb.mxu0 %v1055_v24  ;;  %1391 = vmatpush.msrb.mxu2 %v912_v26  ;;  %v984_v26 = vld [vmem:[#allocation9 + $0x640] sm:$0xff] }
 0x111   : > { %1362 = vmatpush.msrb.mxu1 %v1199_v25  ;;  %v840_v25 = vld [vmem:[#allocation9 + $0x1c0] sm:$0xff] }
 0x112   : > { %1334 = vmatpush.msrb.mxu0 %v1046_v30  ;;  %1392 = vmatpush.msrb.mxu2 %v903_v32  ;;  %v1118_v32 = vld [vmem:[#allocation9 + $0xa70] sm:$0xff] }
 0x113   : > { %1363 = vmatpush.msrb.mxu1 %v1190_v31  ;;  %v618_v31 = vld [vmem:[#allocation8] sm:$0x7] }
 0x114   : > { %1335 = vmatpush.msrb.mxu0 %v1037_v35  ;;  %1393 = vmatpush.msrb.mxu2 %v894_v37 }
 0x115   : > { %1364 = vmatpush.msrb.mxu1 %v1181_v36 }
 0x116   : > { %1336 = vmatpush.msrb.mxu0 %v1028_v48  ;;  %1394 = vmatpush.msrb.mxu2 %v885_v50  ;;  %v8966_v48 = vperm.slane %v617_v14, 2  ;;  %v8972_v50 = vperm.slane %v618_v31, 1 }
 0x117   : > { %1365 = vmatpush.msrb.mxu1 %v1172_v49  ;;  %v8970_v49 = vperm.slane %v618_v31, 0 }
 0x118   : > { %1337 = vmatpush.msrb.mxu0 %v1019_v53  ;;  %1395 = vmatpush.msrb.mxu2 %v876_v57  ;;  %v822_v53 = vld [vmem:[#allocation9 + $0x130] sm:$0xff]  ;;  %v8977_v57 = vperm.slane %v618_v31, 2  ;;  %v939_v31 = vld [vmem:[#allocation9 + $0x4d8] sm:$0xff] }
 0x119   : > { %1366 = vmatpush.msrb.mxu1 %v1163_v54  ;;  %v966_v54 = vld [vmem:[#allocation9 + $0x5b0] sm:$0xff] }
 0x11a   : > { %1338 = vmatpush.msrb.mxu0 %v1010_v1  ;;  %1396 = vmatpush.msrb.mxu2 %v867_v5 }
 0x11b   : > { %1367 = vmatpush.msrb.mxu1 %v1154_v4 }
 0x11c   : > { %1339 = vmatpush.msrb.mxu0 %v1001_v9  ;;  %1397 = vmatpush.msrb.mxu2 %v858_v11 }
 0x11d   : > { %1368 = vmatpush.msrb.mxu1 %v1145_v10 }
 0x11e   : > { %1340 = vmatpush.msrb.mxu0 %v992_v17  ;;  %1398 = vmatpush.msrb.mxu2 %v849_v19  ;;  %v804_v19 = vld [vmem:[#allocation9 + $0xa0] sm:$0xff] }
 0x11f   : > { %1369 = vmatpush.msrb.mxu1 %v1136_v18  ;;  %v1091_v18 = vld [vmem:[#allocation9 + $0x998] sm:$0xff] }
 0x120   : > { %1399 = vmatpush.msrb.mxu2 %v840_v25  ;;  %v795_v25 = vld [vmem:[#allocation9 + $0x58] sm:$0xff] }
 0x121   : > { %1370 = vmatpush.msrb.mxu1 %v1127_v22  ;;  %v948_v22 = vld [vmem:[#allocation9 + $0x520] sm:$0xff] }
 0x122   : > { %1400 = vmatpush.msrb.mxu2 %v831_v33 }
 0x123   : > { %1371 = vmatpush.msrb.mxu1 %v1118_v32  ;;  %v929_v32 = vld [vmem:[#allocation9 + $0x488] sm:$0xff] }
 0x124   : > { %1401 = vmatpush.msrb.mxu2 %v822_v53 }
 0x163   : > { %v681_v16 = vpop.xlane.xlu0 %680 }
 0x164   : > { %v673_v20 = vpop.xlane.xlu2 %672  ;;  %v688_v21 = vmul.f32 %v681_v16, %v8869_v34 }
 0x165   : > { %v686_v23 = vmul.f32 %v673_v20, %v8869_v34  ;;  %v993_v20 = vld [vmem:[#allocation9 + $0x688] sm:$0xff] }
 0x166   : > { %v8929_v27 = vadd.f32 1e-05, %v688_v21  ;;  %v983_v21 = vld [vmem:[#allocation9 + $0x638] sm:$0xff]  ;;  %1427 = vmatpush.msrb.mxu3 %v993_v20 }
 0x167   : > { %v8931_v29 = vadd.f32 1e-05, %v686_v23  ;;  %1341 = vmatpush.msrb.mxu0 %v983_v21 }
 0x168   : > { %7989 = vrsqrt.f32 %v8929_v27  ;;  %1428 = vmatpush.msrb.mxu3 %v984_v26  ;;  %vm720_vm4 = vweird.f32 %v8929_v27 }
 0x169   : > { %7991 = vrsqrt.f32 %v8931_v29  ;;  %vm700_vm2 = vweird.f32 %v8931_v29  ;;  %1342 = vmatpush.msrb.mxu0 %v974_v28 }
 0x16a   : > { %1429 = vmatpush.msrb.mxu3 %v975_v38 }
 0x16b   : > { %v685_v45 = vpop.xlane.xlu1 %684 }
 0x16c   : > { %v689_v46 = vmul.f32 %v685_v45, %v8869_v34  ;;  %v677_v47 = vpop.xlane.xlu2 %676  ;;  %v965_v45 = vld [vmem:[#allocation9 + $0x5a8] sm:$0xff]  ;;  %1430 = vmatpush.msrb.mxu3 %v966_v54 }
 0x16d   : > { %v687_v51 = vmul.f32 %v677_v47, %v8869_v34  ;;  %v8964_v47 = vperm.slane %v617_v14, 1  ;;  %1343 = vmatpush.msrb.mxu0 %v965_v45  ;;  %v930_v45 = vld [vmem:[#allocation9 + $0x490] sm:$0xff] }
 0x16e   : > { %v8937_v55 = vpop.eup %7989  ;;  %v8939_v56 = vadd.f32 1e-05, %v689_v46  ;;  %v8962_v46 = vperm.slane %v617_v14, 0 }
 0x16f   : > { %v8941_v2 = vpop.eup %7991  ;;  %v8943_v3 = vadd.f32 1e-05, %v687_v51  ;;  %v715_v8 = vmul.f32 %v8937_v55, %v8929_v27  ;;  %vm721_vm5 = vweird.f32 %v8937_v55  ;;  %v1082_v27 = vld [vmem:[#allocation9 + $0x950] sm:$0xff] }
 0x170   : > { %v695_v7 = vmul.f32 %v8941_v2, %v8931_v29  ;;  %7993 = vrsqrt.f32 %v8939_v56  ;;  %vm701_vm1 = vweird.f32 %v8941_v2  ;;  %v1109_v29 = vld [vmem:[#allocation9 + $0xa28] sm:$0xff]  ;;  %vm722_vm7 = vmor %vm720_vm4, %vm721_vm5  ;;  %vm730_vm10 = vweird.f32 %v8939_v56 }
 0x171   : > { %7995 = vrsqrt.f32 %v8943_v3  ;;  %v716_v16 = vmul.f32 %v8937_v55, %v715_v8  ;;  %vm702_vm3 = vmor %vm700_vm2, %vm701_vm1  ;;  %1372 = vmatpush.msrb.mxu1 %v1109_v29  ;;  %v813_v8 = vld [vmem:[#allocation9 + $0xe8] sm:$0xff]  ;;  %vm710_vm8 = vweird.f32 %v8943_v3 }
 0x172   : > { %v696_v13 = vmul.f32 %v8941_v2, %v695_v7  ;;  %v1100_v7 = vld [vmem:[#allocation9 + $0x9e0] sm:$0xff]  ;;  %1402 = vmatpush.msrb.mxu2 %v813_v8  ;;  %v1191_v8 = vld [vmem:[#allocation9 + $0xcb8] sm:$0xff] }
 0x173   : > { %v717_v36 = vmul.f32 0.5, %v716_v16  ;;  %1373 = vmatpush.msrb.mxu1 %v1100_v7  ;;  %v1201_v7 = vld [vmem:[#allocation9 + $0xd08] sm:$0xff] }
 0x174   : > { %v697_v15 = vmul.f32 0.5, %v696_v13  ;;  %1403 = vmatpush.msrb.mxu2 %v804_v19 }
 0x175   : > { %v718_v5 = vsub.f32 1.5, %v717_v36  ;;  %1374 = vmatpush.msrb.mxu1 %v1091_v18  ;;  %v1073_v36 = vld [vmem:[#allocation9 + $0x908] sm:$0xff] }
 0x176   : > { %v8953_v23 = vpop.eup %7993  ;;  %v698_v24 = vsub.f32 1.5, %v697_v15  ;;  %1404 = vmatpush.msrb.mxu2 %v795_v25  ;;  %v1030_v25 = vld [vmem:[#allocation9 + $0x7b0] sm:$0xff] }
 0x177   : > { %v8956_v30 = vpop.eup %7995  ;;  %v725_v52 = vmul.f32 %v8953_v23, %v8939_v56  ;;  %v719_v16 = vmul.f32 %v8937_v55, %v718_v5  ;;  %1375 = vmatpush.msrb.mxu1 %v1082_v27  ;;  %vm731_vm11 = vweird.f32 %v8953_v23  ;;  %v886_v27 = vld [vmem:[#allocation9 + $0x330] sm:$0xff]  ;;  %v823_v5 = vld [vmem:[#allocation9 + $0x138] sm:$0xff] }
 0x178   : > { %v699_v35 = vmul.f32 %v8941_v2, %v698_v24  ;;  %v705_v37 = vmul.f32 %v8956_v30, %v8943_v3  ;;  %vm711_vm6 = vweird.f32 %v8956_v30  ;;  %v938_v24 = vld [vmem:[#allocation9 + $0x4d0] sm:$0xff]  ;;  %vm9035_vm12 = vmor %vm730_vm10, %vm731_vm11 }
 0x179   : > { %vm712_vm9 = vmor %vm710_vm8, %vm711_vm6  ;;  %v723_v26 = vsel %vm722_vm7, %v8937_v55, %v719_v16  ;;  %v1209_v55 = vld [vmem:[#allocation9 + $0xd48] sm:$0xff]  ;;  %1376 = vmatpush.msrb.mxu1 %v1073_v36  ;;  %v1039_v16 = vld [vmem:[#allocation9 + $0x7f8] sm:$0xff] }
 0x17a   : > { %v703_v51 = vsel %vm702_vm3, %v8941_v2, %v699_v35  ;;  %v706_v6 = vmul.f32 %v8956_v30, %v705_v37  ;;  %v956_v2 = vld [vmem:[#allocation9 + $0x560] sm:$0xff]  ;;  %v786_v37 = vld [vmem:[#allocation9 + $0x10] sm:$0xff] }
 0x17b   : > { %v734_v58 = vmul.f32 %v703_v51, %v8879_v42  ;;  %v735_v1 = vmul.f32 %v703_v51, %v8881_v43  ;;  %v736_v4 = vmul.f32 %v703_v51, %v8883_v44  ;;  %v957_v42 = vld [vmem:[#allocation9 + $0x568] sm:$0xff]  ;;  %v947_v43 = vld [vmem:[#allocation9 + $0x518] sm:$0xff]  ;;  %v726_v44 = vmul.f32 %v8953_v23, %v725_v52  ;;  %1344 = vmatpush.msrb.mxu0 %v956_v2  ;;  %v1012_v36 = vld [vmem:[#allocation9 + $0x720] sm:$0xff] }
 0x17c   : > { %v707_v12 = vmul.f32 0.5, %v706_v6  ;;  %1431 = vmatpush.msrb.mxu3 %v957_v42  ;;  %v741_v52 = vmul.f32 %v723_v26, %v8875_v40  ;;  %1405 = vmatpush.msrb.mxu2 %v786_v37  ;;  %v913_v6 = vld [vmem:[#allocation9 + $0x408] sm:$0xff]  ;;  %v1156_v37 = vld [vmem:[#allocation9 + $0xba0] sm:$0xff] }
 0x17d   : > { %v753_v9 = vmul.f32 %v8962_v46, %v734_v58  ;;  %v754_v10 = vmul.f32 %v8964_v47, %v735_v1  ;;  %v755_v11 = vmul.f32 %v8966_v48, %v736_v4  ;;  %1345 = vmatpush.msrb.mxu0 %v947_v43  ;;  %v727_v20 = vmul.f32 0.5, %v726_v44  ;;  %v1210_v1 = vld [vmem:[#allocation9 + $0xd50] sm:$0xff]  ;;  %v1200_v4 = vld [vmem:[#allocation9 + $0xd00] sm:$0xff]  ;;  %v1057_v2 = vld [vmem:[#allocation9 + $0x888] sm:$0xff] }
 0x17e   : > { %v708_v17 = vsub.f32 1.5, %v707_v12  ;;  %1432 = vmatpush.msrb.mxu3 %v948_v22  ;;  %v760_v56 = vmul.f32 %v8964_v47, %v741_v52  ;;  %v1192_v43 = vld [vmem:[#allocation9 + $0xcc0] sm:$0xff]  ;;  %v1182_v44 = vld [vmem:[#allocation9 + $0xc70] sm:$0xff]  ;;  %v895_v12 = vld [vmem:[#allocation9 + $0x378] sm:$0xff] }
 0x17f   : > { %v8990_v13 = vadd.f32 %v8970_v49, %v753_v9  ;;  %v8993_v14 = vadd.f32 %v8972_v50, %v754_v10  ;;  %v8996_v15 = vadd.f32 %v8977_v57, %v755_v11  ;;  %1346 = vmatpush.msrb.mxu0 %v938_v24  ;;  %v728_v38 = vsub.f32 1.5, %v727_v20  ;;  %v904_v9 = vld [vmem:[#allocation9 + $0x3c0] sm:$0xff]  ;;  %v1183_v22 = vld [vmem:[#allocation9 + $0xc78] sm:$0xff]  ;;  %v1173_v24 = vld [vmem:[#allocation9 + $0xc28] sm:$0xff] }
 0x180   : > { %v709_v21 = vmul.f32 %v8956_v30, %v708_v17  ;;  %1433 = vmatpush.msrb.mxu3 %v939_v31  ;;  %v1048_v10 = vld [vmem:[#allocation9 + $0x840] sm:$0xff]  ;;  %v9053_v18 = vadd.f32 %v8972_v50, %v760_v56  ;;  %v1021_v31 = vld [vmem:[#allocation9 + $0x768] sm:$0xff]  ;;  %v1119_v52 = vld [vmem:[#allocation9 + $0xa78] sm:$0xff] }
 0x181   : > { %1232 = vmatmul.f32.vlgmr.msra.gmra.mxu0 %v8990_v13  ;;  %1261 = vmatmul.f32.vlgmr.msra.gmra.mxu1 %v8993_v14  ;;  %v729_v40 = vmul.f32 %v8953_v23, %v728_v38  ;;  %v1146_v38 = vld [vmem:[#allocation9 + $0xb50] sm:$0xff] }
 0x182   : > { %1290 = vmatmul.f32.vlgmr.msra.gmra.mxu2 %v8996_v15  ;;  %1319 = vmatmul.f32.vlgmr.msra.gmra.mxu3 %v8990_v13  ;;  %v713_v28 = vsel %vm712_vm9, %v8956_v30, %v709_v21  ;;  %v1102_v56 = vld [vmem:[#allocation9 + $0x9f0] sm:$0xff] }
 0x183   : > { %v737_v33 = vmul.f32 %v713_v28, %v8908_v62  ;;  %v738_v3 = vmul.f32 %v713_v28, %v8911_v63  ;;  %v739_v35 = vmul.f32 %v713_v28, %v8913_v0  ;;  %1347 = vmatpush.msrb.mxu0 %v929_v32  ;;  %v922_v62 = vld [vmem:[#allocation9 + $0x450] sm:$0xff]  ;;  %v740_v0 = vmul.f32 %v723_v26, %v8873_v39  ;;  %v877_v28 = vld [vmem:[#allocation9 + $0x2e8] sm:$0xff] }
 0x184   : > { %v1066_v63 = vld [vmem:[#allocation9 + $0x8d0] sm:$0xff]  ;;  %1434 = vmatpush.msrb.mxu3 %v930_v45  ;;  %v742_v39 = vmul.f32 %v723_v26, %v8877_v41  ;;  %1477 = vmatpush.msra.mxu1 %v922_v62  ;;  %v733_v42 = vsel %vm9035_vm12, %v8953_v23, %v729_v40  ;;  %v859_v45 = vld [vmem:[#allocation9 + $0x258] sm:$0xff]  ;;  %v841_v62 = vld [vmem:[#allocation9 + $0x1c8] sm:$0xff] }
 0x185   : > { %v756_v30 = vmul.f32 %v8962_v46, %v737_v33  ;;  %v757_v29 = vmul.f32 %v8964_v47, %v738_v3  ;;  %v758_v51 = vmul.f32 %v8966_v48, %v739_v35  ;;  %1448 = vmatpush.msra.mxu0 %v1209_v55  ;;  %1506 = vmatpush.msra.mxu2 %v1066_v63  ;;  %v1165_v33 = vld [vmem:[#allocation9 + $0xbe8] sm:$0xff]  ;;  %v1155_v3 = vld [vmem:[#allocation9 + $0xb98] sm:$0xff]  ;;  %v868_v35 = vld [vmem:[#allocation9 + $0x2a0] sm:$0xff] }
 0x186   : > { %v759_v41 = vmul.f32 %v8962_v46, %v740_v0  ;;  %1535 = vmatpush.msra.mxu3 %v1210_v1  ;;  %v761_v11 = vmul.f32 %v8966_v48, %v742_v39  ;;  %1478 = vmatpush.msra.mxu1 %v913_v6  ;;  %v743_v19 = vmul.f32 %v733_v42, %v8900_v59  ;;  %v1174_v59 = vld [vmem:[#allocation9 + $0xc30] sm:$0xff]  ;;  %v1003_v55 = vld [vmem:[#allocation9 + $0x6d8] sm:$0xff]  ;;  %v985_v63 = vld [vmem:[#allocation9 + $0x648] sm:$0xff] }
 0x187   : > { %v9023_v53 = vadd.f32 %v8970_v49, %v756_v30  ;;  %v9026_v54 = vadd.f32 %v8972_v50, %v757_v29  ;;  %v9029_v58 = vadd.f32 %v8977_v57, %v758_v51  ;;  %1449 = vmatpush.msra.mxu0 %v1200_v4  ;;  %1507 = vmatpush.msra.mxu2 %v1057_v2  ;;  %v994_v30 = vld [vmem:[#allocation9 + $0x690] sm:$0xff]  ;;  %v1128_v51 = vld [vmem:[#allocation9 + $0xac0] sm:$0xff]  ;;  %v1129_v0 = vld [vmem:[#allocation9 + $0xac8] sm:$0xff] }
 0x188   : > { %1536 = vmatpush.msra.mxu3 %v1201_v7  ;;  %v9050_v17 = vadd.f32 %v8970_v49, %v759_v41  ;;  %1479 = vmatpush.msra.mxu1 %v904_v9  ;;  %v744_v23 = vmul.f32 %v733_v42, %v8903_v60  ;;  %v9058_v20 = vadd.f32 %v8977_v57, %v761_v11  ;;  %v1164_v60 = vld [vmem:[#allocation9 + $0xbe0] sm:$0xff]  ;;  %v1138_v29 = vld [vmem:[#allocation9 + $0xb10] sm:$0xff]  ;;  %v967_v6 = vld [vmem:[#allocation9 + $0x5b8] sm:$0xff] }
 0x189   : > { %1235 = vmatmul.f32.gmra.mxu0 %v9023_v53  ;;  %1264 = vmatmul.f32.gmra.mxu1 %v9026_v54  ;;  %v745_v21 = vmul.f32 %v733_v42, %v8905_v61  ;;  %v762_v26 = vmul.f32 %v8962_v46, %v743_v19  ;;  %v832_v39 = vld [vmem:[#allocation9 + $0x180] sm:$0xff]  ;;  %v1110_v4 = vld [vmem:[#allocation9 + $0xa30] sm:$0xff]  ;;  %v1111_v2 = vld [vmem:[#allocation9 + $0xa38] sm:$0xff] }
 0x18a   : > { %1293 = vmatmul.f32.gmra.mxu2 %v9029_v58  ;;  %1322 = vmatmul.f32.gmra.mxu3 %v9023_v53  ;;  %v763_v61 = vmul.f32 %v8964_v47, %v744_v23  ;;  %v976_v40 = vld [vmem:[#allocation9 + $0x600] sm:$0xff]  ;;  %v1101_v41 = vld [vmem:[#allocation9 + $0x9e8] sm:$0xff]  ;;  %v814_v7 = vld [vmem:[#allocation9 + $0xf0] sm:$0xff] }
 0x18b   : > { %1450 = vmatpush.msra.mxu0 %v1191_v8  ;;  %1508 = vmatpush.msra.mxu2 %v1048_v10  ;;  %v764_v32 = vmul.f32 %v8966_v48, %v745_v21  ;;  %v9069_v46 = vadd.f32 %v8970_v49, %v762_v26  ;;  %v1147_v49 = vld [vmem:[#allocation9 + $0xb58] sm:$0xff]  ;;  %v1120_v1 = vld [vmem:[#allocation9 + $0xa80] sm:$0xff]  ;;  %v958_v8 = vld [vmem:[#allocation9 + $0x570] sm:$0xff] }
 0x18c   : > { %1537 = vmatpush.msra.mxu3 %v1192_v43  ;;  %1480 = vmatpush.msra.mxu1 %v895_v12  ;;  %v9072_v47 = vadd.f32 %v8972_v50, %v763_v61  ;;  %v1137_v50 = vld [vmem:[#allocation9 + $0xb08] sm:$0xff]  ;;  %v1092_v9 = vld [vmem:[#allocation9 + $0x9a0] sm:$0xff]  ;;  %v1083_v43 = vld [vmem:[#allocation9 + $0x958] sm:$0xff] }
 0x18d   : > { %1451 = vmatpush.msra.mxu0 %v1182_v44  ;;  %1509 = vmatpush.msra.mxu2 %v1039_v16  ;;  %v9075_v48 = vadd.f32 %v8977_v57, %v764_v32  ;;  %v850_v57 = vld [vmem:[#allocation9 + $0x210] sm:$0xff]  ;;  %v805_v10 = vld [vmem:[#allocation9 + $0xa8] sm:$0xff]  ;;  %v796_v44 = vld [vmem:[#allocation9 + $0x60] sm:$0xff] }
 0x18e   : > { %1538 = vmatpush.msra.mxu3 %v1183_v22  ;;  %1481 = vmatpush.msra.mxu1 %v886_v27  ;;  %v949_v11 = vld [vmem:[#allocation9 + $0x528] sm:$0xff]  ;;  %v940_v12 = vld [vmem:[#allocation9 + $0x4e0] sm:$0xff]  ;;  %v1074_v19 = vld [vmem:[#allocation9 + $0x910] sm:$0xff] }
 0x18f   : > { %1452 = vmatpush.msra.mxu0 %v1173_v24  ;;  %1510 = vmatpush.msra.mxu2 %v1030_v25  ;;  %v1093_v42 = vld [vmem:[#allocation9 + $0x9a8] sm:$0xff]  ;;  %v1084_v16 = vld [vmem:[#allocation9 + $0x960] sm:$0xff]  ;;  %v787_v23 = vld [vmem:[#allocation9 + $0x18] sm:$0xff] }
 0x190   : > { %1539 = vmatpush.msra.mxu3 %v1174_v59  ;;  %1482 = vmatpush.msra.mxu1 %v877_v28  ;;  %v931_v21 = vld [vmem:[#allocation9 + $0x498] sm:$0xff]  ;;  %v924_v59 = vld [vmem:[#allocation9 + $0x460] sm:$0xff]  ;;  %v1058_v26 = vld [vmem:[#allocation9 + $0x890] sm:$0xff] }
 0x191   : > { %1238 = vmatmul.f32.gmra.mxu0 %v9050_v17  ;;  %1267 = vmatmul.f32.gmra.mxu1 %v9053_v18  ;;  %v1075_v22 = vld [vmem:[#allocation9 + $0x918] sm:$0xff]  ;;  %v1202_v61 = vld [vmem:[#allocation9 + $0xd10] sm:$0xff]  ;;  %v1049_v32 = vld [vmem:[#allocation9 + $0x848] sm:$0xff] }
 0x192   : > { %1296 = vmatmul.f32.gmra.mxu2 %v9058_v20  ;;  %1325 = vmatmul.f32.gmra.mxu3 %v9050_v17  ;;  %v923_v24 = vld [vmem:[#allocation9 + $0x458] sm:$0xff] }
 0x193   : > { %1453 = vmatpush.msra.mxu0 %v1164_v60  ;;  %1511 = vmatpush.msra.mxu2 %v1021_v31  ;;  %v1067_v27 = vld [vmem:[#allocation9 + $0x8d8] sm:$0xff]  ;;  %v914_v60 = vld [vmem:[#allocation9 + $0x410] sm:$0xff]  ;;  %v905_v31 = vld [vmem:[#allocation9 + $0x3c8] sm:$0xff] }
 0x194   : > { %1540 = vmatpush.msra.mxu3 %v1165_v33  ;;  %1483 = vmatpush.msra.mxu1 %v868_v35  ;;  %v1211_v25 = vld [vmem:[#allocation9 + $0xd58] sm:$0xff]  ;;  %v1193_v33 = vld [vmem:[#allocation9 + $0xcc8] sm:$0xff]  ;;  %v896_v35 = vld [vmem:[#allocation9 + $0x380] sm:$0xff] }
 0x195   : > { %1454 = vmatpush.msra.mxu0 %v1155_v3  ;;  %1512 = vmatpush.msra.mxu2 %v1012_v36  ;;  %v915_v28 = vld [vmem:[#allocation9 + $0x418] sm:$0xff]  ;;  %v906_v3 = vld [vmem:[#allocation9 + $0x3d0] sm:$0xff]  ;;  %v1040_v36 = vld [vmem:[#allocation9 + $0x800] sm:$0xff] }
 0x196   : > { %1541 = vmatpush.msra.mxu3 %v1156_v37  ;;  %1484 = vmatpush.msra.mxu1 %v859_v45  ;;  %v1184_v37 = vld [vmem:[#allocation9 + $0xc80] sm:$0xff]  ;;  %v887_v45 = vld [vmem:[#allocation9 + $0x338] sm:$0xff] }
 0x197   : > { %1455 = vmatpush.msra.mxu0 %v1146_v38  ;;  %1513 = vmatpush.msra.mxu2 %v1003_v55  ;;  %v897_v38 = vld [vmem:[#allocation9 + $0x388] sm:$0xff]  ;;  %v1031_v55 = vld [vmem:[#allocation9 + $0x7b8] sm:$0xff] }
 0x198   : > { %1542 = vmatpush.msra.mxu3 %v1147_v49  ;;  %1485 = vmatpush.msra.mxu1 %v850_v57  ;;  %v1175_v49 = vld [vmem:[#allocation9 + $0xc38] sm:$0xff]  ;;  %v878_v57 = vld [vmem:[#allocation9 + $0x2f0] sm:$0xff] }
 0x199   : > { %1241 = vmatmul.f32.gmra.mxu0 %v9069_v46  ;;  %1270 = vmatmul.f32.gmra.mxu1 %v9072_v47 }
 0x19a   : > { %1299 = vmatmul.f32.gmra.mxu2 %v9075_v48  ;;  %1328 = vmatmul.f32.gmra.mxu3 %v9069_v46 }
 0x19b   : > { %1456 = vmatpush.msra.mxu0 %v1137_v50  ;;  %1514 = vmatpush.msra.mxu2 %v994_v30  ;;  %v888_v50 = vld [vmem:[#allocation9 + $0x340] sm:$0xff]  ;;  %v1022_v30 = vld [vmem:[#allocation9 + $0x770] sm:$0xff] }
 0x19c   : > { %1543 = vmatpush.msra.mxu3 %v1138_v29  ;;  %1486 = vmatpush.msra.mxu1 %v841_v62  ;;  %v1166_v29 = vld [vmem:[#allocation9 + $0xbf0] sm:$0xff]  ;;  %v869_v62 = vld [vmem:[#allocation9 + $0x2a8] sm:$0xff] }
 0x19d   : > { %1457 = vmatpush.msra.mxu0 %v1128_v51  ;;  %1515 = vmatpush.msra.mxu2 %v985_v63  ;;  %v879_v51 = vld [vmem:[#allocation9 + $0x2f8] sm:$0xff]  ;;  %v1013_v63 = vld [vmem:[#allocation9 + $0x728] sm:$0xff] }
 0x19e   : > { %1544 = vmatpush.msra.mxu3 %v1129_v0  ;;  %1487 = vmatpush.msra.mxu1 %v832_v39  ;;  %v1157_v0 = vld [vmem:[#allocation9 + $0xba8] sm:$0xff]  ;;  %v860_v39 = vld [vmem:[#allocation9 + $0x260] sm:$0xff] }
 0x19f   : > { %1458 = vmatpush.msra.mxu0 %v1119_v52  ;;  %1516 = vmatpush.msra.mxu2 %v976_v40  ;;  %v870_v52 = vld [vmem:[#allocation9 + $0x2b0] sm:$0xff]  ;;  %v1004_v40 = vld [vmem:[#allocation9 + $0x6e0] sm:$0xff] }
 0x1a0   : > { %1545 = vmatpush.msra.mxu3 %v1120_v1  ;;  %1488 = vmatpush.msra.mxu1 %v823_v5  ;;  %v1148_v1 = vld [vmem:[#allocation9 + $0xb60] sm:$0xff]  ;;  %v851_v5 = vld [vmem:[#allocation9 + $0x218] sm:$0xff] }
 0x1a1   : > { %1348 = vmatmul.f32.vlgmr.msrb.gmra.mxu0 %v8993_v14  ;;  %1377 = vmatmul.f32.vlgmr.msrb.gmra.mxu1 %v8996_v15 }
 0x1a2   : > { %1406 = vmatmul.f32.vlgmr.msrb.gmra.mxu2 %v8990_v13  ;;  %1435 = vmatmul.f32.vlgmr.msrb.gmra.mxu3 %v8993_v14 }
 0x1a3   : > { %1459 = vmatpush.msra.mxu0 %v1110_v4  ;;  %1517 = vmatpush.msra.mxu2 %v967_v6  ;;  %v861_v4 = vld [vmem:[#allocation9 + $0x268] sm:$0xff]  ;;  %v995_v6 = vld [vmem:[#allocation9 + $0x698] sm:$0xff] }
 0x1a4   : > { %1546 = vmatpush.msra.mxu3 %v1111_v2  ;;  %1489 = vmatpush.msra.mxu1 %v814_v7  ;;  %v1139_v2 = vld [vmem:[#allocation9 + $0xb18] sm:$0xff]  ;;  %v842_v7 = vld [vmem:[#allocation9 + $0x1d0] sm:$0xff] }
 0x1a5   : > { %1460 = vmatpush.msra.mxu0 %v1101_v41  ;;  %1518 = vmatpush.msra.mxu2 %v958_v8  ;;  %v852_v41 = vld [vmem:[#allocation9 + $0x220] sm:$0xff]  ;;  %v986_v8 = vld [vmem:[#allocation9 + $0x650] sm:$0xff] }
 0x1a6   : > { %1547 = vmatpush.msra.mxu3 %v1102_v56  ;;  %1490 = vmatpush.msra.mxu1 %v805_v10  ;;  %v1130_v56 = vld [vmem:[#allocation9 + $0xad0] sm:$0xff]  ;;  %v833_v10 = vld [vmem:[#allocation9 + $0x188] sm:$0xff] }
 0x1a7   : > { %1461 = vmatpush.msra.mxu0 %v1092_v9  ;;  %1519 = vmatpush.msra.mxu2 %v949_v11  ;;  %v843_v9 = vld [vmem:[#allocation9 + $0x1d8] sm:$0xff]  ;;  %v977_v11 = vld [vmem:[#allocation9 + $0x608] sm:$0xff] }
 0x1a8   : > { %1548 = vmatpush.msra.mxu3 %v1093_v42  ;;  %1491 = vmatpush.msra.mxu1 %v796_v44  ;;  %v1121_v42 = vld [vmem:[#allocation9 + $0xa88] sm:$0xff]  ;;  %v824_v44 = vld [vmem:[#allocation9 + $0x140] sm:$0xff] }
 0x1a9   : > { %1351 = vmatmul.f32.gmra.mxu0 %v9026_v54  ;;  %1380 = vmatmul.f32.gmra.mxu1 %v9029_v58 }
 0x1aa   : > { %1409 = vmatmul.f32.gmra.mxu2 %v9023_v53  ;;  %1438 = vmatmul.f32.gmra.mxu3 %v9026_v54 }
 0x1ab   : > { %1462 = vmatpush.msra.mxu0 %v1083_v43  ;;  %1520 = vmatpush.msra.mxu2 %v940_v12  ;;  %v834_v43 = vld [vmem:[#allocation9 + $0x190] sm:$0xff]  ;;  %v968_v12 = vld [vmem:[#allocation9 + $0x5c0] sm:$0xff] }
 0x1ac   : > { %1549 = vmatpush.msra.mxu3 %v1084_v16  ;;  %1492 = vmatpush.msra.mxu1 %v787_v23  ;;  %v1112_v16 = vld [vmem:[#allocation9 + $0xa40] sm:$0xff]  ;;  %v815_v23 = vld [vmem:[#allocation9 + $0xf8] sm:$0xff] }
 0x1ad   : > { %1463 = vmatpush.msra.mxu0 %v1074_v19  ;;  %1521 = vmatpush.msra.mxu2 %v931_v21  ;;  %v825_v19 = vld [vmem:[#allocation9 + $0x148] sm:$0xff]  ;;  %v959_v21 = vld [vmem:[#allocation9 + $0x578] sm:$0xff] }
 0x1ae   : > { %1550 = vmatpush.msra.mxu3 %v1075_v22  ;;  %1593 = vmatpush.msrb.mxu1 %v1067_v27  ;;  %v1103_v22 = vld [vmem:[#allocation9 + $0x9f8] sm:$0xff]  ;;  %v806_v27 = vld [vmem:[#allocation9 + $0xb0] sm:$0xff] }
 0x1af   : > { %1564 = vmatpush.msrb.mxu0 %v923_v24  ;;  %1622 = vmatpush.msrb.mxu2 %v1211_v25  ;;  %v816_v24 = vld [vmem:[#allocation9 + $0x100] sm:$0xff]  ;;  %v950_v25 = vld [vmem:[#allocation9 + $0x530] sm:$0xff] }
 0x1b0   : > { %1651 = vmatpush.msrb.mxu3 %v924_v59  ;;  %1594 = vmatpush.msrb.mxu1 %v1058_v26  ;;  %v1094_v59 = vld [vmem:[#allocation9 + $0x9b0] sm:$0xff]  ;;  %v797_v26 = vld [vmem:[#allocation9 + $0x68] sm:$0xff] }
 0x1b1   : > { %1354 = vmatmul.f32.gmra.mxu0 %v9053_v18  ;;  %1383 = vmatmul.f32.gmra.mxu1 %v9058_v20 }
 0x1b2   : > { %1412 = vmatmul.f32.gmra.mxu2 %v9050_v17  ;;  %1441 = vmatmul.f32.gmra.mxu3 %v9053_v18 }
 0x1b3   : > { %1565 = vmatpush.msrb.mxu0 %v914_v60  ;;  %1623 = vmatpush.msrb.mxu2 %v1202_v61  ;;  %v807_v60 = vld [vmem:[#allocation9 + $0xb8] sm:$0xff]  ;;  %v941_v61 = vld [vmem:[#allocation9 + $0x4e8] sm:$0xff] }
 0x1b4   : > { %1652 = vmatpush.msrb.mxu3 %v915_v28  ;;  %1595 = vmatpush.msrb.mxu1 %v1049_v32  ;;  %v1085_v28 = vld [vmem:[#allocation9 + $0x968] sm:$0xff]  ;;  %v788_v32 = vld [vmem:[#allocation9 + $0x20] sm:$0xff] }
 0x1b5   : > { %1566 = vmatpush.msrb.mxu0 %v905_v31  ;;  %1624 = vmatpush.msrb.mxu2 %v1193_v33  ;;  %v798_v31 = vld [vmem:[#allocation9 + $0x70] sm:$0xff]  ;;  %v932_v33 = vld [vmem:[#allocation9 + $0x4a0] sm:$0xff] }
 0x1b6   : > { %1653 = vmatpush.msrb.mxu3 %v906_v3  ;;  %1596 = vmatpush.msrb.mxu1 %v1040_v36  ;;  %v1076_v3 = vld [vmem:[#allocation9 + $0x920] sm:$0xff] }
 0x1b7   : > { %1567 = vmatpush.msrb.mxu0 %v896_v35  ;;  %1625 = vmatpush.msrb.mxu2 %v1184_v37  ;;  %v789_v35 = vld [vmem:[#allocation9 + $0x28] sm:$0xff]  ;;  %v1068_v36 = vld [vmem:[#allocation9 + $0x8e0] sm:$0xff] }
 0x1b8   : > { %1654 = vmatpush.msrb.mxu3 %v897_v38  ;;  %1597 = vmatpush.msrb.mxu1 %v1031_v55  ;;  %v1212_v37 = vld [vmem:[#allocation9 + $0xd60] sm:$0xff]  ;;  %v925_v38 = vld [vmem:[#allocation9 + $0x468] sm:$0xff]  ;;  %v1059_v55 = vld [vmem:[#allocation9 + $0x898] sm:$0xff] }
 0x1b9   : > { %1357 = vmatmul.f32.gmra.mxu0 %v9072_v47  ;;  %1386 = vmatmul.f32.gmra.mxu1 %v9075_v48 }
 0x1ba   : > { %1415 = vmatmul.f32.gmra.mxu2 %v9069_v46  ;;  %1444 = vmatmul.f32.gmra.mxu3 %v9072_v47 }
 0x1bb   : > { %1568 = vmatpush.msrb.mxu0 %v887_v45  ;;  %1626 = vmatpush.msrb.mxu2 %v1175_v49  ;;  %v1069_v45 = vld [vmem:[#allocation9 + $0x8e8] sm:$0xff]  ;;  %v1203_v49 = vld [vmem:[#allocation9 + $0xd18] sm:$0xff] }
 0x1bc   : > { %1655 = vmatpush.msrb.mxu3 %v888_v50  ;;  %1598 = vmatpush.msrb.mxu1 %v1022_v30  ;;  %v916_v50 = vld [vmem:[#allocation9 + $0x420] sm:$0xff]  ;;  %v1050_v30 = vld [vmem:[#allocation9 + $0x850] sm:$0xff] }
 0x1bd   : > { %1569 = vmatpush.msrb.mxu0 %v878_v57  ;;  %1627 = vmatpush.msrb.mxu2 %v1166_v29  ;;  %v1060_v57 = vld [vmem:[#allocation9 + $0x8a0] sm:$0xff]  ;;  %v1194_v29 = vld [vmem:[#allocation9 + $0xcd0] sm:$0xff] }
 0x1be   : > { %1656 = vmatpush.msrb.mxu3 %v879_v51  ;;  %1599 = vmatpush.msrb.mxu1 %v1013_v63  ;;  %v907_v51 = vld [vmem:[#allocation9 + $0x3d8] sm:$0xff]  ;;  %v1041_v63 = vld [vmem:[#allocation9 + $0x808] sm:$0xff] }
 0x1bf   : > { %1570 = vmatpush.msrb.mxu0 %v869_v62  ;;  %1628 = vmatpush.msrb.mxu2 %v1157_v0  ;;  %v1051_v62 = vld [vmem:[#allocation9 + $0x858] sm:$0xff]  ;;  %v1185_v0 = vld [vmem:[#allocation9 + $0xc88] sm:$0xff] }
 0x1c0   : > { %1657 = vmatpush.msrb.mxu3 %v870_v52  ;;  %1600 = vmatpush.msrb.mxu1 %v1004_v40  ;;  %v898_v52 = vld [vmem:[#allocation9 + $0x390] sm:$0xff]  ;;  %v1032_v40 = vld [vmem:[#allocation9 + $0x7c0] sm:$0xff] }
 0x1c1   : > { %1464 = vmatmul.f32.vlgmr.msra.gmra.mxu0 %v8996_v15  ;;  %1493 = vmatmul.f32.vlgmr.msra.gmra.mxu1 %v8990_v13 }
 0x1c2   : > { %1522 = vmatmul.f32.vlgmr.msra.gmra.mxu2 %v8993_v14  ;;  %1551 = vmatmul.f32.vlgmr.msra.gmra.mxu3 %v8996_v15 }
 0x1c3   : > { %1571 = vmatpush.msrb.mxu0 %v860_v39  ;;  %1629 = vmatpush.msrb.mxu2 %v1148_v1  ;;  %v1042_v39 = vld [vmem:[#allocation9 + $0x810] sm:$0xff]  ;;  %v1176_v1 = vld [vmem:[#allocation9 + $0xc40] sm:$0xff] }
 0x1c4   : > { %1658 = vmatpush.msrb.mxu3 %v861_v4  ;;  %1601 = vmatpush.msrb.mxu1 %v995_v6  ;;  %v889_v4 = vld [vmem:[#allocation9 + $0x348] sm:$0xff]  ;;  %v1023_v6 = vld [vmem:[#allocation9 + $0x778] sm:$0xff] }
 0x1c5   : > { %1572 = vmatpush.msrb.mxu0 %v851_v5  ;;  %1630 = vmatpush.msrb.mxu2 %v1139_v2  ;;  %v1033_v5 = vld [vmem:[#allocation9 + $0x7c8] sm:$0xff]  ;;  %v1167_v2 = vld [vmem:[#allocation9 + $0xbf8] sm:$0xff] }
 0x1c6   : > { %1659 = vmatpush.msrb.mxu3 %v852_v41  ;;  %1602 = vmatpush.msrb.mxu1 %v986_v8  ;;  %v880_v41 = vld [vmem:[#allocation9 + $0x300] sm:$0xff]  ;;  %v1014_v8 = vld [vmem:[#allocation9 + $0x730] sm:$0xff] }
 0x1c7   : > { %1573 = vmatpush.msrb.mxu0 %v842_v7  ;;  %1631 = vmatpush.msrb.mxu2 %v1130_v56  ;;  %v1024_v7 = vld [vmem:[#allocation9 + $0x780] sm:$0xff]  ;;  %v1158_v56 = vld [vmem:[#allocation9 + $0xbb0] sm:$0xff] }
 0x1c8   : > { %1660 = vmatpush.msrb.mxu3 %v843_v9  ;;  %1603 = vmatpush.msrb.mxu1 %v977_v11  ;;  %v871_v9 = vld [vmem:[#allocation9 + $0x2b8] sm:$0xff]  ;;  %v1005_v11 = vld [vmem:[#allocation9 + $0x6e8] sm:$0xff] }
 0x1c9   : > { %1467 = vmatmul.f32.gmra.mxu0 %v9029_v58  ;;  %1496 = vmatmul.f32.gmra.mxu1 %v9023_v53 }
 0x1ca   : > { %1525 = vmatmul.f32.gmra.mxu2 %v9026_v54  ;;  %1554 = vmatmul.f32.gmra.mxu3 %v9029_v58 }
 0x1cb   : > { %1574 = vmatpush.msrb.mxu0 %v833_v10  ;;  %1632 = vmatpush.msrb.mxu2 %v1121_v42  ;;  %v1015_v10 = vld [vmem:[#allocation9 + $0x738] sm:$0xff]  ;;  %v1149_v42 = vld [vmem:[#allocation9 + $0xb68] sm:$0xff] }
 0x1cc   : > { %1661 = vmatpush.msrb.mxu3 %v834_v43  ;;  %1604 = vmatpush.msrb.mxu1 %v968_v12  ;;  %v862_v43 = vld [vmem:[#allocation9 + $0x270] sm:$0xff]  ;;  %v996_v12 = vld [vmem:[#allocation9 + $0x6a0] sm:$0xff] }
 0x1cd   : > { %1575 = vmatpush.msrb.mxu0 %v824_v44  ;;  %1633 = vmatpush.msrb.mxu2 %v1112_v16  ;;  %v1006_v44 = vld [vmem:[#allocation9 + $0x6f0] sm:$0xff]  ;;  %v1140_v16 = vld [vmem:[#allocation9 + $0xb20] sm:$0xff] }
 0x1ce   : > { %1662 = vmatpush.msrb.mxu3 %v825_v19  ;;  %1605 = vmatpush.msrb.mxu1 %v959_v21  ;;  %v853_v19 = vld [vmem:[#allocation9 + $0x228] sm:$0xff]  ;;  %v987_v21 = vld [vmem:[#allocation9 + $0x658] sm:$0xff] }
 0x1cf   : > { %1576 = vmatpush.msrb.mxu0 %v815_v23  ;;  %1634 = vmatpush.msrb.mxu2 %v1103_v22  ;;  %v997_v23 = vld [vmem:[#allocation9 + $0x6a8] sm:$0xff]  ;;  %v1131_v22 = vld [vmem:[#allocation9 + $0xad8] sm:$0xff] }
 0x1d0   : > { %1663 = vmatpush.msrb.mxu3 %v816_v24  ;;  %1606 = vmatpush.msrb.mxu1 %v950_v25  ;;  %v844_v24 = vld [vmem:[#allocation9 + $0x1e0] sm:$0xff]  ;;  %v978_v25 = vld [vmem:[#allocation9 + $0x610] sm:$0xff] }
 0x1d1   : > { %1470 = vmatmul.f32.gmra.mxu0 %v9058_v20  ;;  %1499 = vmatmul.f32.gmra.mxu1 %v9050_v17 }
 0x1d2   : > { %1528 = vmatmul.f32.gmra.mxu2 %v9053_v18  ;;  %1557 = vmatmul.f32.gmra.mxu3 %v9058_v20 }
 0x1d3   : > { %1577 = vmatpush.msrb.mxu0 %v806_v27  ;;  %1635 = vmatpush.msrb.mxu2 %v1094_v59  ;;  %v988_v27 = vld [vmem:[#allocation9 + $0x660] sm:$0xff]  ;;  %v1122_v59 = vld [vmem:[#allocation9 + $0xa90] sm:$0xff] }
 0x1d4   : > { %1664 = vmatpush.msrb.mxu3 %v807_v60  ;;  %1607 = vmatpush.msrb.mxu1 %v941_v61  ;;  %v835_v60 = vld [vmem:[#allocation9 + $0x198] sm:$0xff]  ;;  %v969_v61 = vld [vmem:[#allocation9 + $0x5c8] sm:$0xff] }
 0x1d5   : > { %1578 = vmatpush.msrb.mxu0 %v797_v26  ;;  %1636 = vmatpush.msrb.mxu2 %v1085_v28  ;;  %v979_v26 = vld [vmem:[#allocation9 + $0x618] sm:$0xff]  ;;  %v1113_v28 = vld [vmem:[#allocation9 + $0xa48] sm:$0xff] }
 0x1d6   : > { %1665 = vmatpush.msrb.mxu3 %v798_v31  ;;  %1608 = vmatpush.msrb.mxu1 %v932_v33  ;;  %v826_v31 = vld [vmem:[#allocation9 + $0x150] sm:$0xff]  ;;  %v960_v33 = vld [vmem:[#allocation9 + $0x580] sm:$0xff] }
 0x1d7   : > { %1579 = vmatpush.msrb.mxu0 %v788_v32  ;;  %1637 = vmatpush.msrb.mxu2 %v1076_v3  ;;  %v970_v32 = vld [vmem:[#allocation9 + $0x5d0] sm:$0xff]  ;;  %v1104_v3 = vld [vmem:[#allocation9 + $0xa00] sm:$0xff] }
 0x1d8   : > { %1666 = vmatpush.msrb.mxu3 %v789_v35  ;;  %1709 = vmatpush.msra.mxu1 %v1212_v37  ;;  %v817_v35 = vld [vmem:[#allocation9 + $0x108] sm:$0xff]  ;;  %v951_v37 = vld [vmem:[#allocation9 + $0x538] sm:$0xff] }
 0x1d9   : > { %1473 = vmatmul.f32.gmra.mxu0 %v9075_v48  ;;  %1502 = vmatmul.f32.gmra.mxu1 %v9069_v46 }
 0x1da   : > { %1531 = vmatmul.f32.gmra.mxu2 %v9072_v47  ;;  %1560 = vmatmul.f32.gmra.mxu3 %v9075_v48 }
 0x1db   : > { %1680 = vmatpush.msra.mxu0 %v1068_v36  ;;  %1738 = vmatpush.msra.mxu2 %v925_v38  ;;  %v961_v36 = vld [vmem:[#allocation9 + $0x588] sm:$0xff] }
 0x1dc   : > { %1767 = vmatpush.msra.mxu3 %v1069_v45  ;;  %1710 = vmatpush.msra.mxu1 %v1203_v49  ;;  %v808_v49 = vld [vmem:[#allocation9 + $0xc0] sm:$0xff] }
 0x1dd   : > { %1681 = vmatpush.msra.mxu0 %v1059_v55  ;;  %1739 = vmatpush.msra.mxu2 %v916_v50  ;;  %v1095_v55 = vld [vmem:[#allocation9 + $0x9b8] sm:$0xff]  ;;  %v952_v50 = vld [vmem:[#allocation9 + $0x540] sm:$0xff] }
 0x1de   : > { %1768 = vmatpush.msra.mxu3 %v1060_v57  ;;  %1711 = vmatpush.msra.mxu1 %v1194_v29  ;;  %v942_v57 = vld [vmem:[#allocation9 + $0x4f0] sm:$0xff]  ;;  %v799_v29 = vld [vmem:[#allocation9 + $0x78] sm:$0xff] }
 0x1df   : > { %1682 = vmatpush.msra.mxu0 %v1050_v30  ;;  %1740 = vmatpush.msra.mxu2 %v907_v51  ;;  %v1086_v30 = vld [vmem:[#allocation9 + $0x970] sm:$0xff]  ;;  %v943_v51 = vld [vmem:[#allocation9 + $0x4f8] sm:$0xff] }
 0x1e0   : > { %1769 = vmatpush.msra.mxu3 %v1051_v62  ;;  %1712 = vmatpush.msra.mxu1 %v1185_v0  ;;  %v933_v62 = vld [vmem:[#allocation9 + $0x4a8] sm:$0xff]  ;;  %v790_v0 = vld [vmem:[#allocation9 + $0x30] sm:$0xff] }
 0x1e1   : > { %1580 = vmatmul.f32.vlgmr.msrb.gmra.mxu0 %v8990_v13  ;;  %1609 = vmatmul.f32.vlgmr.msrb.gmra.mxu1 %v8993_v14 }
 0x1e2   : > { %1638 = vmatmul.f32.vlgmr.msrb.gmra.mxu2 %v8996_v15  ;;  %1667 = vmatmul.f32.vlgmr.msrb.gmra.mxu3 %v8990_v13 }
 0x1e3   : > { %1683 = vmatpush.msra.mxu0 %v1041_v63  ;;  %1741 = vmatpush.msra.mxu2 %v898_v52  ;;  %v1077_v63 = vld [vmem:[#allocation9 + $0x928] sm:$0xff]  ;;  %v934_v52 = vld [vmem:[#allocation9 + $0x4b0] sm:$0xff] }
 0x1e4   : > { %1770 = vmatpush.msra.mxu3 %v1042_v39  ;;  %1713 = vmatpush.msra.mxu1 %v1176_v1 }
 0x1e5   : > { %1684 = vmatpush.msra.mxu0 %v1032_v40  ;;  %1742 = vmatpush.msra.mxu2 %v889_v4  ;;  %v1213_v40 = vld [vmem:[#allocation9 + $0xd68] sm:$0xff]  ;;  %v926_v4 = vld [vmem:[#allocation9 + $0x470] sm:$0xff] }
 0x1e6   : > { %1771 = vmatpush.msra.mxu3 %v1033_v5  ;;  %1714 = vmatpush.msra.mxu1 %v1167_v2  ;;  %v1070_v5 = vld [vmem:[#allocation9 + $0x8f0] sm:$0xff]  ;;  %v1204_v2 = vld [vmem:[#allocation9 + $0xd20] sm:$0xff] }
 0x1e7   : > { %1685 = vmatpush.msra.mxu0 %v1023_v6  ;;  %1743 = vmatpush.msra.mxu2 %v880_v41  ;;  %v1214_v6 = vld [vmem:[#allocation9 + $0xd70] sm:$0xff] }
 0x1e8   : > { %1772 = vmatpush.msra.mxu3 %v1024_v7  ;;  %1715 = vmatpush.msra.mxu1 %v1158_v56  ;;  %v917_v56 = vld [vmem:[#allocation9 + $0x428] sm:$0xff] }
 0x1e9   : > { %1583 = vmatmul.f32.gmra.mxu0 %v9023_v53  ;;  %1612 = vmatmul.f32.gmra.mxu1 %v9026_v54 }
 0x1ea   : > { %1641 = vmatmul.f32.gmra.mxu2 %v9029_v58  ;;  %1670 = vmatmul.f32.gmra.mxu3 %v9023_v53 }
 0x1eb   : > { %1686 = vmatpush.msra.mxu0 %v1014_v8  ;;  %1744 = vmatpush.msra.mxu2 %v871_v9  ;;  %v1061_v9 = vld [vmem:[#allocation9 + $0x8a8] sm:$0xff] }
 0x1ec   : > { %1773 = vmatpush.msra.mxu3 %v1015_v10  ;;  %1716 = vmatpush.msra.mxu1 %v1149_v42  ;;  %v1205_v10 = vld [vmem:[#allocation9 + $0xd28] sm:$0xff] }
 0x1ed   : > { %1687 = vmatpush.msra.mxu0 %v1005_v11  ;;  %1745 = vmatpush.msra.mxu2 %v862_v43  ;;  %v1195_v11 = vld [vmem:[#allocation9 + $0xcd8] sm:$0xff]  ;;  %v908_v43 = vld [vmem:[#allocation9 + $0x3e0] sm:$0xff] }
 0x1ee   : > { %1774 = vmatpush.msra.mxu3 %v1006_v44  ;;  %1717 = vmatpush.msra.mxu1 %v1140_v16  ;;  %v1052_v44 = vld [vmem:[#allocation9 + $0x860] sm:$0xff]  ;;  %v1186_v16 = vld [vmem:[#allocation9 + $0xc90] sm:$0xff] }
 0x1ef   : > { %1688 = vmatpush.msra.mxu0 %v996_v12  ;;  %1746 = vmatpush.msra.mxu2 %v853_v19  ;;  %v1196_v12 = vld [vmem:[#allocation9 + $0xce0] sm:$0xff]  ;;  %v899_v19 = vld [vmem:[#allocation9 + $0x398] sm:$0xff] }
 0x1f0   : > { %1775 = vmatpush.msra.mxu3 %v997_v23  ;;  %1718 = vmatpush.msra.mxu1 %v1131_v22  ;;  %v1043_v23 = vld [vmem:[#allocation9 + $0x818] sm:$0xff] }
 0x1f1   : > { %1586 = vmatmul.f32.gmra.mxu0 %v9050_v17  ;;  %1615 = vmatmul.f32.gmra.mxu1 %v9053_v18 }
 0x1f2   : > { %1644 = vmatmul.f32.gmra.mxu2 %v9058_v20  ;;  %1673 = vmatmul.f32.gmra.mxu3 %v9050_v17 }
 0x1f3   : > { %1689 = vmatpush.msra.mxu0 %v987_v21  ;;  %1747 = vmatpush.msra.mxu2 %v844_v24  ;;  %v1187_v21 = vld [vmem:[#allocation9 + $0xc98] sm:$0xff] }
 0x1f4   : > { %1776 = vmatpush.msra.mxu3 %v988_v27  ;;  %1719 = vmatpush.msra.mxu1 %v1122_v59  ;;  %v1177_v59 = vld [vmem:[#allocation9 + $0xc48] sm:$0xff] }
 0x1f5   : > { %1690 = vmatpush.msra.mxu0 %v978_v25  ;;  %1748 = vmatpush.msra.mxu2 %v835_v60  ;;  %v890_v60 = vld [vmem:[#allocation9 + $0x350] sm:$0xff] }
 0x1f6   : > { %1777 = vmatpush.msra.mxu3 %v979_v26  ;;  %1720 = vmatpush.msra.mxu1 %v1113_v28  ;;  %v1034_v26 = vld [vmem:[#allocation9 + $0x7d0] sm:$0xff]  ;;  %v1168_v28 = vld [vmem:[#allocation9 + $0xc00] sm:$0xff] }
 0x1f7   : > { %1691 = vmatpush.msra.mxu0 %v969_v61  ;;  %1749 = vmatpush.msra.mxu2 %v826_v31  ;;  %v1178_v61 = vld [vmem:[#allocation9 + $0xc50] sm:$0xff]  ;;  %v881_v31 = vld [vmem:[#allocation9 + $0x308] sm:$0xff] }
 0x1f8   : > { %1778 = vmatpush.msra.mxu3 %v970_v32  ;;  %1721 = vmatpush.msra.mxu1 %v1104_v3  ;;  %v1025_v32 = vld [vmem:[#allocation9 + $0x788] sm:$0xff]  ;;  %v1159_v3 = vld [vmem:[#allocation9 + $0xbb8] sm:$0xff] }
 0x1f9   : > { %1589 = vmatmul.f32.gmra.mxu0 %v9069_v46  ;;  %1618 = vmatmul.f32.gmra.mxu1 %v9072_v47 }
 0x1fa   : > { %1647 = vmatmul.f32.gmra.mxu2 %v9075_v48  ;;  %1676 = vmatmul.f32.gmra.mxu3 %v9069_v46 }
 0x1fb   : > { %1692 = vmatpush.msra.mxu0 %v960_v33  ;;  %1750 = vmatpush.msra.mxu2 %v817_v35  ;;  %v1169_v33 = vld [vmem:[#allocation9 + $0xc08] sm:$0xff]  ;;  %v872_v35 = vld [vmem:[#allocation9 + $0x2c0] sm:$0xff] }
 0x1fc   : > { %1779 = vmatpush.msra.mxu3 %v961_v36  ;;  %1722 = vmatpush.msra.mxu1 %v1095_v55  ;;  %v1016_v36 = vld [vmem:[#allocation9 + $0x740] sm:$0xff] }
 0x1fd   : > { %1693 = vmatpush.msra.mxu0 %v951_v37  ;;  %1751 = vmatpush.msra.mxu2 %v808_v49  ;;  %v1160_v37 = vld [vmem:[#allocation9 + $0xbc0] sm:$0xff] }
 0x1fe   : > { %v1233_v38 = vpop.f32.mrf.mxu0  ;;  %v1262_v45 = vpop.f32.mrf.mxu1  ;;  %1780 = vmatpush.msra.mxu3 %v952_v50  ;;  %1723 = vmatpush.msra.mxu1 %v1086_v30  ;;  %v1007_v50 = vld [vmem:[#allocation9 + $0x6f8] sm:$0xff] }
 0x1ff   : > { %1694 = vmatpush.msra.mxu0 %v942_v57  ;;  %1752 = vmatpush.msra.mxu2 %v799_v29  ;;  %v1263_v8 = vadd.f32 %v1262_v45, %v1233_v38  ;;  %v1150_v38 = vld [vmem:[#allocation9 + $0xb70] sm:$0xff]  ;;  %v863_v45 = vld [vmem:[#allocation9 + $0x278] sm:$0xff] }
 0x200   : > { %1781 = vmatpush.msra.mxu3 %v943_v51  ;;  %1724 = vmatpush.msra.mxu1 %v1077_v63  ;;  %v1151_v57 = vld [vmem:[#allocation9 + $0xb78] sm:$0xff]  ;;  %v1141_v51 = vld [vmem:[#allocation9 + $0xb28] sm:$0xff]  ;;  %v998_v63 = vld [vmem:[#allocation9 + $0x6b0] sm:$0xff] }
 0x201   : > { %1695 = vmatpush.msra.mxu0 %v933_v62  ;;  %1753 = vmatpush.msra.mxu2 %v790_v0  ;;  %v854_v62 = vld [vmem:[#allocation9 + $0x230] sm:$0xff] }
 0x202   : > { %1782 = vmatpush.msra.mxu3 %v934_v52  ;;  %1696 = vmatmul.f32.vlgmr.msra.gmra.mxu0 %v8993_v14  ;;  %v1142_v0 = vld [vmem:[#allocation9 + $0xb30] sm:$0xff]  ;;  %v1132_v52 = vld [vmem:[#allocation9 + $0xae0] sm:$0xff] }
 0x203   : > { %1725 = vmatmul.f32.vlgmr.msra.gmra.mxu1 %v8996_v15  ;;  %1754 = vmatmul.f32.vlgmr.msra.gmra.mxu2 %v8990_v13 }
 0x204   : > { %1783 = vmatmul.f32.vlgmr.msra.gmra.mxu3 %v8993_v14  ;;  %1796 = vmatpush.msrb.mxu0 %v1213_v40 }
 0x205   : > { %v1291_v39 = vpop.f32.mrf.mxu2  ;;  %v9129_v1 = vpop.f32.mrf.mxu3  ;;  %1825 = vmatpush.msrb.mxu1 %v926_v4  ;;  %1854 = vmatpush.msrb.mxu2 %v1070_v5  ;;  %v989_v4 = vld [vmem:[#allocation9 + $0x668] sm:$0xff] }
 0x206   : > { %v9134_v41 = vpop.f32.mrf.mxu0  ;;  %v9136_v7 = vpop.f32.mrf.mxu1  ;;  %1883 = vmatpush.msrb.mxu3 %v1214_v6  ;;  %v9139_v42 = vadd.f32 %v1291_v39, %v1263_v8  ;;  %1797 = vmatpush.msrb.mxu0 %v1204_v2  ;;  %v845_v39 = vld [vmem:[#allocation9 + $0x1e8] sm:$0xff]  ;;  %v1123_v6 = vld [vmem:[#allocation9 + $0xa98] sm:$0xff]  ;;  %v836_v2 = vld [vmem:[#allocation9 + $0x1a0] sm:$0xff] }
 0x207   : > { %1826 = vmatpush.msrb.mxu1 %v917_v56  ;;  %1855 = vmatpush.msrb.mxu2 %v1061_v9  ;;  %v1133_v5 = vld [vmem:[#allocation9 + $0xae8] sm:$0xff] }
 0x208   : > { %1884 = vmatpush.msrb.mxu3 %v1205_v10  ;;  %1798 = vmatpush.msrb.mxu0 %v1195_v11  ;;  %v980_v10 = vld [vmem:[#allocation9 + $0x620] sm:$0xff] }
 0x209   : > { %1827 = vmatpush.msrb.mxu1 %v908_v43  ;;  %1856 = vmatpush.msrb.mxu2 %v1052_v44  ;;  %v1124_v11 = vld [vmem:[#allocation9 + $0xaa0] sm:$0xff] }
 0x20a   : > { %1885 = vmatpush.msrb.mxu3 %v1196_v12  ;;  %2242 = vrot.lane.b32.xlu1 %v9139_v42, %s8584_s7  ;;  %v1114_v12 = vld [vmem:[#allocation9 + $0xa50] sm:$0xff] }
 0x20b   : > { %1799 = vmatpush.msrb.mxu0 %v1186_v16  ;;  %1828 = vmatpush.msrb.mxu1 %v899_v19  ;;  %v827_v16 = vld [vmem:[#allocation9 + $0x158] sm:$0xff] }
 0x20c   : > { %1857 = vmatpush.msrb.mxu2 %v1043_v23  ;;  %1886 = vmatpush.msrb.mxu3 %v1187_v21  ;;  %v971_v19 = vld [vmem:[#allocation9 + $0x5d8] sm:$0xff]  ;;  %v1105_v21 = vld [vmem:[#allocation9 + $0xa08] sm:$0xff] }
 0x20d   : > { %v9143_v22 = vpop.f32.mrf.mxu2  ;;  %v9145_v24 = vpop.f32.mrf.mxu3  ;;  %1699 = vmatmul.f32.gmra.mxu0 %v9026_v54  ;;  %1728 = vmatmul.f32.gmra.mxu1 %v9029_v58  ;;  %v1115_v23 = vld [vmem:[#allocation9 + $0xa58] sm:$0xff] }
 0x20e   : > { %v1239_v27 = vpop.f32.mrf.mxu0  ;;  %v1268_v25 = vpop.f32.mrf.mxu1  ;;  %1757 = vmatmul.f32.gmra.mxu2 %v9023_v53  ;;  %1786 = vmatmul.f32.gmra.mxu3 %v9026_v54 }
 0x20f   : > { %1800 = vmatpush.msrb.mxu0 %v1177_v59  ;;  %1829 = vmatpush.msrb.mxu1 %v890_v60  ;;  %v1269_v40 = vadd.f32 %v1268_v25, %v1239_v27  ;;  %v818_v27 = vld [vmem:[#allocation9 + $0x110] sm:$0xff]  ;;  %v1096_v60 = vld [vmem:[#allocation9 + $0x9c0] sm:$0xff] }
 0x210   : > { %1858 = vmatpush.msrb.mxu2 %v1034_v26  ;;  %1887 = vmatpush.msrb.mxu3 %v1178_v61  ;;  %v962_v25 = vld [vmem:[#allocation9 + $0x590] sm:$0xff] }
 0x211   : > { %1801 = vmatpush.msrb.mxu0 %v1168_v28  ;;  %1830 = vmatpush.msrb.mxu1 %v881_v31  ;;  %v1106_v59 = vld [vmem:[#allocation9 + $0xa10] sm:$0xff]  ;;  %v809_v28 = vld [vmem:[#allocation9 + $0xc8] sm:$0xff] }
 0x212   : > { %1859 = vmatpush.msrb.mxu2 %v1025_v32  ;;  %1888 = vmatpush.msrb.mxu3 %v1169_v33  ;;  %v953_v31 = vld [vmem:[#allocation9 + $0x548] sm:$0xff] }
 0x213   : > { %1802 = vmatpush.msrb.mxu0 %v1159_v3  ;;  %1831 = vmatpush.msrb.mxu1 %v872_v35  ;;  %v1097_v3 = vld [vmem:[#allocation9 + $0x9c8] sm:$0xff]  ;;  %v1087_v35 = vld [vmem:[#allocation9 + $0x978] sm:$0xff] }
 0x214   : > { %1860 = vmatpush.msrb.mxu2 %v1016_v36  ;;  %1889 = vmatpush.msrb.mxu3 %v1160_v37  ;;  %v800_v36 = vld [vmem:[#allocation9 + $0x80] sm:$0xff] }
 0x215   : > { %v1297_v55 = vpop.f32.mrf.mxu2  ;;  %v9151_v49 = vpop.f32.mrf.mxu3  ;;  %1803 = vmatpush.msrb.mxu0 %v1150_v38  ;;  %1832 = vmatpush.msrb.mxu1 %v863_v45  ;;  %v944_v37 = vld [vmem:[#allocation9 + $0x500] sm:$0xff]  ;;  %v1078_v45 = vld [vmem:[#allocation9 + $0x930] sm:$0xff] }
 0x216   : > { %v9153_v30 = vpop.f32.mrf.mxu0  ;;  %v9155_v29 = vpop.f32.mrf.mxu1  ;;  %1861 = vmatpush.msrb.mxu2 %v1007_v50  ;;  %1890 = vmatpush.msrb.mxu3 %v1151_v57  ;;  %v9165_v9 = vadd.f32 %v1297_v55, %v1269_v40  ;;  %v1088_v38 = vld [vmem:[#allocation9 + $0x980] sm:$0xff]  ;;  %v791_v55 = vld [vmem:[#allocation9 + $0x38] sm:$0xff] }
 0x217   : > { %1702 = vmatmul.f32.gmra.mxu0 %v9053_v18  ;;  %1731 = vmatmul.f32.gmra.mxu1 %v9058_v20  ;;  %v935_v50 = vld [vmem:[#allocation9 + $0x4b8] sm:$0xff] }
 0x218   : > { %1760 = vmatmul.f32.gmra.mxu2 %v9050_v17  ;;  %1789 = vmatmul.f32.gmra.mxu3 %v9053_v18  ;;  %v1079_v57 = vld [vmem:[#allocation9 + $0x938] sm:$0xff] }
 0x219   : > { %1804 = vmatpush.msrb.mxu0 %v1141_v51  ;;  %1833 = vmatpush.msrb.mxu1 %v854_v62  ;;  %v927_v51 = vld [vmem:[#allocation9 + $0x478] sm:$0xff] }
 0x21a   : > { %1862 = vmatpush.msrb.mxu2 %v998_v63  ;;  %1891 = vmatpush.msrb.mxu3 %v1142_v0  ;;  %v1071_v0 = vld [vmem:[#allocation9 + $0x8f8] sm:$0xff] }
 0x21b   : > { %1805 = vmatpush.msrb.mxu0 %v1132_v52  ;;  %1834 = vmatpush.msrb.mxu1 %v845_v39  ;;  %v1215_v52 = vld [vmem:[#allocation9 + $0xd78] sm:$0xff] }
 0x21c   : > { %1863 = vmatpush.msrb.mxu2 %v989_v4  ;;  %1892 = vmatpush.msrb.mxu3 %v1133_v5  ;;  %v918_v4 = vld [vmem:[#allocation9 + $0x430] sm:$0xff] }
 0x21d   : > { %v9161_v8 = vpop.f32.mrf.mxu2  ;;  %v9163_v56 = vpop.f32.mrf.mxu3  ;;  %1806 = vmatpush.msrb.mxu0 %v1123_v6  ;;  %1835 = vmatpush.msrb.mxu1 %v836_v2  ;;  %v1062_v5 = vld [vmem:[#allocation9 + $0x8b0] sm:$0xff]  ;;  %v909_v2 = vld [vmem:[#allocation9 + $0x3e8] sm:$0xff] }
 0x21e   : > { %v9167_v43 = vpop.f32.mrf.mxu0  ;;  %v9169_v44 = vpop.f32.mrf.mxu1  ;;  %1864 = vmatpush.msrb.mxu2 %v980_v10  ;;  %1893 = vmatpush.msrb.mxu3 %v1124_v11  ;;  %v1206_v6 = vld [vmem:[#allocation9 + $0xd30] sm:$0xff]  ;;  %v1053_v10 = vld [vmem:[#allocation9 + $0x868] sm:$0xff] }
 0x21f   : > { %2281 = vrot.lane.b32.xlu1 %v9165_v9, %s8584_s7  ;;  %1807 = vmatpush.msrb.mxu0 %v1114_v12  ;;  %v1197_v11 = vld [vmem:[#allocation9 + $0xce8] sm:$0xff]  ;;  %v900_v12 = vld [vmem:[#allocation9 + $0x3a0] sm:$0xff] }
 0x220   : > { %1836 = vmatpush.msrb.mxu1 %v827_v16  ;;  %1865 = vmatpush.msrb.mxu2 %v971_v19  ;;  %v1044_v16 = vld [vmem:[#allocation9 + $0x820] sm:$0xff] }
 0x221   : > { %1894 = vmatpush.msrb.mxu3 %v1115_v23  ;;  %1705 = vmatmul.f32.gmra.mxu0 %v9072_v47  ;;  %v1188_v19 = vld [vmem:[#allocation9 + $0xca0] sm:$0xff] }
 0x222   : > { %1734 = vmatmul.f32.gmra.mxu1 %v9075_v48  ;;  %1763 = vmatmul.f32.gmra.mxu2 %v9069_v46 }
 0x223   : > { %1792 = vmatmul.f32.gmra.mxu3 %v9072_v47  ;;  %1808 = vmatpush.msrb.mxu0 %v1105_v21 }
 0x224   : > { %1837 = vmatpush.msrb.mxu1 %v818_v27  ;;  %1866 = vmatpush.msrb.mxu2 %v962_v25 }
 0x225   : > { %v9176_v26 = vpop.f32.mrf.mxu2  ;;  %v9178_v61 = vpop.f32.mrf.mxu3  ;;  %1895 = vmatpush.msrb.mxu3 %v1106_v59  ;;  %1809 = vmatpush.msrb.mxu0 %v1096_v60  ;;  %v891_v59 = vld [vmem:[#allocation9 + $0x358] sm:$0xff] }
 0x226   : > { %v9181_v32 = vpop.f32.mrf.mxu0  ;;  %v9183_v33 = vpop.f32.mrf.mxu1  ;;  %1838 = vmatpush.msrb.mxu1 %v809_v28  ;;  %1867 = vmatpush.msrb.mxu2 %v953_v31  ;;  %v1035_v60 = vld [vmem:[#allocation9 + $0x7d8] sm:$0xff]  ;;  %v882_v31 = vld [vmem:[#allocation9 + $0x310] sm:$0xff] }
 0x227   : > { %1896 = vmatpush.msrb.mxu3 %v1097_v3  ;;  %1810 = vmatpush.msrb.mxu0 %v1087_v35  ;;  %v1179_v28 = vld [vmem:[#allocation9 + $0xc58] sm:$0xff]  ;;  %v1026_v3 = vld [vmem:[#allocation9 + $0x790] sm:$0xff] }
 0x228   : > { %1839 = vmatpush.msrb.mxu1 %v800_v36  ;;  %1868 = vmatpush.msrb.mxu2 %v944_v37  ;;  %v1170_v35 = vld [vmem:[#allocation9 + $0xc10] sm:$0xff]  ;;  %v873_v36 = vld [vmem:[#allocation9 + $0x2c8] sm:$0xff] }
 0x229   : > { %1897 = vmatpush.msrb.mxu3 %v1088_v38  ;;  %1811 = vmatpush.msrb.mxu0 %v1078_v45  ;;  %v1017_v37 = vld [vmem:[#allocation9 + $0x748] sm:$0xff]  ;;  %v864_v45 = vld [vmem:[#allocation9 + $0x280] sm:$0xff] }
 0x22a   : > { %1840 = vmatpush.msrb.mxu1 %v791_v55  ;;  %1869 = vmatpush.msrb.mxu2 %v935_v50  ;;  %v1161_v38 = vld [vmem:[#allocation9 + $0xbc8] sm:$0xff] }
 0x22b   : > { %1898 = vmatpush.msrb.mxu3 %v1079_v57  ;;  %1812 = vmatmul.f32.vlgmr.msrb.gmra.mxu0 %v8996_v15  ;;  %v1008_v57 = vld [vmem:[#allocation9 + $0x700] sm:$0xff] }
 0x22c   : > { %1841 = vmatmul.f32.vlgmr.msrb.gmra.mxu1 %v8990_v13  ;;  %1870 = vmatmul.f32.vlgmr.msrb.gmra.mxu2 %v8993_v14 }
 0x22d   : > { %v9185_v62 = vpop.f32.mrf.mxu2  ;;  %v9187_v63 = vpop.f32.mrf.mxu3  ;;  %1899 = vmatmul.f32.vlgmr.msrb.gmra.mxu3 %v8996_v15  ;;  %1912 = vmatpush.msra.mxu0 %v927_v51  ;;  %v1152_v51 = vld [vmem:[#allocation9 + $0xb80] sm:$0xff] }
 0x22e   : > { %v9190_v39 = vpop.f32.mrf.mxu0  ;;  %v9192_v40 = vpop.f32.mrf.mxu1  ;;  %1941 = vmatpush.msra.mxu1 %v1071_v0  ;;  %1970 = vmatpush.msra.mxu2 %v1215_v52 }
 0x22f   : > { %7769 = vmatpush.msra.mxu3 %v1215_v52  ;;  %1913 = vmatpush.msra.mxu0 %v918_v4  ;;  %v855_v4 = vld [vmem:[#allocation9 + $0x238] sm:$0xff] }
 0x230   : > { %1942 = vmatpush.msra.mxu1 %v1062_v5  ;;  %1971 = vmatpush.msra.mxu2 %v1206_v6  ;;  %v999_v5 = vld [vmem:[#allocation9 + $0x6b8] sm:$0xff] }
 0x231   : > { %7770 = vmatpush.msra.mxu3 %v1206_v6  ;;  %1914 = vmatpush.msra.mxu0 %v909_v2  ;;  %v1143_v6 = vld [vmem:[#allocation9 + $0xb38] sm:$0xff]  ;;  %v846_v2 = vld [vmem:[#allocation9 + $0x1f0] sm:$0xff] }
 0x232   : > { %1943 = vmatpush.msra.mxu1 %v1053_v10  ;;  %1972 = vmatpush.msra.mxu2 %v1197_v11  ;;  %v990_v10 = vld [vmem:[#allocation9 + $0x670] sm:$0xff] }
 0x233   : > { %7771 = vmatpush.msra.mxu3 %v1197_v11  ;;  %1915 = vmatpush.msra.mxu0 %v900_v12  ;;  %v1134_v11 = vld [vmem:[#allocation9 + $0xaf0] sm:$0xff]  ;;  %v837_v12 = vld [vmem:[#allocation9 + $0x1a8] sm:$0xff] }
 0x234   : > { %1944 = vmatpush.msra.mxu1 %v1044_v16  ;;  %1973 = vmatpush.msra.mxu2 %v1188_v19 }
 0x235   : > { %v9197_v23 = vpop.f32.mrf.mxu2  ;;  %v9199_v21 = vpop.f32.mrf.mxu3  ;;  %7772 = vmatpush.msra.mxu3 %v1188_v19  ;;  %1815 = vmatmul.f32.gmra.mxu0 %v9029_v58 }
 0x236   : > { %v9201_v27 = vpop.f32.mrf.mxu0  ;;  %v9203_v25 = vpop.f32.mrf.mxu1  ;;  %1844 = vmatmul.f32.gmra.mxu1 %v9023_v53  ;;  %1873 = vmatmul.f32.gmra.mxu2 %v9026_v54 }
 0x237   : > { %1902 = vmatmul.f32.gmra.mxu3 %v9029_v58  ;;  %1916 = vmatpush.msra.mxu0 %v891_v59  ;;  %v981_v59 = vld [vmem:[#allocation9 + $0x628] sm:$0xff] }
 0x238   : > { %1945 = vmatpush.msra.mxu1 %v1035_v60  ;;  %1974 = vmatpush.msra.mxu2 %v1179_v28  ;;  %v1125_v60 = vld [vmem:[#allocation9 + $0xaa8] sm:$0xff] }
 0x239   : > { %7773 = vmatpush.msra.mxu3 %v1179_v28  ;;  %1917 = vmatpush.msra.mxu0 %v882_v31 }
 0x23a   : > { %1946 = vmatpush.msra.mxu1 %v1026_v3  ;;  %1975 = vmatpush.msra.mxu2 %v1170_v35  ;;  %v828_v3 = vld [vmem:[#allocation9 + $0x160] sm:$0xff] }
 0x23b   : > { %7774 = vmatpush.msra.mxu3 %v1170_v35  ;;  %1918 = vmatpush.msra.mxu0 %v873_v36  ;;  %v972_v35 = vld [vmem:[#allocation9 + $0x5e0] sm:$0xff] }
 0x23c   : > { %1947 = vmatpush.msra.mxu1 %v1017_v37  ;;  %1976 = vmatpush.msra.mxu2 %v1161_v38  ;;  %v1116_v36 = vld [vmem:[#allocation9 + $0xa60] sm:$0xff]  ;;  %v819_v37 = vld [vmem:[#allocation9 + $0x118] sm:$0xff] }
 0x23d   : > { %v9209_v55 = vpop.f32.mrf.mxu2  ;;  %v9211_v50 = vpop.f32.mrf.mxu3  ;;  %7775 = vmatpush.msra.mxu3 %v1161_v38  ;;  %1919 = vmatpush.msra.mxu0 %v864_v45  ;;  %v963_v38 = vld [vmem:[#allocation9 + $0x598] sm:$0xff] }
 0x23e   : > { %v9213_v0 = vpop.f32.mrf.mxu0  ;;  %v9215_v52 = vpop.f32.mrf.mxu1  ;;  %1948 = vmatpush.msra.mxu1 %v1008_v57  ;;  %1977 = vmatpush.msra.mxu2 %v1152_v51  ;;  %v1107_v45 = vld [vmem:[#allocation9 + $0xa18] sm:$0xff]  ;;  %v810_v57 = vld [vmem:[#allocation9 + $0xd0] sm:$0xff] }
 0x23f   : > { %7776 = vmatpush.msra.mxu3 %v1152_v51  ;;  %1818 = vmatmul.f32.gmra.mxu0 %v9058_v20 }
 0x240   : > { %1847 = vmatmul.f32.gmra.mxu1 %v9050_v17  ;;  %1876 = vmatmul.f32.gmra.mxu2 %v9053_v18 }
 0x241   : > { %1905 = vmatmul.f32.gmra.mxu3 %v9058_v20  ;;  %1920 = vmatpush.msra.mxu0 %v855_v4 }
 0x242   : > { %1949 = vmatpush.msra.mxu1 %v999_v5  ;;  %1978 = vmatpush.msra.mxu2 %v1143_v6  ;;  %v954_v5 = vld [vmem:[#allocation9 + $0x550] sm:$0xff] }
 0x243   : > { %7777 = vmatpush.msra.mxu3 %v1143_v6  ;;  %1921 = vmatpush.msra.mxu0 %v846_v2  ;;  %v1098_v6 = vld [vmem:[#allocation9 + $0x9d0] sm:$0xff] }
 0x244   : > { %1950 = vmatpush.msra.mxu1 %v990_v10  ;;  %1979 = vmatpush.msra.mxu2 %v1134_v11 }
 0x245   : > { %v1523_v16 = vpop.f32.mrf.mxu2  ;;  %v1552_v19 = vpop.f32.mrf.mxu3  ;;  %7778 = vmatpush.msra.mxu3 %v1134_v11  ;;  %1922 = vmatpush.msra.mxu0 %v837_v12  ;;  %v801_v11 = vld [vmem:[#allocation9 + $0x88] sm:$0xff] }
 0x246   : > { %v9221_v28 = vpop.f32.mrf.mxu0  ;;  %v1497_v31 = vpop.f32.mrf.mxu1  ;;  %1951 = vmatpush.msra.mxu1 %v981_v59  ;;  %1980 = vmatpush.msra.mxu2 %v1125_v60  ;;  %v945_v12 = vld [vmem:[#allocation9 + $0x508] sm:$0xff] }
 0x247   : > { %7779 = vmatpush.msra.mxu3 %v1125_v60  ;;  %1923 = vmatpush.msra.mxu0 %v828_v3  ;;  %v1089_v59 = vld [vmem:[#allocation9 + $0x988] sm:$0xff]  ;;  %v1524_v60 = vadd.f32 %v1523_v16, %v9215_v52  ;;  %v792_v3 = vld [vmem:[#allocation9 + $0x40] sm:$0xff] }
 0x248   : > { %1952 = vmatpush.msra.mxu1 %v972_v35  ;;  %1981 = vmatpush.msra.mxu2 %v1116_v36 }
 0x249   : > { %7780 = vmatpush.msra.mxu3 %v1116_v36  ;;  %1821 = vmatmul.f32.gmra.mxu0 %v9075_v48  ;;  %v936_v36 = vld [vmem:[#allocation9 + $0x4c0] sm:$0xff] }
 0x24a   : > { %1850 = vmatmul.f32.gmra.mxu1 %v9069_v46  ;;  %1879 = vmatmul.f32.gmra.mxu2 %v9072_v47 }
 0x24b   : > { %1908 = vmatmul.f32.gmra.mxu3 %v9075_v48  ;;  %1924 = vmatpush.msra.mxu0 %v819_v37  ;;  %v1080_v37 = vld [vmem:[#allocation9 + $0x940] sm:$0xff] }
 0x24c   : > { %1953 = vmatpush.msra.mxu1 %v963_v38  ;;  %1982 = vmatpush.msra.mxu2 %v1107_v45  ;;  %v1553_v38 = vadd.f32 %v1552_v19, %v1524_v60  ;;  %v1266_v19 = vadd.f32 %v9136_v7, %v9134_v41 }
 0x24d   : > { %v1526_v51 = vpop.f32.mrf.mxu2  ;;  %v1555_v4 = vpop.f32.mrf.mxu3  ;;  %7781 = vmatpush.msra.mxu3 %v1107_v45  ;;  %1925 = vmatpush.msra.mxu0 %v810_v57 }
 0x24e   : > { %v9227_v2 = vpop.f32.mrf.mxu0  ;;  %v1500_v10 = vpop.f32.mrf.mxu1  ;;  %1954 = vmatpush.msra.mxu1 %v954_v5  ;;  %1983 = vmatpush.msra.mxu2 %v1098_v6  ;;  %v1527_v35 = vadd.f32 %v1526_v51, %v1497_v31 }
 0x24f   : > { %7782 = vmatpush.msra.mxu3 %v1098_v6  ;;  %1926 = vmatpush.msra.mxu0 %v801_v11 }
 0x250   : > { %1955 = vmatpush.msra.mxu1 %v945_v12  ;;  %1984 = vmatpush.msra.mxu2 %v1089_v59  ;;  %v1556_v45 = vadd.f32 %v1555_v4, %v1527_v35 }
 0x251   : > { %7783 = vmatpush.msra.mxu3 %v1089_v59  ;;  %1927 = vmatpush.msra.mxu0 %v792_v3 }
 0x252   : > { %1956 = vmatpush.msra.mxu1 %v936_v36  ;;  %1985 = vmatpush.msra.mxu2 %v1080_v37 }
 0x253   : > { %7784 = vmatpush.msra.mxu3 %v1080_v37  ;;  %1928 = vmatmul.f32.vlgmr.msra.gmra.mxu0 %v8990_v13 }
 0x254   : > { %1957 = vmatmul.f32.vlgmr.msra.gmra.mxu1 %v8993_v14  ;;  %1986 = vmatmul.f32.vlgmr.msra.gmra.mxu2 %v8996_v15 }
 0x255   : > { %v1529_v57 = vpop.f32.mrf.mxu2  ;;  %v1558_v34 = vpop.f32.mrf.mxu3  ;;  %1992 = vmatmul.f32.vlgmr.msra.gmra.mxu3 %v9058_v20  ;;  %2246 = vrot.lane.b32.xlu0 %v1553_v38, %s8584_s7  ;;  %v1295_v20 = vadd.f32 %v9143_v22, %v1266_v19  ;;  %v1272_v22 = vadd.f32 %v9155_v29, %v9153_v30  ;;  %v1437_v19 = vadd.f32 %v9178_v61, %v9176_v26 }
 0x256   : > { %v9231_v52 = vpop.f32.mrf.mxu0  ;;  %v1503_v16 = vpop.f32.mrf.mxu1  ;;  %2248 = vrot.lane.b32.xlu2 %v1556_v45, %s8584_s7  ;;  %7692 = vmatpush.xpose.msk.msrb.mxu3 %vm2008_vm13, %v1556_v45  ;;  %v1530_v4 = vadd.f32 %v1529_v57, %v1500_v10 }
 0x257   : > { %v1301_v10 = vadd.f32 %v9161_v8, %v1272_v22 }
 0x25a   : > { %7693 = vmatpush.xpose.msk.msrb.mxu3 %vm2008_vm13, %v1553_v38 }
 0x25b   : > { %1931 = vmatmul.f32.gmra.mxu0 %v9023_v53  ;;  %v1559_v53 = vadd.f32 %v1558_v34, %v1530_v4  ;;  %v1350_v34 = vadd.f32 %v9167_v43, %v9129_v1  ;;  %v1443_v4 = vadd.f32 %v9199_v21, %v9197_v23  ;;  %v1446_v23 = vadd.f32 %v9211_v50, %v9209_v55 }
 0x25c   : > { %1960 = vmatmul.f32.gmra.mxu1 %v9026_v54  ;;  %1989 = vmatmul.f32.gmra.mxu2 %v9029_v58 }
 0x25d   : > { %v1532_v13 = vpop.f32.mrf.mxu2  ;;  %v1561_v31 = vpop.f32.mrf.mxu3  ;;  %1995 = vmatmul.f32.gmra.mxu3 %v9075_v48 }
 0x25e   : > { %v1533_v14 = vadd.f32 %v1532_v13, %v1503_v16  ;;  %v1581_v51 = vpop.f32.mrf.mxu0  ;;  %v1610_v15 = vpop.f32.mrf.mxu1  ;;  %2244 = vrot.lane.b32.xlu2 %v1295_v20, %s8584_s7 }
 0x25f   : > { %v1611_v41 = vadd.f32 %v1610_v15, %v1581_v51  ;;  %v1440_v51 = vadd.f32 %v9187_v63, %v9185_v62  ;;  %v9339_v62 = vadd.f32 %v9227_v2, %v1443_v4  ;;  %v9350_v2 = vadd.f32 %v9231_v52, %v1446_v23 }
 0x260   : > { %v1562_v5 = vadd.f32 %v1561_v31, %v1533_v14 }
 0x261   : > { %v9328_v26 = vadd.f32 %v9221_v28, %v1440_v51 }
 0x262   : > { %2287 = vrot.lane.b32.xlu0 %v1562_v5, %s8584_s7  ;;  %7696 = vmatpush.xpose.msk.msra.mxu3 %vm2008_vm13, %v1562_v5 }
 0x263   : > { %1934 = vmatmul.f32.gmra.mxu0 %v9050_v17 }
 0x264   : > { %1963 = vmatmul.f32.gmra.mxu1 %v9053_v18 }
 0x265   : > { %v1639_v7 = vpop.f32.mrf.mxu2  ;;  %v1668_v6 = vpop.f32.mrf.mxu3  ;;  %7694 = vmatmul.msk.f32.vlgmr.msrb.gmra.mxu3 %vm2008_vm13, %v9139_v42  ;;  %v9271_v42 = vadd.f32 %v9169_v44, %v1350_v34 }
 0x266   : > { %v9253_v54 = vadd.f32 %v1639_v7, %v1611_v41  ;;  %7697 = vmatpush.xpose.msk.msra.mxu3 %vm2008_vm13, %v1559_v53  ;;  %v1584_v58 = vpop.f32.mrf.mxu0  ;;  %v1613_v48 = vpop.f32.mrf.mxu1  ;;  %2285 = vrot.lane.b32.xlu2 %v1559_v53, %s8584_s7 }
 0x267   : > { %v1614_v17 = vadd.f32 %v1613_v48, %v1584_v58 }
 0x268   : > { %2751 = vrot.lane.b32.xlu1 %v9253_v54, %s8584_s7 }
 0x26a   : > { %2283 = vrot.lane.b32.xlu0 %v1301_v10, %s8584_s7 }
 0x26b   : > { %1937 = vmatmul.f32.gmra.mxu0 %v9069_v46  ;;  %v1353_v46 = vadd.f32 %v9181_v32, %v9145_v24  ;;  %v1356_v24 = vadd.f32 %v9190_v39, %v9151_v49  ;;  %v1359_v49 = vadd.f32 %v9201_v27, %v9163_v56  ;;  %v9317_v27 = vadd.f32 %v9213_v0, %v1437_v19 }
 0x26c   : > { %1966 = vmatmul.f32.gmra.mxu1 %v9072_v47 }
 0x26d   : > { %v1642_v30 = vpop.f32.mrf.mxu2  ;;  %v1671_v29 = vpop.f32.mrf.mxu3  ;;  %7695 = vmatmul.msk.f32.gmra.mxu3 %vm2008_vm13, %v1295_v20  ;;  %v9281_v12 = vadd.f32 %v9183_v33, %v1353_v46  ;;  %v9294_v33 = vadd.f32 %v9192_v40, %v1356_v24  ;;  %v9308_v38 = vadd.f32 %v9203_v25, %v1359_v49 }
 0x26e   : > { %v9267_v18 = vadd.f32 %v1642_v30, %v1614_v17  ;;  %v1587_v8 = vpop.f32.mrf.mxu0  ;;  %v1616_v11 = vpop.f32.mrf.mxu1 }
 0x26f   : > { %v1617_v43 = vadd.f32 %v1616_v11, %v1587_v8 }
 0x270   : > { %2753 = vrot.lane.b32.xlu2 %v9267_v18, %s8584_s7 }
 0x272   : > { %2747 = vrot.lane.b32.xlu0 %v9271_v42, %s8584_s7 }
 0x275   : > { %v1645_v1 = vpop.f32.mrf.mxu2  ;;  %v1674_v47 = vpop.f32.mrf.mxu3  ;;  %7698 = vmatmul.msk.f32.vlgmr.msra.gmra.mxu3 %vm2008_vm13, %v9165_v9 }
 0x276   : > { %v9285_v44 = vadd.f32 %v1645_v1, %v1617_v43  ;;  %v1590_v59 = vpop.f32.mrf.mxu0  ;;  %v1619_v32 = vpop.f32.mrf.mxu1 }
 0x277   : > { %v1620_v60 = vadd.f32 %v1619_v32, %v1590_v59 }
 0x278   : > { %2749 = vrot.lane.b32.xlu2 %v9281_v12, %s8584_s7 }
 0x27a   : > { %2790 = vrot.lane.b32.xlu0 %v9285_v44, %s8584_s7 }
 0x27d   : > { %v1648_v3 = vpop.f32.mrf.mxu2  ;;  %7699 = vmatmul.msk.f32.gmra.mxu3 %vm2008_vm13, %v1301_v10  ;;  %v1677_v35 = vpop.f32.mrf.mxu3 }
 0x27e   : > { %v9297_v9 = vadd.f32 %v1648_v3, %v1620_v60 }
 0x27f   : > { %v1697_v36 = vpop.f32.mrf.mxu0 }
 0x280   : > { %2786 = vrot.lane.b32.xlu2 %v9294_v33, %s8584_s7  ;;  %2792 = vrot.lane.b32.xlu1 %v9297_v9, %s8584_s7  ;;  %v1698_v37 = vadd.f32 %v1697_v36, %v1668_v6  ;;  %v1726_v39 = vpop.f32.mrf.mxu1 }
 0x282   : > { %v9305_v40 = vadd.f32 %v1726_v39, %v1698_v37  ;;  %v2243_v39 = vpop.permute.xlu1 %2242 }
 0x286   : > { %v1755_v45 = vpop.f32.mrf.mxu2 }
 0x287   : > { %v1784_v57 = vpop.f32.mrf.mxu3 }
 0x288   : > { %3255 = vrot.lane.b32.xlu2 %v9305_v40, %s8584_s7  ;;  %2788 = vrot.lane.b32.xlu1 %v9308_v38, %s8584_s7  ;;  %v1785_v17 = vadd.f32 %v1784_v57, %v1755_v45 }
 0x28a   : > { %v1700_v16 = vpop.f32.mrf.mxu0  ;;  %v1729_v56 = vpop.f32.mrf.mxu1 }
 0x28b   : > { %v1701_v13 = vadd.f32 %v1700_v16, %v1671_v29 }
 0x28d   : > { %v9319_v31 = vadd.f32 %v1729_v56, %v1701_v13 }
 0x28f   : > { %3257 = vrot.lane.b32.xlu0 %v9319_v31, %s8584_s7 }
 0x290   : > { %3251 = vrot.lane.b32.xlu1 %v9317_v27, %s8584_s7 }
 0x291   : > { %v1758_v25 = vpop.f32.mrf.mxu2  ;;  %v1787_v14 = vpop.f32.mrf.mxu3 }
 0x292   : > { %v1788_v30 = vadd.f32 %v1787_v14, %v1758_v25  ;;  %v2282_v25 = vpop.permute.xlu1 %2281 }
 0x294   : > { %v1703_v15 = vpop.f32.mrf.mxu0  ;;  %v1732_v0 = vpop.f32.mrf.mxu1 }
 0x295   : > { %v1704_v61 = vadd.f32 %v1703_v15, %v1674_v47 }
 0x297   : > { %v9330_v20 = vadd.f32 %v1732_v0, %v1704_v61  ;;  %3253 = vrot.lane.b32.xlu0 %v9328_v26, %s8584_s7 }
 0x299   : > { %3294 = vrot.lane.b32.xlu1 %v9330_v20, %s8584_s7 }
 0x29b   : > { %v1761_v5 = vpop.f32.mrf.mxu2  ;;  %v1790_v53 = vpop.f32.mrf.mxu3 }
 0x29c   : > { %v1791_v36 = vadd.f32 %v1790_v53, %v1761_v5 }
 0x29e   : > { %v1706_v63 = vpop.f32.mrf.mxu0 }
 0x29f   : > { %v1707_v28 = vadd.f32 %v1706_v63, %v1677_v35  ;;  %3290 = vrot.lane.b32.xlu0 %v9339_v62, %s8584_s7  ;;  %v1735_v41 = vpop.f32.mrf.mxu1 }
 0x2a1   : > { %v9343_v7 = vadd.f32 %v1735_v41, %v1707_v28 }
 0x2a3   : > { %3296 = vrot.lane.b32.xlu2 %v9343_v7, %s8584_s7 }
 0x2a5   : > { %v1764_v6 = vpop.f32.mrf.mxu2 }
 0x2a6   : > { %v1793_v22 = vpop.f32.mrf.mxu3 }
 0x2a7   : > { %v1794_v37 = vadd.f32 %v1793_v22, %v1764_v6 }
 0x2a8   : > { %v1813_v21 = vpop.f32.mrf.mxu0 }
 0x2a9   : > { %v1842_v58 = vpop.f32.mrf.mxu1  ;;  %v1814_v8 = vadd.f32 %v1813_v21, %v1785_v17 }
 0x2ab   : > { %3292 = vrot.lane.b32.xlu2 %v9350_v2, %s8584_s7 }
 0x2af   : > { %v1871_v48 = vpop.f32.mrf.mxu2 }
 0x2b0   : > { %v1900_v10 = vpop.f32.mrf.mxu3  ;;  %v2249_v34 = vpop.permute.xlu2 %2248  ;;  %v1872_v55 = vadd.f32 %v1871_v48, %v1842_v58 }
 0x2b1   : > { %7704 = vmatpush.xpose.msk.msrb.mxu2 %vm2008_vm13, %v2249_v34 }
 0x2b2   : > { %v1816_v29 = vpop.f32.mrf.mxu0  ;;  %v9356_v59 = vadd.f32 %v1900_v10, %v1872_v55 }
 0x2b3   : > { %v1817_v11 = vadd.f32 %v1816_v29, %v1788_v30  ;;  %v1845_v50 = vpop.f32.mrf.mxu1 }
 0x2b5   : > { %v7957_v46 = vpack.i.bf16 %v1814_v8, %v1817_v11  ;;  %2200 = vmatpush.msrb.mxu0 %v1817_v11 }
 0x2b7   : > { %2201 = vmatpush.msrb.mxu0 %v1814_v8  ;;  %7958 = vrot.lane.b32.xlu0 %v7957_v46, %s8584_s7 }
 0x2b8   : > { %v2245_v1 = vpop.permute.xlu2 %2244 }
 0x2b9   : > { %v1874_v52 = vpop.f32.mrf.mxu2 }
 0x2ba   : > { %v1875_v43 = vadd.f32 %v1874_v52, %v1845_v50  ;;  %v1903_v47 = vpop.f32.mrf.mxu3 }
 0x2bc   : > { %v9358_v24 = vadd.f32 %v1903_v47, %v1875_v43  ;;  %v1819_v32 = vpop.f32.mrf.mxu0 }
 0x2bd   : > { %v1820_v45 = vadd.f32 %v1819_v32, %v1791_v36 }
 0x2be   : > { %v7962_v60 = vpack.i.bf16 %v9356_v59, %v9358_v24 }
 0x2c0   : > { %7963 = vrot.lane.b32.xlu1 %v7962_v60, %s8584_s7  ;;  %v2286_v3 = vpop.permute.xlu2 %2285 }
 0x2c3   : > { %v9451_v50 = vpop.f32.mrf.mxu2 }
 0x2c4   : > { %v9363_v35 = vpop.f32.mrf.mxu3 }
 0x2c6   : > { %v1822_v49 = vpop.f32.mrf.mxu0 }
 0x2c7   : > { %v1823_v57 = vadd.f32 %v1822_v49, %v1794_v37  ;;  %v2247_v16 = vpop.permute.xlu0 %2246 }
 0x2c8   : > { %7705 = vmatpush.xpose.msk.msrb.mxu2 %vm2008_vm13, %v2247_v16 }
 0x2c9   : > { %v7967_v19 = vpack.i.bf16 %v1820_v45, %v1823_v57  ;;  %2229 = vmatpush.msrb.mxu1 %v1823_v57 }
 0x2ca   : > { %v2754_v13 = vpop.permute.xlu2 %2753 }
 0x2cb   : > { %2230 = vmatpush.msrb.mxu1 %v1820_v45  ;;  %7968 = vrot.lane.b32.xlu2 %v7967_v19, %s8584_s7 }
 0x2cc   : > { %7716 = vmatpush.xpose.msk.msra.mxu2 %vm2008_vm13, %v9267_v18 }
 0x2cd   : > { %7706 = vmatmul.msk.f32.vlgmr.msrb.gmra.mxu2 %vm2008_vm13, %v2243_v39 }
 0x2ce   : > { %v9372_v56 = vpop.f32.mrf.mxu3 }
 0x2d0   : > { %7717 = vmatpush.xpose.msk.msra.mxu2 %vm2008_vm13, %v9253_v54  ;;  %v1999_v54 = vlaneseq }
 0x2d2   : > { %v2000_v15 = vshrl.u32 %v1999_v54, 7  ;;  %v2003_v61 = vand.u32 127, %v1999_v54  ;;  %v2750_v4 = vpop.permute.xlu2 %2749 }
 0x2d4   : > { %7728 = vmatpush.xpose.msk.msrb.mxu2 %vm2008_vm13, %v2754_v13  ;;  %v2288_v14 = vpop.permute.xlu0 %2287  ;;  %vm2004_vm14 = vcmp.le.s32.totalorder %v2003_v61, %v2000_v15  ;;  %v2001_v5 = vadd.s32 8, %v2000_v15 }
 0x2d5   : > { %7708 = vmatpush.xpose.msk.msrb.mxu3 %vm2008_vm13, %v2288_v14  ;;  %7707 = vmatmul.msk.f32.gmra.mxu2 %vm2008_vm13, %v2245_v1 }
 0x2d6   : > { %vm2005_vm0 = vcmp.le.s32.totalorder %v2003_v61, %v2001_v5 }
 0x2d8   : > { %v9380_v51 = vpop.f32.mrf.mxu3 }
 0x2d9   : > { %7709 = vmatpush.xpose.msk.msrb.mxu3 %vm2008_vm13, %v2286_v3 }
 0x2da   : > { %v2752_v18 = vpop.permute.xlu1 %2751 }
 0x2db   : > { %7729 = vmatpush.xpose.msk.msrb.mxu2 %vm2008_vm13, %v2752_v18 }
 0x2dc   : > { %7710 = vmatmul.msk.f32.vlgmr.msrb.gmra.mxu3 %vm2008_vm13, %v2282_v25  ;;  %v2284_v0 = vpop.permute.xlu0 %2283 }
 0x2dd   : > { %7720 = vmatpush.xpose.msk.msra.mxu3 %vm2008_vm13, %v9297_v9  ;;  %7718 = vmatmul.msk.f32.vlgmr.msra.gmra.mxu2 %vm2008_vm13, %v9271_v42 }
 0x2df   : > { %7740 = vmatpush.xpose.msk.msra.mxu2 %vm2008_vm13, %v9319_v31 }
 0x2e0   : > { %v9390_v9 = vpop.f32.mrf.mxu3 }
 0x2e1   : > { %7721 = vmatpush.xpose.msk.msra.mxu3 %vm2008_vm13, %v9285_v44  ;;  %v8585_v44 = vmov -1e+30  }
 0x2e2   : > { %v9397_v42 = vsel %vm2004_vm14, 0.0, %v8585_v44 }
 0x2e3   : > { %7741 = vmatpush.xpose.msk.msra.mxu2 %vm2008_vm13, %v9305_v40  ;;  %v2787_v40 = vpop.permute.xlu2 %2786 }
 0x2e4   : > { %7711 = vmatmul.msk.f32.gmra.mxu3 %vm2008_vm13, %v2284_v0  ;;  %v2748_v63 = vpop.permute.xlu0 %2747 }
 0x2e5   : > { %7719 = vmatmul.msk.f32.gmra.mxu2 %vm2008_vm13, %v9281_v12  ;;  %v9407_v12 = vsel %vm2005_vm0, 0.0, %v8585_v44 }
 0x2e8   : > { %v2038_v31 = vpop.f32.mrf.mxu3 }
 0x2e9   : > { %v9400_v53 = vadd.f32 %v2038_v31, %v9397_v42 }
 0x2eb   : > { %v2080_v28 = vsel %vm2079_vm15, %v9400_v53, -inf  ;;  %v3256_v23 = vpop.permute.xlu2 %3255 }
 0x2ec   : > { %7722 = vmatmul.msk.f32.vlgmr.msra.gmra.mxu3 %vm2008_vm13, %v9294_v33  ;;  %2081 = vmax.xlane.f32.xlu1 %v2080_v28  ;;  %v2791_v21 = vpop.permute.xlu0 %2790 }
 0x2ed   : > { %7730 = vmatmul.msk.f32.vlgmr.msrb.gmra.mxu2 %vm2008_vm13, %v2748_v63 }
 0x2f0   : > { %v2041_v41 = vpop.f32.mrf.mxu3 }
 0x2f1   : > { %v9410_v6 = vadd.f32 %v2041_v41, %v9407_v12 }
 0x2f2   : > { %v2793_v22 = vpop.permute.xlu1 %2792 }
 0x2f3   : > { %7732 = vmatpush.xpose.msk.msrb.mxu3 %vm2008_vm13, %v2793_v22  ;;  %v2083_v33 = vsel %vm2079_vm15, %v9410_v6, -inf }
 0x2f4   : > { %7723 = vmatmul.msk.f32.gmra.mxu3 %vm2008_vm13, %v9308_v38  ;;  %2084 = vmax.xlane.f32.xlu0 %v2083_v33 }
 0x2f5   : > { %7731 = vmatmul.msk.f32.gmra.mxu2 %vm2008_vm13, %v2750_v4 }
 0x2f7   : > { %7733 = vmatpush.xpose.msk.msrb.mxu3 %vm2008_vm13, %v2791_v21 }
 0x2f8   : > { %v2073_v58 = vpop.f32.mrf.mxu3 }
 0x2f9   : > { %v9422_v48 = vadd.f32 %v2073_v58, %v9397_v42 }
 0x2fa   : > { %v2789_v38 = vpop.permute.xlu1 %2788 }
 0x2fb   : > { %7744 = vmatpush.xpose.msk.msra.mxu3 %vm2008_vm13, %v9343_v7  ;;  %v2086_v10 = vsel %vm2079_vm15, %v9422_v48, -inf }
 0x2fc   : > { %7734 = vmatmul.msk.f32.vlgmr.msrb.gmra.mxu3 %vm2008_vm13, %v2787_v40  ;;  %2087 = vmax.xlane.f32.xlu2 %v2086_v10 }
 0x2fd   : > { %7742 = vmatmul.msk.f32.vlgmr.msra.gmra.mxu2 %vm2008_vm13, %v9317_v27  ;;  %v3297_v34 = vpop.permute.xlu2 %3296 }
 0x2ff   : > { %7745 = vmatpush.xpose.msk.msra.mxu3 %vm2008_vm13, %v9330_v20 }
 0x300   : > { %v2076_v7 = vpop.f32.mrf.mxu3 }
 0x301   : > { %v9433_v17 = vadd.f32 %v2076_v7, %v9407_v12  ;;  %v3258_v30 = vpop.permute.xlu0 %3257 }
 0x302   : > { %v3252_v29 = vpop.permute.xlu1 %3251  ;;  %7752 = vmatpush.xpose.msk.msrb.mxu2 %vm2008_vm13, %v3258_v30 }
 0x303   : > { %7756 = vmatpush.xpose.msk.msrb.mxu3 %vm2008_vm13, %v3297_v34  ;;  %v2089_v20 = vsel %vm2079_vm15, %v9433_v17, -inf }
 0x304   : > { %7735 = vmatmul.msk.f32.gmra.mxu3 %vm2008_vm13, %v2789_v38  ;;  %2090 = vmax.xlane.f32.xlu0 %v2089_v20 }
 0x305   : > { %7743 = vmatmul.msk.f32.gmra.mxu2 %vm2008_vm13, %v9328_v26  ;;  %v3293_v26 = vpop.permute.xlu2 %3292 }
 0x306   : > { %7753 = vmatpush.xpose.msk.msrb.mxu2 %vm2008_vm13, %v3256_v23 }
 0x309   : > { %v3254_v8 = vpop.permute.xlu0 %3253 }
 0x30b   : > { %v3295_v27 = vpop.permute.xlu1 %3294 }
 0x30c   : > { %7746 = vmatmul.msk.f32.vlgmr.msra.gmra.mxu3 %vm2008_vm13, %v9339_v62 }
 0x30d   : > { %7754 = vmatmul.msk.f32.vlgmr.msrb.gmra.mxu2 %vm2008_vm13, %v3252_v29  ;;  %7757 = vmatpush.xpose.msk.msrb.mxu3 %vm2008_vm13, %v3295_v27 }
 0x311   : > { %v3291_v11 = vpop.permute.xlu0 %3290 }
 0x314   : > { %7747 = vmatmul.msk.f32.gmra.mxu3 %vm2008_vm13, %v9350_v2  ;;  %v9453_v2 = vpop.f32.mrf.mxu2 }
 0x315   : > { %7755 = vmatmul.msk.f32.gmra.mxu2 %vm2008_vm13, %v3254_v8 }
 0x31c   : > { %7758 = vmatmul.msk.f32.vlgmr.msrb.gmra.mxu3 %vm2008_vm13, %v3291_v11  ;;  %v9455_v47 = vpop.f32.mrf.mxu2 }
 0x324   : > { %7759 = vmatmul.msk.f32.gmra.mxu3 %vm2008_vm13, %v3293_v26  ;;  %v9457_v32 = vpop.f32.mrf.mxu2 }
 0x325   : > { %v7969_v46 = vpop.permute.xlu2 %7968 }
 0x326   : > { %v7970_v55 = vunpack.i.l.bf16 %v7969_v46  ;;  %v7971_v62 = vunpack.i.h.bf16 %v7969_v46 }
 0x328   : > { %2485 = vmatpush.msra.mxu1 %v7970_v55 }
 0x329   : > { %v7959_v52 = vpop.permute.xlu0 %7958 }
 0x32a   : > { %2486 = vmatpush.msra.mxu1 %v7971_v62  ;;  %v7960_v1 = vunpack.i.l.bf16 %v7959_v52  ;;  %v7961_v43 = vunpack.i.h.bf16 %v7959_v52 }
 0x32c   : > { %2448 = vmatpush.msra.mxu0 %v7960_v1 }
 0x32e   : > { %2449 = vmatpush.msra.mxu0 %v7961_v43 }
 0x332   : > { %v9464_v37 = vpop.permute.xlu1 %7963 }
 0x350   : > { %v2275_v60 = vpop.f32.mrf.mxu2 }
 0x351   : > { %v9460_v3 = vadd.f32 %v2275_v60, %v9397_v42 }
 0x353   : > { %v2320_v36 = vsel %vm2079_vm15, %v9460_v3, -inf }
 0x354   : > { %2321 = vmax.xlane.f32.xlu1 %v2320_v36 }
 0x358   : > { %v2278_v49 = vpop.f32.mrf.mxu2 }
 0x359   : > { %v9467_v39 = vadd.f32 %v2278_v49, %v9407_v12 }
 0x35b   : > { %v2323_v45 = vsel %vm2079_vm15, %v9467_v39, -inf }
 0x35c   : > { %2324 = vmax.xlane.f32.xlu2 %v2323_v45 }
 0x35f   : > { %v2314_v57 = vpop.f32.mrf.mxu3  ;;  %v2082_v16 = vpop.xlane.xlu1 %2081 }
 0x360   : > { %v2544_v19 = vpop.f32.mrf.mxu2  ;;  %v2092_v13 = vsub.f32 %v9400_v53, %v2082_v16  ;;  %v9491_v28 = vadd.f32 %v2314_v57, %v9397_v42 }
 0x361   : > { %v9473_v25 = vadd.f32 %v2544_v19, %v9397_v42 }
 0x362   : > { %v2096_v14 = vmul.f32 1.442695, %v2092_v13  ;;  %v2326_v23 = vsel %vm2079_vm15, %v9491_v28, -inf }
 0x363   : > { %v2585_v18 = vsel %vm2079_vm15, %v9473_v25, -inf }
 0x364   : > { %2586 = vmax.xlane.f32.xlu0 %v2585_v18  ;;  %7997 = vpow2.f32 %v2096_v14 }
 0x367   : > { %v2317_v54 = vpop.f32.mrf.mxu3  ;;  %v2085_v0 = vpop.xlane.xlu0 %2084 }
 0x368   : > { %v9478_v15 = vadd.f32 %v2317_v54, %v9407_v12  ;;  %v2547_v61 = vpop.f32.mrf.mxu2  ;;  %v2093_v5 = vsub.f32 %v9410_v6, %v2085_v0 }
 0x369   : > { %v9514_v46 = vadd.f32 %v2547_v61, %v9407_v12 }
 0x36a   : > { %v2329_v4 = vsel %vm2079_vm15, %v9478_v15, -inf  ;;  %v9482_v44 = vpop.eup %7997  ;;  %v2098_v40 = vmul.f32 1.442695, %v2093_v5 }
 0x36b   : > { %2330 = vmax.xlane.f32.xlu2 %v2329_v4  ;;  %v2104_v31 = vsel %vm2079_vm15, %v9482_v44, 0.0  ;;  %v2588_v52 = vsel %vm2079_vm15, %v9514_v46, -inf }
 0x36c   : > { %2105 = vadd.xlane.f32.xlu1 %v2104_v31  ;;  %7999 = vpow2.f32 %v2098_v40 }
 0x36f   : > { %v2579_v53 = vpop.f32.mrf.mxu3  ;;  %v2088_v58 = vpop.xlane.xlu2 %2087 }
 0x370   : > { %v9488_v63 = vadd.f32 %v2579_v53, %v9397_v42  ;;  %v2780_v41 = vpop.f32.mrf.mxu2  ;;  %v2094_v29 = vsub.f32 %v9422_v48, %v2088_v58 }
 0x371   : > { %v9496_v33 = vadd.f32 %v2780_v41, %v9397_v42 }
 0x372   : > { %v2591_v22 = vsel %vm2079_vm15, %v9488_v63, -inf  ;;  %v9502_v34 = vpop.eup %7999  ;;  %v2100_v26 = vmul.f32 1.442695, %v2094_v29 }
 0x373   : > { %2592 = vmax.xlane.f32.xlu0 %v2591_v22  ;;  %v2825_v6 = vsel %vm2079_vm15, %v9496_v33, -inf  ;;  %v2107_v8 = vsel %vm2079_vm15, %v9502_v34, 0.0 }
 0x374   : > { %2826 = vmax.xlane.f32.xlu2 %v2825_v6  ;;  %2327 = vmax.xlane.f32.xlu1 %v2326_v23 }
 0x377   : > { %v2582_v21 = vpop.f32.mrf.mxu3  ;;  %v2091_v38 = vpop.xlane.xlu0 %2090 }
 0x378   : > { %v2783_v10 = vpop.f32.mrf.mxu2  ;;  %v2095_v7 = vsub.f32 %v9433_v17, %v2091_v38  ;;  %v9531_v36 = vadd.f32 %v2582_v21, %v9407_v12 }
 0x379   : > { %v9506_v30 = vadd.f32 %v2783_v10, %v9407_v12 }
 0x37a   : > { %v2102_v20 = vmul.f32 1.442695, %v2095_v7  ;;  %v2594_v19 = vsel %vm2079_vm15, %v9531_v36, -inf }
 0x37b   : > { %v2828_v27 = vsel %vm2079_vm15, %v9506_v30, -inf }
 0x37c   : > { %2829 = vmax.xlane.f32.xlu2 %v2828_v27  ;;  %8001 = vpow2.f32 %v2102_v20  ;;  %2108 = vadd.xlane.f32.xlu1 %v2107_v8 }
 0x37d   : > { %8003 = vpow2.f32 %v2100_v26 }
 0x37f   : > { %v2819_v11 = vpop.f32.mrf.mxu3 }
 0x380   : > { %v3048_v17 = vpop.f32.mrf.mxu2  ;;  %v9542_v14 = vadd.f32 %v2819_v11, %v9397_v42 }
 0x381   : > { %v9517_v55 = vadd.f32 %v3048_v17, %v9397_v42 }
 0x382   : > { %v9519_v48 = vpop.eup %8001  ;;  %v2831_v0 = vsel %vm2079_vm15, %v9542_v14, -inf }
 0x383   : > { %v3089_v62 = vsel %vm2079_vm15, %v9517_v55, -inf  ;;  %v2113_v1 = vsel %vm2079_vm15, %v9519_v48, 0.0  ;;  %v9533_v49 = vpop.eup %8003 }
 0x384   : > { %3090 = vmax.xlane.f32.xlu2 %v3089_v62  ;;  %2589 = vmax.xlane.f32.xlu1 %v2588_v52  ;;  %v2110_v16 = vsel %vm2079_vm15, %v9533_v49, 0.0 }
 0x385   : > { %2114 = vadd.xlane.f32.xlu0 %v2113_v1 }
 0x387   : > { %v2822_v43 = vpop.f32.mrf.mxu3 }
 0x388   : > { %v9528_v60 = vadd.f32 %v2822_v43, %v9407_v12  ;;  %v3051_v45 = vpop.f32.mrf.mxu2 }
 0x389   : > { %v9545_v18 = vadd.f32 %v3051_v45, %v9407_v12 }
 0x38a   : > { %v2834_v57 = vsel %vm2079_vm15, %v9528_v60, -inf }
 0x38b   : > { %v3092_v61 = vsel %vm2079_vm15, %v9545_v18, -inf }
 0x38c   : > { %2835 = vmax.xlane.f32.xlu2 %v2834_v57  ;;  %2111 = vadd.xlane.f32.xlu1 %v2110_v16 }
 0x38d   : > { %2595 = vmax.xlane.f32.xlu0 %v2594_v19 }
 0x38f   : > { %v3083_v13 = vpop.f32.mrf.mxu3 }
 0x390   : > { %v3284_v54 = vpop.f32.mrf.mxu2  ;;  %v9552_v5 = vadd.f32 %v3083_v13, %v9397_v42 }
 0x391   : > { %v9558_v53 = vadd.f32 %v3284_v54, %v9397_v42 }
 0x392   : > { %v3095_v41 = vsel %vm2079_vm15, %v9552_v5, -inf }
 0x393   : > { %v3329_v22 = vsel %vm2079_vm15, %v9558_v53, -inf }
 0x394   : > { %3093 = vmax.xlane.f32.xlu1 %v3092_v61 }
 0x395   : > { %2832 = vmax.xlane.f32.xlu0 %v2831_v0 }
 0x397   : > { %v3086_v4 = vpop.f32.mrf.mxu3 }
 0x398   : > { %v9555_v31 = vadd.f32 %v3086_v4, %v9407_v12  ;;  %v3287_v6 = vpop.f32.mrf.mxu2 }
 0x399   : > { %v9570_v58 = vadd.f32 %v3287_v6, %v9407_v12 }
 0x39a   : > { %v3098_v40 = vsel %vm2079_vm15, %v9555_v31, -inf }
 0x39b   : > { %3099 = vmax.xlane.f32.xlu2 %v3098_v40  ;;  %v3332_v10 = vsel %vm2079_vm15, %v9570_v58, -inf }
 0x39c   : > { %3096 = vmax.xlane.f32.xlu1 %v3095_v41 }
 0x39d   : > { %3330 = vmax.xlane.f32.xlu0 %v3329_v22 }
 0x39f   : > { %v3323_v23 = vpop.f32.mrf.mxu3 }
 0x3a0   : > { %v9567_v21 = vadd.f32 %v3323_v23, %v9397_v42 }
 0x3a2   : > { %v3335_v38 = vsel %vm2079_vm15, %v9567_v21, -inf }
 0x3a3   : > { %3336 = vmax.xlane.f32.xlu2 %v3335_v38 }
 0x3a4   : > { %3333 = vmax.xlane.f32.xlu1 %v3332_v10 }
 0x3a7   : > { %v3326_v7 = vpop.f32.mrf.mxu3 }
 0x3a8   : > { %v9577_v29 = vadd.f32 %v3326_v7, %v9407_v12 }
 0x3aa   : > { %v3338_v20 = vsel %vm2079_vm15, %v9577_v29, -inf }
 0x3ac   : > { %3339 = vmax.xlane.f32.xlu1 %v3338_v20 }
 0x3c7   : > { %v2322_v42 = vpop.xlane.xlu1 %2321 }
 0x3c8   : > { %v2332_v27 = vsub.f32 %v9460_v3, %v2322_v42 }
 0x3ca   : > { %v2336_v8 = vmul.f32 1.442695, %v2332_v27 }
 0x3cc   : > { %8005 = vpow2.f32 %v2336_v8 }
 0x3cf   : > { %v2325_v11 = vpop.xlane.xlu2 %2324 }
 0x3d0   : > { %v2333_v26 = vsub.f32 %v9467_v39, %v2325_v11 }
 0x3d2   : > { %v9583_v17 = vpop.eup %8005  ;;  %v2338_v62 = vmul.f32 1.442695, %v2333_v26 }
 0x3d3   : > { %v2344_v52 = vsel %vm2079_vm15, %v9583_v17, 0.0 }
 0x3d4   : > { %8007 = vpow2.f32 %v2338_v62  ;;  %2345 = vadd.xlane.f32.xlu0 %v2344_v52 }
 0x3d7   : > { %v2587_v12 = vpop.xlane.xlu0 %2586 }
 0x3d8   : > { %v2597_v1 = vsub.f32 %v9473_v25, %v2587_v12 }
 0x3da   : > { %v9588_v43 = vpop.eup %8007  ;;  %v2601_v45 = vmul.f32 1.442695, %v2597_v1 }
 0x3db   : > { %v2347_v3 = vsel %vm2079_vm15, %v9588_v43, 0.0 }
 0x3dc   : > { %8009 = vpow2.f32 %v2601_v45  ;;  %2348 = vadd.xlane.f32.xlu2 %v2347_v3 }
 0x3de   : > { %v2331_v39 = vpop.xlane.xlu2 %2330 }
 0x3df   : > { %v2106_v57 = vpop.xlane.xlu1 %2105  ;;  %v2335_v6 = vsub.f32 %v9478_v15, %v2331_v39 }
 0x3e0   : > { %8011 = vrcp.f32 %v2106_v57  ;;  %v2127_v23 = vand.u32 2147483648, %v2106_v57  ;;  %v2125_v7 = vand.u32 2147483647, %v2106_v57  ;;  %vm2121_vm2 = vweird.f32 %v2106_v57 }
 0x3e2   : > { %v9592_v16 = vpop.eup %8009  ;;  %v2128_v27 = vor.u32 1.1754944e-38, %v2127_v23  ;;  %vm2126_vm4 = vcmp.eq.f32.partialorder %v2125_v7, 8.507059e+37 }
 0x3e3   : > { %v2609_v19 = vsel %vm2079_vm15, %v9592_v16, 0.0 }
 0x3e4   : > { %2610 = vadd.xlane.f32.xlu1 %v2609_v19 }
 0x3e6   : > { %v2593_v13 = vpop.xlane.xlu0 %2592  ;;  %v8012_v54 = vpop.eup %8011 }
 0x3e7   : > { %v2599_v25 = vsub.f32 %v9488_v63, %v2593_v13  ;;  %v2827_v61 = vpop.xlane.xlu2 %2826  ;;  %v2117_v4 = vmul.f32 %v8012_v54, %v2106_v57  ;;  %v2328_v40 = vpop.xlane.xlu1 %2327  ;;  %vm2122_vm1 = vweird.f32 %v8012_v54  ;;  %v2342_v63 = vmul.f32 1.442695, %v2335_v6 }
 0x3e8   : > { %v2334_v41 = vsub.f32 %v9491_v28, %v2328_v40  ;;  %vm2123_vm3 = vmor %vm2121_vm2, %vm2122_vm1 }
 0x3e9   : > { %v2605_v0 = vmul.f32 1.442695, %v2599_v25  ;;  %v2118_v22 = vsub.f32 1.0, %v2117_v4 }
 0x3ea   : > { %v2340_v38 = vmul.f32 1.442695, %v2334_v41 }
 0x3eb   : > { %8013 = vpow2.f32 %v2605_v0  ;;  %v2119_v10 = vmul.f32 %v8012_v54, %v2118_v22 }
 0x3ec   : > { %8015 = vpow2.f32 %v2340_v38 }
 0x3ed   : > { %v2120_v20 = vadd.f32 %v8012_v54, %v2119_v10 }
 0x3ef   : > { %v9601_v8 = vpop.xlane.xlu2 %2829  ;;  %v2124_v28 = vsel %vm2123_vm3, %v8012_v54, %v2120_v20  ;;  %v2109_v11 = vpop.xlane.xlu1 %2108 }
 0x3f0   : > { %v2129_v26 = vsel %vm2126_vm4, %v2128_v27, %v2124_v28  ;;  %8017 = vrcp.f32 %v2109_v11  ;;  %v2142_v0 = vand.u32 2147483648, %v2109_v11  ;;  %v2140_v40 = vand.u32 2147483647, %v2109_v11  ;;  %v1848_v28 = vpop.f32.mrf.mxu1 }
 0x3f1   : > { %v9599_v42 = vpop.eup %8013  ;;  %v2176_v62 = vmul.f32 %v9482_v44, %v2129_v26  ;;  %8019 = vpow2.f32 %v2342_v63  ;;  %v2837_v44 = vsub.f32 %v9496_v33, %v2827_v61  ;;  %vm2136_vm6 = vweird.f32 %v2109_v11 }
 0x3f2   : > { %v2615_v15 = vsel %vm2079_vm15, %v9599_v42, 0.0  ;;  %v9606_v52 = vpop.eup %8015  ;;  %v2143_v41 = vor.u32 1.1754944e-38, %v2142_v0  ;;  %vm2141_vm8 = vcmp.eq.f32.partialorder %v2140_v40, 8.507059e+37 }
 0x3f3   : > { %2616 = vadd.xlane.f32.xlu0 %v2615_v15  ;;  %7700 = vmatmul.msk.f32.vlgmr.msrb.gmra.mxu0 %vm2079_vm15, %v2176_v62  ;;  %v2350_v12 = vsel %vm2079_vm15, %v9606_v52, 0.0  ;;  %v2841_v4 = vmul.f32 1.442695, %v2837_v44 }
 0x3f4   : > { %2705 = vmatpush.msrb.mxu0 %v9358_v24  ;;  %2351 = vadd.xlane.f32.xlu2 %v2350_v12 }
 0x3f6   : > { %v8018_v1 = vpop.eup %8017  ;;  %2706 = vmatpush.msrb.mxu0 %v9356_v59 }
 0x3f7   : > { %v9613_v45 = vpop.xlane.xlu2 %3090  ;;  %v9615_v3 = vpop.eup %8019  ;;  %v2132_v39 = vmul.f32 %v8018_v1, %v2109_v11  ;;  %vm2137_vm5 = vweird.f32 %v8018_v1 }
 0x3f8   : > { %v2590_v57 = vpop.xlane.xlu1 %2589  ;;  %v9618_v19 = vpop.xlane.xlu0 %2114  ;;  %v2353_v24 = vsel %vm2079_vm15, %v9615_v3, 0.0  ;;  %vm2138_vm7 = vmor %vm2136_vm6, %vm2137_vm5 }
 0x3f9   : > { %v2598_v13 = vsub.f32 %v9514_v46, %v2590_v57  ;;  %v2133_v25 = vsub.f32 1.0, %v2132_v39  ;;  %8021 = vrcp.f32 %v9618_v19  ;;  %vm2166_vm0 = vweird.f32 %v9618_v19 }
 0x3fb   : > { %v2603_v54 = vmul.f32 1.442695, %v2598_v13  ;;  %v2134_v59 = vmul.f32 %v8018_v1, %v2133_v25  ;;  %v2838_v13 = vsub.f32 %v9506_v30, %v9601_v8  ;;  %v1878_v8 = vadd.f32 %v9451_v50, %v1848_v28 }
 0x3fc   : > { %2354 = vadd.xlane.f32.xlu2 %v2353_v24  ;;  %v2172_v50 = vand.u32 2147483648, %v9618_v19 }
 0x3fd   : > { %8023 = vpow2.f32 %v2603_v54  ;;  %v2135_v33 = vadd.f32 %v8018_v1, %v2134_v59 }
 0x3fe   : > { %8025 = vpow2.f32 %v2841_v4 }
 0x3ff   : > { %v2836_v61 = vpop.xlane.xlu2 %2835  ;;  %v2139_v6 = vsel %vm2138_vm7, %v8018_v1, %v2135_v33  ;;  %v9625_v38 = vpop.eup %8021 }
 0x400   : > { %v2112_v46 = vpop.xlane.xlu1 %2111  ;;  %v2596_v22 = vpop.xlane.xlu0 %2595  ;;  %v2840_v23 = vsub.f32 %v9528_v60, %v2836_v61  ;;  %v2144_v10 = vsel %vm2141_vm8, %v2143_v41, %v2139_v6  ;;  %v2162_v11 = vmul.f32 %v9625_v38, %v9618_v19  ;;  %v2843_v6 = vmul.f32 1.442695, %v2838_v13 }
 0x401   : > { %8027 = vrcp.f32 %v2112_v46  ;;  %v2600_v63 = vsub.f32 %v9531_v36, %v2596_v22  ;;  %v2177_v27 = vmul.f32 %v9502_v34, %v2144_v10  ;;  %v2157_v54 = vand.u32 2147483648, %v2112_v46  ;;  %v1851_v61 = vpop.f32.mrf.mxu1 }
 0x402   : > { %v2847_v7 = vmul.f32 1.442695, %v2840_v23  ;;  %v2163_v12 = vsub.f32 1.0, %v2162_v11  ;;  %vm2151_vm10 = vweird.f32 %v2112_v46  ;;  %v1881_v22 = vadd.f32 %v9453_v2, %v1851_v61 }
 0x403   : > { %v9627_v20 = vpop.eup %8023  ;;  %7701 = vmatmul.msk.f32.gmra.mxu0 %vm2079_vm15, %v2177_v27  ;;  %v2607_v62 = vmul.f32 1.442695, %v2600_v63  ;;  %v2158_v23 = vor.u32 1.1754944e-38, %v2157_v54  ;;  %vm2167_vm12 = vweird.f32 %v9625_v38  ;;  %v2170_v2 = vand.u32 2147483647, %v9618_v19 }
 0x404   : > { %v2612_v15 = vsel %vm2079_vm15, %v9627_v20, 0.0  ;;  %8029 = vpow2.f32 %v2847_v7  ;;  %v9636_v60 = vpop.eup %8025  ;;  %vm9668_vm1 = vmor %vm2166_vm0, %vm2167_vm12 }
 0x405   : > { %2613 = vadd.xlane.f32.xlu1 %v2612_v15  ;;  %v2849_v24 = vsel %vm2079_vm15, %v9636_v60, 0.0  ;;  %8031 = vpow2.f32 %v2607_v62  ;;  %vm2171_vm2 = vcmp.eq.f32.partialorder %v2170_v2, 8.507059e+37 }
 0x407   : > { %v8028_v26 = vpop.eup %8027 }
 0x408   : > { %v2147_v1 = vmul.f32 %v8028_v26, %v2112_v46  ;;  %v3094_v36 = vpop.xlane.xlu1 %3093  ;;  %v2833_v39 = vpop.xlane.xlu0 %2832  ;;  %vm2152_vm9 = vweird.f32 %v8028_v26 }
 0x409   : > { %v3102_v34 = vsub.f32 %v9545_v18, %v3094_v36  ;;  %v2839_v44 = vsub.f32 %v9542_v14, %v2833_v39  ;;  %v2164_v18 = vmul.f32 %v9625_v38, %v2163_v12  ;;  %v2155_v14 = vand.u32 2147483647, %v2112_v46  ;;  %vm2153_vm11 = vmor %vm2151_vm10, %vm2152_vm9 }
 0x40a   : > { %v9640_v57 = vpop.eup %8029  ;;  %v2148_v25 = vsub.f32 1.0, %v2147_v1 }
 0x40b   : > { %v3107_v59 = vmul.f32 1.442695, %v3102_v34  ;;  %v2845_v0 = vmul.f32 1.442695, %v2839_v44  ;;  %v2858_v4 = vsel %vm2079_vm15, %v9640_v57, 0.0  ;;  %v2165_v7 = vadd.f32 %v9625_v38, %v2164_v18 }
 0x40c   : > { %v2149_v40 = vmul.f32 %v8028_v26, %v2148_v25  ;;  %2859 = vadd.xlane.f32.xlu0 %v2858_v4  ;;  %vm2156_vm14 = vcmp.eq.f32.partialorder %v2155_v14, 8.507059e+37  ;;  %v2173_v34 = vor.u32 1.1754944e-38, %v2172_v50 }
 0x40d   : > { %8033 = vpow2.f32 %v3107_v59  ;;  %2850 = vadd.xlane.f32.xlu1 %v2849_v24  ;;  %v2169_v39 = vsel %vm9668_vm1, %v9625_v38, %v2165_v7 }
 0x40e   : > { %v3100_v33 = vpop.xlane.xlu2 %3099  ;;  %v2150_v41 = vadd.f32 %v8028_v26, %v2149_v40  ;;  %8035 = vpow2.f32 %v2845_v0  ;;  %v1958_v40 = vpop.f32.mrf.mxu1 }
 0x40f   : > { %v3104_v30 = vsub.f32 %v9555_v31, %v3100_v33  ;;  %v9654_v31 = vpop.eup %8031 }
 0x410   : > { %v2154_v63 = vsel %vm2153_vm11, %v8028_v26, %v2150_v41  ;;  %v3097_v27 = vpop.xlane.xlu1 %3096  ;;  %v3331_v11 = vpop.xlane.xlu0 %3330  ;;  %v9664_v26 = vadd.f32 %v9372_v56, %v1881_v22  ;;  %v2618_v56 = vsel %vm2079_vm15, %v9654_v31, 0.0 }
 0x411   : > { %v3111_v10 = vmul.f32 1.442695, %v3104_v30  ;;  %v2159_v28 = vsel %vm2156_vm14, %v2158_v23, %v2154_v63  ;;  %v3103_v46 = vsub.f32 %v9552_v5, %v3097_v27  ;;  %v3101_v5 = vsub.f32 %v9517_v55, %v9613_v45 }
 0x412   : > { %v2178_v15 = vmul.f32 %v9533_v49, %v2159_v28  ;;  %v9677_v49 = vadd.f32 %v9363_v35, %v1878_v8  ;;  %v3341_v36 = vsub.f32 %v9558_v53, %v3331_v11  ;;  %v2174_v45 = vsel %vm2171_vm2, %v2173_v34, %v2169_v39 }
 0x413   : > { %8037 = vpow2.f32 %v3111_v10  ;;  %v9661_v62 = vpop.eup %8033  ;;  %v3109_v1 = vmul.f32 1.442695, %v3103_v46  ;;  %v3105_v53 = vmul.f32 1.442695, %v3101_v5  ;;  %v2179_v54 = vmul.f32 %v9519_v48, %v2174_v45  ;;  %v1929_v48 = vpop.f32.mrf.mxu0 }
 0x414   : > { %8039 = vpow2.f32 %v2843_v6  ;;  %v9674_v19 = vpop.eup %8035  ;;  %7702 = vmatmul.msk.f32.vlgmr.msrb.gmra.mxu1 %vm2079_vm15, %v2178_v15  ;;  %v3116_v55 = vsel %vm2079_vm15, %v9661_v62, 0.0  ;;  %v3345_v38 = vmul.f32 1.442695, %v3341_v36  ;;  %v1959_v27 = vadd.f32 %v1958_v40, %v1929_v48 }
 0x415   : > { %8041 = vpow2.f32 %v3109_v1  ;;  %2734 = vmatpush.msrb.mxu1 %v9664_v26  ;;  %2619 = vadd.xlane.f32.xlu1 %v2618_v56  ;;  %v2855_v35 = vsel %vm2079_vm15, %v9674_v19, 0.0 }
 0x416   : > { %2856 = vadd.xlane.f32.xlu2 %v2855_v35  ;;  %3117 = vadd.xlane.f32.xlu0 %v3116_v55  ;;  %8043 = vpow2.f32 %v3105_v53  ;;  %v1961_v23 = vpop.f32.mrf.mxu1  ;;  %v9726_v28 = vadd.f32 %v9455_v47, %v1959_v27  ;;  %v3337_v39 = vpop.xlane.xlu2 %3336 }
 0x417   : > { %2735 = vmatpush.msrb.mxu1 %v9677_v49  ;;  %8045 = vpow2.f32 %v3345_v38 }
 0x418   : > { %v3334_v25 = vpop.xlane.xlu1 %3333 }
 0x419   : > { %v9692_v44 = vpop.eup %8037  ;;  %v3342_v0 = vsub.f32 %v9570_v58, %v3334_v25 }
 0x41a   : > { %v9694_v13 = vpop.eup %8039  ;;  %v3122_v59 = vsel %vm2079_vm15, %v9692_v44, 0.0 }
 0x41b   : > { %v9697_v24 = vpop.eup %8041  ;;  %v2852_v4 = vsel %vm2079_vm15, %v9694_v13, 0.0  ;;  %v3347_v14 = vmul.f32 1.442695, %v3342_v0  ;;  %v1932_v6 = vpop.f32.mrf.mxu0 }
 0x41c   : > { %7703 = vmatmul.msk.f32.gmra.mxu1 %vm2079_vm15, %v2179_v54  ;;  %v3119_v18 = vsel %vm2079_vm15, %v9697_v24, 0.0  ;;  %v9707_v33 = vpop.eup %8043  ;;  %v1962_v63 = vadd.f32 %v1961_v23, %v1932_v6  ;;  %v3343_v54 = vsub.f32 %v9567_v21, %v3337_v39  ;;  %v7966_v21 = vunpack.i.h.bf16 %v9464_v37 }
 0x41d   : > { %2853 = vadd.xlane.f32.xlu1 %v2852_v4  ;;  %v9709_v8 = vpop.eup %8045  ;;  %8047 = vpow2.f32 %v3347_v14  ;;  %v3113_v58 = vsel %vm2079_vm15, %v9707_v33, 0.0 }
 0x41e   : > { %3120 = vadd.xlane.f32.xlu0 %v3119_v18  ;;  %3123 = vadd.xlane.f32.xlu2 %v3122_v59  ;;  %v3353_v41 = vsel %vm2079_vm15, %v9709_v8, 0.0  ;;  %v9721_v50 = vadd.f32 %v9457_v32, %v1962_v63  ;;  %v1964_v11 = vpop.f32.mrf.mxu1  ;;  %v7972_v32 = vpack.i.bf16 %v9677_v49, %v9664_v26 }
 0x420   : > { %v3340_v30 = vpop.xlane.xlu1 %3339  ;;  %v7977_v2 = vpack.i.bf16 %v9726_v28, %v9721_v50 }
 0x421   : > { %v3344_v61 = vsub.f32 %v9577_v29, %v3340_v30  ;;  %v7965_v30 = vunpack.i.l.bf16 %v9464_v37 }
 0x423   : > { %v3351_v22 = vmul.f32 1.442695, %v3344_v61  ;;  %v9716_v10 = vpop.eup %8047  ;;  %v1935_v46 = vpop.f32.mrf.mxu0 }
 0x424   : > { %v3356_v7 = vsel %vm2079_vm15, %v9716_v10, 0.0  ;;  %v1965_v1 = vadd.f32 %v1964_v11, %v1935_v46 }
 0x425   : > { %3114 = vadd.xlane.f32.xlu1 %v3113_v58  ;;  %8049 = vpow2.f32 %v3351_v22  ;;  %v3349_v58 = vmul.f32 1.442695, %v3343_v54 }
 0x426   : > { %3354 = vadd.xlane.f32.xlu0 %v3353_v41  ;;  %v1967_v5 = vpop.f32.mrf.mxu1  ;;  %v9740_v56 = vadd.f32 %v9380_v51, %v1965_v1 }
 0x42b   : > { %v9723_v29 = vpop.eup %8049  ;;  %v1938_v12 = vpop.f32.mrf.mxu0 }
 0x42c   : > { %v3362_v15 = vsel %vm2079_vm15, %v9723_v29, 0.0  ;;  %v1968_v47 = vadd.f32 %v1967_v5, %v1938_v12 }
 0x42e   : > { %3357 = vadd.xlane.f32.xlu0 %v3356_v7  ;;  %v9737_v36 = vadd.f32 %v9390_v9, %v1968_v47 }
 0x430   : > { %v7982_v35 = vpack.i.bf16 %v9740_v56, %v9737_v36 }
 0x436   : > { %7978 = vrot.lane.b32.xlu2 %v7977_v2, %s8584_s7  ;;  %3363 = vadd.xlane.f32.xlu0 %v3362_v15 }
 0x43e   : > { %7973 = vrot.lane.b32.xlu1 %v7972_v32, %s8584_s7 }
 0x447   : > { %v2346_v34 = vpop.xlane.xlu0 %2345 }
 0x448   : > { %8051 = vrcp.f32 %v2346_v34  ;;  %v2367_v45 = vand.u32 2147483648, %v2346_v34  ;;  %v2365_v9 = vand.u32 2147483647, %v2346_v34  ;;  %vm2361_vm4 = vweird.f32 %v2346_v34 }
 0x44a   : > { %7983 = vrot.lane.b32.xlu0 %v7982_v35, %s8584_s7  ;;  %v2368_v59 = vor.u32 1.1754944e-38, %v2367_v45  ;;  %vm2366_vm6 = vcmp.eq.f32.partialorder %v2365_v9, 8.507059e+37 }
 0x44e   : > { %v8052_v26 = vpop.eup %8051 }
 0x44f   : > { %v2357_v49 = vmul.f32 %v8052_v26, %v2346_v34  ;;  %v2349_v55 = vpop.xlane.xlu2 %2348  ;;  %vm2362_vm3 = vweird.f32 %v8052_v26 }
 0x450   : > { %8053 = vrcp.f32 %v2349_v55  ;;  %vm2363_vm5 = vmor %vm2361_vm4, %vm2362_vm3  ;;  %v2382_v61 = vand.u32 2147483648, %v2349_v55  ;;  %v2380_v22 = vand.u32 2147483647, %v2349_v55  ;;  %vm2376_vm8 = vweird.f32 %v2349_v55 }
 0x451   : > { %v2358_v53 = vsub.f32 1.0, %v2357_v49 }
 0x452   : > { %v2383_v7 = vor.u32 1.1754944e-38, %v2382_v61  ;;  %vm2381_vm10 = vcmp.eq.f32.partialorder %v2380_v22, 8.507059e+37 }
 0x453   : > { %v2359_v38 = vmul.f32 %v8052_v26, %v2358_v53 }
 0x455   : > { %v2360_v25 = vadd.f32 %v8052_v26, %v2359_v38 }
 0x456   : > { %v8054_v51 = vpop.eup %8053 }
 0x457   : > { %v2364_v0 = vsel %vm2363_vm5, %v8052_v26, %v2360_v25  ;;  %v2372_v4 = vmul.f32 %v8054_v51, %v2349_v55  ;;  %v2611_v18 = vpop.xlane.xlu1 %2610  ;;  %vm2377_vm7 = vweird.f32 %v8054_v51 }
 0x458   : > { %v2369_v48 = vsel %vm2366_vm6, %v2368_v59, %v2364_v0  ;;  %8055 = vrcp.f32 %v2611_v18  ;;  %vm2378_vm9 = vmor %vm2376_vm8, %vm2377_vm7  ;;  %v2632_v2 = vand.u32 2147483648, %v2611_v18  ;;  %v2630_v32 = vand.u32 2147483647, %v2611_v18 }
 0x459   : > { %v2416_v40 = vmul.f32 %v9583_v17, %v2369_v48  ;;  %v2373_v14 = vsub.f32 1.0, %v2372_v4  ;;  %8057 = vpow2.f32 %v3349_v58  ;;  %vm2626_vm12 = vweird.f32 %v2611_v18 }
 0x45a   : > { %v2633_v5 = vor.u32 1.1754944e-38, %v2632_v2  ;;  %vm2631_vm0 = vcmp.eq.f32.partialorder %v2630_v32, 8.507059e+37 }
 0x45b   : > { %v2374_v41 = vmul.f32 %v8054_v51, %v2373_v14  ;;  %7712 = vmatmul.msk.f32.vlgmr.msra.gmra.mxu0 %vm2079_vm15, %v2416_v40 }
 0x45c   : > { %2953 = vmatpush.msra.mxu0 %v7965_v30 }
 0x45d   : > { %v2375_v6 = vadd.f32 %v8054_v51, %v2374_v41 }
 0x45e   : > { %v8056_v23 = vpop.eup %8055  ;;  %2954 = vmatpush.msra.mxu0 %v7966_v21 }
 0x45f   : > { %v2622_v17 = vmul.f32 %v8056_v23, %v2611_v18  ;;  %v2379_v63 = vsel %vm2378_vm9, %v8054_v51, %v2375_v6  ;;  %vm2627_vm11 = vweird.f32 %v8056_v23  ;;  %v9752_v37 = vpop.eup %8057 }
 0x460   : > { %v2384_v27 = vsel %vm2381_vm10, %v2383_v7, %v2379_v63  ;;  %vm2628_vm14 = vmor %vm2626_vm12, %vm2627_vm11  ;;  %v3359_v1 = vsel %vm2079_vm15, %v9752_v37, 0.0 }
 0x461   : > { %v2623_v46 = vsub.f32 1.0, %v2622_v17  ;;  %v2417_v11 = vmul.f32 %v9588_v43, %v2384_v27 }
 0x463   : > { %v2624_v15 = vmul.f32 %v8056_v23, %v2623_v46  ;;  %7713 = vmatmul.msk.f32.gmra.mxu0 %vm2079_vm15, %v2417_v11 }
 0x465   : > { %v2625_v12 = vadd.f32 %v8056_v23, %v2624_v15 }
 0x466   : > { %v9757_v35 = vpop.xlane.xlu0 %2616 }
 0x467   : > { %v2629_v47 = vsel %vm2628_vm14, %v8056_v23, %v2625_v12  ;;  %v2352_v34 = vpop.xlane.xlu2 %2351  ;;  %v2662_v27 = vand.u32 2147483648, %v9757_v35  ;;  %vm2656_vm10 = vweird.f32 %v9757_v35  ;;  %v2660_v15 = vand.u32 2147483647, %v9757_v35 }
 0x468   : > { %v2634_v39 = vsel %vm2631_vm0, %v2633_v5, %v2629_v47  ;;  %3360 = vadd.xlane.f32.xlu1 %v3359_v1  ;;  %8059 = vrcp.f32 %v2352_v34  ;;  %v2395_v25 = vand.u32 2147483647, %v2352_v34  ;;  %vm2391_vm2 = vweird.f32 %v2352_v34 }
 0x469   : > { %v2681_v43 = vmul.f32 %v9592_v16, %v2634_v39  ;;  %8061 = vrcp.f32 %v9757_v35  ;;  %v2397_v16 = vand.u32 2147483648, %v2352_v34  ;;  %v2663_v47 = vor.u32 1.1754944e-38, %v2662_v27 }
 0x46a   : > { %vm2396_vm4 = vcmp.eq.f32.partialorder %v2395_v25, 8.507059e+37  ;;  %vm2661_vm14 = vcmp.eq.f32.partialorder %v2660_v15, 8.507059e+37 }
 0x46b   : > { %7724 = vmatmul.msk.f32.vlgmr.msrb.gmra.mxu0 %vm2079_vm15, %v2681_v43  ;;  %v2398_v54 = vor.u32 1.1754944e-38, %v2397_v16 }
 0x46c   : > { %3209 = vmatpush.msrb.mxu0 %v9721_v50 }
 0x46e   : > { %3210 = vmatpush.msrb.mxu0 %v9726_v28  ;;  %v8060_v26 = vpop.eup %8059 }
 0x46f   : > { %v2387_v49 = vmul.f32 %v8060_v26, %v2352_v34  ;;  %v2355_v55 = vpop.xlane.xlu2 %2354  ;;  %v9763_v45 = vpop.eup %8061  ;;  %vm2392_vm1 = vweird.f32 %v8060_v26 }
 0x470   : > { %8063 = vrcp.f32 %v2355_v55  ;;  %v2203_v53 = vpop.f32.mrf.mxu0  ;;  %v2652_v50 = vmul.f32 %v9763_v45, %v9757_v35  ;;  %vm2393_vm3 = vmor %vm2391_vm2, %vm2392_vm1  ;;  %v2412_v58 = vand.u32 2147483648, %v2355_v55  ;;  %v2410_v61 = vand.u32 2147483647, %v2355_v55 }
 0x471   : > { %v2388_v38 = vsub.f32 1.0, %v2387_v49  ;;  %2238 = vst.msk [vmem:[#allocation2] sm:$0xff] %vm2008_vm13, %v2203_v53  ;;  %vm2406_vm6 = vweird.f32 %v2355_v55  ;;  %vm2657_vm9 = vweird.f32 %v9763_v45 }
 0x472   : > { %v2653_v48 = vsub.f32 1.0, %v2652_v50  ;;  %v2413_v23 = vor.u32 1.1754944e-38, %v2412_v58  ;;  %vm2411_vm8 = vcmp.eq.f32.partialorder %v2410_v61, 8.507059e+37  ;;  %vm2658_vm11 = vmor %vm2656_vm10, %vm2657_vm9 }
 0x473   : > { %v2389_v9 = vmul.f32 %v8060_v26, %v2388_v38 }
 0x474   : > { %v2654_v41 = vmul.f32 %v9763_v45, %v2653_v48 }
 0x475   : > { %v2390_v51 = vadd.f32 %v8060_v26, %v2389_v9 }
 0x476   : > { %v8064_v28 = vpop.eup %8063 }
 0x477   : > { %v2394_v59 = vsel %vm2393_vm3, %v8060_v26, %v2390_v51  ;;  %v2402_v0 = vmul.f32 %v8064_v28, %v2355_v55  ;;  %vm2407_vm5 = vweird.f32 %v8064_v28 }
 0x478   : > { %v2614_v4 = vpop.xlane.xlu1 %2613  ;;  %v2399_v18 = vsel %vm2396_vm4, %v2398_v54, %v2394_v59  ;;  %vm2408_vm7 = vmor %vm2406_vm6, %vm2407_vm5 }
 0x479   : > { %8065 = vrcp.f32 %v2614_v4  ;;  %v2418_v40 = vmul.f32 %v9606_v52, %v2399_v18  ;;  %v2403_v14 = vsub.f32 1.0, %v2402_v0  ;;  %v2655_v52 = vadd.f32 %v9763_v45, %v2654_v41 }
 0x47a   : > { %v2647_v39 = vand.u32 2147483648, %v2614_v4  ;;  %vm2641_vm0 = vweird.f32 %v2614_v4  ;;  %v2645_v43 = vand.u32 2147483647, %v2614_v4 }
 0x47b   : > { %v2404_v30 = vmul.f32 %v8064_v28, %v2403_v14  ;;  %7714 = vmatmul.msk.f32.vlgmr.msra.gmra.mxu1 %vm2079_vm15, %v2418_v40  ;;  %v2659_v5 = vsel %vm2658_vm11, %v9763_v45, %v2655_v52 }
 0x47c   : > { %v2664_v26 = vsel %vm2661_vm14, %v2663_v47, %v2659_v5  ;;  %v2648_v45 = vor.u32 1.1754944e-38, %v2647_v39  ;;  %vm2646_vm2 = vcmp.eq.f32.partialorder %v2645_v43, 8.507059e+37 }
 0x47d   : > { %v2405_v22 = vadd.f32 %v8064_v28, %v2404_v30  ;;  %v2683_v9 = vmul.f32 %v9599_v42, %v2664_v26 }
 0x47f   : > { %v8066_v21 = vpop.eup %8065  ;;  %v9771_v6 = vpop.xlane.xlu0 %2859  ;;  %v2409_v63 = vsel %vm2408_vm7, %v8064_v28, %v2405_v22 }
 0x480   : > { %v2637_v7 = vmul.f32 %v8066_v21, %v2614_v4  ;;  %v2851_v17 = vpop.xlane.xlu1 %2850  ;;  %v2206_v11 = vpop.f32.mrf.mxu0  ;;  %v2414_v2 = vsel %vm2411_vm8, %v2413_v23, %v2409_v63  ;;  %vm2642_vm12 = vweird.f32 %v8066_v21 }
 0x481   : > { %8067 = vrcp.f32 %v2851_v17  ;;  %2239 = vst.msk [vmem:[#allocation2 + $0x18] sm:$0xff] %vm2008_vm13, %v2206_v11  ;;  %v2419_v32 = vmul.f32 %v9615_v3, %v2414_v2  ;;  %vm9782_vm1 = vmor %vm2641_vm0, %vm2642_vm12  ;;  %v2872_v25 = vand.u32 2147483648, %v2851_v17  ;;  %v2870_v51 = vand.u32 2147483647, %v2851_v17 }
 0x482   : > { %v2638_v46 = vsub.f32 1.0, %v2637_v7  ;;  %vm2866_vm4 = vweird.f32 %v2851_v17 }
 0x483   : > { %7715 = vmatmul.msk.f32.gmra.mxu1 %vm2079_vm15, %v2419_v32  ;;  %v2873_v4 = vor.u32 1.1754944e-38, %v2872_v25  ;;  %vm2871_vm6 = vcmp.eq.f32.partialorder %v2870_v51, 8.507059e+37 }
 0x484   : > { %v2639_v12 = vmul.f32 %v8066_v21, %v2638_v46 }
 0x486   : > { %v2640_v1 = vadd.f32 %v8066_v21, %v2639_v12 }
 0x487   : > { %v8068_v34 = vpop.eup %8067 }
 0x488   : > { %v2862_v3 = vmul.f32 %v8068_v34, %v2851_v17  ;;  %v2620_v49 = vpop.xlane.xlu1 %2619  ;;  %v2644_v55 = vsel %vm9782_vm1, %v8066_v21, %v2640_v1  ;;  %vm2867_vm3 = vweird.f32 %v8068_v34 }
 0x489   : > { %8069 = vrcp.f32 %v2620_v49  ;;  %v9788_v53 = vpop.xlane.xlu0 %3117  ;;  %v9790_v16 = vpop.xlane.xlu2 %2856  ;;  %v2649_v28 = vsel %vm2646_vm2, %v2648_v45, %v2644_v55  ;;  %vm2868_vm5 = vmor %vm2866_vm4, %vm2867_vm3  ;;  %v2675_v21 = vand.u32 2147483647, %v2620_v49  ;;  %v2677_v23 = vand.u32 2147483648, %v2620_v49 }
 0x48a   : > { %v2863_v38 = vsub.f32 1.0, %v2862_v3  ;;  %v2682_v54 = vmul.f32 %v9627_v20, %v2649_v28  ;;  %vm2671_vm8 = vweird.f32 %v2620_v49 }
 0x48b   : > { %7726 = vmatmul.msk.f32.vlgmr.msrb.gmra.mxu1 %vm2079_vm15, %v2683_v9  ;;  %vm2676_vm10 = vcmp.eq.f32.partialorder %v2675_v21, 8.507059e+37  ;;  %v2678_v2 = vor.u32 1.1754944e-38, %v2677_v23 }
 0x48c   : > { %v2864_v50 = vmul.f32 %v8068_v34, %v2863_v38  ;;  %7725 = vmatmul.msk.f32.gmra.mxu0 %vm2079_vm15, %v2682_v54 }
 0x48e   : > { %v2865_v59 = vadd.f32 %v8068_v34, %v2864_v50 }
 0x48f   : > { %v8070_v0 = vpop.eup %8069 }
 0x490   : > { %v2869_v18 = vsel %vm2868_vm5, %v8068_v34, %v2865_v59  ;;  %v2667_v42 = vmul.f32 %v8070_v0, %v2620_v49  ;;  %v2854_v48 = vpop.xlane.xlu1 %2853  ;;  %vm2672_vm7 = vweird.f32 %v8070_v0 }
 0x491   : > { %v2874_v40 = vsel %vm2871_vm6, %v2873_v4, %v2869_v18  ;;  %8071 = vrcp.f32 %v2854_v48  ;;  %v2232_v14 = vpop.f32.mrf.mxu1  ;;  %v9797_v20 = vpop.xlane.xlu2 %3123  ;;  %vm2673_vm9 = vmor %vm2671_vm8, %vm2672_vm7  ;;  %v2885_v5 = vand.u32 2147483647, %v2854_v48  ;;  %v2887_v47 = vand.u32 2147483648, %v2854_v48 }
 0x492   : > { %v2668_v30 = vsub.f32 1.0, %v2667_v42  ;;  %2240 = vst.msk [vmem:[#allocation2 + $0x30] sm:$0xff] %vm2008_vm13, %v2232_v14  ;;  %v9799_v58 = vpop.xlane.xlu0 %3120  ;;  %v2921_v61 = vmul.f32 %v9636_v60, %v2874_v40  ;;  %8073 = vrcp.f32 %v9790_v16  ;;  %vm2881_vm12 = vweird.f32 %v2854_v48 }
 0x493   : > { %8075 = vrcp.f32 %v9788_v53  ;;  %v2888_v45 = vor.u32 1.1754944e-38, %v2887_v47  ;;  %vm2886_vm0 = vcmp.eq.f32.partialorder %v2885_v5, 8.507059e+37  ;;  %vm2896_vm7 = vweird.f32 %v9790_v16 }
 0x494   : > { %v2669_v41 = vmul.f32 %v8070_v0, %v2668_v30  ;;  %7736 = vmatmul.msk.f32.vlgmr.msra.gmra.mxu0 %vm2079_vm15, %v2921_v61  ;;  %v3179_v5 = vand.u32 2147483647, %v9797_v20 }
 0x496   : > { %v2670_v63 = vadd.f32 %v8070_v0, %v2669_v41 }
 0x497   : > { %v8072_v22 = vpop.eup %8071 }
 0x498   : > { %v2877_v7 = vmul.f32 %v8072_v22, %v2854_v48  ;;  %v9805_v17 = vpop.xlane.xlu1 %3114  ;;  %v9808_v27 = vpop.eup %8073  ;;  %v2674_v1 = vsel %vm2673_vm9, %v8070_v0, %v2670_v63  ;;  %vm2882_vm11 = vweird.f32 %v8072_v22  ;;  %vm3145_vm9 = vweird.f32 %v9788_v53 }
 0x499   : > { %8077 = vrcp.f32 %v9805_v17  ;;  %v2235_v52 = vpop.f32.mrf.mxu1  ;;  %v9813_v11 = vpop.eup %8075  ;;  %v2892_v12 = vmul.f32 %v9808_v27, %v9790_v16  ;;  %v2679_v43 = vsel %vm2676_vm10, %v2678_v2, %v2674_v1  ;;  %vm2883_vm14 = vmor %vm2881_vm12, %vm2882_vm11  ;;  %v3136_v28 = vand.u32 2147483648, %v9805_v17 }
 0x49a   : > { %v2878_v60 = vsub.f32 1.0, %v2877_v7  ;;  %2241 = vst.msk [vmem:[#allocation2 + $0x48] sm:$0xff] %vm2008_vm13, %v2235_v52  ;;  %v9811_v46 = vpop.xlane.xlu0 %3354  ;;  %8079 = vrcp.f32 %v9771_v6  ;;  %v7979_v32 = vpop.permute.xlu2 %7978  ;;  %v3141_v34 = vmul.f32 %v9813_v11, %v9788_v53  ;;  %v2684_v35 = vmul.f32 %v9654_v31, %v2679_v43 }
 0x49b   : > { %v7980_v3 = vunpack.i.l.bf16 %v7979_v32  ;;  %8081 = vrcp.f32 %v9811_v46  ;;  %v2893_v55 = vsub.f32 1.0, %v2892_v12  ;;  %v7981_v38 = vunpack.i.h.bf16 %v7979_v32 }
 0x49c   : > { %v2879_v15 = vmul.f32 %v8072_v22, %v2878_v60  ;;  %7727 = vmatmul.msk.f32.gmra.mxu1 %vm2079_vm15, %v2684_v35  ;;  %v3142_v25 = vsub.f32 1.0, %v3141_v34  ;;  %8083 = vrcp.f32 %v9799_v58  ;;  %v3134_v0 = vand.u32 2147483647, %v9805_v17 }
 0x49d   : > { %3457 = vmatpush.msra.mxu0 %v7980_v3  ;;  %v2894_v48 = vmul.f32 %v9808_v27, %v2893_v55  ;;  %vm3130_vm2 = vweird.f32 %v9805_v17  ;;  %v3137_v30 = vor.u32 1.1754944e-38, %v3136_v28  ;;  %vm2897_vm5 = vweird.f32 %v9808_v27 }
 0x49e   : > { %v2880_v39 = vadd.f32 %v8072_v22, %v2879_v15  ;;  %v3143_v40 = vmul.f32 %v9813_v11, %v3142_v25  ;;  %vm3135_vm4 = vcmp.eq.f32.partialorder %v3134_v0, 8.507059e+37  ;;  %vm3146_vm6 = vweird.f32 %v9813_v11  ;;  %vm9855_vm8 = vmor %vm2896_vm7, %vm2897_vm5 }
 0x49f   : > { %v8078_v26 = vpop.eup %8077  ;;  %3458 = vmatpush.msra.mxu0 %v7981_v38  ;;  %v2895_v23 = vadd.f32 %v9808_v27, %v2894_v48  ;;  %v2902_v60 = vand.u32 2147483648, %v9790_v16  ;;  %v3151_v2 = vand.u32 2147483648, %v9788_v53  ;;  %v2900_v32 = vand.u32 2147483647, %v9790_v16  ;;  %vm9866_vm10 = vmor %vm3145_vm9, %vm3146_vm6 }
 0x4a0   : > { %v3126_v49 = vmul.f32 %v8078_v26, %v9805_v17  ;;  %v9824_v9 = vpop.eup %8079  ;;  %v2884_v51 = vsel %vm2883_vm14, %v8072_v22, %v2880_v39  ;;  %vm3131_vm1 = vweird.f32 %v8078_v26  ;;  %v3144_v7 = vadd.f32 %v9813_v11, %v3143_v40 }
 0x4a1   : > { %v2889_v54 = vsel %vm2886_vm0, %v2888_v45, %v2884_v51  ;;  %v2907_v18 = vmul.f32 %v9824_v9, %v9771_v6  ;;  %v9835_v42 = vpop.eup %8081  ;;  %vm3132_vm3 = vmor %vm3130_vm2, %vm3131_vm1  ;;  %v3149_v12 = vand.u32 2147483647, %v9788_v53  ;;  %v2899_v16 = vsel %vm9855_vm8, %v9808_v27, %v2895_v23 }
 0x4a2   : > { %v3127_v50 = vsub.f32 1.0, %v3126_v49  ;;  %v9826_v31 = vpop.xlane.xlu0 %3357  ;;  %v2922_v4 = vmul.f32 %v9694_v13, %v2889_v54  ;;  %v3366_v13 = vmul.f32 %v9835_v42, %v9811_v46  ;;  %v9843_v41 = vpop.eup %8083  ;;  %v3148_v39 = vsel %vm9866_vm10, %v9813_v11, %v3144_v7 }
 0x4a3   : > { %8085 = vrcp.f32 %v9826_v31  ;;  %v2908_v22 = vsub.f32 1.0, %v2907_v18  ;;  %v3156_v47 = vmul.f32 %v9843_v41, %v9799_v58  ;;  %v2903_v34 = vor.u32 1.1754944e-38, %v2902_v60 }
 0x4a4   : > { %v3128_v59 = vmul.f32 %v8078_v26, %v3127_v50  ;;  %7737 = vmatmul.msk.f32.gmra.mxu0 %vm2079_vm15, %v2922_v4  ;;  %v3367_v63 = vsub.f32 1.0, %v3366_v13  ;;  %8087 = vrcp.f32 %v9797_v20  ;;  %v3152_v43 = vor.u32 1.1754944e-38, %v3151_v2 }
 0x4a5   : > { %vm2901_vm11 = vcmp.eq.f32.partialorder %v2900_v32, 8.507059e+37  ;;  %vm2911_vm12 = vweird.f32 %v9771_v6  ;;  %vm2912_vm14 = vweird.f32 %v9824_v9  ;;  %vm3150_vm0 = vcmp.eq.f32.partialorder %v3149_v12, 8.507059e+37 }
 0x4a6   : > { %v3129_v14 = vadd.f32 %v8078_v26, %v3128_v59  ;;  %v3368_v1 = vmul.f32 %v9835_v42, %v3367_v63  ;;  %v3157_v35 = vsub.f32 1.0, %v3156_v47  ;;  %v3153_v49 = vsel %vm3150_vm0, %v3152_v43, %v3148_v39  ;;  %vm9897_vm2 = vmor %vm2911_vm12, %vm2912_vm14 }
 0x4a7   : > { %vm3371_vm1 = vweird.f32 %v9835_v42  ;;  %v2915_v25 = vand.u32 2147483647, %v9771_v6  ;;  %v2917_v50 = vand.u32 2147483648, %v9771_v6  ;;  %v3376_v51 = vand.u32 2147483648, %v9811_v46 }
 0x4a8   : > { %v3133_v61 = vsel %vm3132_vm3, %v8078_v26, %v3129_v14  ;;  %v2904_v26 = vsel %vm2901_vm11, %v2903_v34, %v2899_v16  ;;  %v3369_v38 = vadd.f32 %v9835_v42, %v3368_v1  ;;  %vm3370_vm3 = vweird.f32 %v9811_v46 }
 0x4a9   : > { %v3138_v21 = vsel %vm3135_vm4, %v3137_v30, %v3133_v61  ;;  %v9850_v52 = vpop.eup %8085  ;;  %v2923_v54 = vmul.f32 %v9674_v19, %v2904_v26  ;;  %v3374_v0 = vand.u32 2147483647, %v9811_v46  ;;  %v3186_v18 = vmul.f32 %v9661_v62, %v3153_v49  ;;  %vm3372_vm4 = vmor %vm3370_vm3, %vm3371_vm1 }
 0x4aa   : > { %v3185_v17 = vmul.f32 %v9707_v33, %v3138_v21  ;;  %v2909_v33 = vmul.f32 %v9824_v9, %v2908_v22  ;;  %v3381_v53 = vmul.f32 %v9850_v52, %v9826_v31  ;;  %v9884_v55 = vpop.eup %8087  ;;  %v9903_v4 = vpop.xlane.xlu0 %3363  ;;  %v3158_v19 = vmul.f32 %v9843_v41, %v3157_v35 }
 0x4ab   : > { %v3171_v48 = vmul.f32 %v9884_v55, %v9797_v20  ;;  %v3373_v6 = vsel %vm3372_vm4, %v9835_v42, %v3369_v38  ;;  %v2918_v46 = vor.u32 1.1754944e-38, %v2917_v50  ;;  %v3377_v14 = vor.u32 1.1754944e-38, %v3376_v51 }
 0x4ac   : > { %7748 = vmatmul.msk.f32.vlgmr.msrb.gmra.mxu0 %vm2079_vm15, %v3185_v17  ;;  %v2910_v45 = vadd.f32 %v9824_v9, %v2909_v33  ;;  %v3382_v11 = vsub.f32 1.0, %v3381_v53  ;;  %vm2916_vm5 = vcmp.eq.f32.partialorder %v2915_v25, 8.507059e+37  ;;  %vm3375_vm6 = vcmp.eq.f32.partialorder %v3374_v0, 8.507059e+37 }
 0x4ad   : > { %vm3161_vm7 = vweird.f32 %v9843_v41  ;;  %v3378_v30 = vsel %vm3375_vm6, %v3377_v14, %v3373_v6  ;;  %v3172_v13 = vsub.f32 1.0, %v3171_v48  ;;  %v3159_v61 = vadd.f32 %v9843_v41, %v3158_v19  ;;  %v3577_v14 = vld [vmem:[#allocation11 + $0x150] sm:$0xff] }
 0x4ae   : > { %v3383_v40 = vmul.f32 %v9850_v52, %v3382_v11  ;;  %v2914_v62 = vsel %vm9897_vm2, %v9824_v9, %v2910_v45  ;;  %vm3386_vm8 = vweird.f32 %v9850_v52  ;;  %vm3160_vm9 = vweird.f32 %v9799_v58 }
 0x4af   : > { %v2919_v42 = vsel %vm2916_vm5, %v2918_v46, %v2914_v62  ;;  %v3164_v9 = vand.u32 2147483647, %v9799_v58  ;;  %v3391_v21 = vand.u32 2147483648, %v9826_v31  ;;  %vm9928_vm10 = vmor %vm3160_vm9, %vm3161_vm7  ;;  %vm3385_vm11 = vweird.f32 %v9826_v31  ;;  %v3580_v62 = vld [vmem:[#allocation11 + $0x168] sm:$0xff]  ;;  %v3581_v46 = vld [vmem:[#allocation11 + $0x170] sm:$0xff] }
 0x4b0   : > { %v7974_v27 = vpop.permute.xlu1 %7973  ;;  %v3384_v22 = vadd.f32 %v9850_v52, %v3383_v40  ;;  %v3389_v7 = vand.u32 2147483647, %v9826_v31  ;;  %v2924_v17 = vmul.f32 %v9640_v57, %v2919_v42  ;;  %vm3387_vm12 = vmor %vm3385_vm11, %vm3386_vm8  ;;  %v3173_v2 = vmul.f32 %v9884_v55, %v3172_v13  ;;  %3687 = vmatpush.msra.mxu2 %v3580_v62  ;;  %v3575_v42 = vld [vmem:[#allocation11 + $0x140] sm:$0xff]  ;;  %v3572_v13 = vld [vmem:[#allocation11 + $0x128] sm:$0xff] }
 0x4b1   : > { %v7975_v3 = vunpack.i.l.bf16 %v7974_v27  ;;  %v7976_v28 = vunpack.i.h.bf16 %v7974_v27  ;;  %v3392_v32 = vor.u32 1.1754944e-38, %v3391_v21  ;;  %vm3165_vm14 = vcmp.eq.f32.partialorder %v3164_v9, 8.507059e+37  ;;  %v3565_v9 = vld [vmem:[#allocation11 + $0xf0] sm:$0xff]  ;;  %v3618_v62 = vld [vmem:[#allocation11 + $0x298] sm:$0xff] }
 0x4b2   : > { %vm3390_vm0 = vcmp.eq.f32.partialorder %v3389_v7, 8.507059e+37  ;;  %v3174_v33 = vadd.f32 %v9884_v55, %v3173_v2  ;;  %vm3176_vm1 = vweird.f32 %v9884_v55  ;;  %vm3175_vm2 = vweird.f32 %v9797_v20  ;;  %3688 = vmatpush.msra.mxu2 %v3577_v14  ;;  %v3563_v7 = vld [vmem:[#allocation11 + $0xe0] sm:$0xff]  ;;  %v3557_v2 = vld [vmem:[#allocation11 + $0xb0] sm:$0xff]  ;;  %v3614_v14 = vld [vmem:[#allocation11 + $0x278] sm:$0xff] }
 0x4b3   : > { %2990 = vmatpush.msra.mxu1 %v7975_v3  ;;  %vm3177_vm3 = vmor %vm3175_vm2, %vm3176_vm1  ;;  %vm3180_vm4 = vcmp.eq.f32.partialorder %v3179_v5, 8.507059e+37  ;;  %8089 = vrcp.f32 %v9903_v4  ;;  %v3419_v59 = vand.u32 2147483647, %v9903_v4  ;;  %v3541_v5 = vld [vmem:[#allocation11 + $0x30] sm:$0xff] }
 0x4b4   : > { %7749 = vmatmul.msk.f32.gmra.mxu0 %vm2079_vm15, %v3186_v18  ;;  %v3178_v16 = vsel %vm3177_vm3, %v9884_v55, %v3174_v33  ;;  %v3544_v33 = vld [vmem:[#allocation11 + $0x48] sm:$0xff] }
 0x4b5   : > { %2991 = vmatpush.msra.mxu1 %v7976_v28  ;;  %v3421_v28 = vand.u32 2147483648, %v9903_v4 }
 0x4b6   : > { %7738 = vmatmul.msk.f32.vlgmr.msra.gmra.mxu1 %vm2079_vm15, %v2923_v54 }
 0x4b7   : > { %3238 = vmatpush.msrb.mxu1 %v9737_v36  ;;  %v3166_v36 = vand.u32 2147483648, %v9799_v58  ;;  %v3163_v58 = vsel %vm9928_vm10, %v9843_v41, %v3159_v61  ;;  %v3181_v41 = vand.u32 2147483648, %v9797_v20  ;;  %vm3415_vm10 = vweird.f32 %v9903_v4  ;;  %v3568_v61 = vld [vmem:[#allocation11 + $0x108] sm:$0xff] }
 0x4b8   : > { %v3422_v48 = vor.u32 1.1754944e-38, %v3421_v28  ;;  %v3623_v28 = vld [vmem:[#allocation11 + $0x2c0] sm:$0xff] }
 0x4b9   : > { %3239 = vmatpush.msrb.mxu1 %v9740_v56  ;;  %v3425_v56 = vmul.f32 %v9709_v8, %v3378_v30  ;;  %v3388_v8 = vsel %vm3387_vm12, %v9850_v52, %v3384_v22  ;;  %v3167_v15 = vor.u32 1.1754944e-38, %v3166_v36  ;;  %v3182_v1 = vor.u32 1.1754944e-38, %v3181_v41  ;;  %v3574_v30 = vld [vmem:[#allocation11 + $0x138] sm:$0xff]  ;;  %v3569_v22 = vld [vmem:[#allocation11 + $0x110] sm:$0xff] }
 0x4ba   : > { %v3393_v12 = vsel %vm3390_vm0, %v3392_v32, %v3388_v8  ;;  %vm3420_vm12 = vcmp.eq.f32.partialorder %v3419_v59, 8.507059e+37  ;;  %3689 = vmatpush.msra.mxu2 %v3574_v30  ;;  %v3566_v36 = vld [vmem:[#allocation11 + $0xf8] sm:$0xff]  ;;  %v3545_v41 = vld [vmem:[#allocation11 + $0x50] sm:$0xff]  ;;  %v3619_v59 = vld [vmem:[#allocation11 + $0x2a0] sm:$0xff] }
 0x4bb   : > { %v3168_v57 = vsel %vm3165_vm14, %v3167_v15, %v3163_v58  ;;  %v3426_v47 = vmul.f32 %v9716_v10, %v3393_v12  ;;  %v3183_v53 = vsel %vm3180_vm4, %v3182_v1, %v3178_v16  ;;  %v8090_v10 = vpop.eup %8089  ;;  %v3553_v58 = vld [vmem:[#allocation11 + $0x90] sm:$0xff]  ;;  %v3554_v8 = vld [vmem:[#allocation11 + $0x98] sm:$0xff]  ;;  %v3548_v12 = vld [vmem:[#allocation11 + $0x68] sm:$0xff] }
 0x4bc   : > { %v7984_v63 = vpop.permute.xlu0 %7983  ;;  %7760 = vmatmul.msk.f32.vlgmr.msra.gmra.mxu0 %vm2079_vm15, %v3425_v56  ;;  %v3187_v52 = vmul.f32 %v9697_v24, %v3168_v57  ;;  %v3188_v39 = vmul.f32 %v9692_v44, %v3183_v53  ;;  %v3411_v34 = vmul.f32 %v8090_v10, %v9903_v4  ;;  %vm3416_vm8 = vweird.f32 %v8090_v10  ;;  %v3562_v56 = vld [vmem:[#allocation11 + $0xd8] sm:$0xff]  ;;  %v3547_v57 = vld [vmem:[#allocation11 + $0x60] sm:$0xff]  ;;  %v3536_v53 = vld [vmem:[#allocation11 + $0x8] sm:$0xff] }
 0x4bd   : > { %v7985_v60 = vunpack.i.l.bf16 %v7984_v63  ;;  %v7986_v31 = vunpack.i.h.bf16 %v7984_v63  ;;  %vm3417_vm11 = vmor %vm3415_vm10, %vm3416_vm8  ;;  %v3560_v63 = vld [vmem:[#allocation11 + $0xc8] sm:$0xff]  ;;  %v3550_v32 = vld [vmem:[#allocation11 + $0x78] sm:$0xff] }
 0x4be   : > { %7739 = vmatmul.msk.f32.gmra.mxu1 %vm2079_vm15, %v2924_v17  ;;  %v3412_v26 = vsub.f32 1.0, %v3411_v34  ;;  %v3559_v17 = vld [vmem:[#allocation11 + $0xc0] sm:$0xff] }
 0x4bf   : > { %3494 = vmatpush.msra.mxu1 %v7985_v60  ;;  %v3556_v60 = vld [vmem:[#allocation11 + $0xa8] sm:$0xff]  ;;  %v3539_v16 = vld [vmem:[#allocation11 + $0x20] sm:$0xff] }
 0x4c0   : > { %v3413_v49 = vmul.f32 %v8090_v10, %v3412_v26  ;;  %v3535_v1 = vld [vmem:[#allocation11] sm:$0xff] }
 0x4c1   : > { %3495 = vmatpush.msra.mxu1 %v7986_v31  ;;  %v3551_v31 = vld [vmem:[#allocation11 + $0x80] sm:$0xff] }
 0x4c2   : > { %v3414_v50 = vadd.f32 %v8090_v10, %v3413_v49  ;;  %v3611_v30 = vld [vmem:[#allocation11 + $0x260] sm:$0xff] }
 0x4c4   : > { %7761 = vmatmul.msk.f32.gmra.mxu0 %vm2079_vm15, %v3426_v47  ;;  %v3418_v18 = vsel %vm3417_vm11, %v8090_v10, %v3414_v50  ;;  %v3538_v47 = vld [vmem:[#allocation11 + $0x18] sm:$0xff]  ;;  %v3627_v50 = vld [vmem:[#allocation11 + $0x2e0] sm:$0xff] }
 0x4c5   : > { %v3423_v19 = vsel %vm3420_vm12, %v3422_v48, %v3418_v18 }
 0x4c6   : > { %7750 = vmatmul.msk.f32.vlgmr.msrb.gmra.mxu1 %vm2079_vm15, %v3187_v52  ;;  %v3428_v6 = vmul.f32 %v9723_v29, %v3423_v19  ;;  %v3571_v29 = vld [vmem:[#allocation11 + $0x120] sm:$0xff]  ;;  %v3542_v52 = vld [vmem:[#allocation11 + $0x38] sm:$0xff]  ;;  %v3621_v19 = vld [vmem:[#allocation11 + $0x2b0] sm:$0xff] }
 0x4c7   : > { %3774 = vmatpush.msrb.mxu1 %v3581_v46  ;;  %3690 = vmatpush.msra.mxu2 %v3571_v29  ;;  %v3613_v46 = vld [vmem:[#allocation11 + $0x270] sm:$0xff] }
 0x4c9   : > { %3691 = vmatpush.msra.mxu2 %v3568_v61  ;;  %v3608_v61 = vld [vmem:[#allocation11 + $0x248] sm:$0xff] }
 0x4cb   : > { %3692 = vmatpush.msra.mxu2 %v3565_v9  ;;  %v3604_v9 = vld [vmem:[#allocation11 + $0x228] sm:$0xff] }
 0x4cd   : > { %3693 = vmatpush.msra.mxu2 %v3562_v56  ;;  %v3601_v56 = vld [vmem:[#allocation11 + $0x210] sm:$0xff] }
 0x4ce   : > { %7751 = vmatmul.msk.f32.gmra.mxu1 %vm2079_vm15, %v3188_v39 }
 0x4cf   : > { %3694 = vmatpush.msra.mxu2 %v3559_v17  ;;  %v3602_v17 = vld [vmem:[#allocation11 + $0x218] sm:$0xff] }
 0x4d1   : > { %3695 = vmatpush.msra.mxu2 %v3556_v60  ;;  %v3598_v60 = vld [vmem:[#allocation11 + $0x1f8] sm:$0xff] }
 0x4d3   : > { %3696 = vmatpush.msra.mxu2 %v3553_v58 }
 0x4d5   : > { %3697 = vmatpush.msra.mxu2 %v3550_v32  ;;  %v3595_v32 = vld [vmem:[#allocation11 + $0x1e0] sm:$0xff] }
 0x4d7   : > { %3698 = vmatpush.msra.mxu2 %v3547_v57  ;;  %v3596_v57 = vld [vmem:[#allocation11 + $0x1e8] sm:$0xff] }
 0x4d8   : > { %v2451_v20 = vpop.f32.mrf.mxu0 }
 0x4d9   : > { %2498 = vrot.lane.b32.xlu2 %v2451_v20, %s8584_s7  ;;  %3699 = vmatpush.msra.mxu2 %v3544_v33  ;;  %v3592_v33 = vld [vmem:[#allocation11 + $0x1c8] sm:$0xff] }
 0x4db   : > { %v3361_v24 = vpop.xlane.xlu1 %3360  ;;  %3700 = vmatpush.msra.mxu2 %v3541_v5  ;;  %v3593_v5 = vld [vmem:[#allocation11 + $0x1d0] sm:$0xff] }
 0x4dc   : > { %8091 = vrcp.f32 %v3361_v24  ;;  %v3406_v44 = vand.u32 2147483648, %v3361_v24  ;;  %v3404_v45 = vand.u32 2147483647, %v3361_v24  ;;  %vm3400_vm6 = vweird.f32 %v3361_v24 }
 0x4dd   : > { %3701 = vmatpush.msra.mxu2 %v3538_v47  ;;  %v3589_v47 = vld [vmem:[#allocation11 + $0x1b0] sm:$0xff] }
 0x4de   : > { %v3407_v25 = vor.u32 1.1754944e-38, %v3406_v44  ;;  %vm3405_vm9 = vcmp.eq.f32.partialorder %v3404_v45, 8.507059e+37  ;;  %v3629_v45 = vld [vmem:[#allocation11 + $0x2f0] sm:$0xff] }
 0x4df   : > { %3702 = vmatpush.msra.mxu2 %v3535_v1  ;;  %v3590_v1 = vld [vmem:[#allocation11 + $0x1b8] sm:$0xff] }
 0x4e0   : > { %v2454_v43 = vpop.f32.mrf.mxu0 }
 0x4e1   : > { %2500 = vrot.lane.b32.xlu0 %v2454_v43, %s8584_s7  ;;  %3803 = vmatpush.msrb.mxu2 %v3629_v45 }
 0x4e2   : > { %v8092_v27 = vpop.eup %8091 }
 0x4e3   : > { %v3396_v35 = vmul.f32 %v8092_v27, %v3361_v24  ;;  %vm3401_vm5 = vweird.f32 %v8092_v27 }
 0x4e4   : > { %vm3402_vm7 = vmor %vm3400_vm6, %vm3401_vm5 }
 0x4e5   : > { %v3397_v3 = vsub.f32 1.0, %v3396_v35 }
 0x4e7   : > { %v3398_v55 = vmul.f32 %v8092_v27, %v3397_v3 }
 0x4e8   : > { %v2708_v38 = vpop.f32.mrf.mxu0 }
 0x4e9   : > { %v3399_v11 = vadd.f32 %v8092_v27, %v3398_v55  ;;  %2743 = vst.msk [vmem:[#allocation2 + $0x8] sm:$0xff] %vm2008_vm13, %v2708_v38  ;;  %v3628_v55 = vld [vmem:[#allocation11 + $0x2e8] sm:$0xff]  ;;  %v3630_v38 = vld [vmem:[#allocation11 + $0x2f8] sm:$0xff] }
 0x4ea   : > { %3716 = vmatpush.msra.mxu3 %v3628_v55  ;;  %v3646_v55 = vld [vmem:[#allocation11 + $0x378] sm:$0xff] }
 0x4eb   : > { %v3403_v51 = vsel %vm3402_vm7, %v8092_v27, %v3399_v11  ;;  %v3625_v11 = vld [vmem:[#allocation11 + $0x2d0] sm:$0xff] }
 0x4ec   : > { %v3408_v54 = vsel %vm3405_vm9, %v3407_v25, %v3403_v51  ;;  %v3626_v25 = vld [vmem:[#allocation11 + $0x2d8] sm:$0xff]  ;;  %3717 = vmatpush.msra.mxu3 %v3625_v11  ;;  %v3643_v11 = vld [vmem:[#allocation11 + $0x360] sm:$0xff] }
 0x4ed   : > { %v3427_v0 = vmul.f32 %v9752_v37, %v3408_v54  ;;  %v3578_v37 = vld [vmem:[#allocation11 + $0x158] sm:$0xff]  ;;  %3804 = vmatpush.msrb.mxu2 %v3626_v25  ;;  %v3624_v54 = vld [vmem:[#allocation11 + $0x2c8] sm:$0xff] }
 0x4ee   : > { %3775 = vmatpush.msrb.mxu1 %v3578_v37  ;;  %v3622_v51 = vld [vmem:[#allocation11 + $0x2b8] sm:$0xff]  ;;  %v3615_v37 = vld [vmem:[#allocation11 + $0x280] sm:$0xff]  ;;  %v3640_v25 = vld [vmem:[#allocation11 + $0x348] sm:$0xff] }
 0x4ef   : > { %7762 = vmatmul.msk.f32.vlgmr.msra.gmra.mxu1 %vm2079_vm15, %v3427_v0  ;;  %v3620_v0 = vld [vmem:[#allocation11 + $0x2a8] sm:$0xff]  ;;  %3718 = vmatpush.msra.mxu3 %v3622_v51  ;;  %v3634_v51 = vld [vmem:[#allocation11 + $0x318] sm:$0xff] }
 0x4f0   : > { %3776 = vmatpush.msrb.mxu1 %v3575_v42  ;;  %3805 = vmatpush.msrb.mxu2 %v3623_v28  ;;  %v3612_v42 = vld [vmem:[#allocation11 + $0x268] sm:$0xff] }
 0x4f1   : > { %3719 = vmatpush.msra.mxu3 %v3619_v59  ;;  %v3677_v59 = vld [vmem:[#allocation11 + $0x470] sm:$0xff] }
 0x4f2   : > { %3777 = vmatpush.msrb.mxu1 %v3572_v13  ;;  %3806 = vmatpush.msrb.mxu2 %v3620_v0  ;;  %v3607_v13 = vld [vmem:[#allocation11 + $0x240] sm:$0xff]  ;;  %v3678_v0 = vld [vmem:[#allocation11 + $0x478] sm:$0xff] }
 0x4f4   : > { %3778 = vmatpush.msrb.mxu1 %v3569_v22  ;;  %v3609_v22 = vld [vmem:[#allocation11 + $0x250] sm:$0xff] }
 0x4f6   : > { %3779 = vmatpush.msrb.mxu1 %v3566_v36  ;;  %v3676_v36 = vld [vmem:[#allocation11 + $0x468] sm:$0xff] }
 0x4f7   : > { %7763 = vmatmul.msk.f32.gmra.mxu1 %vm2079_vm15, %v3428_v6  ;;  %vm2510_vm15 = vcmask 1048064   ;;  %v3616_v6 = vld [vmem:[#allocation11 + $0x288] sm:$0xff]  ;;  %3745 = vmatpush.msrb.mxu0 %v3676_v36  ;;  %v3653_v36 = vld [vmem:[#allocation11 + $0x3b0] sm:$0xff] }
 0x4f8   : > { %v2488_v40 = vpop.f32.mrf.mxu1  ;;  %3780 = vmatpush.msrb.mxu1 %v3563_v7  ;;  %3720 = vmatpush.msra.mxu3 %v3616_v6  ;;  %v3673_v7 = vld [vmem:[#allocation11 + $0x450] sm:$0xff]  ;;  %v3672_v6 = vld [vmem:[#allocation11 + $0x448] sm:$0xff] }
 0x4f9   : > { %2502 = vrot.lane.b32.xlu2 %v2488_v40, %s8584_s7  ;;  %v3617_v40 = vld [vmem:[#allocation11 + $0x290] sm:$0xff]  ;;  %3746 = vmatpush.msrb.mxu0 %v3673_v7  ;;  %v3647_v7 = vld [vmem:[#allocation11 + $0x380] sm:$0xff] }
 0x4fa   : > { %3781 = vmatpush.msrb.mxu1 %v3560_v63  ;;  %3807 = vmatpush.msrb.mxu2 %v3617_v40  ;;  %v3603_v63 = vld [vmem:[#allocation11 + $0x220] sm:$0xff] }
 0x4fb   : > { %3721 = vmatpush.msra.mxu3 %v3613_v46  ;;  %v3669_v46 = vld [vmem:[#allocation11 + $0x430] sm:$0xff] }
 0x4fc   : > { %3782 = vmatpush.msrb.mxu1 %v3557_v2  ;;  %3808 = vmatpush.msrb.mxu2 %v3614_v14  ;;  %v3670_v2 = vld [vmem:[#allocation11 + $0x438] sm:$0xff]  ;;  %v3665_v14 = vld [vmem:[#allocation11 + $0x410] sm:$0xff] }
 0x4fd   : > { %3747 = vmatpush.msrb.mxu0 %v3670_v2  ;;  %v3644_v2 = vld [vmem:[#allocation11 + $0x368] sm:$0xff] }
 0x4fe   : > { %3783 = vmatpush.msrb.mxu1 %v3554_v8  ;;  %3809 = vmatpush.msrb.mxu2 %v3611_v30  ;;  %v3599_v8 = vld [vmem:[#allocation11 + $0x200] sm:$0xff] }
 0x4ff   : > { %v3663_v30 = vld [vmem:[#allocation11 + $0x400] sm:$0xff] }
 0x500   : > { %v2491_v4 = vpop.f32.mrf.mxu1  ;;  %3784 = vmatpush.msrb.mxu1 %v3551_v31  ;;  %3810 = vmatpush.msrb.mxu2 %v3608_v61  ;;  %v3667_v31 = vld [vmem:[#allocation11 + $0x420] sm:$0xff]  ;;  %v3656_v61 = vld [vmem:[#allocation11 + $0x3c8] sm:$0xff] }
 0x501   : > { %2504 = vrot.lane.b32.xlu1 %v2491_v4, %s8584_s7  ;;  %v3610_v4 = vld [vmem:[#allocation11 + $0x258] sm:$0xff]  ;;  %3748 = vmatpush.msrb.mxu0 %v3667_v31 }
 0x502   : > { %3785 = vmatpush.msrb.mxu1 %v3548_v12  ;;  %3722 = vmatpush.msra.mxu3 %v3610_v4  ;;  %v3597_v12 = vld [vmem:[#allocation11 + $0x1f0] sm:$0xff]  ;;  %v3662_v4 = vld [vmem:[#allocation11 + $0x3f8] sm:$0xff] }
 0x503   : > { %v3638_v31 = vld [vmem:[#allocation11 + $0x338] sm:$0xff] }
 0x504   : > { %3786 = vmatpush.msrb.mxu1 %v3545_v41  ;;  %3723 = vmatpush.msra.mxu3 %v3607_v13  ;;  %v3664_v41 = vld [vmem:[#allocation11 + $0x408] sm:$0xff] }
 0x505   : > { %3749 = vmatpush.msrb.mxu0 %v3664_v41  ;;  %v3660_v13 = vld [vmem:[#allocation11 + $0x3e8] sm:$0xff] }
 0x506   : > { %3787 = vmatpush.msrb.mxu1 %v3542_v52  ;;  %3724 = vmatpush.msra.mxu3 %v3604_v9  ;;  %v3594_v52 = vld [vmem:[#allocation11 + $0x1d8] sm:$0xff]  ;;  %v3657_v9 = vld [vmem:[#allocation11 + $0x3d0] sm:$0xff] }
 0x508   : > { %v2737_v21 = vpop.f32.mrf.mxu1  ;;  %3788 = vmatpush.msrb.mxu1 %v3539_v16  ;;  %3725 = vmatpush.msra.mxu3 %v3601_v56  ;;  %v3661_v16 = vld [vmem:[#allocation11 + $0x3f0] sm:$0xff]  ;;  %v3651_v56 = vld [vmem:[#allocation11 + $0x3a0] sm:$0xff] }
 0x509   : > { %2745 = vst.msk [vmem:[#allocation2 + $0x38] sm:$0xff] %vm2008_vm13, %v2737_v21  ;;  %v2711_v23 = vpop.f32.mrf.mxu0  ;;  %v3605_v21 = vld [vmem:[#allocation11 + $0x230] sm:$0xff]  ;;  %3750 = vmatpush.msrb.mxu0 %v3661_v16 }
 0x50a   : > { %2744 = vst.msk [vmem:[#allocation2 + $0x20] sm:$0xff] %vm2008_vm13, %v2711_v23  ;;  %3789 = vmatpush.msrb.mxu1 %v3536_v53  ;;  %v3606_v23 = vld [vmem:[#allocation11 + $0x238] sm:$0xff]  ;;  %3811 = vmatpush.msrb.mxu2 %v3605_v21  ;;  %v3591_v53 = vld [vmem:[#allocation11 + $0x1c0] sm:$0xff]  ;;  %v3633_v16 = vld [vmem:[#allocation11 + $0x310] sm:$0xff] }
 0x50b   : > { %3726 = vmatpush.msra.mxu3 %v3598_v60  ;;  %v3654_v21 = vld [vmem:[#allocation11 + $0x3b8] sm:$0xff] }
 0x50c   : > { %3890 = vmatpush.msra.mxu1 %v3630_v38  ;;  %3812 = vmatpush.msrb.mxu2 %v3602_v17  ;;  %v3648_v17 = vld [vmem:[#allocation11 + $0x388] sm:$0xff] }
 0x50d   : > { %3727 = vmatpush.msra.mxu3 %v3595_v32  ;;  %v3642_v32 = vld [vmem:[#allocation11 + $0x358] sm:$0xff] }
 0x50e   : > { %3891 = vmatpush.msra.mxu1 %v3627_v50  ;;  %3813 = vmatpush.msrb.mxu2 %v3599_v8  ;;  %v3637_v50 = vld [vmem:[#allocation11 + $0x330] sm:$0xff] }
 0x50f   : > { %3728 = vmatpush.msra.mxu3 %v3592_v33  ;;  %v3645_v8 = vld [vmem:[#allocation11 + $0x370] sm:$0xff] }
 0x510   : > { %3892 = vmatpush.msra.mxu1 %v3624_v54  ;;  %3814 = vmatpush.msrb.mxu2 %v3596_v57  ;;  %v3631_v54 = vld [vmem:[#allocation11 + $0x300] sm:$0xff] }
 0x511   : > { %v2956_v15 = vpop.f32.mrf.mxu0  ;;  %3729 = vmatpush.msra.mxu3 %v3589_v47  ;;  %v3639_v57 = vld [vmem:[#allocation11 + $0x340] sm:$0xff]  ;;  %v3632_v47 = vld [vmem:[#allocation11 + $0x308] sm:$0xff] }
 0x512   : > { %3003 = vrot.lane.b32.xlu0 %v2956_v15, %s8584_s7  ;;  %3893 = vmatpush.msra.mxu1 %v3621_v19  ;;  %v3600_v15 = vld [vmem:[#allocation11 + $0x208] sm:$0xff]  ;;  %v3671_v19 = vld [vmem:[#allocation11 + $0x440] sm:$0xff] }
 0x513   : > { %3815 = vmatpush.msrb.mxu2 %v3593_v5  ;;  %v3636_v5 = vld [vmem:[#allocation11 + $0x328] sm:$0xff] }
 0x514   : > { %3894 = vmatpush.msra.mxu1 %v3618_v62  ;;  %v3668_v62 = vld [vmem:[#allocation11 + $0x428] sm:$0xff] }
 0x515   : > { %3816 = vmatpush.msrb.mxu2 %v3590_v1 }
 0x516   : > { %3895 = vmatpush.msra.mxu1 %v3615_v37  ;;  %v3666_v37 = vld [vmem:[#allocation11 + $0x418] sm:$0xff] }
 0x518   : > { %3896 = vmatpush.msra.mxu1 %v3612_v42  ;;  %v3659_v42 = vld [vmem:[#allocation11 + $0x3e0] sm:$0xff] }
 0x519   : > { %v2740_v39 = vpop.f32.mrf.mxu1 }
 0x51a   : > { %2746 = vst.msk [vmem:[#allocation2 + $0x50] sm:$0xff] %vm2008_vm13, %v2740_v39  ;;  %3897 = vmatpush.msra.mxu1 %v3609_v22  ;;  %v3586_v39 = vld [vmem:[#allocation11 + $0x198] sm:$0xff] }
 0x51b   : > { %3730 = vmatpush.msra.mxu3 %v3586_v39 }
 0x51c   : > { %3898 = vmatpush.msra.mxu1 %v3606_v23  ;;  %v3650_v23 = vld [vmem:[#allocation11 + $0x398] sm:$0xff] }
 0x51e   : > { %3899 = vmatpush.msra.mxu1 %v3603_v63 }
 0x520   : > { %3900 = vmatpush.msra.mxu1 %v3600_v15  ;;  %v3641_v15 = vld [vmem:[#allocation11 + $0x350] sm:$0xff] }
 0x521   : > { %v2959_v20 = vpop.f32.mrf.mxu0 }
 0x522   : > { %3005 = vrot.lane.b32.xlu0 %v2959_v20, %s8584_s7  ;;  %3901 = vmatpush.msra.mxu1 %v3597_v12  ;;  %v3658_v20 = vld [vmem:[#allocation11 + $0x3d8] sm:$0xff]  ;;  %v3635_v12 = vld [vmem:[#allocation11 + $0x320] sm:$0xff] }
 0x523   : > { %3751 = vmatpush.msrb.mxu0 %v3658_v20 }
 0x524   : > { %3902 = vmatpush.msra.mxu1 %v3594_v52 }
 0x526   : > { %3903 = vmatpush.msra.mxu1 %v3591_v53 }
 0x529   : > { %v3212_v24 = vpop.f32.mrf.mxu0 }
 0x52a   : > { %3247 = vst.msk [vmem:[#allocation2 + $0x10] sm:$0xff] %vm2008_vm13, %v3212_v24 }
 0x531   : > { %v3215_v10 = vpop.f32.mrf.mxu0 }
 0x532   : > { %3248 = vst.msk [vmem:[#allocation2 + $0x28] sm:$0xff] %vm2008_vm13, %v3215_v10  ;;  %v3587_v10 = vld [vmem:[#allocation11 + $0x1a0] sm:$0xff] }
 0x533   : > { %v2499_v34 = vpop.permute.xlu2 %2498  ;;  %v2993_v43 = vpop.f32.mrf.mxu1  ;;  %3817 = vmatpush.msrb.mxu2 %v3587_v10  ;;  %v3582_v10 = vld [vmem:[#allocation11 + $0x178] sm:$0xff] }
 0x534   : > { %2511 = vst.msk [vmem:[#allocation2] sm:$0xff] %vm2510_vm15, %v2499_v34  ;;  %3007 = vrot.lane.b32.xlu0 %v2993_v43, %s8584_s7  ;;  %v3588_v34 = vld [vmem:[#allocation11 + $0x1a8] sm:$0xff]  ;;  %v3583_v43 = vld [vmem:[#allocation11 + $0x180] sm:$0xff] }
 0x535   : > { %3904 = vmatpush.msra.mxu1 %v3588_v34  ;;  %3731 = vmatpush.msra.mxu3 %v3583_v43  ;;  %v3579_v34 = vld [vmem:[#allocation11 + $0x160] sm:$0xff]  ;;  %v3576_v43 = vld [vmem:[#allocation11 + $0x148] sm:$0xff] }
 0x537   : > { %3832 = vmatpush.msrb.mxu3 %v3677_v59  ;;  %v3540_v59 = vld [vmem:[#allocation11 + $0x28] sm:$0xff] }
 0x539   : > { %v3460_v27 = vpop.f32.mrf.mxu0 }
 0x53a   : > { %3507 = vrot.lane.b32.xlu2 %v3460_v27, %s8584_s7  ;;  %v3655_v27 = vld [vmem:[#allocation11 + $0x3c0] sm:$0xff] }
 0x53b   : > { %v2996_v26 = vpop.f32.mrf.mxu1  ;;  %v9979_v35 = vld [vmem:[#allocation2] sm:$0xff]  ;;  %3752 = vmatpush.msrb.mxu0 %v3655_v27  ;;  %v3573_v27 = vld [vmem:[#allocation11 + $0x130] sm:$0xff] }
 0x53c   : > { %3703 = vmatmul.f32.vlgmr.msra.gmra.mxu2 %v9979_v35  ;;  %3009 = vrot.lane.b32.xlu1 %v2996_v26, %s8584_s7  ;;  %v3584_v26 = vld [vmem:[#allocation11 + $0x188] sm:$0xff] }
 0x53d   : > { %3790 = vmatmul.f32.vlgmr.msrb.gmra.mxu1 %v9979_v35  ;;  %3818 = vmatpush.msrb.mxu2 %v3584_v26  ;;  %v3570_v26 = vld [vmem:[#allocation11 + $0x118] sm:$0xff] }
 0x53f   : > { %3919 = vmatpush.msra.mxu2 %v3678_v0  ;;  %v3537_v0 = vld [vmem:[#allocation11 + $0x10] sm:$0xff] }
 0x541   : > { %v3463_v3 = vpop.f32.mrf.mxu0 }
 0x542   : > { %3509 = vrot.lane.b32.xlu2 %v3463_v3, %s8584_s7  ;;  %v3585_v3 = vld [vmem:[#allocation11 + $0x190] sm:$0xff] }
 0x543   : > { %v3241_v44 = vpop.f32.mrf.mxu1  ;;  %3905 = vmatpush.msra.mxu1 %v3585_v3  ;;  %v3567_v3 = vld [vmem:[#allocation11 + $0x100] sm:$0xff] }
 0x544   : > { %3249 = vst.msk [vmem:[#allocation2 + $0x40] sm:$0xff] %vm2008_vm13, %v3241_v44  ;;  %v3652_v44 = vld [vmem:[#allocation11 + $0x3a8] sm:$0xff] }
 0x545   : > { %3753 = vmatpush.msrb.mxu0 %v3652_v44  ;;  %v3564_v44 = vld [vmem:[#allocation11 + $0xe8] sm:$0xff] }
 0x54b   : > { %v3244_v49 = vpop.f32.mrf.mxu1 }
 0x54c   : > { %3250 = vst.msk [vmem:[#allocation2 + $0x58] sm:$0xff] %vm2008_vm13, %v3244_v49  ;;  %v3649_v49 = vld [vmem:[#allocation11 + $0x390] sm:$0xff] }
 0x54d   : > { %3754 = vmatpush.msrb.mxu0 %v3649_v49 }
 0x54f   : > { %3755 = vmatpush.msrb.mxu0 %v3646_v55  ;;  %v3561_v55 = vld [vmem:[#allocation11 + $0xd0] sm:$0xff] }
 0x551   : > { %3756 = vmatpush.msrb.mxu0 %v3643_v11  ;;  %v3552_v11 = vld [vmem:[#allocation11 + $0x88] sm:$0xff] }
 0x553   : > { %v2501_v18 = vpop.permute.xlu0 %2500  ;;  %v2503_v48 = vpop.permute.xlu2 %2502  ;;  %3757 = vmatpush.msrb.mxu0 %v3640_v25  ;;  %v3549_v25 = vld [vmem:[#allocation11 + $0x70] sm:$0xff] }
 0x554   : > { %2512 = vst.msk [vmem:[#allocation2 + $0x18] sm:$0xff] %vm2510_vm15, %v2501_v18  ;;  %v3674_v18 = vld [vmem:[#allocation11 + $0x458] sm:$0xff] }
 0x555   : > { %2513 = vst.msk [vmem:[#allocation2 + $0x30] sm:$0xff] %vm2510_vm15, %v2503_v48  ;;  %3758 = vmatpush.msrb.mxu0 %v3637_v50  ;;  %v3675_v48 = vld [vmem:[#allocation11 + $0x460] sm:$0xff]  ;;  %3833 = vmatpush.msrb.mxu3 %v3674_v18 }
 0x556   : > { %3920 = vmatpush.msra.mxu2 %v3675_v48 }
 0x557   : > { %3759 = vmatpush.msrb.mxu0 %v3634_v51  ;;  %3834 = vmatpush.msrb.mxu3 %v3671_v19  ;;  %v3546_v51 = vld [vmem:[#allocation11 + $0x58] sm:$0xff] }
 0x558   : > { %3921 = vmatpush.msra.mxu2 %v3672_v6 }
 0x559   : > { %3760 = vmatpush.msrb.mxu0 %v3631_v54  ;;  %3835 = vmatpush.msrb.mxu3 %v3668_v62  ;;  %v3543_v54 = vld [vmem:[#allocation11 + $0x40] sm:$0xff] }
 0x55a   : > { %3922 = vmatpush.msra.mxu2 %v3669_v46 }
 0x55b   : > { %v9989_v29 = vld [vmem:[#allocation2 + $0x18] sm:$0xff]  ;;  %3836 = vmatpush.msrb.mxu3 %v3665_v14  ;;  %3861 = vmatpush.msra.mxu0 %v3582_v10 }
 0x55c   : > { %3706 = vmatmul.f32.gmra.mxu2 %v9989_v29  ;;  %3793 = vmatmul.f32.gmra.mxu1 %v9989_v29  ;;  %v9993_v58 = vld [vmem:[#allocation2 + $0x30] sm:$0xff] }
 0x55d   : > { %3923 = vmatpush.msra.mxu2 %v3666_v37  ;;  %3837 = vmatpush.msrb.mxu3 %v3662_v4 }
 0x55e   : > { %3862 = vmatpush.msra.mxu0 %v3579_v34 }
 0x55f   : > { %3924 = vmatpush.msra.mxu2 %v3663_v30  ;;  %3838 = vmatpush.msrb.mxu3 %v3659_v42 }
 0x560   : > { %3863 = vmatpush.msra.mxu0 %v3576_v43 }
 0x561   : > { %3925 = vmatpush.msra.mxu2 %v3660_v13  ;;  %3839 = vmatpush.msrb.mxu3 %v3656_v61 }
 0x562   : > { %3864 = vmatpush.msra.mxu0 %v3573_v27  ;;  %v8103_v27 = vld [vmem:[%s8815_s6 + $0x10] sm:$0xff] }
 0x563   : > { %3926 = vmatpush.msra.mxu2 %v3657_v9  ;;  %3840 = vmatpush.msrb.mxu3 %v3653_v36 }
 0x564   : > { %3709 = vmatmul.f32.gmra.mxu2 %v9993_v58  ;;  %3796 = vmatmul.f32.gmra.mxu1 %v9993_v58 }
 0x565   : > { %3927 = vmatpush.msra.mxu2 %v3654_v21  ;;  %3841 = vmatpush.msrb.mxu3 %v3650_v23 }
 0x566   : > { %3865 = vmatpush.msra.mxu0 %v3570_v26 }
 0x567   : > { %3928 = vmatpush.msra.mxu2 %v3651_v56  ;;  %3842 = vmatpush.msrb.mxu3 %v3647_v7 }
 0x568   : > { %3866 = vmatpush.msra.mxu0 %v3567_v3 }
 0x569   : > { %3929 = vmatpush.msra.mxu2 %v3648_v17  ;;  %3843 = vmatpush.msrb.mxu3 %v3644_v2 }
 0x56a   : > { %3867 = vmatpush.msra.mxu0 %v3564_v44 }
 0x56b   : > { %3930 = vmatpush.msra.mxu2 %v3645_v8  ;;  %3844 = vmatpush.msrb.mxu3 %v3641_v15 }
 0x56c   : > { %v3497_v24 = vpop.f32.mrf.mxu1  ;;  %3868 = vmatpush.msra.mxu0 %v3561_v55 }
 0x56d   : > { %3511 = vrot.lane.b32.xlu2 %v3497_v24, %s8584_s7  ;;  %3931 = vmatpush.msra.mxu2 %v3642_v32 }
 0x56e   : > { %3845 = vmatpush.msrb.mxu3 %v3638_v31 }
 0x56f   : > { %3932 = vmatpush.msra.mxu2 %v3639_v57 }
 0x570   : > { %3846 = vmatpush.msrb.mxu3 %v3635_v12 }
 0x571   : > { %3933 = vmatpush.msra.mxu2 %v3636_v5 }
 0x572   : > { %3847 = vmatpush.msrb.mxu3 %v3632_v47 }
 0x573   : > { %v2505_v38 = vpop.permute.xlu1 %2504  ;;  %3934 = vmatpush.msra.mxu2 %v3633_v16  ;;  %v8101_v16 = vld [vmem:[%s8815_s6 + $0x8] sm:$0xff] }
 0x574   : > { %v3500_v45 = vpop.f32.mrf.mxu1  ;;  %2514 = vst.msk [vmem:[#allocation2 + $0x48] sm:$0xff] %vm2510_vm15, %v2505_v38  ;;  %v3555_v38 = vld [vmem:[#allocation11 + $0xa0] sm:$0xff] }
 0x575   : > { %3513 = vrot.lane.b32.xlu0 %v3500_v45, %s8584_s7  ;;  %v3558_v45 = vld [vmem:[#allocation11 + $0xb8] sm:$0xff] }
 0x576   : > { %3869 = vmatpush.msra.mxu0 %v3558_v45 }
 0x578   : > { %3870 = vmatpush.msra.mxu0 %v3555_v38 }
 0x57a   : > { %3871 = vmatpush.msra.mxu0 %v3552_v11 }
 0x57b   : > { %v10000_v28 = vld [vmem:[#allocation2 + $0x48] sm:$0xff] }
 0x57c   : > { %3712 = vmatmul.f32.gmra.mxu2 %v10000_v28  ;;  %3799 = vmatmul.f32.gmra.mxu1 %v10000_v28 }
 0x57d   : > { %3872 = vmatpush.msra.mxu0 %v3549_v25 }
 0x57f   : > { %3873 = vmatpush.msra.mxu0 %v3546_v51 }
 0x581   : > { %3874 = vmatpush.msra.mxu0 %v3543_v54 }
 0x583   : > { %3875 = vmatpush.msra.mxu0 %v3540_v59 }
 0x584   : > { %v3004_v40 = vpop.permute.xlu0 %3003 }
 0x585   : > { %3015 = vst.msk [vmem:[#allocation2 + $0x8] sm:$0xff] %vm2510_vm15, %v3004_v40  ;;  %3876 = vmatpush.msra.mxu0 %v3537_v0 }
 0x58c   : > { %v3524_v22 = vld [vmem:[#allocation2 + $0x8] sm:$0xff] }
 0x58d   : > { %3732 = vmatmul.f32.vlgmr.msra.gmra.mxu3 %v3524_v22  ;;  %3819 = vmatmul.f32.vlgmr.msrb.gmra.mxu2 %v3524_v22 }
 0x58e   : > { %3906 = vmatmul.f32.vlgmr.msra.gmra.mxu1 %v3524_v22 }
 0x594   : > { %v3508_v63 = vpop.permute.xlu2 %3507  ;;  %v3006_v60 = vpop.permute.xlu0 %3005 }
 0x595   : > { %3519 = vst.msk [vmem:[#allocation2 + $0x10] sm:$0xff] %vm2510_vm15, %v3508_v63 }
 0x596   : > { %3016 = vst.msk [vmem:[#allocation2 + $0x20] sm:$0xff] %vm2510_vm15, %v3006_v60 }
 0x59c   : > { %v3510_v33 = vpop.permute.xlu2 %3509  ;;  %v3525_v41 = vld [vmem:[#allocation2 + $0x10] sm:$0xff] }
 0x59d   : > { %3520 = vst.msk [vmem:[#allocation2 + $0x28] sm:$0xff] %vm2510_vm15, %v3510_v33  ;;  %v3527_v52 = vld [vmem:[#allocation2 + $0x20] sm:$0xff]  ;;  %3761 = vmatmul.f32.vlgmr.msrb.gmra.mxu0 %v3525_v41 }
 0x59e   : > { %3735 = vmatmul.f32.gmra.mxu3 %v3527_v52  ;;  %3822 = vmatmul.f32.gmra.mxu2 %v3527_v52 }
 0x59f   : > { %3909 = vmatmul.f32.gmra.mxu1 %v3527_v52 }
 0x5a4   : > { %v3528_v1 = vld [vmem:[#allocation2 + $0x28] sm:$0xff] }
 0x5a5   : > { %3764 = vmatmul.f32.gmra.mxu0 %v3528_v1 }
 0x5a6   : > { %v3008_v53 = vpop.permute.xlu0 %3007 }
 0x5a7   : > { %3017 = vst.msk [vmem:[#allocation2 + $0x38] sm:$0xff] %vm2510_vm15, %v3008_v53 }
 0x5ae   : > { %v3010_v39 = vpop.permute.xlu1 %3009  ;;  %v3530_v20 = vld [vmem:[#allocation2 + $0x38] sm:$0xff] }
 0x5af   : > { %3018 = vst.msk [vmem:[#allocation2 + $0x50] sm:$0xff] %vm2510_vm15, %v3010_v39  ;;  %3738 = vmatmul.f32.gmra.mxu3 %v3530_v20  ;;  %3825 = vmatmul.f32.gmra.mxu2 %v3530_v20  ;;  %v8102_v39 = vld [vmem:[%s8815_s6] sm:$0xff] }
 0x5b0   : > { %3912 = vmatmul.f32.gmra.mxu1 %v3530_v20 }
 0x5b6   : > { %v3533_v24 = vld [vmem:[#allocation2 + $0x50] sm:$0xff] }
 0x5b7   : > { %3741 = vmatmul.f32.gmra.mxu3 %v3533_v24  ;;  %3828 = vmatmul.f32.gmra.mxu2 %v3533_v24 }
 0x5b8   : > { %3915 = vmatmul.f32.gmra.mxu1 %v3533_v24 }
 0x5ba   : > { %v3791_v4 = vpop.f32.mrf.mxu1 }
 0x5bf   : > { %3848 = vmatmul.f32.vlgmr.msrb.gmra.mxu3 %v3525_v41  ;;  %3935 = vmatmul.f32.vlgmr.msra.gmra.mxu2 %v3525_v41  ;;  %v3704_v19 = vpop.f32.mrf.mxu2 }
 0x5c7   : > { %v3512_v49 = vpop.permute.xlu2 %3511  ;;  %3851 = vmatmul.f32.gmra.mxu3 %v3528_v1  ;;  %3938 = vmatmul.f32.gmra.mxu2 %v3528_v1 }
 0x5c8   : > { %3521 = vst.msk [vmem:[#allocation2 + $0x40] sm:$0xff] %vm2510_vm15, %v3512_v49 }
 0x5cf   : > { %v3531_v50 = vld [vmem:[#allocation2 + $0x40] sm:$0xff] }
 0x5d0   : > { %3767 = vmatmul.f32.gmra.mxu0 %v3531_v50  ;;  %3854 = vmatmul.f32.gmra.mxu3 %v3531_v50 }
 0x5d1   : > { %3941 = vmatmul.f32.gmra.mxu2 %v3531_v50  ;;  %v8104_v50 = vld [vmem:[%s8815_s6 + $0x20] sm:$0xff] }
 0x5d9   : > { %v3794_v61 = vpop.f32.mrf.mxu1 }
 0x5df   : > { %v3707_v6 = vpop.f32.mrf.mxu2 }
 0x5e7   : > { %v3514_v18 = vpop.permute.xlu0 %3513  ;;  %v3710_v40 = vpop.f32.mrf.mxu2 }
 0x5e8   : > { %3522 = vst.msk [vmem:[#allocation2 + $0x58] sm:$0xff] %vm2510_vm15, %v3514_v18  ;;  %v8105_v18 = vld [vmem:[%s8815_s6 + $0x18] sm:$0xff] }
 0x5ef   : > { %v3534_v48 = vld [vmem:[#allocation2 + $0x58] sm:$0xff] }
 0x5f0   : > { %3770 = vmatmul.f32.gmra.mxu0 %v3534_v48  ;;  %3857 = vmatmul.f32.gmra.mxu3 %v3534_v48 }
 0x5f1   : > { %3944 = vmatmul.f32.gmra.mxu2 %v3534_v48 }
 0x5f8   : > { %3877 = vmatmul.f32.vlgmr.msra.gmra.mxu0 %v9979_v35 }
 0x5ff   : > { %v10016_v62 = vpop.f32.mrf.mxu2 }
 0x600   : > { %3880 = vmatmul.f32.gmra.mxu0 %v9989_v29 }
 0x608   : > { %3883 = vmatmul.f32.gmra.mxu0 %v9993_v58  ;;  %v3797_v58 = vpop.f32.mrf.mxu1 }
 0x610   : > { %3886 = vmatmul.f32.gmra.mxu0 %v10000_v28  ;;  %v3733_v46 = vpop.f32.mrf.mxu3  ;;  %v3820_v14 = vpop.f32.mrf.mxu2  ;;  %v3679_v28 = vld [vmem:[#allocation12] sm:$0x7] }
 0x611   : > { %v3682_v21 = vperm.slane %v3679_v28, 1  ;;  %v3800_v23 = vpop.f32.mrf.mxu1  ;;  %v3681_v17 = vperm.slane %v3679_v28, 0  ;;  %v10024_v8 = vperm.slane %v3679_v28, 2 }
 0x613   : > { %v3792_v63 = vadd.f32 %v3791_v4, %v3682_v21  ;;  %v3705_v60 = vadd.f32 %v3704_v19, %v3681_v17  ;;  %v3795_v52 = vadd.f32 %v3794_v61, %v3682_v21  ;;  %v3708_v47 = vadd.f32 %v3707_v6, %v3681_v17 }
 0x614   : > { %v3798_v25 = vadd.f32 %v3797_v58, %v3682_v21  ;;  %v3711_v0 = vadd.f32 %v3710_v40, %v3681_v17  ;;  %v3801_v28 = vadd.f32 %v3800_v23, %v3682_v21  ;;  %v8109_v23 = vld [vmem:[%s8815_s6 + $0x40] sm:$0xff] }
 0x615   : > { %v3821_v2 = vadd.f32 %v3820_v14, %v3792_v63  ;;  %v3734_v32 = vadd.f32 %v3733_v46, %v3705_v60 }
 0x619   : > { %v3907_v15 = vpop.f32.mrf.mxu1 }
 0x61a   : > { %v3762_v30 = vpop.f32.mrf.mxu0 }
 0x61b   : > { %v3763_v33 = vadd.f32 %v3762_v30, %v3734_v32  ;;  %v8108_v32 = vld [vmem:[%s8815_s6 + $0x30] sm:$0xff] }
 0x61d   : > { %v10031_v20 = vadd.f32 %v8102_v39, %v3763_v33 }
 0x61f   : > { %11524 = vst [vmem:[#allocation35_spill] sm:$0xff] %v10031_v20 }
 0x621   : > { %v3736_v37 = vpop.f32.mrf.mxu3  ;;  %v3823_v42 = vpop.f32.mrf.mxu2 }
 0x622   : > { %v3765_v35 = vpop.f32.mrf.mxu0  ;;  %v3737_v24 = vadd.f32 %v3736_v37, %v3708_v47  ;;  %v3824_v10 = vadd.f32 %v3823_v42, %v3795_v52  ;;  %v3910_v44 = vpop.f32.mrf.mxu1  ;;  %v8106_v37 = vld [vmem:[%s8815_s6 + $0x28] sm:$0xff]  ;;  %v8110_v52 = vld [vmem:[%s8815_s6 + $0x50] sm:$0xff] }
 0x624   : > { %v3766_v55 = vadd.f32 %v3765_v35, %v3737_v24 }
 0x626   : > { %v10044_v48 = vadd.f32 %v8105_v18, %v3766_v55  ;;  %v4672_v18 = vld [vmem:[#allocation17 + $0x1140] sm:$0xff] }
 0x628   : > { %11527 = vst [vmem:[#allocation38_spill] sm:$0xff] %v10044_v48 }
 0x62d   : > { %v3913_v42 = vpop.f32.mrf.mxu1 }
 0x632   : > { %v3739_v13 = vpop.f32.mrf.mxu3  ;;  %v3826_v22 = vpop.f32.mrf.mxu2 }
 0x633   : > { %v3827_v19 = vadd.f32 %v3826_v22, %v3798_v25  ;;  %v3740_v46 = vadd.f32 %v3739_v13, %v3711_v0  ;;  %v8107_v22 = vld [vmem:[%s8815_s6 + $0x38] sm:$0xff] }
 0x634   : > { %v4301_v25 = vld [vmem:[#allocation17 + $0x5a8] sm:$0xff] }
 0x635   : > { %4811 = vmatpush.msrb.mxu2 %v4301_v25  ;;  %v4252_v25 = vld [vmem:[#allocation17 + $0x420] sm:$0xff] }
 0x63a   : > { %v10018_v29 = vpop.f32.mrf.mxu3  ;;  %v10020_v36 = vpop.f32.mrf.mxu2 }
 0x642   : > { %v3849_v56 = vpop.f32.mrf.mxu3  ;;  %v3936_v57 = vpop.f32.mrf.mxu2 }
 0x643   : > { %v3850_v31 = vadd.f32 %v3849_v56, %v3821_v2  ;;  %v3714_v2 = vadd.f32 %v10016_v62, %v3681_v17 }
 0x645   : > { %v10028_v1 = vadd.f32 %v8101_v16, %v3850_v31 }
 0x647   : > { %11523 = vst [vmem:[#allocation34_spill] sm:$0xff] %v10028_v1  ;;  %v3962_v3 = vadd.f32 %v10028_v1, %v10031_v20 }
 0x64a   : > { %v3852_v5 = vpop.f32.mrf.mxu3  ;;  %v3939_v11 = vpop.f32.mrf.mxu2 }
 0x64b   : > { %v3853_v43 = vadd.f32 %v3852_v5, %v3824_v10  ;;  %v3916_v5 = vpop.f32.mrf.mxu1  ;;  %v8112_v10 = vld [vmem:[%s8815_s6 + $0x58] sm:$0xff] }
 0x64d   : > { %v3768_v9 = vpop.f32.mrf.mxu0  ;;  %v10041_v51 = vadd.f32 %v8104_v50, %v3853_v43  ;;  %v4288_v50 = vld [vmem:[#allocation17 + $0x540] sm:$0xff] }
 0x64e   : > { %v3769_v35 = vadd.f32 %v3768_v9, %v3740_v46 }
 0x64f   : > { %11526 = vst [vmem:[#allocation37_spill] sm:$0xff] %v10041_v51  ;;  %v3966_v30 = vadd.f32 %v10041_v51, %v10044_v48 }
 0x650   : > { %v10059_v9 = vadd.f32 %v8108_v32, %v3769_v35 }
 0x652   : > { %11530 = vst [vmem:[#allocation41_spill] sm:$0xff] %v10059_v9 }
 0x653   : > { %v3855_v59 = vpop.f32.mrf.mxu3 }
 0x654   : > { %v3856_v14 = vadd.f32 %v3855_v59, %v3827_v19  ;;  %v3942_v63 = vpop.f32.mrf.mxu2  ;;  %v4289_v19 = vld [vmem:[#allocation17 + $0x548] sm:$0xff] }
 0x655   : > { %4812 = vmatpush.msrb.mxu2 %v4289_v19  ;;  %v4624_v19 = vld [vmem:[#allocation17 + $0xfc0] sm:$0xff] }
 0x656   : > { %v10054_v56 = vadd.f32 %v8107_v22, %v3856_v14 }
 0x658   : > { %11529 = vst [vmem:[#allocation40_spill] sm:$0xff] %v10054_v56  ;;  %v3970_v33 = vadd.f32 %v10054_v56, %v10059_v9 }
 0x66d   : > { %v10022_v7 = vpop.f32.mrf.mxu0 }
 0x673   : > { %v3858_v60 = vpop.f32.mrf.mxu3 }
 0x674   : > { %v3945_v16 = vpop.f32.mrf.mxu2 }
 0x675   : > { %v3878_v12 = vpop.f32.mrf.mxu0 }
 0x676   : > { %v3879_v41 = vadd.f32 %v3878_v12, %v10024_v8 }
 0x678   : > { %v3908_v53 = vadd.f32 %v3907_v15, %v3879_v41  ;;  %v3830_v15 = vadd.f32 %v10020_v36, %v3801_v28 }
 0x67a   : > { %v3937_v34 = vadd.f32 %v3936_v57, %v3908_v53  ;;  %v3743_v57 = vadd.f32 %v10018_v29, %v3714_v2  ;;  %v3859_v21 = vadd.f32 %v3858_v60, %v3830_v15  ;;  %v8111_v53 = vld [vmem:[%s8815_s6 + $0x48] sm:$0xff] }
 0x67c   : > { %v10034_v26 = vadd.f32 %v8103_v27, %v3937_v34  ;;  %v3772_v62 = vadd.f32 %v10022_v7, %v3743_v57  ;;  %v10071_v47 = vadd.f32 %v8110_v52, %v3859_v21  ;;  %v11535_v27 = vld [vmem:[#allocation33_spill] sm:$0xff] }
 0x67d   : > { %v3881_v49 = vpop.f32.mrf.mxu0 }
 0x67e   : > { %11525 = vst [vmem:[#allocation36_spill] sm:$0xff] %v10034_v26  ;;  %v3882_v45 = vadd.f32 %v3881_v49, %v10024_v8  ;;  %v3963_v38 = vadd.f32 %v3962_v3, %v10034_v26  ;;  %v10074_v39 = vadd.f32 %v8111_v53, %v3772_v62 }
 0x67f   : > { %11532 = vst [vmem:[#allocation43_spill] sm:$0xff] %v10071_v47 }
 0x680   : > { %v3911_v54 = vadd.f32 %v3910_v44, %v3882_v45  ;;  %3964 = vadd.xlane.f32.xlu2 %v3963_v38  ;;  %11533 = vst [vmem:[#allocation44_spill] sm:$0xff] %v10074_v39  ;;  %v3974_v7 = vadd.f32 %v10071_v47, %v10074_v39  ;;  %v4300_v45 = vld [vmem:[#allocation17 + $0x5a0] sm:$0xff] }
 0x681   : > { %v4492_v38 = vld [vmem:[#allocation17 + $0xba0] sm:$0xff]  ;;  %4724 = vmatpush.msra.mxu3 %v4300_v45 }
 0x682   : > { %v3940_v6 = vadd.f32 %v3939_v11, %v3911_v54  ;;  %v4684_v11 = vld [vmem:[#allocation17 + $0x11a0] sm:$0xff]  ;;  %4753 = vmatpush.msrb.mxu0 %v4492_v38 }
 0x683   : > { %v4480_v54 = vld [vmem:[#allocation17 + $0xb40] sm:$0xff]  ;;  %4782 = vmatpush.msrb.mxu1 %v4684_v11  ;;  %4725 = vmatpush.msra.mxu3 %v4288_v50  ;;  %v4265_v11 = vld [vmem:[#allocation17 + $0x488] sm:$0xff] }
 0x684   : > { %v10047_v4 = vadd.f32 %v8106_v37, %v3940_v6  ;;  %4754 = vmatpush.msrb.mxu0 %v4480_v54  ;;  %v4456_v45 = vld [vmem:[#allocation17 + $0xa80] sm:$0xff] }
 0x685   : > { %v3884_v61 = vpop.f32.mrf.mxu0  ;;  %4783 = vmatpush.msrb.mxu1 %v4672_v18  ;;  %v4648_v38 = vld [vmem:[#allocation17 + $0x1080] sm:$0xff] }
 0x686   : > { %11528 = vst [vmem:[#allocation39_spill] sm:$0xff] %v10047_v4  ;;  %v3885_v40 = vadd.f32 %v3884_v61, %v10024_v8  ;;  %v3967_v58 = vadd.f32 %v3966_v30, %v10047_v4  ;;  %v4444_v50 = vld [vmem:[#allocation17 + $0xa20] sm:$0xff] }
 0x687   : > { %v4636_v54 = vld [vmem:[#allocation17 + $0x1020] sm:$0xff] }
 0x688   : > { %v3914_v13 = vadd.f32 %v3913_v42, %v3885_v40  ;;  %3968 = vadd.xlane.f32.xlu1 %v3967_v58  ;;  %v4432_v18 = vld [vmem:[#allocation17 + $0x9c0] sm:$0xff] }
 0x68a   : > { %v3943_v31 = vadd.f32 %v3942_v63, %v3914_v13 }
 0x68c   : > { %v10063_v12 = vadd.f32 %v8109_v23, %v3943_v31 }
 0x68d   : > { %v3887_v41 = vpop.f32.mrf.mxu0 }
 0x68e   : > { %11531 = vst [vmem:[#allocation42_spill] sm:$0xff] %v10063_v12  ;;  %v3888_v36 = vadd.f32 %v3887_v41, %v10024_v8  ;;  %v3971_v17 = vadd.f32 %v3970_v33, %v10063_v12 }
 0x690   : > { %v3917_v29 = vadd.f32 %v3916_v5, %v3888_v36  ;;  %3972 = vadd.xlane.f32.xlu0 %v3971_v17 }
 0x692   : > { %v3946_v24 = vadd.f32 %v3945_v16, %v3917_v29 }
 0x694   : > { %v10077_v34 = vadd.f32 %v8112_v10, %v3946_v24  ;;  %v4276_v10 = vld [vmem:[#allocation17 + $0x4e0] sm:$0xff] }
 0x695   : > { %4726 = vmatpush.msra.mxu3 %v4276_v10  ;;  %v4169_v10 = vld [vmem:[#allocation17 + $0x188] sm:$0xff] }
 0x696   : > { %11534 = vst [vmem:[#allocation45_spill] sm:$0xff] %v10077_v34  ;;  %v3975_v8 = vadd.f32 %v3974_v7, %v10077_v34  ;;  %v4468_v7 = vld [vmem:[#allocation17 + $0xae0] sm:$0xff] }
 0x697   : > { %4755 = vmatpush.msrb.mxu0 %v4468_v7 }
 0x698   : > { %3976 = vadd.xlane.f32.xlu2 %v3975_v8  ;;  %v4660_v8 = vld [vmem:[#allocation17 + $0x10e0] sm:$0xff] }
 0x699   : > { %4784 = vmatpush.msrb.mxu1 %v4660_v8  ;;  %4756 = vmatpush.msrb.mxu0 %v4456_v45  ;;  %v4156_v8 = vld [vmem:[#allocation17 + $0x120] sm:$0xff] }
 0x69b   : > { %4785 = vmatpush.msrb.mxu1 %v4648_v38  ;;  %4757 = vmatpush.msrb.mxu0 %v4444_v50  ;;  %v4157_v38 = vld [vmem:[#allocation17 + $0x128] sm:$0xff]  ;;  %v4528_v50 = vld [vmem:[#allocation17 + $0xcc0] sm:$0xff] }
 0x69d   : > { %4786 = vmatpush.msrb.mxu1 %v4636_v54  ;;  %4758 = vmatpush.msrb.mxu0 %v4432_v18  ;;  %v4324_v18 = vld [vmem:[#allocation17 + $0x660] sm:$0xff] }
 0x69f   : > { %4787 = vmatpush.msrb.mxu1 %v4624_v19  ;;  %v4516_v19 = vld [vmem:[#allocation17 + $0xc60] sm:$0xff] }
 0x6f3   : > { %v3965_v43 = vpop.xlane.xlu2 %3964 }
 0x6f4   : > { %v3978_v3 = vmul.f32 %v3965_v43, %v11535_v27  ;;  %v4277_v43 = vld [vmem:[#allocation17 + $0x4e8] sm:$0xff] }
 0x6f5   : > { %4813 = vmatpush.msrb.mxu2 %v4277_v43  ;;  %v4348_v43 = vld [vmem:[#allocation17 + $0x720] sm:$0xff] }
 0x6f6   : > { %v10084_v44 = vsub.f32 %v10031_v20, %v3978_v3  ;;  %v10087_v49 = vsub.f32 %v10028_v1, %v3978_v3  ;;  %v10090_v55 = vsub.f32 %v10034_v26, %v3978_v3  ;;  %v4264_v3 = vld [vmem:[#allocation17 + $0x480] sm:$0xff]  ;;  %v4189_v20 = vld [vmem:[#allocation17 + $0x228] sm:$0xff] }
 0x6f7   : > { %4727 = vmatpush.msra.mxu3 %v4264_v3  ;;  %4814 = vmatpush.msrb.mxu2 %v4265_v11  ;;  %v4540_v3 = vld [vmem:[#allocation17 + $0xd20] sm:$0xff] }
 0x6f8   : > { %v3994_v59 = vmul.f32 %v10084_v44, %v10084_v44  ;;  %v3995_v0 = vmul.f32 %v10087_v49, %v10087_v49  ;;  %v3996_v6 = vmul.f32 %v10090_v55, %v10090_v55  ;;  %v4144_v11 = vld [vmem:[#allocation17 + $0xc0] sm:$0xff] }
 0x6f9   : > { %4728 = vmatpush.msra.mxu3 %v4252_v25  ;;  %v4336_v25 = vld [vmem:[#allocation17 + $0x6c0] sm:$0xff] }
 0x6fa   : > { %v4006_v46 = vadd.f32 %v3995_v0, %v3994_v59  ;;  %v4253_v59 = vld [vmem:[#allocation17 + $0x428] sm:$0xff]  ;;  %v4240_v0 = vld [vmem:[#allocation17 + $0x3c0] sm:$0xff] }
 0x6fb   : > { %v3969_v14 = vpop.xlane.xlu1 %3968  ;;  %4815 = vmatpush.msrb.mxu2 %v4253_v59  ;;  %4729 = vmatpush.msra.mxu3 %v4240_v0  ;;  %v4145_v59 = vld [vmem:[#allocation17 + $0xc8] sm:$0xff]  ;;  %v4132_v0 = vld [vmem:[#allocation17 + $0x60] sm:$0xff] }
 0x6fc   : > { %v3979_v37 = vmul.f32 %v3969_v14, %v11535_v27  ;;  %v4007_v30 = vadd.f32 %v4006_v46, %v3996_v6  ;;  %v4241_v6 = vld [vmem:[#allocation17 + $0x3c8] sm:$0xff]  ;;  %v4228_v46 = vld [vmem:[#allocation17 + $0x360] sm:$0xff] }
 0x6fd   : > { %4816 = vmatpush.msrb.mxu2 %v4241_v6  ;;  %v4420_v14 = vld [vmem:[#allocation17 + $0x960] sm:$0xff]  ;;  %4730 = vmatpush.msra.mxu3 %v4228_v46  ;;  %v4133_v6 = vld [vmem:[#allocation17 + $0x68] sm:$0xff] }
 0x6fe   : > { %v10100_v42 = vsub.f32 %v10044_v48, %v3979_v37  ;;  %v10103_v61 = vsub.f32 %v10041_v51, %v3979_v37  ;;  %v10106_v35 = vsub.f32 %v10047_v4, %v3979_v37  ;;  %4008 = vadd.xlane.f32.xlu1 %v4007_v30  ;;  %v4612_v37 = vld [vmem:[#allocation17 + $0xf60] sm:$0xff]  ;;  %4759 = vmatpush.msrb.mxu0 %v4420_v14  ;;  %v4229_v30 = vld [vmem:[#allocation17 + $0x368] sm:$0xff] }
 0x6ff   : > { %4788 = vmatpush.msrb.mxu1 %v4612_v37  ;;  %4817 = vmatpush.msrb.mxu2 %v4229_v30  ;;  %v4120_v46 = vld [vmem:[#allocation17] sm:$0xff]  ;;  %v4121_v30 = vld [vmem:[#allocation17 + $0x8] sm:$0xff] }
 0x700   : > { %v3997_v40 = vmul.f32 %v10100_v42, %v10100_v42  ;;  %v3998_v58 = vmul.f32 %v10103_v61, %v10103_v61  ;;  %v3999_v28 = vmul.f32 %v10106_v35, %v10106_v35  ;;  %v4312_v14 = vld [vmem:[#allocation17 + $0x600] sm:$0xff] }
 0x701   : > { %v4504_v37 = vld [vmem:[#allocation17 + $0xc00] sm:$0xff] }
 0x702   : > { %v4010_v22 = vadd.f32 %v3998_v58, %v3997_v40  ;;  %v4216_v40 = vld [vmem:[#allocation17 + $0x300] sm:$0xff] }
 0x703   : > { %v3973_v13 = vpop.xlane.xlu0 %3972  ;;  %v4408_v58 = vld [vmem:[#allocation17 + $0x900] sm:$0xff]  ;;  %4731 = vmatpush.msra.mxu3 %v4216_v40 }
 0x704   : > { %v3980_v63 = vmul.f32 %v3973_v13, %v11535_v27  ;;  %v4011_v60 = vadd.f32 %v4010_v22, %v3999_v28  ;;  %v4600_v28 = vld [vmem:[#allocation17 + $0xf00] sm:$0xff]  ;;  %4760 = vmatpush.msrb.mxu0 %v4408_v58  ;;  %v4217_v22 = vld [vmem:[#allocation17 + $0x308] sm:$0xff] }
 0x705   : > { %4789 = vmatpush.msrb.mxu1 %v4600_v28  ;;  %4818 = vmatpush.msrb.mxu2 %v4217_v22  ;;  %v4204_v13 = vld [vmem:[#allocation17 + $0x2a0] sm:$0xff]  ;;  %v4493_v58 = vld [vmem:[#allocation17 + $0xba8] sm:$0xff]  ;;  %v4302_v22 = vld [vmem:[#allocation17 + $0x5b0] sm:$0xff] }
 0x706   : > { %v10116_v2 = vsub.f32 %v10059_v9, %v3980_v63  ;;  %v10119_v15 = vsub.f32 %v10054_v56, %v3980_v63  ;;  %v10122_v32 = vsub.f32 %v10063_v12, %v3980_v63  ;;  %4012 = vadd.xlane.f32.xlu0 %v4011_v60  ;;  %v4396_v63 = vld [vmem:[#allocation17 + $0x8a0] sm:$0xff]  ;;  %4732 = vmatpush.msra.mxu3 %v4204_v13  ;;  %v4685_v28 = vld [vmem:[#allocation17 + $0x11a8] sm:$0xff] }
 0x707   : > { %v4588_v60 = vld [vmem:[#allocation17 + $0xea0] sm:$0xff]  ;;  %4761 = vmatpush.msrb.mxu0 %v4396_v63  ;;  %v4494_v63 = vld [vmem:[#allocation17 + $0xbb0] sm:$0xff]  ;;  %v4285_v12 = vld [vmem:[#allocation17 + $0x528] sm:$0xff] }
 0x708   : > { %v4000_v31 = vmul.f32 %v10116_v2, %v10116_v2  ;;  %v4001_v57 = vmul.f32 %v10119_v15, %v10119_v15  ;;  %v4002_v21 = vmul.f32 %v10122_v32, %v10122_v32  ;;  %4790 = vmatpush.msrb.mxu1 %v4588_v60  ;;  %v4481_v60 = vld [vmem:[#allocation17 + $0xb48] sm:$0xff]  ;;  %v4272_v4 = vld [vmem:[#allocation17 + $0x4c0] sm:$0xff] }
 0x709   : > { %v4464_v26 = vld [vmem:[#allocation17 + $0xac0] sm:$0xff] }
 0x70a   : > { %v4014_v23 = vadd.f32 %v4001_v57, %v4000_v31  ;;  %v4205_v31 = vld [vmem:[#allocation17 + $0x2a8] sm:$0xff]  ;;  %v4192_v57 = vld [vmem:[#allocation17 + $0x240] sm:$0xff] }
 0x70b   : > { %v3977_v33 = vpop.xlane.xlu2 %3976  ;;  %4819 = vmatpush.msrb.mxu2 %v4205_v31  ;;  %4733 = vmatpush.msra.mxu3 %v4192_v57  ;;  %v4673_v31 = vld [vmem:[#allocation17 + $0x1148] sm:$0xff]  ;;  %v4290_v57 = vld [vmem:[#allocation17 + $0x550] sm:$0xff]  ;;  %v4224_v51 = vld [vmem:[#allocation17 + $0x340] sm:$0xff] }
 0x70c   : > { %v3981_v41 = vmul.f32 %v3977_v33, %v11535_v27  ;;  %v4015_v62 = vadd.f32 %v4014_v23, %v4002_v21  ;;  %v4384_v21 = vld [vmem:[#allocation17 + $0x840] sm:$0xff]  ;;  %v4193_v33 = vld [vmem:[#allocation17 + $0x248] sm:$0xff] }
 0x70d   : > { %v4576_v23 = vld [vmem:[#allocation17 + $0xe40] sm:$0xff]  ;;  %4762 = vmatpush.msrb.mxu0 %v4384_v21  ;;  %4820 = vmatpush.msrb.mxu2 %v4193_v33  ;;  %v4482_v33 = vld [vmem:[#allocation17 + $0xb50] sm:$0xff] }
 0x70e   : > { %v10132_v36 = vsub.f32 %v10074_v39, %v3981_v41  ;;  %v10135_v17 = vsub.f32 %v10071_v47, %v3981_v41  ;;  %v10138_v5 = vsub.f32 %v10077_v34, %v3981_v41  ;;  %4016 = vadd.xlane.f32.xlu2 %v4015_v62  ;;  %4791 = vmatpush.msrb.mxu1 %v4576_v23  ;;  %v4180_v41 = vld [vmem:[#allocation17 + $0x1e0] sm:$0xff]  ;;  %v4273_v47 = vld [vmem:[#allocation17 + $0x4c8] sm:$0xff] }
 0x70f   : > { %v4372_v62 = vld [vmem:[#allocation17 + $0x7e0] sm:$0xff]  ;;  %4734 = vmatpush.msra.mxu3 %v4180_v41 }
 0x710   : > { %v4003_v52 = vmul.f32 %v10132_v36, %v10132_v36  ;;  %v4004_v29 = vmul.f32 %v10135_v17, %v10135_v17  ;;  %v4005_v16 = vmul.f32 %v10138_v5, %v10138_v5  ;;  %4763 = vmatpush.msrb.mxu0 %v4372_v62  ;;  %v4469_v62 = vld [vmem:[#allocation17 + $0xae8] sm:$0xff]  ;;  %v4668_v34 = vld [vmem:[#allocation17 + $0x1120] sm:$0xff] }
 0x711   : > { %v4416_v39 = vld [vmem:[#allocation17 + $0x940] sm:$0xff] }
 0x712   : > { %v4018_v53 = vadd.f32 %v4004_v29, %v4003_v52  ;;  %v4564_v52 = vld [vmem:[#allocation17 + $0xde0] sm:$0xff]  ;;  %v4181_v29 = vld [vmem:[#allocation17 + $0x1e8] sm:$0xff] }
 0x713   : > { %4792 = vmatpush.msrb.mxu1 %v4564_v52  ;;  %4821 = vmatpush.msrb.mxu2 %v4181_v29  ;;  %v4661_v52 = vld [vmem:[#allocation17 + $0x10e8] sm:$0xff]  ;;  %v4278_v29 = vld [vmem:[#allocation17 + $0x4f0] sm:$0xff] }
 0x714   : > { %v4019_v24 = vadd.f32 %v4018_v53, %v4005_v16  ;;  %v4168_v16 = vld [vmem:[#allocation17 + $0x180] sm:$0xff] }
 0x715   : > { %v4360_v53 = vld [vmem:[#allocation17 + $0x780] sm:$0xff]  ;;  %4735 = vmatpush.msra.mxu3 %v4168_v16  ;;  %4822 = vmatpush.msrb.mxu2 %v4169_v10  ;;  %v4470_v16 = vld [vmem:[#allocation17 + $0xaf0] sm:$0xff]  ;;  %v4649_v10 = vld [vmem:[#allocation17 + $0x1088] sm:$0xff] }
 0x716   : > { %4020 = vadd.xlane.f32.xlu1 %v4019_v24  ;;  %v4552_v24 = vld [vmem:[#allocation17 + $0xd80] sm:$0xff]  ;;  %4764 = vmatpush.msrb.mxu0 %v4360_v53 }
 0x717   : > { %4793 = vmatpush.msrb.mxu1 %v4552_v24  ;;  %4736 = vmatpush.msra.mxu3 %v4156_v8  ;;  %v4457_v24 = vld [vmem:[#allocation17 + $0xa88] sm:$0xff]  ;;  %v4458_v8 = vld [vmem:[#allocation17 + $0xa90] sm:$0xff] }
 0x718   : > { %4765 = vmatpush.msrb.mxu0 %v4348_v43  ;;  %4823 = vmatpush.msrb.mxu2 %v4157_v38  ;;  %v4637_v38 = vld [vmem:[#allocation17 + $0x1028] sm:$0xff] }
 0x719   : > { %4794 = vmatpush.msrb.mxu1 %v4540_v3  ;;  %4737 = vmatpush.msra.mxu3 %v4144_v11  ;;  %v4254_v11 = vld [vmem:[#allocation17 + $0x430] sm:$0xff] }
 0x71a   : > { %4766 = vmatpush.msrb.mxu0 %v4336_v25  ;;  %4824 = vmatpush.msrb.mxu2 %v4145_v59  ;;  %v3960_v25 = vld [vmem:[#allocation14] sm:$0x7] }
 0x71b   : > { %4795 = vmatpush.msrb.mxu1 %v4528_v50  ;;  %4738 = vmatpush.msra.mxu3 %v4132_v0  ;;  %v3961_v50 = vld [vmem:[#allocation15] sm:$0x7]  ;;  %v4446_v0 = vld [vmem:[#allocation17 + $0xa30] sm:$0xff] }
 0x71c   : > { %4767 = vmatpush.msrb.mxu0 %v4324_v18  ;;  %4825 = vmatpush.msrb.mxu2 %v4133_v6  ;;  %v4625_v6 = vld [vmem:[#allocation17 + $0xfc8] sm:$0xff] }
 0x71d   : > { %4796 = vmatpush.msrb.mxu1 %v4516_v19  ;;  %4739 = vmatpush.msra.mxu3 %v4120_v46  ;;  %v4433_v19 = vld [vmem:[#allocation17 + $0x9c8] sm:$0xff]  ;;  %v4242_v46 = vld [vmem:[#allocation17 + $0x3d0] sm:$0xff] }
 0x71e   : > { %4768 = vmatpush.msrb.mxu0 %v4312_v14  ;;  %4826 = vmatpush.msrb.mxu2 %v4121_v30  ;;  %v4434_v30 = vld [vmem:[#allocation17 + $0x9d0] sm:$0xff] }
 0x71f   : > { %4797 = vmatpush.msrb.mxu1 %v4504_v37  ;;  %4840 = vmatpush.msrb.mxu3 %v4493_v58  ;;  %v4613_v58 = vld [vmem:[#allocation17 + $0xf68] sm:$0xff] }
 0x720   : > { %4869 = vmatpush.msra.mxu0 %v4685_v28  ;;  %4927 = vmatpush.msra.mxu2 %v4494_v63  ;;  %v4422_v63 = vld [vmem:[#allocation17 + $0x970] sm:$0xff] }
 0x721   : > { %4898 = vmatpush.msra.mxu1 %v4302_v22  ;;  %4841 = vmatpush.msrb.mxu3 %v4481_v60  ;;  %v4409_v60 = vld [vmem:[#allocation17 + $0x908] sm:$0xff] }
 0x722   : > { %4870 = vmatpush.msra.mxu0 %v4673_v31  ;;  %4928 = vmatpush.msra.mxu2 %v4482_v33  ;;  %v10169_v31 = vperm.slane %v3960_v25, 0  ;;  %v10173_v33 = vperm.slane %v3960_v25, 2 }
 0x723   : > { %4899 = vmatpush.msra.mxu1 %v4290_v57  ;;  %4842 = vmatpush.msrb.mxu3 %v4469_v62  ;;  %v10171_v57 = vperm.slane %v3960_v25, 1  ;;  %v10178_v62 = vperm.slane %v3961_v50, 0  ;;  %v4385_v25 = vld [vmem:[#allocation17 + $0x848] sm:$0xff] }
 0x724   : > { %4871 = vmatpush.msra.mxu0 %v4661_v52  ;;  %4929 = vmatpush.msra.mxu2 %v4470_v16  ;;  %v10180_v52 = vperm.slane %v3961_v50, 1 }
 0x725   : > { %4900 = vmatpush.msra.mxu1 %v4278_v29  ;;  %4843 = vmatpush.msrb.mxu3 %v4457_v24  ;;  %v4397_v24 = vld [vmem:[#allocation17 + $0x8a8] sm:$0xff] }
 0x726   : > { %4872 = vmatpush.msra.mxu0 %v4649_v10  ;;  %4930 = vmatpush.msra.mxu2 %v4458_v8  ;;  %v10184_v10 = vperm.slane %v3961_v50, 2 }
 0x728   : > { %4873 = vmatpush.msra.mxu0 %v4637_v38  ;;  %4931 = vmatpush.msra.mxu2 %v4446_v0  ;;  %v4194_v0 = vld [vmem:[#allocation17 + $0x250] sm:$0xff] }
 0x72a   : > { %4874 = vmatpush.msra.mxu0 %v4625_v6  ;;  %4932 = vmatpush.msra.mxu2 %v4434_v30 }
 0x72c   : > { %4875 = vmatpush.msra.mxu0 %v4613_v58  ;;  %4933 = vmatpush.msra.mxu2 %v4422_v63  ;;  %v4182_v63 = vld [vmem:[#allocation17 + $0x1f0] sm:$0xff] }
 0x771   : > { %v4009_v7 = vpop.xlane.xlu1 %4008 }
 0x772   : > { %v4022_v45 = vmul.f32 %v4009_v7, %v11535_v27  ;;  %v4266_v7 = vld [vmem:[#allocation17 + $0x490] sm:$0xff] }
 0x773   : > { %4901 = vmatpush.msra.mxu1 %v4266_v7 }
 0x774   : > { %v10147_v54 = vadd.f32 1e-05, %v4022_v45  ;;  %v4445_v45 = vld [vmem:[#allocation17 + $0xa28] sm:$0xff] }
 0x775   : > { %4844 = vmatpush.msrb.mxu3 %v4445_v45  ;;  %4902 = vmatpush.msra.mxu1 %v4254_v11  ;;  %v4206_v45 = vld [vmem:[#allocation17 + $0x2b0] sm:$0xff] }
 0x776   : > { %8093 = vrsqrt.f32 %v10147_v54  ;;  %vm4036_vm14 = vweird.f32 %v10147_v54  ;;  %v4398_v11 = vld [vmem:[#allocation17 + $0x8b0] sm:$0xff] }
 0x777   : > { %4845 = vmatpush.msrb.mxu3 %v4433_v19  ;;  %4903 = vmatpush.msra.mxu1 %v4242_v46 }
 0x779   : > { %v4013_v40 = vpop.xlane.xlu0 %4012 }
 0x77a   : > { %v4023_v13 = vmul.f32 %v4013_v40, %v11535_v27  ;;  %v4421_v40 = vld [vmem:[#allocation17 + $0x968] sm:$0xff] }
 0x77b   : > { %4846 = vmatpush.msrb.mxu3 %v4421_v40 }
 0x77c   : > { %v10151_v21 = vpop.eup %8093  ;;  %v10153_v23 = vadd.f32 1e-05, %v4023_v13  ;;  %v4230_v13 = vld [vmem:[#allocation17 + $0x370] sm:$0xff] }
 0x77d   : > { %v4031_v41 = vmul.f32 %v10151_v21, %v10147_v54  ;;  %vm4037_vm13 = vweird.f32 %v10151_v21  ;;  %v4601_v54 = vld [vmem:[#allocation17 + $0xf08] sm:$0xff]  ;;  %4904 = vmatpush.msra.mxu1 %v4230_v13  ;;  %4847 = vmatpush.msrb.mxu3 %v4409_v60 }
 0x77e   : > { %8095 = vrsqrt.f32 %v10153_v23  ;;  %vm4038_vm0 = vmor %vm4036_vm14, %vm4037_vm13  ;;  %4876 = vmatpush.msra.mxu0 %v4601_v54  ;;  %vm4046_vm2 = vweird.f32 %v10153_v23  ;;  %v4565_v13 = vld [vmem:[#allocation17 + $0xde8] sm:$0xff]  ;;  %v4374_v54 = vld [vmem:[#allocation17 + $0x7f0] sm:$0xff] }
 0x77f   : > { %v4032_v53 = vmul.f32 %v10151_v21, %v4031_v41  ;;  %v4218_v41 = vld [vmem:[#allocation17 + $0x310] sm:$0xff]  ;;  %4848 = vmatpush.msrb.mxu3 %v4397_v24  ;;  %v4553_v24 = vld [vmem:[#allocation17 + $0xd88] sm:$0xff] }
 0x780   : > { %4905 = vmatpush.msra.mxu1 %v4218_v41  ;;  %v4361_v41 = vld [vmem:[#allocation17 + $0x788] sm:$0xff] }
 0x781   : > { %v4033_v43 = vmul.f32 0.5, %v4032_v53  ;;  %v4017_v3 = vpop.xlane.xlu2 %4016  ;;  %v4410_v53 = vld [vmem:[#allocation17 + $0x910] sm:$0xff]  ;;  %4849 = vmatpush.msrb.mxu3 %v4385_v25 }
 0x782   : > { %v4024_v59 = vmul.f32 %v4017_v3, %v11535_v27  ;;  %v4589_v3 = vld [vmem:[#allocation17 + $0xea8] sm:$0xff]  ;;  %4934 = vmatpush.msra.mxu2 %v4410_v53  ;;  %4906 = vmatpush.msra.mxu1 %v4206_v45 }
 0x783   : > { %v4034_v18 = vsub.f32 1.5, %v4033_v43  ;;  %4877 = vmatpush.msra.mxu0 %v4589_v3 }
 0x784   : > { %v10161_v14 = vpop.eup %8095  ;;  %v10163_v37 = vadd.f32 1e-05, %v4024_v59  ;;  %4935 = vmatpush.msra.mxu2 %v4398_v11  ;;  %4907 = vmatpush.msra.mxu1 %v4194_v0  ;;  %v4529_v0 = vld [vmem:[#allocation17 + $0xcc8] sm:$0xff] }
 0x785   : > { %v4035_v28 = vmul.f32 %v10151_v21, %v4034_v18  ;;  %v4041_v22 = vmul.f32 %v10161_v14, %v10153_v23  ;;  %vm4047_vm1 = vweird.f32 %v10161_v14 }
 0x786   : > { %8097 = vrsqrt.f32 %v10163_v37  ;;  %vm4048_vm3 = vmor %vm4046_vm2, %vm4047_vm1  ;;  %4908 = vmatpush.msra.mxu1 %v4182_v63  ;;  %vm4056_vm5 = vweird.f32 %v10163_v37 }
 0x787   : > { %v4039_v29 = vsel %vm4038_vm0, %v10151_v21, %v4035_v28  ;;  %v4042_v16 = vmul.f32 %v10161_v14, %v4041_v22  ;;  %v4386_v28 = vld [vmem:[#allocation17 + $0x850] sm:$0xff]  ;;  %v4373_v22 = vld [vmem:[#allocation17 + $0x7e8] sm:$0xff] }
 0x788   : > { %v4070_v7 = vmul.f32 %v4039_v29, %v10084_v44  ;;  %v4071_v8 = vmul.f32 %v4039_v29, %v10087_v49  ;;  %v4072_v43 = vmul.f32 %v4039_v29, %v10090_v55  ;;  %v4577_v55 = vld [vmem:[#allocation17 + $0xe48] sm:$0xff]  ;;  %4936 = vmatpush.msra.mxu2 %v4386_v28  ;;  %4850 = vmatpush.msrb.mxu3 %v4373_v22 }
 0x789   : > { %v4043_v38 = vmul.f32 0.5, %v4042_v16  ;;  %v4021_v21 = vpop.xlane.xlu1 %4020  ;;  %4878 = vmatpush.msra.mxu0 %v4577_v55  ;;  %v4337_v55 = vld [vmem:[#allocation17 + $0x6c8] sm:$0xff] }
 0x78a   : > { %v4089_v59 = vmul.f32 %v10169_v31, %v4070_v7  ;;  %v4090_v50 = vmul.f32 %v10171_v57, %v4071_v8  ;;  %v4091_v44 = vmul.f32 %v10173_v33, %v4072_v43  ;;  %v4025_v49 = vmul.f32 %v4021_v21, %v11535_v27  ;;  %v4170_v7 = vld [vmem:[#allocation17 + $0x190] sm:$0xff]  ;;  %v4349_v43 = vld [vmem:[#allocation17 + $0x728] sm:$0xff]  ;;  %4937 = vmatpush.msra.mxu2 %v4374_v54 }
 0x78b   : > { %v4044_v18 = vsub.f32 1.5, %v4043_v38  ;;  %4879 = vmatpush.msra.mxu0 %v4565_v13  ;;  %4851 = vmatpush.msrb.mxu3 %v4361_v41  ;;  %v4325_v28 = vld [vmem:[#allocation17 + $0x668] sm:$0xff] }
 0x78c   : > { %v10194_v19 = vpop.eup %8097  ;;  %v10197_v6 = vadd.f32 %v10178_v62, %v4089_v59  ;;  %v10200_v46 = vadd.f32 %v10180_v52, %v4090_v50  ;;  %v10203_v30 = vadd.f32 %v10184_v10, %v4091_v44  ;;  %v10205_v27 = vadd.f32 1e-05, %v4025_v49  ;;  %4909 = vmatpush.msra.mxu1 %v4170_v7  ;;  %v4350_v49 = vld [vmem:[#allocation17 + $0x730] sm:$0xff]  ;;  %v4313_v41 = vld [vmem:[#allocation17 + $0x608] sm:$0xff] }
 0x78d   : > { %v4045_v40 = vmul.f32 %v10161_v14, %v4044_v18  ;;  %v4051_v58 = vmul.f32 %v10194_v19, %v10163_v37  ;;  %vm4057_vm4 = vweird.f32 %v10194_v19  ;;  %4880 = vmatpush.msra.mxu0 %v4553_v24  ;;  %4852 = vmatpush.msrb.mxu3 %v4349_v43  ;;  %v4146_v18 = vld [vmem:[#allocation17 + $0xd0] sm:$0xff] }
 0x78e   : > { %8099 = vrsqrt.f32 %v10205_v27  ;;  %4740 = vmatmul.f32.vlgmr.msra.gmra.mxu3 %v10197_v6  ;;  %4769 = vmatmul.f32.vlgmr.msrb.gmra.mxu0 %v10200_v46  ;;  %vm4058_vm6 = vmor %vm4056_vm5, %vm4057_vm4  ;;  %vm4066_vm8 = vweird.f32 %v10205_v27  ;;  %v4314_v43 = vld [vmem:[#allocation17 + $0x610] sm:$0xff] }
 0x78f   : > { %v4049_v23 = vsel %vm4048_vm3, %v10161_v14, %v4045_v40  ;;  %v4052_v60 = vmul.f32 %v10194_v19, %v4051_v58  ;;  %4798 = vmatmul.f32.vlgmr.msrb.gmra.mxu1 %v10203_v30  ;;  %4827 = vmatmul.f32.vlgmr.msrb.gmra.mxu2 %v10197_v6  ;;  %v4362_v14 = vld [vmem:[#allocation17 + $0x790] sm:$0xff] }
 0x790   : > { %v4073_v29 = vmul.f32 %v4049_v23, %v10100_v42  ;;  %v4074_v16 = vmul.f32 %v4049_v23, %v10103_v61  ;;  %v4075_v53 = vmul.f32 %v4049_v23, %v10106_v35  ;;  %v4541_v42 = vld [vmem:[#allocation17 + $0xd28] sm:$0xff]  ;;  %v4158_v61 = vld [vmem:[#allocation17 + $0x130] sm:$0xff]  ;;  %4938 = vmatpush.msra.mxu2 %v4362_v14  ;;  %4853 = vmatpush.msrb.mxu3 %v4337_v55  ;;  %v4483_v55 = vld [vmem:[#allocation17 + $0xb58] sm:$0xff] }
 0x791   : > { %v4053_v8 = vmul.f32 0.5, %v4052_v60  ;;  %4881 = vmatpush.msra.mxu0 %v4541_v42  ;;  %4910 = vmatpush.msra.mxu1 %v4158_v61  ;;  %v4338_v58 = vld [vmem:[#allocation17 + $0x6d0] sm:$0xff]  ;;  %v4517_v23 = vld [vmem:[#allocation17 + $0xc68] sm:$0xff]  ;;  %v4687_v61 = vld [vmem:[#allocation17 + $0x11b8] sm:$0xff] }
 0x792   : > { %v4092_v3 = vmul.f32 %v10169_v31, %v4073_v29  ;;  %v4093_v45 = vmul.f32 %v10171_v57, %v4074_v16  ;;  %v4094_v38 = vmul.f32 %v10173_v33, %v4075_v53  ;;  %4939 = vmatpush.msra.mxu2 %v4350_v49  ;;  %v4134_v60 = vld [vmem:[#allocation17 + $0x70] sm:$0xff]  ;;  %4854 = vmatpush.msrb.mxu3 %v4325_v28  ;;  %v4291_v49 = vld [vmem:[#allocation17 + $0x558] sm:$0xff] }
 0x793   : > { %v4054_v35 = vsub.f32 1.5, %v4053_v8  ;;  %4882 = vmatpush.msra.mxu0 %v4529_v0  ;;  %4911 = vmatpush.msra.mxu1 %v4146_v18  ;;  %v4675_v0 = vld [vmem:[#allocation17 + $0x1158] sm:$0xff] }
 0x794   : > { %v10227_v21 = vpop.eup %8099  ;;  %v10230_v11 = vadd.f32 %v10178_v62, %v4092_v3  ;;  %v10233_v25 = vadd.f32 %v10180_v52, %v4093_v45  ;;  %v10236_v59 = vadd.f32 %v10184_v10, %v4094_v38  ;;  %4940 = vmatpush.msra.mxu2 %v4338_v58  ;;  %4855 = vmatpush.msrb.mxu3 %v4313_v41  ;;  %v4686_v3 = vld [vmem:[#allocation17 + $0x11b0] sm:$0xff]  ;;  %v4303_v45 = vld [vmem:[#allocation17 + $0x5b8] sm:$0xff] }
 0x795   : > { %v4055_v50 = vmul.f32 %v10194_v19, %v4054_v35  ;;  %v4061_v44 = vmul.f32 %v10227_v21, %v10205_v27  ;;  %vm4067_vm7 = vweird.f32 %v10227_v21  ;;  %4883 = vmatpush.msra.mxu0 %v4517_v23  ;;  %4912 = vmatpush.msra.mxu1 %v4134_v60  ;;  %v4495_v38 = vld [vmem:[#allocation17 + $0xbb8] sm:$0xff]  ;;  %v4674_v35 = vld [vmem:[#allocation17 + $0x1150] sm:$0xff] }
 0x796   : > { %4743 = vmatmul.f32.gmra.mxu3 %v10230_v11  ;;  %4772 = vmatmul.f32.gmra.mxu0 %v10233_v25  ;;  %vm4068_vm9 = vmor %vm4066_vm8, %vm4067_vm7  ;;  %v4626_v23 = vld [vmem:[#allocation17 + $0xfd0] sm:$0xff]  ;;  %v4243_v60 = vld [vmem:[#allocation17 + $0x3d8] sm:$0xff] }
 0x797   : > { %v4059_v40 = vsel %vm4058_vm6, %v10194_v19, %v4055_v50  ;;  %v4062_v37 = vmul.f32 %v10227_v21, %v4061_v44  ;;  %4801 = vmatmul.f32.gmra.mxu1 %v10236_v59  ;;  %4830 = vmatmul.f32.gmra.mxu2 %v10230_v11  ;;  %v4326_v19 = vld [vmem:[#allocation17 + $0x670] sm:$0xff] }
 0x798   : > { %v4076_v22 = vmul.f32 %v4059_v40, %v10116_v2  ;;  %v4077_v13 = vmul.f32 %v4059_v40, %v10119_v15  ;;  %v4078_v63 = vmul.f32 %v4059_v40, %v10122_v32  ;;  %v4505_v2 = vld [vmem:[#allocation17 + $0xc08] sm:$0xff]  ;;  %v4122_v15 = vld [vmem:[#allocation17 + $0x10] sm:$0xff]  ;;  %4941 = vmatpush.msra.mxu2 %v4326_v19  ;;  %4956 = vmatpush.msra.mxu3 %v4686_v3  ;;  %v4627_v19 = vld [vmem:[#allocation17 + $0xfd8] sm:$0xff] }
 0x799   : > { %v4063_v54 = vmul.f32 0.5, %v4062_v37  ;;  %4884 = vmatpush.msra.mxu0 %v4505_v2  ;;  %4913 = vmatpush.msra.mxu1 %v4122_v15  ;;  %v4614_v41 = vld [vmem:[#allocation17 + $0xf70] sm:$0xff]  ;;  %v4219_v15 = vld [vmem:[#allocation17 + $0x318] sm:$0xff] }
 0x79a   : > { %v4095_v29 = vmul.f32 %v10169_v31, %v4076_v22  ;;  %v4096_v16 = vmul.f32 %v10171_v57, %v4077_v13  ;;  %v4097_v53 = vmul.f32 %v10173_v33, %v4078_v63  ;;  %4942 = vmatpush.msra.mxu2 %v4314_v43  ;;  %4957 = vmatpush.msra.mxu3 %v4674_v35  ;;  %v4459_v22 = vld [vmem:[#allocation17 + $0xa98] sm:$0xff]  ;;  %v4602_v2 = vld [vmem:[#allocation17 + $0xf10] sm:$0xff] }
 0x79b   : > { %v4064_v32 = vsub.f32 1.5, %v4063_v54  ;;  %4985 = vmatpush.msrb.mxu0 %v4303_v45  ;;  %5014 = vmatpush.msrb.mxu1 %v4495_v38  ;;  %v4447_v13 = vld [vmem:[#allocation17 + $0xa38] sm:$0xff]  ;;  %v4590_v43 = vld [vmem:[#allocation17 + $0xeb0] sm:$0xff] }
 0x79c   : > { %v10258_v24 = vadd.f32 %v10178_v62, %v4095_v29  ;;  %v10261_v7 = vadd.f32 %v10180_v52, %v4096_v16  ;;  %v10264_v8 = vadd.f32 %v10184_v10, %v4097_v53  ;;  %5043 = vmatpush.msrb.mxu2 %v4687_v61  ;;  %v4639_v63 = vld [vmem:[#allocation17 + $0x1038] sm:$0xff] }
 0x79d   : > { %v4065_v14 = vmul.f32 %v10227_v21, %v4064_v32  ;;  %4986 = vmatpush.msrb.mxu0 %v4291_v49  ;;  %5015 = vmatpush.msrb.mxu1 %v4483_v55  ;;  %v4435_v54 = vld [vmem:[#allocation17 + $0x9d8] sm:$0xff] }
 0x79e   : > { %4746 = vmatmul.f32.gmra.mxu3 %v10258_v24  ;;  %4775 = vmatmul.f32.gmra.mxu0 %v10261_v7  ;;  %v4231_v29 = vld [vmem:[#allocation17 + $0x378] sm:$0xff] }
 0x79f   : > { %v4069_v42 = vsel %vm4068_vm9, %v10227_v21, %v4065_v14  ;;  %4804 = vmatmul.f32.gmra.mxu1 %v10264_v8  ;;  %4833 = vmatmul.f32.gmra.mxu2 %v10258_v24  ;;  %v4662_v21 = vld [vmem:[#allocation17 + $0x10f0] sm:$0xff]  ;;  %v4423_v16 = vld [vmem:[#allocation17 + $0x978] sm:$0xff] }
 0x7a0   : > { %v4079_v27 = vmul.f32 %v4069_v42, %v10132_v36  ;;  %v4080_v50 = vmul.f32 %v4069_v42, %v10135_v17  ;;  %v4081_v44 = vmul.f32 %v4069_v42, %v10138_v5  ;;  %v4279_v36 = vld [vmem:[#allocation17 + $0x4f8] sm:$0xff]  ;;  %5044 = vmatpush.msrb.mxu2 %v4675_v0  ;;  %4958 = vmatpush.msra.mxu3 %v4662_v21  ;;  %v4578_v42 = vld [vmem:[#allocation17 + $0xe50] sm:$0xff] }
 0x7a1   : > { %v4471_v17 = vld [vmem:[#allocation17 + $0xaf8] sm:$0xff]  ;;  %4987 = vmatpush.msrb.mxu0 %v4279_v36  ;;  %v4554_v0 = vld [vmem:[#allocation17 + $0xd90] sm:$0xff] }
 0x7a2   : > { %v4098_v18 = vmul.f32 %v10169_v31, %v4079_v27  ;;  %v4099_v40 = vmul.f32 %v10171_v57, %v4080_v50  ;;  %v4100_v37 = vmul.f32 %v10173_v33, %v4081_v44  ;;  %5016 = vmatpush.msrb.mxu1 %v4471_v17  ;;  %v4663_v31 = vld [vmem:[#allocation17 + $0x10f8] sm:$0xff]  ;;  %v4650_v57 = vld [vmem:[#allocation17 + $0x1090] sm:$0xff] }
 0x7a3   : > { %v4267_v33 = vld [vmem:[#allocation17 + $0x498] sm:$0xff]  ;;  %5045 = vmatpush.msrb.mxu2 %v4663_v31  ;;  %4959 = vmatpush.msra.mxu3 %v4650_v57  ;;  %v4566_v50 = vld [vmem:[#allocation17 + $0xdf0] sm:$0xff] }
 0x7a4   : > { %v10280_v5 = vadd.f32 %v10178_v62, %v4098_v18  ;;  %v10283_v58 = vadd.f32 %v10180_v52, %v4099_v40  ;;  %v10286_v28 = vadd.f32 %v10184_v10, %v4100_v37  ;;  %v4651_v62 = vld [vmem:[#allocation17 + $0x1098] sm:$0xff]  ;;  %v4638_v52 = vld [vmem:[#allocation17 + $0x1030] sm:$0xff]  ;;  %4988 = vmatpush.msrb.mxu0 %v4267_v33  ;;  %5017 = vmatpush.msrb.mxu1 %v4459_v22 }
 0x7a5   : > { %v4255_v10 = vld [vmem:[#allocation17 + $0x438] sm:$0xff]  ;;  %5046 = vmatpush.msrb.mxu2 %v4651_v62  ;;  %4960 = vmatpush.msra.mxu3 %v4638_v52  ;;  %v4542_v37 = vld [vmem:[#allocation17 + $0xd30] sm:$0xff] }
 0x7a6   : > { %4749 = vmatmul.f32.gmra.mxu3 %v10280_v5  ;;  %4778 = vmatmul.f32.gmra.mxu0 %v10283_v58  ;;  %v4615_v53 = vld [vmem:[#allocation17 + $0xf78] sm:$0xff]  ;;  %v4530_v57 = vld [vmem:[#allocation17 + $0xcd0] sm:$0xff] }
 0x7a7   : > { %4807 = vmatmul.f32.gmra.mxu1 %v10286_v28  ;;  %4836 = vmatmul.f32.gmra.mxu2 %v10280_v5  ;;  %v4411_v32 = vld [vmem:[#allocation17 + $0x918] sm:$0xff]  ;;  %v4518_v52 = vld [vmem:[#allocation17 + $0xc70] sm:$0xff] }
 0x7a8   : > { %4989 = vmatpush.msrb.mxu0 %v4255_v10  ;;  %5018 = vmatpush.msrb.mxu1 %v4447_v13  ;;  %v4603_v14 = vld [vmem:[#allocation17 + $0xf18] sm:$0xff] }
 0x7a9   : > { %5047 = vmatpush.msrb.mxu2 %v4639_v63  ;;  %4961 = vmatpush.msra.mxu3 %v4626_v23  ;;  %v4207_v3 = vld [vmem:[#allocation17 + $0x2b8] sm:$0xff]  ;;  %v4506_v23 = vld [vmem:[#allocation17 + $0xc10] sm:$0xff] }
 0x7aa   : > { %4990 = vmatpush.msrb.mxu0 %v4243_v60  ;;  %5019 = vmatpush.msrb.mxu1 %v4435_v54  ;;  %v4399_v45 = vld [vmem:[#allocation17 + $0x8b8] sm:$0xff] }
 0x7ab   : > { %5048 = vmatpush.msrb.mxu2 %v4627_v19  ;;  %4962 = vmatpush.msra.mxu3 %v4614_v41  ;;  %v4591_v38 = vld [vmem:[#allocation17 + $0xeb8] sm:$0xff]  ;;  %v4304_v41 = vld [vmem:[#allocation17 + $0x5c0] sm:$0xff] }
 0x7ac   : > { %4991 = vmatpush.msrb.mxu0 %v4231_v29  ;;  %5020 = vmatpush.msrb.mxu1 %v4423_v16  ;;  %v4195_v61 = vld [vmem:[#allocation17 + $0x258] sm:$0xff]  ;;  %v4496_v29 = vld [vmem:[#allocation17 + $0xbc0] sm:$0xff] }
 0x7ad   : > { %5049 = vmatpush.msrb.mxu2 %v4615_v53  ;;  %4963 = vmatpush.msra.mxu3 %v4602_v2  ;;  %v4387_v35 = vld [vmem:[#allocation17 + $0x858] sm:$0xff]  ;;  %v4688_v16 = vld [vmem:[#allocation17 + $0x11c0] sm:$0xff]  ;;  %v4305_v53 = vld [vmem:[#allocation17 + $0x5c8] sm:$0xff] }
 0x7ae   : > { %4856 = vmatmul.f32.vlgmr.msrb.gmra.mxu3 %v10200_v46  ;;  %4885 = vmatmul.f32.vlgmr.msra.gmra.mxu0 %v10203_v30  ;;  %v4579_v27 = vld [vmem:[#allocation17 + $0xe58] sm:$0xff]  ;;  %v4292_v2 = vld [vmem:[#allocation17 + $0x560] sm:$0xff] }
 0x7af   : > { %4914 = vmatmul.f32.vlgmr.msra.gmra.mxu1 %v10197_v6  ;;  %4943 = vmatmul.f32.vlgmr.msra.gmra.mxu2 %v10200_v46  ;;  %v4183_v44 = vld [vmem:[#allocation17 + $0x1f8] sm:$0xff] }
 0x7b0   : > { %4992 = vmatpush.msrb.mxu0 %v4219_v15  ;;  %5021 = vmatpush.msrb.mxu1 %v4411_v32  ;;  %v4375_v49 = vld [vmem:[#allocation17 + $0x7f8] sm:$0xff]  ;;  %v4484_v15 = vld [vmem:[#allocation17 + $0xb60] sm:$0xff] }
 0x7b1   : > { %5050 = vmatpush.msrb.mxu2 %v4603_v14  ;;  %4964 = vmatpush.msra.mxu3 %v4590_v43  ;;  %v4567_v55 = vld [vmem:[#allocation17 + $0xdf8] sm:$0xff]  ;;  %v4676_v32 = vld [vmem:[#allocation17 + $0x1160] sm:$0xff]  ;;  %v4293_v14 = vld [vmem:[#allocation17 + $0x568] sm:$0xff] }
 0x7b2   : > { %4993 = vmatpush.msrb.mxu0 %v4207_v3  ;;  %5022 = vmatpush.msrb.mxu1 %v4399_v45  ;;  %v4171_v21 = vld [vmem:[#allocation17 + $0x198] sm:$0xff]  ;;  %v4280_v43 = vld [vmem:[#allocation17 + $0x500] sm:$0xff] }
 0x7b3   : > { %5051 = vmatpush.msrb.mxu2 %v4591_v38  ;;  %4965 = vmatpush.msra.mxu3 %v4578_v42  ;;  %v4363_v18 = vld [vmem:[#allocation17 + $0x798] sm:$0xff]  ;;  %v4472_v3 = vld [vmem:[#allocation17 + $0xb00] sm:$0xff]  ;;  %v4281_v38 = vld [vmem:[#allocation17 + $0x508] sm:$0xff] }
 0x7b4   : > { %4994 = vmatpush.msrb.mxu0 %v4195_v61  ;;  %5023 = vmatpush.msrb.mxu1 %v4387_v35  ;;  %v4555_v40 = vld [vmem:[#allocation17 + $0xd98] sm:$0xff]  ;;  %v4664_v45 = vld [vmem:[#allocation17 + $0x1100] sm:$0xff] }
 0x7b5   : > { %5052 = vmatpush.msrb.mxu2 %v4579_v27  ;;  %4966 = vmatpush.msra.mxu3 %v4566_v50  ;;  %v4159_v36 = vld [vmem:[#allocation17 + $0x138] sm:$0xff]  ;;  %v4268_v42 = vld [vmem:[#allocation17 + $0x4a0] sm:$0xff]  ;;  %v4269_v27 = vld [vmem:[#allocation17 + $0x4a8] sm:$0xff] }
 0x7b6   : > { %4859 = vmatmul.f32.gmra.mxu3 %v10233_v25  ;;  %4888 = vmatmul.f32.gmra.mxu0 %v10236_v59  ;;  %v4351_v17 = vld [vmem:[#allocation17 + $0x738] sm:$0xff]  ;;  %v4460_v61 = vld [vmem:[#allocation17 + $0xaa0] sm:$0xff] }
 0x7b7   : > { %4917 = vmatmul.f32.gmra.mxu1 %v10230_v11  ;;  %4946 = vmatmul.f32.gmra.mxu2 %v10233_v25  ;;  %v4543_v31 = vld [vmem:[#allocation17 + $0xd38] sm:$0xff]  ;;  %v4652_v35 = vld [vmem:[#allocation17 + $0x10a0] sm:$0xff] }
 0x7b8   : > { %4995 = vmatpush.msrb.mxu0 %v4183_v44  ;;  %5024 = vmatpush.msrb.mxu1 %v4375_v49  ;;  %v4147_v33 = vld [vmem:[#allocation17 + $0xd8] sm:$0xff]  ;;  %v4256_v50 = vld [vmem:[#allocation17 + $0x440] sm:$0xff] }
 0x7b9   : > { %5053 = vmatpush.msrb.mxu2 %v4567_v55  ;;  %4967 = vmatpush.msra.mxu3 %v4554_v0  ;;  %v4339_v22 = vld [vmem:[#allocation17 + $0x6d8] sm:$0xff]  ;;  %v4448_v44 = vld [vmem:[#allocation17 + $0xa40] sm:$0xff]  ;;  %v4257_v55 = vld [vmem:[#allocation17 + $0x448] sm:$0xff] }
 0x7ba   : > { %4996 = vmatpush.msrb.mxu0 %v4171_v21  ;;  %5025 = vmatpush.msrb.mxu1 %v4363_v18  ;;  %v4531_v62 = vld [vmem:[#allocation17 + $0xcd8] sm:$0xff]  ;;  %v4640_v49 = vld [vmem:[#allocation17 + $0x1040] sm:$0xff] }
 0x7bb   : > { %5054 = vmatpush.msrb.mxu2 %v4555_v40  ;;  %4968 = vmatpush.msra.mxu3 %v4542_v37  ;;  %v4135_v10 = vld [vmem:[#allocation17 + $0x78] sm:$0xff]  ;;  %v4244_v0 = vld [vmem:[#allocation17 + $0x3e0] sm:$0xff]  ;;  %v4245_v40 = vld [vmem:[#allocation17 + $0x3e8] sm:$0xff] }
 0x7bc   : > { %4997 = vmatpush.msrb.mxu0 %v4159_v36  ;;  %5026 = vmatpush.msrb.mxu1 %v4351_v17  ;;  %v4327_v13 = vld [vmem:[#allocation17 + $0x678] sm:$0xff]  ;;  %v4436_v21 = vld [vmem:[#allocation17 + $0x9e0] sm:$0xff] }
 0x7bd   : > { %5055 = vmatpush.msrb.mxu2 %v4543_v31  ;;  %4969 = vmatpush.msra.mxu3 %v4530_v57  ;;  %v4519_v63 = vld [vmem:[#allocation17 + $0xc78] sm:$0xff]  ;;  %v4628_v18 = vld [vmem:[#allocation17 + $0xfe0] sm:$0xff]  ;;  %v4233_v31 = vld [vmem:[#allocation17 + $0x388] sm:$0xff] }
 0x7be   : > { %4862 = vmatmul.f32.gmra.mxu3 %v10261_v7  ;;  %4891 = vmatmul.f32.gmra.mxu0 %v10264_v8  ;;  %v4123_v60 = vld [vmem:[#allocation17 + $0x18] sm:$0xff]  ;;  %v4232_v37 = vld [vmem:[#allocation17 + $0x380] sm:$0xff] }
 0x7bf   : > { %4920 = vmatmul.f32.gmra.mxu1 %v10258_v24  ;;  %4949 = vmatmul.f32.gmra.mxu2 %v10261_v7  ;;  %v4315_v54 = vld [vmem:[#allocation17 + $0x618] sm:$0xff]  ;;  %v4424_v36 = vld [vmem:[#allocation17 + $0x980] sm:$0xff] }
 0x7c0   : > { %4998 = vmatpush.msrb.mxu0 %v4147_v33  ;;  %5027 = vmatpush.msrb.mxu1 %v4339_v22  ;;  %v4507_v19 = vld [vmem:[#allocation17 + $0xc18] sm:$0xff]  ;;  %v4616_v17 = vld [vmem:[#allocation17 + $0xf80] sm:$0xff] }
 0x7c1   : > { %5056 = vmatpush.msrb.mxu2 %v4531_v62  ;;  %4970 = vmatpush.msra.mxu3 %v4518_v52  ;;  %v4220_v57 = vld [vmem:[#allocation17 + $0x320] sm:$0xff]  ;;  %v4221_v62 = vld [vmem:[#allocation17 + $0x328] sm:$0xff] }
 0x7c2   : > { %4999 = vmatpush.msrb.mxu0 %v4135_v10  ;;  %5028 = vmatpush.msrb.mxu1 %v4327_v13  ;;  %v4412_v33 = vld [vmem:[#allocation17 + $0x920] sm:$0xff] }
 0x7c3   : > { %5057 = vmatpush.msrb.mxu2 %v4519_v63  ;;  %4971 = vmatpush.msra.mxu3 %v4506_v23  ;;  %v4604_v22 = vld [vmem:[#allocation17 + $0xf20] sm:$0xff]  ;;  %v4209_v63 = vld [vmem:[#allocation17 + $0x2c8] sm:$0xff] }
 0x7c4   : > { %5000 = vmatpush.msrb.mxu0 %v4123_v60  ;;  %5029 = vmatpush.msrb.mxu1 %v4315_v54  ;;  %v4208_v52 = vld [vmem:[#allocation17 + $0x2c0] sm:$0xff] }
 0x7c5   : > { %5058 = vmatpush.msrb.mxu2 %v4507_v19  ;;  %5072 = vmatpush.msrb.mxu3 %v4304_v41  ;;  %v4400_v10 = vld [vmem:[#allocation17 + $0x8c0] sm:$0xff]  ;;  %v4197_v19 = vld [vmem:[#allocation17 + $0x268] sm:$0xff] }
 0x7c6   : > { %4865 = vmatmul.f32.gmra.mxu3 %v10283_v58  ;;  %4894 = vmatmul.f32.gmra.mxu0 %v10286_v28  ;;  %v4592_v13 = vld [vmem:[#allocation17 + $0xec0] sm:$0xff] }
 0x7c7   : > { %4923 = vmatmul.f32.gmra.mxu1 %v10280_v5  ;;  %4952 = vmatmul.f32.gmra.mxu2 %v10283_v58  ;;  %v4196_v23 = vld [vmem:[#allocation17 + $0x260] sm:$0xff] }
 0x7c8   : > { %5101 = vmatpush.msra.mxu0 %v4496_v29  ;;  %5130 = vmatpush.msra.mxu1 %v4688_v16  ;;  %v4388_v60 = vld [vmem:[#allocation17 + $0x860] sm:$0xff] }
 0x7c9   : > { %5159 = vmatpush.msra.mxu2 %v4305_v53  ;;  %5073 = vmatpush.msrb.mxu3 %v4292_v2  ;;  %v4580_v54 = vld [vmem:[#allocation17 + $0xe60] sm:$0xff]  ;;  %v4185_v53 = vld [vmem:[#allocation17 + $0x208] sm:$0xff] }
 0x7ca   : > { %5102 = vmatpush.msra.mxu0 %v4484_v15  ;;  %5131 = vmatpush.msra.mxu1 %v4676_v32  ;;  %v4184_v41 = vld [vmem:[#allocation17 + $0x200] sm:$0xff] }
 0x7cb   : > { %5160 = vmatpush.msra.mxu2 %v4293_v14  ;;  %5074 = vmatpush.msrb.mxu3 %v4280_v43  ;;  %v4376_v29 = vld [vmem:[#allocation17 + $0x800] sm:$0xff]  ;;  %v4173_v14 = vld [vmem:[#allocation17 + $0x1a8] sm:$0xff] }
 0x7cc   : > { %5103 = vmatpush.msra.mxu0 %v4472_v3  ;;  %5132 = vmatpush.msra.mxu1 %v4664_v45  ;;  %v4568_v16 = vld [vmem:[#allocation17 + $0xe00] sm:$0xff] }
 0x7cd   : > { %5161 = vmatpush.msra.mxu2 %v4281_v38  ;;  %5075 = vmatpush.msrb.mxu3 %v4268_v42  ;;  %v4172_v2 = vld [vmem:[#allocation17 + $0x1a0] sm:$0xff]  ;;  %v4161_v38 = vld [vmem:[#allocation17 + $0x148] sm:$0xff] }
 0x7ce   : > { %4972 = vmatmul.f32.vlgmr.msra.gmra.mxu3 %v10203_v30  ;;  %5001 = vmatmul.f32.vlgmr.msrb.gmra.mxu0 %v10197_v6  ;;  %v4364_v15 = vld [vmem:[#allocation17 + $0x7a0] sm:$0xff] }
 0x7cf   : > { %5030 = vmatmul.f32.vlgmr.msrb.gmra.mxu1 %v10200_v46  ;;  %5059 = vmatmul.f32.vlgmr.msrb.gmra.mxu2 %v10203_v30  ;;  %v4556_v32 = vld [vmem:[#allocation17 + $0xda0] sm:$0xff] }
 0x7d0   : > { %5104 = vmatpush.msra.mxu0 %v4460_v61  ;;  %5133 = vmatpush.msra.mxu1 %v4652_v35  ;;  %v4160_v43 = vld [vmem:[#allocation17 + $0x140] sm:$0xff] }
 0x7d1   : > { %5162 = vmatpush.msra.mxu2 %v4269_v27  ;;  %5076 = vmatpush.msrb.mxu3 %v4256_v50  ;;  %v4352_v3 = vld [vmem:[#allocation17 + $0x740] sm:$0xff]  ;;  %v4149_v27 = vld [vmem:[#allocation17 + $0xe8] sm:$0xff] }
 0x7d2   : > { %5105 = vmatpush.msra.mxu0 %v4448_v44  ;;  %5134 = vmatpush.msra.mxu1 %v4640_v49  ;;  %v4544_v45 = vld [vmem:[#allocation17 + $0xd40] sm:$0xff] }
 0x7d3   : > { %5163 = vmatpush.msra.mxu2 %v4257_v55  ;;  %5077 = vmatpush.msrb.mxu3 %v4244_v0  ;;  %v4148_v42 = vld [vmem:[#allocation17 + $0xe0] sm:$0xff]  ;;  %v4137_v55 = vld [vmem:[#allocation17 + $0x88] sm:$0xff] }
 0x7d4   : > { %5106 = vmatpush.msra.mxu0 %v4436_v21  ;;  %5135 = vmatpush.msra.mxu1 %v4628_v18  ;;  %v4340_v61 = vld [vmem:[#allocation17 + $0x6e0] sm:$0xff] }
 0x7d5   : > { %5164 = vmatpush.msra.mxu2 %v4245_v40  ;;  %5078 = vmatpush.msrb.mxu3 %v4232_v37  ;;  %v4532_v35 = vld [vmem:[#allocation17 + $0xce0] sm:$0xff]  ;;  %v4125_v40 = vld [vmem:[#allocation17 + $0x28] sm:$0xff] }
 0x7d6   : > { %4975 = vmatmul.f32.gmra.mxu3 %v10236_v59  ;;  %5004 = vmatmul.f32.gmra.mxu0 %v10230_v11  ;;  %v4136_v50 = vld [vmem:[#allocation17 + $0x80] sm:$0xff]  ;;  %v4497_v37 = vld [vmem:[#allocation17 + $0xbc8] sm:$0xff] }
 0x7d7   : > { %5033 = vmatmul.f32.gmra.mxu1 %v10233_v25  ;;  %5062 = vmatmul.f32.gmra.mxu2 %v10236_v59  ;;  %v4328_v44 = vld [vmem:[#allocation17 + $0x680] sm:$0xff] }
 0x7d8   : > { %5107 = vmatpush.msra.mxu0 %v4424_v36  ;;  %5136 = vmatpush.msra.mxu1 %v4616_v17  ;;  %v4520_v49 = vld [vmem:[#allocation17 + $0xc80] sm:$0xff]  ;;  %v4689_v36 = vld [vmem:[#allocation17 + $0x11c8] sm:$0xff]  ;;  %v4306_v17 = vld [vmem:[#allocation17 + $0x5d0] sm:$0xff] }
 0x7d9   : > { %5165 = vmatpush.msra.mxu2 %v4233_v31  ;;  %5079 = vmatpush.msrb.mxu3 %v4220_v57  ;;  %v4124_v0 = vld [vmem:[#allocation17 + $0x20] sm:$0xff]  ;;  %v4498_v31 = vld [vmem:[#allocation17 + $0xbd0] sm:$0xff]  ;;  %v4485_v57 = vld [vmem:[#allocation17 + $0xb68] sm:$0xff] }
 0x7da   : > { %5108 = vmatpush.msra.mxu0 %v4412_v33  ;;  %5137 = vmatpush.msra.mxu1 %v4604_v22  ;;  %v4316_v21 = vld [vmem:[#allocation17 + $0x620] sm:$0xff]  ;;  %v4677_v33 = vld [vmem:[#allocation17 + $0x1168] sm:$0xff]  ;;  %v4294_v22 = vld [vmem:[#allocation17 + $0x570] sm:$0xff] }
 0x7db   : > { %5166 = vmatpush.msra.mxu2 %v4221_v62  ;;  %5080 = vmatpush.msrb.mxu3 %v4208_v52  ;;  %v4508_v18 = vld [vmem:[#allocation17 + $0xc20] sm:$0xff]  ;;  %v4486_v62 = vld [vmem:[#allocation17 + $0xb70] sm:$0xff]  ;;  %v4473_v52 = vld [vmem:[#allocation17 + $0xb08] sm:$0xff] }
 0x7dc   : > { %5109 = vmatpush.msra.mxu0 %v4400_v10  ;;  %5138 = vmatpush.msra.mxu1 %v4592_v13  ;;  %v4665_v10 = vld [vmem:[#allocation17 + $0x1108] sm:$0xff]  ;;  %v4282_v13 = vld [vmem:[#allocation17 + $0x510] sm:$0xff] }
 0x7dd   : > { %5167 = vmatpush.msra.mxu2 %v4209_v63  ;;  %5081 = vmatpush.msrb.mxu3 %v4196_v23  ;;  %v4474_v63 = vld [vmem:[#allocation17 + $0xb10] sm:$0xff]  ;;  %v4461_v23 = vld [vmem:[#allocation17 + $0xaa8] sm:$0xff] }
 0x7de   : > { %4978 = vmatmul.f32.gmra.mxu3 %v10264_v8  ;;  %5007 = vmatmul.f32.gmra.mxu0 %v10258_v24 }
 0x7df   : > { %5036 = vmatmul.f32.gmra.mxu1 %v10261_v7  ;;  %5065 = vmatmul.f32.gmra.mxu2 %v10264_v8 }
 0x7e0   : > { %5110 = vmatpush.msra.mxu0 %v4388_v60  ;;  %5139 = vmatpush.msra.mxu1 %v4580_v54  ;;  %v4653_v60 = vld [vmem:[#allocation17 + $0x10a8] sm:$0xff]  ;;  %v4270_v54 = vld [vmem:[#allocation17 + $0x4b0] sm:$0xff] }
 0x7e1   : > { %5168 = vmatpush.msra.mxu2 %v4197_v19  ;;  %5082 = vmatpush.msrb.mxu3 %v4184_v41  ;;  %v4462_v19 = vld [vmem:[#allocation17 + $0xab0] sm:$0xff]  ;;  %v4449_v41 = vld [vmem:[#allocation17 + $0xa48] sm:$0xff] }
 0x7e2   : > { %5111 = vmatpush.msra.mxu0 %v4376_v29  ;;  %5140 = vmatpush.msra.mxu1 %v4568_v16  ;;  %v4641_v29 = vld [vmem:[#allocation17 + $0x1048] sm:$0xff]  ;;  %v4258_v16 = vld [vmem:[#allocation17 + $0x450] sm:$0xff] }
 0x7e3   : > { %5169 = vmatpush.msra.mxu2 %v4185_v53  ;;  %5083 = vmatpush.msrb.mxu3 %v4172_v2  ;;  %v4450_v53 = vld [vmem:[#allocation17 + $0xa50] sm:$0xff]  ;;  %v4437_v2 = vld [vmem:[#allocation17 + $0x9e8] sm:$0xff] }
 0x7e4   : > { %5112 = vmatpush.msra.mxu0 %v4364_v15  ;;  %5141 = vmatpush.msra.mxu1 %v4556_v32  ;;  %v4629_v15 = vld [vmem:[#allocation17 + $0xfe8] sm:$0xff]  ;;  %v4246_v32 = vld [vmem:[#allocation17 + $0x3f0] sm:$0xff] }
 0x7e5   : > { %5170 = vmatpush.msra.mxu2 %v4173_v14  ;;  %5084 = vmatpush.msrb.mxu3 %v4160_v43  ;;  %v4438_v14 = vld [vmem:[#allocation17 + $0x9f0] sm:$0xff]  ;;  %v4425_v43 = vld [vmem:[#allocation17 + $0x988] sm:$0xff] }
 0x7e6   : > { %4981 = vmatmul.f32.gmra.mxu3 %v10286_v28  ;;  %5010 = vmatmul.f32.gmra.mxu0 %v10280_v5 }
 0x7e7   : > { %5039 = vmatmul.f32.gmra.mxu1 %v10283_v58  ;;  %5068 = vmatmul.f32.gmra.mxu2 %v10286_v28 }
 0x7e8   : > { %5113 = vmatpush.msra.mxu0 %v4352_v3  ;;  %5142 = vmatpush.msra.mxu1 %v4544_v45  ;;  %v4617_v3 = vld [vmem:[#allocation17 + $0xf88] sm:$0xff]  ;;  %v4234_v45 = vld [vmem:[#allocation17 + $0x390] sm:$0xff] }
 0x7e9   : > { %5171 = vmatpush.msra.mxu2 %v4161_v38  ;;  %5085 = vmatpush.msrb.mxu3 %v4148_v42  ;;  %v4426_v38 = vld [vmem:[#allocation17 + $0x990] sm:$0xff]  ;;  %v4413_v42 = vld [vmem:[#allocation17 + $0x928] sm:$0xff] }
 0x7ea   : > { %5114 = vmatpush.msra.mxu0 %v4340_v61  ;;  %5143 = vmatpush.msra.mxu1 %v4532_v35  ;;  %v4605_v61 = vld [vmem:[#allocation17 + $0xf28] sm:$0xff]  ;;  %v4222_v35 = vld [vmem:[#allocation17 + $0x330] sm:$0xff] }
 0x7eb   : > { %5172 = vmatpush.msra.mxu2 %v4149_v27  ;;  %5086 = vmatpush.msrb.mxu3 %v4136_v50  ;;  %v4414_v27 = vld [vmem:[#allocation17 + $0x930] sm:$0xff]  ;;  %v4401_v50 = vld [vmem:[#allocation17 + $0x8c8] sm:$0xff] }
 0x7ec   : > { %5115 = vmatpush.msra.mxu0 %v4328_v44  ;;  %5144 = vmatpush.msra.mxu1 %v4520_v49  ;;  %v4593_v44 = vld [vmem:[#allocation17 + $0xec8] sm:$0xff]  ;;  %v4210_v49 = vld [vmem:[#allocation17 + $0x2d0] sm:$0xff] }
 0x7ed   : > { %5173 = vmatpush.msra.mxu2 %v4137_v55  ;;  %5087 = vmatpush.msrb.mxu3 %v4124_v0  ;;  %v4402_v55 = vld [vmem:[#allocation17 + $0x8d0] sm:$0xff]  ;;  %v4389_v0 = vld [vmem:[#allocation17 + $0x868] sm:$0xff] }
 0x7ee   : > { %5116 = vmatpush.msra.mxu0 %v4316_v21  ;;  %5145 = vmatpush.msra.mxu1 %v4508_v18  ;;  %v4581_v21 = vld [vmem:[#allocation17 + $0xe68] sm:$0xff]  ;;  %v4198_v18 = vld [vmem:[#allocation17 + $0x270] sm:$0xff] }
 0x7ef   : > { %5174 = vmatpush.msra.mxu2 %v4125_v40  ;;  %5088 = vmatmul.f32.vlgmr.msrb.gmra.mxu3 %v10197_v6  ;;  %v4390_v40 = vld [vmem:[#allocation17 + $0x870] sm:$0xff] }
 0x7f0   : > { %5117 = vmatmul.f32.vlgmr.msra.gmra.mxu0 %v10200_v46  ;;  %5146 = vmatmul.f32.vlgmr.msra.gmra.mxu1 %v10203_v30 }
 0x7f1   : > { %5175 = vmatmul.f32.vlgmr.msra.gmra.mxu2 %v10197_v6  ;;  %5188 = vmatpush.msra.mxu3 %v4497_v37  ;;  %v4377_v37 = vld [vmem:[#allocation17 + $0x808] sm:$0xff] }
 0x7f2   : > { %5217 = vmatpush.msrb.mxu0 %v4689_v36  ;;  %5246 = vmatpush.msrb.mxu1 %v4306_v17  ;;  %v4569_v36 = vld [vmem:[#allocation17 + $0xe08] sm:$0xff]  ;;  %v4186_v17 = vld [vmem:[#allocation17 + $0x210] sm:$0xff] }
 0x7f3   : > { %5275 = vmatpush.msrb.mxu2 %v4498_v31  ;;  %5189 = vmatpush.msra.mxu3 %v4485_v57  ;;  %v4378_v31 = vld [vmem:[#allocation17 + $0x810] sm:$0xff]  ;;  %v4365_v57 = vld [vmem:[#allocation17 + $0x7a8] sm:$0xff] }
 0x7f4   : > { %5218 = vmatpush.msrb.mxu0 %v4677_v33  ;;  %5247 = vmatpush.msrb.mxu1 %v4294_v22  ;;  %v4557_v22 = vld [vmem:[#allocation17 + $0xda8] sm:$0xff] }
 0x7f5   : > { %5276 = vmatpush.msrb.mxu2 %v4486_v62  ;;  %5190 = vmatpush.msra.mxu3 %v4473_v52  ;;  %v4174_v62 = vld [vmem:[#allocation17 + $0x1b0] sm:$0xff] }
 0x7f6   : > { %5219 = vmatpush.msrb.mxu0 %v4665_v10  ;;  %5248 = vmatpush.msrb.mxu1 %v4282_v13  ;;  %v4366_v10 = vld [vmem:[#allocation17 + $0x7b0] sm:$0xff]  ;;  %v4353_v13 = vld [vmem:[#allocation17 + $0x748] sm:$0xff] }
 0x7f7   : > { %5277 = vmatpush.msrb.mxu2 %v4474_v63  ;;  %5191 = vmatpush.msra.mxu3 %v4461_v23  ;;  %v4545_v63 = vld [vmem:[#allocation17 + $0xd48] sm:$0xff]  ;;  %v4162_v23 = vld [vmem:[#allocation17 + $0x150] sm:$0xff] }
 0x7f8   : > { %5220 = vmatpush.msrb.mxu0 %v4653_v60  ;;  %5249 = vmatpush.msrb.mxu1 %v4270_v54  ;;  %v4354_v60 = vld [vmem:[#allocation17 + $0x750] sm:$0xff]  ;;  %v4341_v54 = vld [vmem:[#allocation17 + $0x6e8] sm:$0xff] }
 0x7f9   : > { %5278 = vmatpush.msrb.mxu2 %v4462_v19  ;;  %5091 = vmatmul.f32.gmra.mxu3 %v10230_v11 }
 0x7fa   : > { %5120 = vmatmul.f32.gmra.mxu0 %v10233_v25  ;;  %5149 = vmatmul.f32.gmra.mxu1 %v10236_v59 }
 0x7fb   : > { %5178 = vmatmul.f32.gmra.mxu2 %v10230_v11  ;;  %5192 = vmatpush.msra.mxu3 %v4449_v41  ;;  %v4533_v41 = vld [vmem:[#allocation17 + $0xce8] sm:$0xff] }
 0x7fc   : > { %5221 = vmatpush.msrb.mxu0 %v4641_v29  ;;  %5250 = vmatpush.msrb.mxu1 %v4258_v16  ;;  %v4150_v29 = vld [vmem:[#allocation17 + $0xf0] sm:$0xff] }
 0x7fd   : > { %5279 = vmatpush.msrb.mxu2 %v4450_v53  ;;  %5193 = vmatpush.msra.mxu3 %v4437_v2  ;;  %v4342_v53 = vld [vmem:[#allocation17 + $0x6f0] sm:$0xff]  ;;  %v4329_v2 = vld [vmem:[#allocation17 + $0x688] sm:$0xff] }
 0x7fe   : > { %5222 = vmatpush.msrb.mxu0 %v4629_v15  ;;  %5251 = vmatpush.msrb.mxu1 %v4246_v32  ;;  %v4521_v32 = vld [vmem:[#allocation17 + $0xc88] sm:$0xff] }
 0x7ff   : > { %5280 = vmatpush.msrb.mxu2 %v4438_v14  ;;  %5194 = vmatpush.msra.mxu3 %v4425_v43  ;;  %v4138_v14 = vld [vmem:[#allocation17 + $0x90] sm:$0xff] }
 0x800   : > { %5223 = vmatpush.msrb.mxu0 %v4617_v3  ;;  %5252 = vmatpush.msrb.mxu1 %v4234_v45  ;;  %v4330_v3 = vld [vmem:[#allocation17 + $0x690] sm:$0xff]  ;;  %v4317_v45 = vld [vmem:[#allocation17 + $0x628] sm:$0xff] }
 0x801   : > { %5281 = vmatpush.msrb.mxu2 %v4426_v38  ;;  %5195 = vmatpush.msra.mxu3 %v4413_v42  ;;  %v4509_v38 = vld [vmem:[#allocation17 + $0xc28] sm:$0xff]  ;;  %v4126_v42 = vld [vmem:[#allocation17 + $0x30] sm:$0xff] }
 0x802   : > { %5224 = vmatpush.msrb.mxu0 %v4605_v61  ;;  %5253 = vmatpush.msrb.mxu1 %v4222_v35  ;;  %v4318_v61 = vld [vmem:[#allocation17 + $0x630] sm:$0xff] }
 0x803   : > { %5282 = vmatpush.msrb.mxu2 %v4414_v27  ;;  %5094 = vmatmul.f32.gmra.mxu3 %v10258_v24  ;;  %v4690_v35 = vld [vmem:[#allocation17 + $0x11d0] sm:$0xff] }
 0x804   : > { %5123 = vmatmul.f32.gmra.mxu0 %v10261_v7  ;;  %5152 = vmatmul.f32.gmra.mxu1 %v10264_v8 }
 0x805   : > { %5181 = vmatmul.f32.gmra.mxu2 %v10258_v24  ;;  %5196 = vmatpush.msra.mxu3 %v4401_v50  ;;  %v4307_v50 = vld [vmem:[#allocation17 + $0x5d8] sm:$0xff] }
 0x806   : > { %5225 = vmatpush.msrb.mxu0 %v4593_v44  ;;  %5254 = vmatpush.msrb.mxu1 %v4210_v49  ;;  %v4499_v44 = vld [vmem:[#allocation17 + $0xbd8] sm:$0xff] }
 0x807   : > { %5283 = vmatpush.msrb.mxu2 %v4402_v55  ;;  %5197 = vmatpush.msra.mxu3 %v4389_v0  ;;  %v4691_v55 = vld [vmem:[#allocation17 + $0x11d8] sm:$0xff]  ;;  %v4678_v0 = vld [vmem:[#allocation17 + $0x1170] sm:$0xff] }
 0x808   : > { %5226 = vmatpush.msrb.mxu0 %v4581_v21  ;;  %5255 = vmatpush.msrb.mxu1 %v4198_v18  ;;  %v4295_v18 = vld [vmem:[#allocation17 + $0x578] sm:$0xff] }
 0x809   : > { %5284 = vmatpush.msrb.mxu2 %v4390_v40  ;;  %5198 = vmatpush.msra.mxu3 %v4377_v37  ;;  %v4487_v40 = vld [vmem:[#allocation17 + $0xb78] sm:$0xff] }
 0x80a   : > { %5227 = vmatpush.msrb.mxu0 %v4569_v36  ;;  %5256 = vmatpush.msrb.mxu1 %v4186_v17  ;;  %v4679_v36 = vld [vmem:[#allocation17 + $0x1178] sm:$0xff]  ;;  %v4666_v17 = vld [vmem:[#allocation17 + $0x1110] sm:$0xff] }
 0x80b   : > { %v10336_v33 = vpop.f32.mrf.mxu0  ;;  %5285 = vmatpush.msrb.mxu2 %v4378_v31  ;;  %5199 = vmatpush.msra.mxu3 %v4365_v57  ;;  %v4283_v31 = vld [vmem:[#allocation17 + $0x518] sm:$0xff] }
 0x80c   : > { %v10338_v52 = vpop.f32.mrf.mxu1  ;;  %5228 = vmatpush.msrb.mxu0 %v4557_v22  ;;  %5257 = vmatpush.msrb.mxu1 %v4174_v62  ;;  %v4475_v57 = vld [vmem:[#allocation17 + $0xb18] sm:$0xff]  ;;  %v4654_v62 = vld [vmem:[#allocation17 + $0x10b0] sm:$0xff] }
 0x80d   : > { %5286 = vmatpush.msrb.mxu2 %v4366_v10  ;;  %5097 = vmatmul.f32.gmra.mxu3 %v10280_v5  ;;  %v4667_v22 = vld [vmem:[#allocation17 + $0x1118] sm:$0xff] }
 0x80e   : > { %5126 = vmatmul.f32.gmra.mxu0 %v10283_v58  ;;  %5155 = vmatmul.f32.gmra.mxu1 %v10286_v28  ;;  %v4271_v10 = vld [vmem:[#allocation17 + $0x4b8] sm:$0xff] }
 0x80f   : > { %5184 = vmatmul.f32.gmra.mxu2 %v10280_v5  ;;  %5200 = vmatpush.msra.mxu3 %v4353_v13  ;;  %v4463_v13 = vld [vmem:[#allocation17 + $0xab8] sm:$0xff] }
 0x810   : > { %5229 = vmatpush.msrb.mxu0 %v4545_v63  ;;  %5258 = vmatpush.msrb.mxu1 %v4162_v23  ;;  %v4655_v63 = vld [vmem:[#allocation17 + $0x10b8] sm:$0xff] }
 0x811   : > { %v10343_v19 = vpop.f32.mrf.mxu3  ;;  %5287 = vmatpush.msrb.mxu2 %v4354_v60  ;;  %5201 = vmatpush.msra.mxu3 %v4341_v54  ;;  %v4642_v54 = vld [vmem:[#allocation17 + $0x1050] sm:$0xff] }
 0x812   : > { %v10346_v16 = vpop.f32.mrf.mxu2  ;;  %5230 = vmatpush.msrb.mxu0 %v4533_v41  ;;  %5259 = vmatpush.msrb.mxu1 %v4150_v29  ;;  %v4259_v29 = vld [vmem:[#allocation17 + $0x458] sm:$0xff] }
 0x813   : > { %v10348_v15 = vpop.f32.mrf.mxu0  ;;  %5288 = vmatpush.msrb.mxu2 %v4342_v53  ;;  %5202 = vmatpush.msra.mxu3 %v4329_v2  ;;  %v4451_v53 = vld [vmem:[#allocation17 + $0xa58] sm:$0xff] }
 0x814   : > { %v10350_v43 = vpop.f32.mrf.mxu1  ;;  %5231 = vmatpush.msrb.mxu0 %v4521_v32  ;;  %5260 = vmatpush.msrb.mxu1 %v4138_v14  ;;  %v4643_v32 = vld [vmem:[#allocation17 + $0x1058] sm:$0xff]  ;;  %v4630_v14 = vld [vmem:[#allocation17 + $0xff0] sm:$0xff] }
 0x815   : > { %5289 = vmatpush.msrb.mxu2 %v4330_v3  ;;  %5203 = vmatpush.msra.mxu3 %v4317_v45  ;;  %v4247_v3 = vld [vmem:[#allocation17 + $0x3f8] sm:$0xff] }
 0x816   : > { %5232 = vmatpush.msrb.mxu0 %v4509_v38  ;;  %5261 = vmatpush.msrb.mxu1 %v4126_v42  ;;  %v4439_v45 = vld [vmem:[#allocation17 + $0x9f8] sm:$0xff]  ;;  %v4618_v42 = vld [vmem:[#allocation17 + $0xf90] sm:$0xff] }
 0x817   : > { %5290 = vmatpush.msrb.mxu2 %v4318_v61  ;;  %5204 = vmatmul.f32.vlgmr.msra.gmra.mxu3 %v10200_v46  ;;  %v4631_v38 = vld [vmem:[#allocation17 + $0xff8] sm:$0xff] }
 0x818   : > { %5233 = vmatmul.f32.vlgmr.msrb.gmra.mxu0 %v10203_v30  ;;  %5262 = vmatmul.f32.vlgmr.msrb.gmra.mxu1 %v10197_v6  ;;  %v4235_v61 = vld [vmem:[#allocation17 + $0x398] sm:$0xff] }
 0x819   : > { %v10352_v27 = vpop.f32.mrf.mxu3  ;;  %5291 = vmatmul.f32.vlgmr.msrb.gmra.mxu2 %v10200_v46  ;;  %5304 = vmatpush.msrb.mxu3 %v4690_v35  ;;  %v4427_v35 = vld [vmem:[#allocation17 + $0x998] sm:$0xff] }
 0x81a   : > { %v10355_v49 = vpop.f32.mrf.mxu2  ;;  %5333 = vmatpush.msra.mxu0 %v4307_v50  ;;  %5362 = vmatpush.msra.mxu1 %v4499_v44  ;;  %v4619_v50 = vld [vmem:[#allocation17 + $0xf98] sm:$0xff]  ;;  %v4606_v44 = vld [vmem:[#allocation17 + $0xf30] sm:$0xff] }
 0x81b   : > { %v10359_v21 = vpop.f32.mrf.mxu0  ;;  %5391 = vmatpush.msra.mxu2 %v4691_v55  ;;  %5305 = vmatpush.msrb.mxu3 %v4678_v0  ;;  %v4223_v0 = vld [vmem:[#allocation17 + $0x338] sm:$0xff] }
 0x81c   : > { %v10362_v37 = vpop.f32.mrf.mxu1  ;;  %5334 = vmatpush.msra.mxu0 %v4295_v18  ;;  %5363 = vmatpush.msra.mxu1 %v4487_v40  ;;  %v4415_v18 = vld [vmem:[#allocation17 + $0x938] sm:$0xff] }
 0x81d   : > { %5392 = vmatpush.msra.mxu2 %v4679_v36  ;;  %5306 = vmatpush.msrb.mxu3 %v4666_v17  ;;  %v4607_v36 = vld [vmem:[#allocation17 + $0xf38] sm:$0xff] }
 0x81e   : > { %5335 = vmatpush.msra.mxu0 %v4283_v31  ;;  %5364 = vmatpush.msra.mxu1 %v4475_v57  ;;  %v4594_v57 = vld [vmem:[#allocation17 + $0xed0] sm:$0xff] }
 0x81f   : > { %5393 = vmatpush.msra.mxu2 %v4667_v22  ;;  %5307 = vmatpush.msrb.mxu3 %v4654_v62  ;;  %v4211_v22 = vld [vmem:[#allocation17 + $0x2d8] sm:$0xff] }
 0x820   : > { %5336 = vmatpush.msra.mxu0 %v4271_v10  ;;  %5365 = vmatpush.msra.mxu1 %v4463_v13  ;;  %v4403_v62 = vld [vmem:[#allocation17 + $0x8d8] sm:$0xff]  ;;  %v4582_v13 = vld [vmem:[#allocation17 + $0xe70] sm:$0xff] }
 0x821   : > { %v10364_v23 = vpop.f32.mrf.mxu3  ;;  %5394 = vmatpush.msra.mxu2 %v4655_v63  ;;  %5207 = vmatmul.f32.gmra.mxu3 %v10233_v25  ;;  %v4595_v10 = vld [vmem:[#allocation17 + $0xed8] sm:$0xff] }
 0x822   : > { %v10366_v60 = vpop.f32.mrf.mxu2  ;;  %5236 = vmatmul.f32.gmra.mxu0 %v10236_v59  ;;  %5265 = vmatmul.f32.gmra.mxu1 %v10230_v11  ;;  %v4199_v63 = vld [vmem:[#allocation17 + $0x278] sm:$0xff] }
 0x823   : > { %v10368_v41 = vpop.f32.mrf.mxu0  ;;  %5294 = vmatmul.f32.gmra.mxu2 %v10233_v25  ;;  %5308 = vmatpush.msrb.mxu3 %v4642_v54  ;;  %v4391_v54 = vld [vmem:[#allocation17 + $0x878] sm:$0xff] }
 0x824   : > { %11536 = vst [vmem:[#allocation33_spill] sm:$0xff] %v10368_v41  ;;  %v10371_v2 = vpop.f32.mrf.mxu1  ;;  %5337 = vmatpush.msra.mxu0 %v4259_v29  ;;  %5366 = vmatpush.msra.mxu1 %v4451_v53  ;;  %v4583_v29 = vld [vmem:[#allocation17 + $0xe78] sm:$0xff]  ;;  %v4570_v53 = vld [vmem:[#allocation17 + $0xe10] sm:$0xff]  ;;  %v4512_v41 = vld [vmem:[#allocation17 + $0xc40] sm:$0xff] }
 0x825   : > { %11537 = vst [vmem:[#allocation46_spill] sm:$0xff] %v10371_v2  ;;  %5395 = vmatpush.msra.mxu2 %v4643_v32  ;;  %5309 = vmatpush.msrb.mxu3 %v4630_v14  ;;  %v4187_v14 = vld [vmem:[#allocation17 + $0x218] sm:$0xff]  ;;  %v4560_v2 = vld [vmem:[#allocation17 + $0xdc0] sm:$0xff] }
 0x826   : > { %5338 = vmatpush.msra.mxu0 %v4247_v3  ;;  %5367 = vmatpush.msra.mxu1 %v4439_v45  ;;  %v4379_v3 = vld [vmem:[#allocation17 + $0x818] sm:$0xff] }
 0x827   : > { %5396 = vmatpush.msra.mxu2 %v4631_v38  ;;  %5310 = vmatpush.msrb.mxu3 %v4618_v42  ;;  %v4571_v38 = vld [vmem:[#allocation17 + $0xe18] sm:$0xff]  ;;  %v4558_v42 = vld [vmem:[#allocation17 + $0xdb0] sm:$0xff] }
 0x828   : > { %5339 = vmatpush.msra.mxu0 %v4235_v61  ;;  %5368 = vmatpush.msra.mxu1 %v4427_v35  ;;  %v4175_v35 = vld [vmem:[#allocation17 + $0x1b8] sm:$0xff] }
 0x829   : > { %v10376_v55 = vpop.f32.mrf.mxu3  ;;  %5397 = vmatpush.msra.mxu2 %v4619_v50  ;;  %5311 = vmatpush.msrb.mxu3 %v4606_v44  ;;  %v4367_v50 = vld [vmem:[#allocation17 + $0x7b8] sm:$0xff] }
 0x82a   : > { %11538 = vst [vmem:[#allocation47_spill] sm:$0xff] %v10376_v55  ;;  %v10378_v40 = vpop.f32.mrf.mxu2  ;;  %5340 = vmatpush.msra.mxu0 %v4223_v0  ;;  %5369 = vmatpush.msra.mxu1 %v4415_v18  ;;  %v4559_v0 = vld [vmem:[#allocation17 + $0xdb8] sm:$0xff]  ;;  %v4546_v18 = vld [vmem:[#allocation17 + $0xd50] sm:$0xff] }
 0x82b   : > { %11539 = vst [vmem:[#allocation48_spill] sm:$0xff] %v10378_v40  ;;  %v10380_v17 = vpop.f32.mrf.mxu0  ;;  %5398 = vmatpush.msra.mxu2 %v4607_v36  ;;  %5210 = vmatmul.f32.gmra.mxu3 %v10261_v7  ;;  %v4163_v36 = vld [vmem:[#allocation17 + $0x158] sm:$0xff] }
 0x82c   : > { %v10382_v31 = vpop.f32.mrf.mxu1  ;;  %5239 = vmatmul.f32.gmra.mxu0 %v10264_v8  ;;  %5268 = vmatmul.f32.gmra.mxu1 %v10258_v24 }
 0x82d   : > { %5297 = vmatmul.f32.gmra.mxu2 %v10261_v7  ;;  %5312 = vmatpush.msrb.mxu3 %v4594_v57  ;;  %v4355_v57 = vld [vmem:[#allocation17 + $0x758] sm:$0xff] }
 0x82e   : > { %5341 = vmatpush.msra.mxu0 %v4211_v22  ;;  %5370 = vmatpush.msra.mxu1 %v4403_v62  ;;  %v4547_v22 = vld [vmem:[#allocation17 + $0xd58] sm:$0xff]  ;;  %v4534_v62 = vld [vmem:[#allocation17 + $0xcf0] sm:$0xff] }
 0x82f   : > { %5399 = vmatpush.msra.mxu2 %v4595_v10  ;;  %5313 = vmatpush.msrb.mxu3 %v4582_v13  ;;  %v4151_v13 = vld [vmem:[#allocation17 + $0xf8] sm:$0xff] }
 0x830   : > { %5342 = vmatpush.msra.mxu0 %v4199_v63  ;;  %5371 = vmatpush.msra.mxu1 %v4391_v54  ;;  %v4343_v63 = vld [vmem:[#allocation17 + $0x6f8] sm:$0xff] }
 0x831   : > { %v10388_v32 = vpop.f32.mrf.mxu3  ;;  %5400 = vmatpush.msra.mxu2 %v4583_v29  ;;  %5314 = vmatpush.msrb.mxu3 %v4570_v53  ;;  %v4535_v29 = vld [vmem:[#allocation17 + $0xcf8] sm:$0xff]  ;;  %v4522_v53 = vld [vmem:[#allocation17 + $0xc90] sm:$0xff] }
 0x832   : > { %v10390_v45 = vpop.f32.mrf.mxu2  ;;  %5343 = vmatpush.msra.mxu0 %v4187_v14  ;;  %5372 = vmatpush.msra.mxu1 %v4379_v3  ;;  %v4139_v3 = vld [vmem:[#allocation17 + $0x98] sm:$0xff] }
 0x833   : > { %v10392_v61 = vpop.f32.mrf.mxu0  ;;  %5401 = vmatpush.msra.mxu2 %v4571_v38  ;;  %5315 = vmatpush.msrb.mxu3 %v4558_v42  ;;  %v4331_v38 = vld [vmem:[#allocation17 + $0x698] sm:$0xff] }
 0x834   : > { %v10394_v44 = vpop.f32.mrf.mxu1  ;;  %5344 = vmatpush.msra.mxu0 %v4175_v35  ;;  %5373 = vmatpush.msra.mxu1 %v4367_v50  ;;  %v4523_v35 = vld [vmem:[#allocation17 + $0xc98] sm:$0xff]  ;;  %v4510_v50 = vld [vmem:[#allocation17 + $0xc30] sm:$0xff] }
 0x835   : > { %5402 = vmatpush.msra.mxu2 %v4559_v0  ;;  %5213 = vmatmul.f32.gmra.mxu3 %v10283_v58  ;;  %v4127_v0 = vld [vmem:[#allocation17 + $0x38] sm:$0xff] }
 0x836   : > { %5242 = vmatmul.f32.gmra.mxu0 %v10286_v28  ;;  %5271 = vmatmul.f32.gmra.mxu1 %v10280_v5 }
 0x837   : > { %5300 = vmatmul.f32.gmra.mxu2 %v10283_v58  ;;  %5316 = vmatpush.msrb.mxu3 %v4546_v18  ;;  %v4319_v18 = vld [vmem:[#allocation17 + $0x638] sm:$0xff] }
 0x838   : > { %5345 = vmatpush.msra.mxu0 %v4163_v36  ;;  %5374 = vmatpush.msra.mxu1 %v4355_v57  ;;  %v4511_v36 = vld [vmem:[#allocation17 + $0xc38] sm:$0xff]  ;;  %v4308_v57 = vld [vmem:[#allocation17 + $0x5e0] sm:$0xff] }
 0x839   : > { %v10399_v10 = vpop.f32.mrf.mxu3  ;;  %5403 = vmatpush.msra.mxu2 %v4547_v22  ;;  %5317 = vmatpush.msrb.mxu3 %v4534_v62  ;;  %v4500_v62 = vld [vmem:[#allocation17 + $0xbe0] sm:$0xff] }
 0x83a   : > { %v10402_v54 = vpop.f32.mrf.mxu2  ;;  %5346 = vmatpush.msra.mxu0 %v4151_v13  ;;  %5375 = vmatpush.msra.mxu1 %v4343_v63  ;;  %v4692_v13 = vld [vmem:[#allocation17 + $0x11e0] sm:$0xff] }
 0x83b   : > { %v10404_v14 = vpop.f32.mrf.mxu0  ;;  %5404 = vmatpush.msra.mxu2 %v4535_v29  ;;  %5318 = vmatpush.msrb.mxu3 %v4522_v53  ;;  %v4309_v29 = vld [vmem:[#allocation17 + $0x5e8] sm:$0xff]  ;;  %v4296_v53 = vld [vmem:[#allocation17 + $0x580] sm:$0xff] }
 0x83c   : > { %v10406_v42 = vpop.f32.mrf.mxu1  ;;  %5347 = vmatpush.msra.mxu0 %v4139_v3  ;;  %5376 = vmatpush.msra.mxu1 %v4331_v38  ;;  %v4488_v38 = vld [vmem:[#allocation17 + $0xb80] sm:$0xff] }
 0x83d   : > { %5405 = vmatpush.msra.mxu2 %v4523_v35  ;;  %5319 = vmatpush.msrb.mxu3 %v4510_v50  ;;  %v4680_v35 = vld [vmem:[#allocation17 + $0x1180] sm:$0xff] }
 0x83e   : > { %5348 = vmatpush.msra.mxu0 %v4127_v0  ;;  %5377 = vmatpush.msra.mxu1 %v4319_v18  ;;  %v4297_v0 = vld [vmem:[#allocation17 + $0x588] sm:$0xff]  ;;  %v4284_v18 = vld [vmem:[#allocation17 + $0x520] sm:$0xff] }
 0x83f   : > { %5406 = vmatpush.msra.mxu2 %v4511_v36  ;;  %5320 = vmatmul.f32.vlgmr.msrb.gmra.mxu3 %v10203_v30  ;;  %v4476_v36 = vld [vmem:[#allocation17 + $0xb20] sm:$0xff] }
 0x840   : > { %5349 = vmatmul.f32.vlgmr.msra.gmra.mxu0 %v10197_v6  ;;  %5378 = vmatmul.f32.vlgmr.msra.gmra.mxu1 %v10200_v46 }
 0x841   : > { %v10408_v22 = vpop.f32.mrf.mxu3  ;;  %5407 = vmatmul.f32.vlgmr.msra.gmra.mxu2 %v10203_v30  ;;  %5420 = vmatpush.msra.mxu3 %v4308_v57  ;;  %v4656_v57 = vld [vmem:[#allocation17 + $0x10c0] sm:$0xff] }
 0x842   : > { %v10411_v63 = vpop.f32.mrf.mxu2  ;;  %5449 = vmatpush.msrb.mxu0 %v4500_v62  ;;  %5478 = vmatpush.msrb.mxu1 %v4692_v13  ;;  %v4260_v13 = vld [vmem:[#allocation17 + $0x460] sm:$0xff] }
 0x843   : > { %v10415_v3 = vpop.f32.mrf.mxu0  ;;  %5507 = vmatpush.msrb.mxu2 %v4309_v29  ;;  %5421 = vmatpush.msra.mxu3 %v4296_v53  ;;  %v4452_v53 = vld [vmem:[#allocation17 + $0xa60] sm:$0xff] }
 0x844   : > { %11540 = vst [vmem:[#allocation49_spill] sm:$0xff] %v10415_v3  ;;  %v10418_v50 = vpop.f32.mrf.mxu1  ;;  %5450 = vmatpush.msrb.mxu0 %v4488_v38  ;;  %5479 = vmatpush.msrb.mxu1 %v4680_v35  ;;  %v4644_v38 = vld [vmem:[#allocation17 + $0x1060] sm:$0xff] }
 0x845   : > { %11541 = vst [vmem:[#allocation50_spill] sm:$0xff] %v10418_v50  ;;  %5508 = vmatpush.msrb.mxu2 %v4297_v0  ;;  %5422 = vmatpush.msra.mxu3 %v4284_v18  ;;  %v4248_v35 = vld [vmem:[#allocation17 + $0x400] sm:$0xff] }
 0x846   : > { %5451 = vmatpush.msrb.mxu0 %v4476_v36  ;;  %5480 = vmatpush.msrb.mxu1 %v4668_v34  ;;  %v4261_v34 = vld [vmem:[#allocation17 + $0x468] sm:$0xff]  ;;  %v4236_v0 = vld [vmem:[#allocation17 + $0x3a0] sm:$0xff] }
 0x847   : > { %5509 = vmatpush.msrb.mxu2 %v4285_v12  ;;  %5423 = vmatpush.msra.mxu3 %v4272_v4  ;;  %v4632_v4 = vld [vmem:[#allocation17 + $0x1000] sm:$0xff] }
 0x848   : > { %5452 = vmatpush.msrb.mxu0 %v4464_v26  ;;  %5481 = vmatpush.msrb.mxu1 %v4656_v57  ;;  %v4440_v26 = vld [vmem:[#allocation17 + $0xa00] sm:$0xff]  ;;  %v4237_v57 = vld [vmem:[#allocation17 + $0x3a8] sm:$0xff] }
 0x849   : > { %v10420_v56 = vpop.f32.mrf.mxu3  ;;  %5510 = vmatpush.msrb.mxu2 %v4273_v47  ;;  %5323 = vmatmul.f32.gmra.mxu3 %v10236_v59  ;;  %v4249_v47 = vld [vmem:[#allocation17 + $0x408] sm:$0xff]  ;;  %v4428_v18 = vld [vmem:[#allocation17 + $0x9a0] sm:$0xff] }
 0x84a   : > { %11542 = vst [vmem:[#allocation51_spill] sm:$0xff] %v10420_v56  ;;  %v10422_v62 = vpop.f32.mrf.mxu2  ;;  %5352 = vmatmul.f32.gmra.mxu0 %v10230_v11  ;;  %5381 = vmatmul.f32.gmra.mxu1 %v10233_v25  ;;  %v4620_v36 = vld [vmem:[#allocation17 + $0xfa0] sm:$0xff]  ;;  %v4141_v56 = vld [vmem:[#allocation17 + $0xa8] sm:$0xff] }
 0x84b   : > { %11543 = vst [vmem:[#allocation52_spill] sm:$0xff] %v10422_v62  ;;  %v10424_v29 = vpop.f32.mrf.mxu0  ;;  %5410 = vmatmul.f32.gmra.mxu2 %v10236_v59  ;;  %5424 = vmatpush.msra.mxu3 %v4260_v13  ;;  %v4608_v13 = vld [vmem:[#allocation17 + $0xf40] sm:$0xff] }
 0x84c   : > { %v10429_v12 = vpop.f32.mrf.mxu1  ;;  %5453 = vmatpush.msrb.mxu0 %v4452_v53  ;;  %5482 = vmatpush.msrb.mxu1 %v4644_v38  ;;  %v4225_v53 = vld [vmem:[#allocation17 + $0x348] sm:$0xff]  ;;  %v4176_v3 = vld [vmem:[#allocation17 + $0x1c0] sm:$0xff] }
 0x84d   : > { %5511 = vmatpush.msrb.mxu2 %v4261_v34  ;;  %5425 = vmatpush.msra.mxu3 %v4248_v35  ;;  %v4212_v34 = vld [vmem:[#allocation17 + $0x2e0] sm:$0xff] }
 0x84e   : > { %5454 = vmatpush.msrb.mxu0 %v4440_v26  ;;  %5483 = vmatpush.msrb.mxu1 %v4632_v4  ;;  %v4404_v35 = vld [vmem:[#allocation17 + $0x8e0] sm:$0xff]  ;;  %v4213_v4 = vld [vmem:[#allocation17 + $0x2e8] sm:$0xff] }
 0x84f   : > { %5512 = vmatpush.msrb.mxu2 %v4249_v47  ;;  %5426 = vmatpush.msra.mxu3 %v4236_v0  ;;  %v4596_v26 = vld [vmem:[#allocation17 + $0xee0] sm:$0xff] }
 0x850   : > { %5455 = vmatpush.msrb.mxu0 %v4428_v18  ;;  %5484 = vmatpush.msrb.mxu1 %v4620_v36  ;;  %v4200_v47 = vld [vmem:[#allocation17 + $0x280] sm:$0xff]  ;;  %v4201_v18 = vld [vmem:[#allocation17 + $0x288] sm:$0xff] }
 0x851   : > { %v10432_v1 = vpop.f32.mrf.mxu3  ;;  %5513 = vmatpush.msrb.mxu2 %v4237_v57  ;;  %5427 = vmatpush.msra.mxu3 %v4224_v51  ;;  %v4392_v51 = vld [vmem:[#allocation17 + $0x880] sm:$0xff] }
 0x852   : > { %v10434_v9 = vpop.f32.mrf.mxu2  ;;  %5456 = vmatpush.msrb.mxu0 %v4416_v39  ;;  %5485 = vmatpush.msrb.mxu1 %v4608_v13  ;;  %v4584_v39 = vld [vmem:[#allocation17 + $0xe80] sm:$0xff] }
 0x853   : > { %v10436_v38 = vpop.f32.mrf.mxu0  ;;  %5514 = vmatpush.msrb.mxu2 %v4225_v53  ;;  %5326 = vmatmul.f32.gmra.mxu3 %v10264_v8  ;;  %v4188_v36 = vld [vmem:[#allocation17 + $0x220] sm:$0xff] }
 0x854   : > { %5355 = vmatmul.f32.gmra.mxu0 %v10258_v24  ;;  %5384 = vmatmul.f32.gmra.mxu1 %v10261_v7  ;;  %v10441_v0 = vpop.f32.mrf.mxu1  ;;  %v4380_v13 = vld [vmem:[#allocation17 + $0x820] sm:$0xff] }
 0x855   : > { %5413 = vmatmul.f32.gmra.mxu2 %v10264_v8  ;;  %5428 = vmatpush.msra.mxu3 %v4212_v34  ;;  %v4572_v53 = vld [vmem:[#allocation17 + $0xe20] sm:$0xff] }
 0x856   : > { %5457 = vmatpush.msrb.mxu0 %v4404_v35  ;;  %5486 = vmatpush.msrb.mxu1 %v4596_v26  ;;  %v4368_v34 = vld [vmem:[#allocation17 + $0x7c0] sm:$0xff]  ;;  %v4177_v26 = vld [vmem:[#allocation17 + $0x1c8] sm:$0xff] }
 0x857   : > { %5515 = vmatpush.msrb.mxu2 %v4213_v4  ;;  %5429 = vmatpush.msra.mxu3 %v4200_v47  ;;  %v4164_v4 = vld [vmem:[#allocation17 + $0x160] sm:$0xff] }
 0x858   : > { %5458 = vmatpush.msrb.mxu0 %v4392_v51  ;;  %5487 = vmatpush.msrb.mxu1 %v4584_v39  ;;  %v4356_v47 = vld [vmem:[#allocation17 + $0x760] sm:$0xff]  ;;  %v4165_v39 = vld [vmem:[#allocation17 + $0x168] sm:$0xff] }
 0x859   : > { %v10444_v57 = vpop.f32.mrf.mxu3  ;;  %5516 = vmatpush.msrb.mxu2 %v4201_v18  ;;  %5430 = vmatpush.msra.mxu3 %v4188_v36  ;;  %v4548_v51 = vld [vmem:[#allocation17 + $0xd60] sm:$0xff] }
 0x85a   : > { %v10446_v48 = vpop.f32.mrf.mxu2  ;;  %5459 = vmatpush.msrb.mxu0 %v4380_v13  ;;  %5488 = vmatpush.msrb.mxu1 %v4572_v53  ;;  %v4152_v18 = vld [vmem:[#allocation17 + $0x100] sm:$0xff]  ;;  %v4153_v13 = vld [vmem:[#allocation17 + $0x108] sm:$0xff] }
 0x85b   : > { %v10448_v35 = vpop.f32.mrf.mxu0  ;;  %5517 = vmatpush.msrb.mxu2 %v4189_v20  ;;  %5431 = vmatpush.msra.mxu3 %v4176_v3  ;;  %v4344_v20 = vld [vmem:[#allocation17 + $0x700] sm:$0xff] }
 0x85c   : > { %5460 = vmatpush.msrb.mxu0 %v4368_v34  ;;  %5489 = vmatpush.msrb.mxu1 %v4560_v2  ;;  %v10453_v36 = vpop.f32.mrf.mxu1  ;;  %v4536_v3 = vld [vmem:[#allocation17 + $0xd00] sm:$0xff] }
 0x85d   : > { %5518 = vmatpush.msrb.mxu2 %v4177_v26  ;;  %5329 = vmatmul.f32.gmra.mxu3 %v10286_v28  ;;  %v4140_v53 = vld [vmem:[#allocation17 + $0xa0] sm:$0xff] }
 0x85e   : > { %5358 = vmatmul.f32.gmra.mxu0 %v10280_v5  ;;  %5387 = vmatmul.f32.gmra.mxu1 %v10283_v58  ;;  %v4332_v26 = vld [vmem:[#allocation17 + $0x6a0] sm:$0xff] }
 0x85f   : > { %5416 = vmatmul.f32.gmra.mxu2 %v10286_v28  ;;  %5432 = vmatpush.msra.mxu3 %v4164_v4  ;;  %v4524_v62 = vld [vmem:[#allocation17 + $0xca0] sm:$0xff] }
 0x860   : > { %5461 = vmatpush.msrb.mxu0 %v4356_v47  ;;  %5490 = vmatpush.msrb.mxu1 %v4548_v51  ;;  %v4128_v50 = vld [vmem:[#allocation17 + $0x40] sm:$0xff]  ;;  %v4129_v47 = vld [vmem:[#allocation17 + $0x48] sm:$0xff] }
 0x861   : > { %v10456_v2 = vpop.f32.mrf.mxu3  ;;  %5519 = vmatpush.msrb.mxu2 %v4165_v39  ;;  %5433 = vmatpush.msra.mxu3 %v4152_v18  ;;  %v4320_v4 = vld [vmem:[#allocation17 + $0x640] sm:$0xff]  ;;  %v4501_v51 = vld [vmem:[#allocation17 + $0xbe8] sm:$0xff]  ;;  %v4310_v18 = vld [vmem:[#allocation17 + $0x5f0] sm:$0xff] }
 0x862   : > { %v10458_v34 = vpop.f32.mrf.mxu2  ;;  %5462 = vmatpush.msrb.mxu0 %v4344_v20  ;;  %5491 = vmatpush.msrb.mxu1 %v4536_v3  ;;  %v4693_v39 = vld [vmem:[#allocation17 + $0x11e8] sm:$0xff]  ;;  %v4502_v20 = vld [vmem:[#allocation17 + $0xbf0] sm:$0xff] }
 0x863   : > { %11544 = vst [vmem:[#allocation53_spill] sm:$0xff] %v10458_v34  ;;  %5520 = vmatpush.msrb.mxu2 %v4153_v13  ;;  %5434 = vmatpush.msra.mxu3 %v4140_v53  ;;  %v10460_v40 = vpop.f32.mrf.mxu0  ;;  %v4489_v3 = vld [vmem:[#allocation17 + $0xb88] sm:$0xff]  ;;  %v4274_v34 = vld [vmem:[#allocation17 + $0x4d0] sm:$0xff] }
 0x864   : > { %11545 = vst [vmem:[#allocation54_spill] sm:$0xff] %v10460_v40  ;;  %5463 = vmatpush.msrb.mxu0 %v4332_v26  ;;  %5492 = vmatpush.msrb.mxu1 %v4524_v62  ;;  %v10465_v13 = vpop.f32.mrf.mxu1  ;;  %v4490_v62 = vld [vmem:[#allocation17 + $0xb90] sm:$0xff]  ;;  %v4477_v53 = vld [vmem:[#allocation17 + $0xb28] sm:$0xff] }
 0x865   : > { %5521 = vmatpush.msrb.mxu2 %v4141_v56  ;;  %5435 = vmatpush.msra.mxu3 %v4128_v50  ;;  %11546 = vst [vmem:[#allocation55_spill] sm:$0xff] %v10465_v13  ;;  %v4681_v56 = vld [vmem:[#allocation17 + $0x1188] sm:$0xff]  ;;  %v4298_v50 = vld [vmem:[#allocation17 + $0x590] sm:$0xff] }
 0x866   : > { %5464 = vmatpush.msrb.mxu0 %v4320_v4  ;;  %5493 = vmatpush.msrb.mxu1 %v4512_v41  ;;  %v4669_v4 = vld [vmem:[#allocation17 + $0x1128] sm:$0xff]  ;;  %v4478_v13 = vld [vmem:[#allocation17 + $0xb30] sm:$0xff] }
 0x867   : > { %5522 = vmatpush.msrb.mxu2 %v4129_v47  ;;  %5436 = vmatmul.f32.vlgmr.msra.gmra.mxu3 %v10197_v6  ;;  %v4286_v47 = vld [vmem:[#allocation17 + $0x530] sm:$0xff]  ;;  %v4465_v40 = vld [vmem:[#allocation17 + $0xac8] sm:$0xff] }
 0x868   : > { %5465 = vmatmul.f32.vlgmr.msrb.gmra.mxu0 %v10200_v46  ;;  %5494 = vmatmul.f32.vlgmr.msrb.gmra.mxu1 %v10203_v30 }
 0x869   : > { %5523 = vmatmul.f32.vlgmr.msrb.gmra.mxu2 %v10197_v6  ;;  %5536 = vmatpush.msrb.mxu3 %v4501_v51  ;;  %v10468_v41 = vpop.f32.mrf.mxu3  ;;  %v4657_v51 = vld [vmem:[#allocation17 + $0x10c8] sm:$0xff] }
 0x86a   : > { %11547 = vst [vmem:[#allocation56_spill] sm:$0xff] %v10468_v41  ;;  %5565 = vmatpush.msra.mxu0 %v4693_v39  ;;  %5594 = vmatpush.msra.mxu1 %v4310_v18  ;;  %v10470_v26 = vpop.f32.mrf.mxu2  ;;  %v4466_v39 = vld [vmem:[#allocation17 + $0xad0] sm:$0xff]  ;;  %v4453_v18 = vld [vmem:[#allocation17 + $0xa68] sm:$0xff] }
 0x86b   : > { %11548 = vst [vmem:[#allocation57_spill] sm:$0xff] %v10470_v26  ;;  %5623 = vmatpush.msra.mxu2 %v4502_v20  ;;  %5537 = vmatpush.msrb.mxu3 %v4489_v3  ;;  %v4645_v20 = vld [vmem:[#allocation17 + $0x1068] sm:$0xff]  ;;  %v4262_v3 = vld [vmem:[#allocation17 + $0x470] sm:$0xff] }
 0x86c   : > { %5566 = vmatpush.msra.mxu0 %v4681_v56  ;;  %5595 = vmatpush.msra.mxu1 %v4298_v50  ;;  %v4454_v56 = vld [vmem:[#allocation17 + $0xa70] sm:$0xff]  ;;  %v4441_v50 = vld [vmem:[#allocation17 + $0xa08] sm:$0xff] }
 0x86d   : > { %5624 = vmatpush.msra.mxu2 %v4490_v62  ;;  %5538 = vmatpush.msrb.mxu3 %v4477_v53  ;;  %v10472_v55 = vpop.f32.mrf.mxu0  ;;  %v10477_v62 = vpop.f32.mrf.mxu1  ;;  %v4442_v53 = vld [vmem:[#allocation17 + $0xa10] sm:$0xff] }
 0x86e   : > { %11549 = vst [vmem:[#allocation58_spill] sm:$0xff] %v10472_v55  ;;  %5567 = vmatpush.msra.mxu0 %v4669_v4  ;;  %5596 = vmatpush.msra.mxu1 %v4286_v47  ;;  %v4429_v4 = vld [vmem:[#allocation17 + $0x9a8] sm:$0xff]  ;;  %v4226_v26 = vld [vmem:[#allocation17 + $0x350] sm:$0xff] }
 0x86f   : > { %5625 = vmatpush.msra.mxu2 %v4478_v13  ;;  %5539 = vmatpush.msrb.mxu3 %v4465_v40  ;;  %11550 = vst [vmem:[#allocation59_spill] sm:$0xff] %v10477_v62  ;;  %v4633_v40 = vld [vmem:[#allocation17 + $0x1008] sm:$0xff]  ;;  %v4250_v13 = vld [vmem:[#allocation17 + $0x410] sm:$0xff] }
 0x870   : > { %5568 = vmatpush.msra.mxu0 %v4657_v51  ;;  %5597 = vmatpush.msra.mxu1 %v4274_v34  ;;  %v4621_v51 = vld [vmem:[#allocation17 + $0xfa8] sm:$0xff]  ;;  %v4430_v62 = vld [vmem:[#allocation17 + $0x9b0] sm:$0xff] }
 0x871   : > { %5626 = vmatpush.msra.mxu2 %v4466_v39  ;;  %5439 = vmatmul.f32.gmra.mxu3 %v10230_v11  ;;  %v4238_v39 = vld [vmem:[#allocation17 + $0x3b0] sm:$0xff]  ;;  %v4417_v55 = vld [vmem:[#allocation17 + $0x948] sm:$0xff] }
 0x872   : > { %5468 = vmatmul.f32.gmra.mxu0 %v10233_v25  ;;  %5497 = vmatmul.f32.gmra.mxu1 %v10236_v59  ;;  %v10480_v34 = vpop.f32.mrf.mxu3 }
 0x873   : > { %5526 = vmatmul.f32.gmra.mxu2 %v10230_v11  ;;  %5540 = vmatpush.msrb.mxu3 %v4453_v18  ;;  %11551 = vst [vmem:[#allocation60_spill] sm:$0xff] %v10480_v34  ;;  %v4609_v18 = vld [vmem:[#allocation17 + $0xf48] sm:$0xff] }
 0x874   : > { %5569 = vmatpush.msra.mxu0 %v4645_v20  ;;  %5598 = vmatpush.msra.mxu1 %v4262_v3  ;;  %v10482_v47 = vpop.f32.mrf.mxu2  ;;  %v4418_v20 = vld [vmem:[#allocation17 + $0x950] sm:$0xff]  ;;  %v4405_v3 = vld [vmem:[#allocation17 + $0x8e8] sm:$0xff] }
 0x875   : > { %11552 = vst [vmem:[#allocation61_spill] sm:$0xff] %v10482_v47  ;;  %5627 = vmatpush.msra.mxu2 %v4454_v56  ;;  %5541 = vmatpush.msrb.mxu3 %v4441_v50  ;;  %v4597_v56 = vld [vmem:[#allocation17 + $0xee8] sm:$0xff]  ;;  %v4214_v50 = vld [vmem:[#allocation17 + $0x2f0] sm:$0xff] }
 0x876   : > { %5570 = vmatpush.msra.mxu0 %v4633_v40  ;;  %5599 = vmatpush.msra.mxu1 %v4250_v13  ;;  %v4406_v40 = vld [vmem:[#allocation17 + $0x8f0] sm:$0xff]  ;;  %v4393_v13 = vld [vmem:[#allocation17 + $0x888] sm:$0xff] }
 0x877   : > { %5628 = vmatpush.msra.mxu2 %v4442_v53  ;;  %5542 = vmatpush.msrb.mxu3 %v4429_v4  ;;  %v10484_v41 = vpop.f32.mrf.mxu0  ;;  %v10489_v53 = vpop.f32.mrf.mxu1  ;;  %v4394_v4 = vld [vmem:[#allocation17 + $0x890] sm:$0xff] }
 0x878   : > { %11553 = vst [vmem:[#allocation62_spill] sm:$0xff] %v10484_v41  ;;  %5571 = vmatpush.msra.mxu0 %v4621_v51  ;;  %5600 = vmatpush.msra.mxu1 %v4238_v39  ;;  %v4381_v51 = vld [vmem:[#allocation17 + $0x828] sm:$0xff]  ;;  %v4178_v47 = vld [vmem:[#allocation17 + $0x1d0] sm:$0xff] }
 0x879   : > { %5629 = vmatpush.msra.mxu2 %v4430_v62  ;;  %5543 = vmatpush.msrb.mxu3 %v4417_v55  ;;  %11554 = vst [vmem:[#allocation63_spill] sm:$0xff] %v10489_v53  ;;  %v4585_v55 = vld [vmem:[#allocation17 + $0xe88] sm:$0xff]  ;;  %v4202_v62 = vld [vmem:[#allocation17 + $0x290] sm:$0xff] }
 0x87a   : > { %5572 = vmatpush.msra.mxu0 %v4609_v18  ;;  %5601 = vmatpush.msra.mxu1 %v4226_v26  ;;  %v4573_v18 = vld [vmem:[#allocation17 + $0xe28] sm:$0xff]  ;;  %v4382_v53 = vld [vmem:[#allocation17 + $0x830] sm:$0xff] }
 0x87b   : > { %5630 = vmatpush.msra.mxu2 %v4418_v20  ;;  %5442 = vmatmul.f32.gmra.mxu3 %v10258_v24  ;;  %v4190_v20 = vld [vmem:[#allocation17 + $0x230] sm:$0xff]  ;;  %v4369_v41 = vld [vmem:[#allocation17 + $0x7c8] sm:$0xff] }
 0x87c   : > { %5471 = vmatmul.f32.gmra.mxu0 %v10261_v7  ;;  %5500 = vmatmul.f32.gmra.mxu1 %v10264_v8  ;;  %v10492_v26 = vpop.f32.mrf.mxu3 }
 0x87d   : > { %5529 = vmatmul.f32.gmra.mxu2 %v10258_v24  ;;  %5544 = vmatpush.msrb.mxu3 %v4405_v3  ;;  %11555 = vst [vmem:[#allocation64_spill] sm:$0xff] %v10492_v26  ;;  %v4561_v3 = vld [vmem:[#allocation17 + $0xdc8] sm:$0xff] }
 0x87e   : > { %5573 = vmatpush.msra.mxu0 %v4597_v56  ;;  %5602 = vmatpush.msra.mxu1 %v4214_v50  ;;  %v10494_v39 = vpop.f32.mrf.mxu2  ;;  %v4370_v56 = vld [vmem:[#allocation17 + $0x7d0] sm:$0xff]  ;;  %v4357_v50 = vld [vmem:[#allocation17 + $0x768] sm:$0xff] }
 0x87f   : > { %11556 = vst [vmem:[#allocation65_spill] sm:$0xff] %v10494_v39  ;;  %5631 = vmatpush.msra.mxu2 %v4406_v40  ;;  %5545 = vmatpush.msrb.mxu3 %v4393_v13  ;;  %v4549_v40 = vld [vmem:[#allocation17 + $0xd68] sm:$0xff]  ;;  %v4166_v13 = vld [vmem:[#allocation17 + $0x170] sm:$0xff] }
 0x880   : > { %5574 = vmatpush.msra.mxu0 %v4585_v55  ;;  %5603 = vmatpush.msra.mxu1 %v4202_v62  ;;  %v4358_v55 = vld [vmem:[#allocation17 + $0x770] sm:$0xff]  ;;  %v4345_v62 = vld [vmem:[#allocation17 + $0x708] sm:$0xff] }
 0x881   : > { %5632 = vmatpush.msra.mxu2 %v4394_v4  ;;  %5546 = vmatpush.msrb.mxu3 %v4381_v51  ;;  %v10496_v34 = vpop.f32.mrf.mxu0  ;;  %v10501_v4 = vpop.f32.mrf.mxu1  ;;  %v4346_v51 = vld [vmem:[#allocation17 + $0x710] sm:$0xff] }
 0x882   : > { %11557 = vst [vmem:[#allocation66_spill] sm:$0xff] %v10496_v34  ;;  %5575 = vmatpush.msra.mxu0 %v4573_v18  ;;  %5604 = vmatpush.msra.mxu1 %v4190_v20  ;;  %v4333_v18 = vld [vmem:[#allocation17 + $0x6a8] sm:$0xff]  ;;  %v4130_v39 = vld [vmem:[#allocation17 + $0x50] sm:$0xff] }
 0x883   : > { %5633 = vmatpush.msra.mxu2 %v4382_v53  ;;  %5547 = vmatpush.msrb.mxu3 %v4369_v41  ;;  %11558 = vst [vmem:[#allocation67_spill] sm:$0xff] %v10501_v4  ;;  %v4537_v41 = vld [vmem:[#allocation17 + $0xd08] sm:$0xff]  ;;  %v4154_v53 = vld [vmem:[#allocation17 + $0x110] sm:$0xff] }
 0x884   : > { %5576 = vmatpush.msra.mxu0 %v4561_v3  ;;  %5605 = vmatpush.msra.mxu1 %v4178_v47  ;;  %v4525_v3 = vld [vmem:[#allocation17 + $0xca8] sm:$0xff]  ;;  %v4334_v4 = vld [vmem:[#allocation17 + $0x6b0] sm:$0xff] }
 0x885   : > { %5634 = vmatpush.msra.mxu2 %v4370_v56  ;;  %5445 = vmatmul.f32.gmra.mxu3 %v10280_v5  ;;  %v4142_v56 = vld [vmem:[#allocation17 + $0xb0] sm:$0xff]  ;;  %v4321_v34 = vld [vmem:[#allocation17 + $0x648] sm:$0xff] }
 0x886   : > { %5474 = vmatmul.f32.gmra.mxu0 %v10283_v58  ;;  %5503 = vmatmul.f32.gmra.mxu1 %v10286_v28  ;;  %v10504_v47 = vpop.f32.mrf.mxu3 }
 0x887   : > { %5532 = vmatmul.f32.gmra.mxu2 %v10280_v5  ;;  %5548 = vmatpush.msrb.mxu3 %v4357_v50  ;;  %11559 = vst [vmem:[#allocation68_spill] sm:$0xff] %v10504_v47  ;;  %v4513_v50 = vld [vmem:[#allocation17 + $0xc48] sm:$0xff] }
 0x888   : > { %5577 = vmatpush.msra.mxu0 %v4549_v40  ;;  %5606 = vmatpush.msra.mxu1 %v4166_v13  ;;  %v10506_v20 = vpop.f32.mrf.mxu2  ;;  %v4322_v40 = vld [vmem:[#allocation17 + $0x650] sm:$0xff] }
 0x889   : > { %11560 = vst [vmem:[#allocation69_spill] sm:$0xff] %v10506_v20  ;;  %5635 = vmatpush.msra.mxu2 %v4358_v55  ;;  %5549 = vmatpush.msrb.mxu3 %v4345_v62  ;;  %v4694_v13 = vld [vmem:[#allocation17 + $0x11f0] sm:$0xff]  ;;  %v4311_v55 = vld [vmem:[#allocation17 + $0x5f8] sm:$0xff] }
 0x88a   : > { %5578 = vmatpush.msra.mxu0 %v4537_v41  ;;  %5607 = vmatpush.msra.mxu1 %v4154_v53  ;;  %v4503_v62 = vld [vmem:[#allocation17 + $0xbf8] sm:$0xff]  ;;  %v4682_v53 = vld [vmem:[#allocation17 + $0x1190] sm:$0xff] }
 0x88b   : > { %5636 = vmatpush.msra.mxu2 %v4346_v51  ;;  %5550 = vmatpush.msrb.mxu3 %v4333_v18  ;;  %v10508_v26 = vpop.f32.mrf.mxu0  ;;  %v4695_v41 = vld [vmem:[#allocation17 + $0x11f8] sm:$0xff]  ;;  %v10513_v51 = vpop.f32.mrf.mxu1 }
 0x88c   : > { %11561 = vst [vmem:[#allocation70_spill] sm:$0xff] %v10508_v26  ;;  %5579 = vmatpush.msra.mxu0 %v4525_v3  ;;  %5608 = vmatpush.msra.mxu1 %v4142_v56  ;;  %v4683_v18 = vld [vmem:[#allocation17 + $0x1198] sm:$0xff]  ;;  %v4670_v3 = vld [vmem:[#allocation17 + $0x1130] sm:$0xff] }
 0x88d   : > { %5637 = vmatpush.msra.mxu2 %v4334_v4  ;;  %5551 = vmatpush.msrb.mxu3 %v4321_v34  ;;  %11562 = vst [vmem:[#allocation71_spill] sm:$0xff] %v10513_v51  ;;  %v4299_v34 = vld [vmem:[#allocation17 + $0x598] sm:$0xff]  ;;  %v4658_v26 = vld [vmem:[#allocation17 + $0x10d0] sm:$0xff] }
 0x88e   : > { %5580 = vmatpush.msra.mxu0 %v4513_v50  ;;  %5609 = vmatpush.msra.mxu1 %v4130_v39  ;;  %v4491_v4 = vld [vmem:[#allocation17 + $0xb98] sm:$0xff] }
 0x88f   : > { %5638 = vmatpush.msra.mxu2 %v4322_v40  ;;  %5552 = vmatmul.f32.vlgmr.msrb.gmra.mxu3 %v10200_v46  ;;  %v4287_v50 = vld [vmem:[#allocation17 + $0x538] sm:$0xff] }
 0x890   : > { %5581 = vmatmul.f32.vlgmr.msra.gmra.mxu0 %v10203_v30  ;;  %5610 = vmatmul.f32.vlgmr.msra.gmra.mxu1 %v10197_v6  ;;  %v10516_v39 = vpop.f32.mrf.mxu3  ;;  %v4479_v40 = vld [vmem:[#allocation17 + $0xb38] sm:$0xff] }
 0x891   : > { %5639 = vmatmul.f32.vlgmr.msra.gmra.mxu2 %v10200_v46  ;;  %5652 = vmatpush.msra.mxu3 %v4694_v13  ;;  %11563 = vst [vmem:[#allocation72_spill] sm:$0xff] %v10516_v39  ;;  %v4671_v51 = vld [vmem:[#allocation17 + $0x1138] sm:$0xff]  ;;  %v4610_v39 = vld [vmem:[#allocation17 + $0xf50] sm:$0xff] }
 0x892   : > { %5681 = vmatpush.msrb.mxu0 %v4311_v55  ;;  %5710 = vmatpush.msrb.mxu1 %v4503_v62  ;;  %v10518_v56 = vpop.f32.mrf.mxu2  ;;  %v4275_v13 = vld [vmem:[#allocation17 + $0x4d8] sm:$0xff]  ;;  %v4646_v62 = vld [vmem:[#allocation17 + $0x1070] sm:$0xff] }
 0x893   : > { %11564 = vst [vmem:[#allocation73_spill] sm:$0xff] %v10518_v56  ;;  %5739 = vmatpush.msrb.mxu2 %v4695_v41  ;;  %5653 = vmatpush.msra.mxu3 %v4682_v53  ;;  %v4467_v20 = vld [vmem:[#allocation17 + $0xad8] sm:$0xff] }
 0x894   : > { %5682 = vmatpush.msrb.mxu0 %v4299_v34  ;;  %5711 = vmatpush.msrb.mxu1 %v4491_v4  ;;  %v4659_v55 = vld [vmem:[#allocation17 + $0x10d8] sm:$0xff]  ;;  %v4634_v4 = vld [vmem:[#allocation17 + $0x1010] sm:$0xff] }
 0x895   : > { %5740 = vmatpush.msrb.mxu2 %v4683_v18  ;;  %5654 = vmatpush.msra.mxu3 %v4670_v3  ;;  %v10520_v47 = vpop.f32.mrf.mxu0  ;;  %v4263_v41 = vld [vmem:[#allocation17 + $0x478] sm:$0xff]  ;;  %v10525_v18 = vpop.f32.mrf.mxu1 }
 0x896   : > { %11565 = vst [vmem:[#allocation74_spill] sm:$0xff] %v10520_v47  ;;  %5683 = vmatpush.msrb.mxu0 %v4287_v50  ;;  %5712 = vmatpush.msrb.mxu1 %v4479_v40  ;;  %v4455_v53 = vld [vmem:[#allocation17 + $0xa78] sm:$0xff]  ;;  %v4622_v50 = vld [vmem:[#allocation17 + $0xfb0] sm:$0xff] }
 0x897   : > { %5741 = vmatpush.msrb.mxu2 %v4671_v51  ;;  %5655 = vmatpush.msra.mxu3 %v4658_v26  ;;  %v4647_v34 = vld [vmem:[#allocation17 + $0x1078] sm:$0xff]  ;;  %11566 = vst [vmem:[#allocation75_spill] sm:$0xff] %v10525_v18 }
 0x898   : > { %5684 = vmatpush.msrb.mxu0 %v4275_v13  ;;  %5713 = vmatpush.msrb.mxu1 %v4467_v20  ;;  %v4251_v26 = vld [vmem:[#allocation17 + $0x418] sm:$0xff] }
 0x899   : > { %5742 = vmatpush.msrb.mxu2 %v4659_v55  ;;  %5555 = vmatmul.f32.gmra.mxu3 %v10233_v25  ;;  %v4443_v51 = vld [vmem:[#allocation17 + $0xa18] sm:$0xff] }
 0x89a   : > { %5584 = vmatmul.f32.gmra.mxu0 %v10236_v59  ;;  %5613 = vmatmul.f32.gmra.mxu1 %v10230_v11  ;;  %v10528_v20 = vpop.f32.mrf.mxu3  ;;  %v4635_v3 = vld [vmem:[#allocation17 + $0x1018] sm:$0xff] }
 0x89b   : > { %5642 = vmatmul.f32.gmra.mxu2 %v10233_v25  ;;  %5656 = vmatpush.msra.mxu3 %v4646_v62  ;;  %11567 = vst [vmem:[#allocation76_spill] sm:$0xff] %v10528_v20  ;;  %v4239_v13 = vld [vmem:[#allocation17 + $0x3b8] sm:$0xff] }
 0x89c   : > { %5685 = vmatpush.msrb.mxu0 %v4263_v41  ;;  %5714 = vmatpush.msrb.mxu1 %v4455_v53  ;;  %v10530_v40 = vpop.f32.mrf.mxu2  ;;  %v4431_v55 = vld [vmem:[#allocation17 + $0x9b8] sm:$0xff]  ;;  %v4598_v53 = vld [vmem:[#allocation17 + $0xef0] sm:$0xff] }
 0x89d   : > { %11568 = vst [vmem:[#allocation77_spill] sm:$0xff] %v10530_v40  ;;  %5743 = vmatpush.msrb.mxu2 %v4647_v34  ;;  %5657 = vmatpush.msra.mxu3 %v4634_v4  ;;  %v4623_v56 = vld [vmem:[#allocation17 + $0xfb8] sm:$0xff] }
 0x89e   : > { %5686 = vmatpush.msrb.mxu0 %v4251_v26  ;;  %5715 = vmatpush.msrb.mxu1 %v4443_v51  ;;  %v4227_v62 = vld [vmem:[#allocation17 + $0x358] sm:$0xff]  ;;  %v4586_v51 = vld [vmem:[#allocation17 + $0xe90] sm:$0xff] }
 0x89f   : > { %5744 = vmatpush.msrb.mxu2 %v4635_v3  ;;  %5658 = vmatpush.msra.mxu3 %v4622_v50  ;;  %v4419_v47 = vld [vmem:[#allocation17 + $0x958] sm:$0xff]  ;;  %v10532_v18 = vpop.f32.mrf.mxu0  ;;  %v10537_v3 = vpop.f32.mrf.mxu1 }
 0x8a0   : > { %11569 = vst [vmem:[#allocation78_spill] sm:$0xff] %v10532_v18  ;;  %5687 = vmatpush.msrb.mxu0 %v4239_v13  ;;  %5716 = vmatpush.msrb.mxu1 %v4431_v55  ;;  %v4611_v41 = vld [vmem:[#allocation17 + $0xf58] sm:$0xff]  ;;  %v4574_v13 = vld [vmem:[#allocation17 + $0xe30] sm:$0xff] }
 0x8a1   : > { %5745 = vmatpush.msrb.mxu2 %v4623_v56  ;;  %5659 = vmatpush.msra.mxu3 %v4610_v39  ;;  %v4215_v34 = vld [vmem:[#allocation17 + $0x2f8] sm:$0xff]  ;;  %11570 = vst [vmem:[#allocation79_spill] sm:$0xff] %v10537_v3  ;;  %v4562_v3 = vld [vmem:[#allocation17 + $0xdd0] sm:$0xff] }
 0x8a2   : > { %5688 = vmatpush.msrb.mxu0 %v4227_v62  ;;  %5717 = vmatpush.msrb.mxu1 %v4419_v47  ;;  %v4407_v4 = vld [vmem:[#allocation17 + $0x8f8] sm:$0xff] }
 0x8a3   : > { %5746 = vmatpush.msrb.mxu2 %v4611_v41  ;;  %5558 = vmatmul.f32.gmra.mxu3 %v10261_v7  ;;  %v4599_v26 = vld [vmem:[#allocation17 + $0xef8] sm:$0xff] }
 0x8a4   : > { %5587 = vmatmul.f32.gmra.mxu0 %v10264_v8  ;;  %5616 = vmatmul.f32.gmra.mxu1 %v10258_v24  ;;  %v4203_v39 = vld [vmem:[#allocation17 + $0x298] sm:$0xff]  ;;  %v10540_v47 = vpop.f32.mrf.mxu3 }
 0x8a5   : > { %5645 = vmatmul.f32.gmra.mxu2 %v10261_v7  ;;  %5660 = vmatpush.msra.mxu3 %v4598_v53  ;;  %v4395_v56 = vld [vmem:[#allocation17 + $0x898] sm:$0xff]  ;;  %11571 = vst [vmem:[#allocation80_spill] sm:$0xff] %v10540_v47 }
 0x8a6   : > { %5689 = vmatpush.msrb.mxu0 %v4215_v34  ;;  %5718 = vmatpush.msrb.mxu1 %v4407_v4  ;;  %v4587_v50 = vld [vmem:[#allocation17 + $0xe98] sm:$0xff]  ;;  %v10542_v55 = vpop.f32.mrf.mxu2  ;;  %v4550_v4 = vld [vmem:[#allocation17 + $0xd70] sm:$0xff] }
 0x8a7   : > { %11572 = vst [vmem:[#allocation81_spill] sm:$0xff] %v10542_v55  ;;  %5747 = vmatpush.msrb.mxu2 %v4599_v26  ;;  %5661 = vmatpush.msra.mxu3 %v4586_v51  ;;  %v4191_v62 = vld [vmem:[#allocation17 + $0x238] sm:$0xff] }
 0x8a8   : > { %v4383_v41 = vld [vmem:[#allocation17 + $0x838] sm:$0xff]  ;;  %5690 = vmatpush.msrb.mxu0 %v4203_v39  ;;  %5719 = vmatpush.msrb.mxu1 %v4395_v56  ;;  %v4538_v56 = vld [vmem:[#allocation17 + $0xd10] sm:$0xff] }
 0x8a9   : > { %v4575_v18 = vld [vmem:[#allocation17 + $0xe38] sm:$0xff]  ;;  %5748 = vmatpush.msrb.mxu2 %v4587_v50  ;;  %5662 = vmatpush.msra.mxu3 %v4574_v13  ;;  %v10544_v20 = vpop.f32.mrf.mxu0  ;;  %v10549_v50 = vpop.f32.mrf.mxu1 }
 0x8aa   : > { %v4179_v53 = vld [vmem:[#allocation17 + $0x1d8] sm:$0xff]  ;;  %11573 = vst [vmem:[#allocation82_spill] sm:$0xff] %v10544_v20  ;;  %5691 = vmatpush.msrb.mxu0 %v4191_v62  ;;  %5720 = vmatpush.msrb.mxu1 %v4383_v41  ;;  %v4526_v62 = vld [vmem:[#allocation17 + $0xcb0] sm:$0xff] }
 0x8ab   : > { %v4371_v40 = vld [vmem:[#allocation17 + $0x7d8] sm:$0xff]  ;;  %5749 = vmatpush.msrb.mxu2 %v4575_v18  ;;  %5663 = vmatpush.msra.mxu3 %v4562_v3  ;;  %11574 = vst [vmem:[#allocation83_spill] sm:$0xff] %v10549_v50  ;;  %v4514_v50 = vld [vmem:[#allocation17 + $0xc50] sm:$0xff] }
 0x8ac   : > { %v4563_v34 = vld [vmem:[#allocation17 + $0xdd8] sm:$0xff]  ;;  %5692 = vmatpush.msrb.mxu0 %v4179_v53  ;;  %5721 = vmatpush.msrb.mxu1 %v4371_v40 }
 0x8ad   : > { %5750 = vmatpush.msrb.mxu2 %v4563_v34  ;;  %5561 = vmatmul.f32.gmra.mxu3 %v10283_v58  ;;  %v4167_v26 = vld [vmem:[#allocation17 + $0x178] sm:$0xff] }
 0x8ae   : > { %v4359_v51 = vld [vmem:[#allocation17 + $0x778] sm:$0xff]  ;;  %5590 = vmatmul.f32.gmra.mxu0 %v10286_v28  ;;  %5619 = vmatmul.f32.gmra.mxu1 %v10280_v5  ;;  %v10552_v40 = vpop.f32.mrf.mxu3 }
 0x8af   : > { %v4551_v39 = vld [vmem:[#allocation17 + $0xd78] sm:$0xff]  ;;  %5648 = vmatmul.f32.gmra.mxu2 %v10283_v58  ;;  %5664 = vmatpush.msra.mxu3 %v4550_v4 }
 0x8b0   : > { %v4155_v18 = vld [vmem:[#allocation17 + $0x118] sm:$0xff]  ;;  %5693 = vmatpush.msrb.mxu0 %v4167_v26  ;;  %5722 = vmatpush.msrb.mxu1 %v4359_v51  ;;  %v10554_v41 = vpop.f32.mrf.mxu2 }
 0x8b1   : > { %v4347_v3 = vld [vmem:[#allocation17 + $0x718] sm:$0xff]  ;;  %11575 = vst [vmem:[#allocation84_spill] sm:$0xff] %v10554_v41  ;;  %5751 = vmatpush.msrb.mxu2 %v4551_v39  ;;  %5665 = vmatpush.msra.mxu3 %v4538_v56 }
 0x8b2   : > { %v4539_v13 = vld [vmem:[#allocation17 + $0xd18] sm:$0xff]  ;;  %5694 = vmatpush.msrb.mxu0 %v4155_v18  ;;  %5723 = vmatpush.msrb.mxu1 %v4347_v3 }
 0x8b3   : > { %v4143_v53 = vld [vmem:[#allocation17 + $0xb8] sm:$0xff]  ;;  %5752 = vmatpush.msrb.mxu2 %v4539_v13  ;;  %5666 = vmatpush.msra.mxu3 %v4526_v62  ;;  %v10556_v47 = vpop.f32.mrf.mxu0  ;;  %v10561_v13 = vpop.f32.mrf.mxu1 }
 0x8b4   : > { %v4335_v34 = vld [vmem:[#allocation17 + $0x6b8] sm:$0xff]  ;;  %11576 = vst [vmem:[#allocation85_spill] sm:$0xff] %v10556_v47  ;;  %5695 = vmatpush.msrb.mxu0 %v4143_v53  ;;  %v5855_v53 = vld [vmem:[#allocation20 + $0x138] sm:$0xff] }
 0x8b5   : > { %v4527_v20 = vld [vmem:[#allocation17 + $0xcb8] sm:$0xff]  ;;  %5724 = vmatpush.msrb.mxu1 %v4335_v34  ;;  %5667 = vmatpush.msra.mxu3 %v4514_v50  ;;  %11577 = vst [vmem:[#allocation86_spill] sm:$0xff] %v10561_v13 }
 0x8b6   : > { %v4131_v4 = vld [vmem:[#allocation17 + $0x58] sm:$0xff]  ;;  %5753 = vmatpush.msrb.mxu2 %v4527_v20  ;;  %5668 = vmatmul.f32.vlgmr.msra.gmra.mxu3 %v10203_v30 }
 0x8b7   : > { %v4323_v55 = vld [vmem:[#allocation17 + $0x658] sm:$0xff]  ;;  %5696 = vmatpush.msrb.mxu0 %v4131_v4  ;;  %v5999_v4 = vld [vmem:[#allocation20 + $0x5b8] sm:$0xff] }
 0x8b8   : > { %v4515_v26 = vld [vmem:[#allocation17 + $0xc58] sm:$0xff]  ;;  %5725 = vmatpush.msrb.mxu1 %v4323_v55  ;;  %5697 = vmatmul.f32.vlgmr.msrb.gmra.mxu0 %v10197_v6  ;;  %v10564_v55 = vpop.f32.mrf.mxu3  ;;  %v5903_v6 = vld [vmem:[#allocation20 + $0x2b8] sm:$0xff] }
 0x8b9   : > { %v5861_v51 = vld [vmem:[#allocation20 + $0x168] sm:$0xff]  ;;  %5754 = vmatpush.msrb.mxu2 %v4515_v26  ;;  %5726 = vmatmul.f32.vlgmr.msrb.gmra.mxu1 %v10200_v46  ;;  %v5858_v3 = vld [vmem:[#allocation20 + $0x150] sm:$0xff]  ;;  %11578 = vst [vmem:[#allocation87_spill] sm:$0xff] %v10564_v55  ;;  %v5951_v46 = vld [vmem:[#allocation20 + $0x438] sm:$0xff] }
 0x8ba   : > { %v5909_v39 = vld [vmem:[#allocation20 + $0x2e8] sm:$0xff]  ;;  %5755 = vmatmul.f32.vlgmr.msrb.gmra.mxu2 %v10203_v30  ;;  %6400 = vmatpush.msrb.mxu3 %v5861_v51  ;;  %v5906_v20 = vld [vmem:[#allocation20 + $0x2d0] sm:$0xff]  ;;  %v10566_v34 = vpop.f32.mrf.mxu2  ;;  %v5852_v26 = vld [vmem:[#allocation20 + $0x120] sm:$0xff] }
 0x8bb   : > { %v5957_v56 = vld [vmem:[#allocation20 + $0x468] sm:$0xff]  ;;  %v5954_v50 = vld [vmem:[#allocation20 + $0x450] sm:$0xff]  ;;  %6429 = vmatpush.msra.mxu0 %v5909_v39  ;;  %11579 = vst [vmem:[#allocation88_spill] sm:$0xff] %v10566_v34  ;;  %v5900_v30 = vld [vmem:[#allocation20 + $0x2a0] sm:$0xff] }
 0x8bc   : > { %v6005_v18 = vld [vmem:[#allocation20 + $0x5e8] sm:$0xff]  ;;  %6458 = vmatpush.msra.mxu1 %v5957_v56  ;;  %v6002_v62 = vld [vmem:[#allocation20 + $0x5d0] sm:$0xff]  ;;  %6401 = vmatpush.msrb.mxu3 %v5858_v3  ;;  %v5948_v51 = vld [vmem:[#allocation20 + $0x420] sm:$0xff] }
 0x8bd   : > { %6487 = vmatpush.msra.mxu2 %v6005_v18  ;;  %6430 = vmatpush.msra.mxu0 %v5906_v20  ;;  %v10568_v47 = vpop.f32.mrf.mxu0  ;;  %v5996_v39 = vld [vmem:[#allocation20 + $0x5a0] sm:$0xff]  ;;  %v5849_v56 = vld [vmem:[#allocation20 + $0x108] sm:$0xff] }
 0x8be   : > { %6459 = vmatpush.msra.mxu1 %v5954_v50  ;;  %6402 = vmatpush.msrb.mxu3 %v5855_v53  ;;  %v5897_v18 = vld [vmem:[#allocation20 + $0x288] sm:$0xff]  ;;  %v5846_v50 = vld [vmem:[#allocation20 + $0xf0] sm:$0xff] }
 0x8bf   : > { %6488 = vmatpush.msra.mxu2 %v6002_v62  ;;  %6431 = vmatpush.msra.mxu0 %v5903_v6  ;;  %v5945_v3 = vld [vmem:[#allocation20 + $0x408] sm:$0xff]  ;;  %v10573_v62 = vpop.f32.mrf.mxu1  ;;  %v5894_v53 = vld [vmem:[#allocation20 + $0x270] sm:$0xff] }
 0x8c0   : > { %6460 = vmatpush.msra.mxu1 %v5951_v46  ;;  %6403 = vmatpush.msrb.mxu3 %v5852_v26  ;;  %v5993_v20 = vld [vmem:[#allocation20 + $0x588] sm:$0xff]  ;;  %v5942_v6 = vld [vmem:[#allocation20 + $0x3f0] sm:$0xff]  ;;  %v5843_v26 = vld [vmem:[#allocation20 + $0xd8] sm:$0xff] }
 0x8c1   : > { %6489 = vmatpush.msra.mxu2 %v5999_v4  ;;  %6432 = vmatpush.msra.mxu0 %v5900_v30  ;;  %v5990_v4 = vld [vmem:[#allocation20 + $0x570] sm:$0xff] }
 0x8c2   : > { %6461 = vmatpush.msra.mxu1 %v5948_v51  ;;  %5671 = vmatmul.f32.gmra.mxu3 %v10236_v59  ;;  %v10576_v46 = vpop.f32.mrf.mxu3  ;;  %v5987_v51 = vld [vmem:[#allocation20 + $0x558] sm:$0xff] }
 0x8c3   : > { %6490 = vmatpush.msra.mxu2 %v5996_v39  ;;  %5700 = vmatmul.f32.gmra.mxu0 %v10230_v11  ;;  %v5891_v11 = vld [vmem:[#allocation20 + $0x258] sm:$0xff]  ;;  %v5840_v39 = vld [vmem:[#allocation20 + $0xc0] sm:$0xff] }
 0x8c4   : > { %5729 = vmatmul.f32.gmra.mxu1 %v10233_v25  ;;  %5758 = vmatmul.f32.gmra.mxu2 %v10236_v59  ;;  %v10578_v30 = vpop.f32.mrf.mxu2  ;;  %v5939_v25 = vld [vmem:[#allocation20 + $0x3d8] sm:$0xff]  ;;  %v5888_v59 = vld [vmem:[#allocation20 + $0x240] sm:$0xff] }
 0x8c5   : > { %6404 = vmatpush.msrb.mxu3 %v5849_v56  ;;  %6433 = vmatpush.msra.mxu0 %v5897_v18  ;;  %v5936_v56 = vld [vmem:[#allocation20 + $0x3c0] sm:$0xff] }
 0x8c6   : > { %6462 = vmatpush.msra.mxu1 %v5945_v3  ;;  %6491 = vmatpush.msra.mxu2 %v5993_v20  ;;  %v5984_v18 = vld [vmem:[#allocation20 + $0x540] sm:$0xff]  ;;  %v10582_v3 = vld [vmem:[#allocation18] sm:$0xff]  ;;  %v5837_v20 = vld [vmem:[#allocation20 + $0xa8] sm:$0xff] }
 0x8c7   : > { %6405 = vmatpush.msrb.mxu3 %v5846_v50  ;;  %6434 = vmatpush.msra.mxu0 %v5894_v53  ;;  %v10580_v34 = vpop.f32.mrf.mxu0  ;;  %v5885_v50 = vld [vmem:[#allocation20 + $0x228] sm:$0xff]  ;;  %v10598_v13 = vperm.slane %v10582_v3, 1  ;;  %v10608_v41 = vperm.slane %v10582_v3, 2 }
 0x8c8   : > { %6463 = vmatpush.msra.mxu1 %v5942_v6  ;;  %6492 = vmatpush.msra.mxu2 %v5990_v4  ;;  %v5933_v53 = vld [vmem:[#allocation20 + $0x3a8] sm:$0xff]  ;;  %v5834_v4 = vld [vmem:[#allocation20 + $0x90] sm:$0xff] }
 0x8c9   : > { %6406 = vmatpush.msrb.mxu3 %v5843_v26  ;;  %6435 = vmatpush.msra.mxu0 %v5891_v11  ;;  %v5981_v6 = vld [vmem:[#allocation20 + $0x528] sm:$0xff]  ;;  %v10587_v26 = vpop.f32.mrf.mxu1  ;;  %v10590_v11 = vperm.slane %v10582_v3, 0 }
 0x8ca   : > { %6464 = vmatpush.msra.mxu1 %v5939_v25  ;;  %6493 = vmatpush.msra.mxu2 %v5987_v51  ;;  %v5882_v25 = vld [vmem:[#allocation20 + $0x210] sm:$0xff] }
 0x8cb   : > { %6407 = vmatpush.msrb.mxu3 %v5840_v39  ;;  %6436 = vmatpush.msra.mxu0 %v5888_v59  ;;  %v5930_v51 = vld [vmem:[#allocation20 + $0x390] sm:$0xff]  ;;  %v4742_v55 = vadd.f32 %v10343_v19, %v10590_v11  ;;  %v4829_v19 = vadd.f32 %v10346_v16, %v10598_v13  ;;  %v5969_v16 = vld [vmem:[#allocation20 + $0x4c8] sm:$0xff] }
 0x8cc   : > { %6465 = vmatpush.msra.mxu1 %v5936_v56  ;;  %6494 = vmatpush.msra.mxu2 %v5984_v18  ;;  %v10593_v39 = vpop.f32.mrf.mxu3  ;;  %v5978_v59 = vld [vmem:[#allocation20 + $0x510] sm:$0xff]  ;;  %v5927_v18 = vld [vmem:[#allocation20 + $0x378] sm:$0xff] }
 0x8cd   : > { %5674 = vmatmul.f32.gmra.mxu3 %v10264_v8  ;;  %5703 = vmatmul.f32.gmra.mxu0 %v10258_v24  ;;  %v5831_v24 = vld [vmem:[#allocation20 + $0x78] sm:$0xff] }
 0x8ce   : > { %5732 = vmatmul.f32.gmra.mxu1 %v10261_v7  ;;  %5761 = vmatmul.f32.gmra.mxu2 %v10264_v8  ;;  %v10595_v56 = vpop.f32.mrf.mxu2  ;;  %v5879_v7 = vld [vmem:[#allocation20 + $0x1f8] sm:$0xff] }
 0x8cf   : > { %6408 = vmatpush.msrb.mxu3 %v5837_v20  ;;  %6437 = vmatpush.msra.mxu0 %v5885_v50  ;;  %v5975_v8 = vld [vmem:[#allocation20 + $0x4f8] sm:$0xff]  ;;  %v5828_v20 = vld [vmem:[#allocation20 + $0x60] sm:$0xff]  ;;  %v10603_v50 = vperm.slane %v10582_v3, 3 }
 0x8d0   : > { %6466 = vmatpush.msra.mxu1 %v5933_v53  ;;  %6495 = vmatpush.msra.mxu2 %v5981_v6  ;;  %v5876_v53 = vld [vmem:[#allocation20 + $0x1e0] sm:$0xff] }
 0x8d1   : > { %6409 = vmatpush.msrb.mxu3 %v5834_v4  ;;  %6438 = vmatpush.msra.mxu0 %v5882_v25  ;;  %v5924_v6 = vld [vmem:[#allocation20 + $0x360] sm:$0xff]  ;;  %v10605_v4 = vpop.f32.mrf.mxu0 }
 0x8d2   : > { %6467 = vmatpush.msra.mxu1 %v5930_v51  ;;  %6496 = vmatpush.msra.mxu2 %v5978_v59  ;;  %11580 = vst [vmem:[#allocation89_spill] sm:$0xff] %v10605_v4  ;;  %v5972_v25 = vld [vmem:[#allocation20 + $0x4e0] sm:$0xff]  ;;  %v5825_v51 = vld [vmem:[#allocation20 + $0x48] sm:$0xff]  ;;  %v4771_v59 = vadd.f32 %v10336_v33, %v4742_v55  ;;  %v10621_v33 = vpop.f32.mrf.mxu1  ;;  %v5918_v55 = vld [vmem:[#allocation20 + $0x330] sm:$0xff] }
 0x8d3   : > { %6410 = vmatpush.msrb.mxu3 %v5831_v24  ;;  %6439 = vmatpush.msra.mxu0 %v5879_v7  ;;  %v5003_v24 = vadd.f32 %v10424_v29, %v10603_v50  ;;  %v5873_v4 = vld [vmem:[#allocation20 + $0x1c8] sm:$0xff]  ;;  %v5870_v29 = vld [vmem:[#allocation20 + $0x1b0] sm:$0xff] }
 0x8d4   : > { %6468 = vmatpush.msra.mxu1 %v5927_v18  ;;  %6497 = vmatpush.msra.mxu2 %v5975_v8  ;;  %v5921_v7 = vld [vmem:[#allocation20 + $0x348] sm:$0xff]  ;;  %v4916_v18 = vadd.f32 %v10382_v31, %v10608_v41  ;;  %v4858_v8 = vadd.f32 %v10388_v32, %v4829_v19  ;;  %v5966_v31 = vld [vmem:[#allocation20 + $0x4b0] sm:$0xff]  ;;  %v5819_v32 = vld [vmem:[#allocation20 + $0x18] sm:$0xff] }
 0x8d5   : > { %6411 = vmatpush.msrb.mxu3 %v5828_v20  ;;  %6440 = vmatpush.msra.mxu0 %v5876_v53  ;;  %v5822_v20 = vld [vmem:[#allocation20 + $0x30] sm:$0xff]  ;;  %v5915_v19 = vld [vmem:[#allocation20 + $0x318] sm:$0xff] }
 0x8d6   : > { %6469 = vmatpush.msra.mxu1 %v5924_v6  ;;  %6498 = vmatpush.msra.mxu2 %v5972_v25  ;;  %v10624_v53 = vpop.f32.mrf.mxu3  ;;  %v4945_v6 = vadd.f32 %v10390_v45, %v4916_v18  ;;  %v5032_v25 = vadd.f32 %v10429_v12, %v5003_v24  ;;  %v5963_v45 = vld [vmem:[#allocation20 + $0x498] sm:$0xff]  ;;  %v5912_v12 = vld [vmem:[#allocation20 + $0x300] sm:$0xff] }
 0x8d7   : > { %5677 = vmatmul.f32.gmra.mxu3 %v10286_v28  ;;  %5706 = vmatmul.f32.gmra.mxu0 %v10280_v5  ;;  %11581 = vst [vmem:[#allocation90_spill] sm:$0xff] %v10624_v53 }
 0x8d8   : > { %5735 = vmatmul.f32.gmra.mxu1 %v10283_v58  ;;  %5764 = vmatmul.f32.gmra.mxu2 %v10286_v28  ;;  %v10627_v5 = vpop.f32.mrf.mxu2  ;;  %v4800_v58 = vadd.f32 %v10338_v52, %v4771_v59  ;;  %v5867_v28 = vld [vmem:[#allocation20 + $0x198] sm:$0xff]  ;;  %v4974_v53 = vadd.f32 %v10432_v1, %v4945_v6  ;;  %v5061_v18 = vadd.f32 %v10434_v9, %v5032_v25  ;;  %v5864_v52 = vld [vmem:[#allocation20 + $0x180] sm:$0xff]  ;;  %v6053_v9 = vld [vmem:[#allocation20 + $0x768] sm:$0xff] }
 0x8d9   : > { %6412 = vmatpush.msrb.mxu3 %v5825_v51  ;;  %6441 = vmatpush.msra.mxu0 %v5873_v4  ;;  %v4887_v51 = vadd.f32 %v10380_v17, %v4858_v8  ;;  %v5816_v4 = vld [vmem:[#allocation20] sm:$0xff]  ;;  %v4832_v1 = vadd.f32 %v10355_v49, %v10598_v13  ;;  %v6149_v6 = vld [vmem:[#allocation20 + $0xa68] sm:$0xff]  ;;  %v4919_v49 = vadd.f32 %v10394_v44, %v10608_v41  ;;  %v6194_v44 = vld [vmem:[#allocation20 + $0xbd0] sm:$0xff] }
 0x8da   : > { %6470 = vmatpush.msra.mxu1 %v5921_v7  ;;  %6499 = vmatpush.msra.mxu2 %v5969_v16  ;;  %v4745_v7 = vadd.f32 %v10352_v27, %v10590_v11  ;;  %v5960_v17 = vld [vmem:[#allocation20 + $0x480] sm:$0xff]  ;;  %v10638_v24 = vmax.f32 %v4800_v58, 0.0  ;;  %v10644_v27 = vmax.f32 %v4974_v53, 0.0  ;;  %v6146_v58 = vld [vmem:[#allocation20 + $0xa50] sm:$0xff] }
 0x8db   : > { %6413 = vmatpush.msrb.mxu3 %v5822_v20  ;;  %6442 = vmatpush.msra.mxu0 %v5870_v29  ;;  %v10636_v59 = vpop.f32.mrf.mxu0  ;;  %v10642_v8 = vmax.f32 %v4887_v51, 0.0  ;;  %v10647_v20 = vmax.f32 %v5061_v18, 0.0  ;;  %v5006_v29 = vadd.f32 %v10436_v38, %v10603_v50  ;;  %v4861_v53 = vadd.f32 %v10399_v10, %v4832_v1  ;;  %v6098_v38 = vld [vmem:[#allocation20 + $0x8d0] sm:$0xff]  ;;  %v6047_v10 = vld [vmem:[#allocation20 + $0x738] sm:$0xff] }
 0x8dc   : > { %6471 = vmatpush.msra.mxu1 %v5918_v55  ;;  %6500 = vmatpush.msra.mxu2 %v5966_v31  ;;  %v4774_v16 = vadd.f32 %v10348_v15, %v4745_v7  ;;  %v6101_v55 = vld [vmem:[#allocation20 + $0x8e8] sm:$0xff]  ;;  %v6050_v31 = vld [vmem:[#allocation20 + $0x750] sm:$0xff] }
 0x8dd   : > { %6414 = vmatpush.msrb.mxu3 %v5819_v32  ;;  %6443 = vmatpush.msra.mxu0 %v5867_v28  ;;  %11582 = vst [vmem:[#allocation91_spill] sm:$0xff] %v10647_v20  ;;  %v6197_v15 = vld [vmem:[#allocation20 + $0xbe8] sm:$0xff]  ;;  %v10657_v32 = vpop.f32.mrf.mxu1  ;;  %v4948_v28 = vadd.f32 %v10402_v54, %v4919_v49  ;;  %v5035_v51 = vadd.f32 %v10441_v0, %v5006_v29  ;;  %v6191_v54 = vld [vmem:[#allocation20 + $0xbb8] sm:$0xff]  ;;  %v6092_v0 = vld [vmem:[#allocation20 + $0x8a0] sm:$0xff] }
 0x8de   : > { %6472 = vmatpush.msra.mxu1 %v5915_v19  ;;  %6501 = vmatpush.msra.mxu2 %v5963_v45  ;;  %v6095_v45 = vld [vmem:[#allocation20 + $0x8b8] sm:$0xff]  ;;  %v4803_v7 = vadd.f32 %v10350_v43, %v4774_v16  ;;  %v4890_v18 = vadd.f32 %v10392_v61, %v4861_v53  ;;  %v6188_v43 = vld [vmem:[#allocation20 + $0xba0] sm:$0xff]  ;;  %v5009_v49 = vadd.f32 %v10448_v35, %v10603_v50  ;;  %v6089_v53 = vld [vmem:[#allocation20 + $0x888] sm:$0xff] }
 0x8df   : > { %6415 = vmatpush.msrb.mxu3 %v5816_v4  ;;  %6444 = vmatpush.msra.mxu0 %v5864_v52  ;;  %v6143_v4 = vld [vmem:[#allocation20 + $0xa38] sm:$0xff]  ;;  %v4977_v52 = vadd.f32 %v10444_v57, %v4948_v28  ;;  %v5064_v1 = vadd.f32 %v10446_v48, %v5035_v51  ;;  %v4835_v57 = vadd.f32 %v10366_v60, %v10598_v13  ;;  %v6086_v35 = vld [vmem:[#allocation20 + $0x870] sm:$0xff] }
 0x8e0   : > { %6473 = vmatpush.msra.mxu1 %v5912_v12  ;;  %6502 = vmatpush.msra.mxu2 %v5960_v17  ;;  %v10660_v25 = vpop.f32.mrf.mxu3  ;;  %v6044_v12 = vld [vmem:[#allocation20 + $0x720] sm:$0xff]  ;;  %v4748_v17 = vadd.f32 %v10364_v23, %v10590_v11  ;;  %v10674_v61 = vmax.f32 %v4803_v7, 0.0  ;;  %v10680_v48 = vmax.f32 %v4890_v18, 0.0  ;;  %v6041_v23 = vld [vmem:[#allocation20 + $0x708] sm:$0xff]  ;;  %v4922_v60 = vadd.f32 %v10406_v42, %v10608_v41  ;;  %v6182_v42 = vld [vmem:[#allocation20 + $0xb70] sm:$0xff] }
 0x8e1   : > { %6416 = vmatmul.f32.vlgmr.msrb.gmra.mxu3 %v10638_v24  ;;  %6445 = vmatmul.f32.vlgmr.msra.gmra.mxu0 %v10642_v8  ;;  %v10678_v16 = vmax.f32 %v4977_v52, 0.0  ;;  %v6131_v7 = vld [vmem:[#allocation20 + $0x9d8] sm:$0xff] }
 0x8e2   : > { %6474 = vmatmul.f32.vlgmr.msra.gmra.mxu1 %v10644_v27  ;;  %6503 = vmatmul.f32.vlgmr.msra.gmra.mxu2 %v10647_v20  ;;  %v10663_v19 = vpop.f32.mrf.mxu2 }
 0x8e3   : > { %6516 = vmatpush.msra.mxu3 %v6053_v9  ;;  %6545 = vmatpush.msrb.mxu0 %v6101_v55  ;;  %v6140_v9 = vld [vmem:[#allocation20 + $0xa20] sm:$0xff]  ;;  %11583 = vst [vmem:[#allocation92_spill] sm:$0xff] %v10678_v16  ;;  %v4777_v55 = vadd.f32 %v10359_v21, %v4748_v17  ;;  %v6185_v21 = vld [vmem:[#allocation20 + $0xb88] sm:$0xff]  ;;  %v11585_v17 = vld [vmem:[#allocation47_spill] sm:$0xff] }
 0x8e4   : > { %6574 = vmatpush.msrb.mxu1 %v6149_v6  ;;  %6603 = vmatpush.msrb.mxu2 %v6197_v15  ;;  %v10683_v6 = vmax.f32 %v5064_v1, 0.0  ;;  %v6137_v15 = vld [vmem:[#allocation20 + $0xa08] sm:$0xff]  ;;  %v4751_v1 = vadd.f32 %v11585_v17, %v10590_v11 }
 0x8e5   : > { %6517 = vmatpush.msra.mxu3 %v6050_v31  ;;  %6546 = vmatpush.msrb.mxu0 %v6098_v38  ;;  %v10672_v29 = vpop.f32.mrf.mxu0  ;;  %v4864_v31 = vadd.f32 %v10408_v22, %v4835_v57  ;;  %v6038_v38 = vld [vmem:[#allocation20 + $0x6f0] sm:$0xff]  ;;  %v6035_v22 = vld [vmem:[#allocation20 + $0x6d8] sm:$0xff]  ;;  %v4806_v18 = vadd.f32 %v10362_v37, %v4777_v55  ;;  %v6176_v37 = vld [vmem:[#allocation20 + $0xb40] sm:$0xff] }
 0x8e6   : > { %6575 = vmatpush.msrb.mxu1 %v6146_v58  ;;  %6604 = vmatpush.msrb.mxu2 %v6194_v44  ;;  %11584 = vst [vmem:[#allocation93_spill] sm:$0xff] %v10683_v6  ;;  %v10693_v58 = vpop.f32.mrf.mxu1  ;;  %v6134_v44 = vld [vmem:[#allocation20 + $0x9f0] sm:$0xff] }
 0x8e7   : > { %6518 = vmatpush.msra.mxu3 %v6047_v10  ;;  %6547 = vmatpush.msrb.mxu0 %v6095_v45  ;;  %v4951_v10 = vadd.f32 %v10411_v63, %v4922_v60  ;;  %v5038_v45 = vadd.f32 %v10453_v36, %v5009_v49  ;;  %v4893_v52 = vadd.f32 %v10404_v14, %v4864_v31  ;;  %v6179_v63 = vld [vmem:[#allocation20 + $0xb58] sm:$0xff]  ;;  %v6080_v36 = vld [vmem:[#allocation20 + $0x840] sm:$0xff]  ;;  %v10710_v14 = vmax.f32 %v4806_v18, 0.0  ;;  %v6029_v49 = vld [vmem:[#allocation20 + $0x6a8] sm:$0xff] }
 0x8e8   : > { %6576 = vmatpush.msrb.mxu1 %v6143_v4  ;;  %6605 = vmatpush.msrb.mxu2 %v6191_v54  ;;  %v6083_v4 = vld [vmem:[#allocation20 + $0x858] sm:$0xff]  ;;  %v11591_v31 = vld [vmem:[#allocation54_spill] sm:$0xff] }
 0x8e9   : > { %6519 = vmatpush.msra.mxu3 %v6044_v12  ;;  %6548 = vmatpush.msrb.mxu0 %v6092_v0  ;;  %v4980_v54 = vadd.f32 %v10456_v2, %v4951_v10  ;;  %v6032_v12 = vld [vmem:[#allocation20 + $0x6c0] sm:$0xff]  ;;  %v10716_v11 = vmax.f32 %v4893_v52, 0.0  ;;  %v11593_v10 = vld [vmem:[#allocation51_spill] sm:$0xff] }
 0x8ea   : > { %6577 = vmatpush.msrb.mxu1 %v6140_v9  ;;  %6606 = vmatpush.msrb.mxu2 %v6188_v43  ;;  %v10695_v28 = vpop.f32.mrf.mxu3  ;;  %v11586_v0 = vld [vmem:[#allocation53_spill] sm:$0xff]  ;;  %v11587_v2 = vld [vmem:[#allocation48_spill] sm:$0xff]  ;;  %v6074_v18 = vld [vmem:[#allocation20 + $0x810] sm:$0xff] }
 0x8eb   : > { %6419 = vmatmul.f32.gmra.mxu3 %v10674_v61  ;;  %6448 = vmatmul.f32.gmra.mxu0 %v10680_v48  ;;  %v5067_v9 = vadd.f32 %v11586_v0, %v5038_v45  ;;  %v6128_v43 = vld [vmem:[#allocation20 + $0x9c0] sm:$0xff]  ;;  %v10714_v55 = vmax.f32 %v4980_v54, 0.0  ;;  %v6026_v45 = vld [vmem:[#allocation20 + $0x690] sm:$0xff] }
 0x8ec   : > { %6477 = vmatmul.f32.gmra.mxu1 %v10678_v16  ;;  %6506 = vmatmul.f32.gmra.mxu2 %v10683_v6  ;;  %v10699_v51 = vpop.f32.mrf.mxu2  ;;  %v11594_v52 = vld [vmem:[#allocation52_spill] sm:$0xff] }
 0x8ed   : > { %6520 = vmatpush.msra.mxu3 %v6041_v23  ;;  %6549 = vmatpush.msrb.mxu0 %v6089_v53  ;;  %v4838_v23 = vadd.f32 %v11587_v2, %v10598_v13  ;;  %11588 = vst [vmem:[#allocation47_spill] sm:$0xff] %v10714_v55  ;;  %v11589_v53 = vld [vmem:[#allocation33_spill] sm:$0xff]  ;;  %v10719_v60 = vmax.f32 %v5067_v9, 0.0  ;;  %v11592_v13 = vld [vmem:[#allocation50_spill] sm:$0xff]  ;;  %v6071_v9 = vld [vmem:[#allocation20 + $0x7f8] sm:$0xff] }
 0x8ee   : > { %6578 = vmatpush.msrb.mxu1 %v6137_v15  ;;  %6607 = vmatpush.msrb.mxu2 %v6185_v21  ;;  %v4780_v15 = vadd.f32 %v11589_v53, %v4751_v1  ;;  %v5012_v21 = vadd.f32 %v11591_v31, %v10603_v50  ;;  %v10734_v50 = vperm.slane %v10582_v3, 4  ;;  %v11595_v1 = vld [vmem:[#allocation55_spill] sm:$0xff]  ;;  %v11597_v2 = vld [vmem:[#allocation49_spill] sm:$0xff]  ;;  %v10745_v31 = vperm.slane %v10582_v3, 5 }
 0x8ef   : > { %6521 = vmatpush.msra.mxu3 %v6038_v38  ;;  %6550 = vmatpush.msrb.mxu0 %v6086_v35  ;;  %v10708_v57 = vpop.f32.mrf.mxu0  ;;  %11590 = vst [vmem:[#allocation53_spill] sm:$0xff] %v10719_v60  ;;  %v6077_v38 = vld [vmem:[#allocation20 + $0x828] sm:$0xff] }
 0x8f0   : > { %6579 = vmatpush.msrb.mxu1 %v6134_v44  ;;  %6608 = vmatpush.msrb.mxu2 %v6182_v42  ;;  %v6125_v35 = vld [vmem:[#allocation20 + $0x9a8] sm:$0xff]  ;;  %v4925_v44 = vadd.f32 %v11592_v13, %v10608_v41  ;;  %v4867_v42 = vadd.f32 %v11593_v10, %v4838_v23  ;;  %v6122_v41 = vld [vmem:[#allocation20 + $0x990] sm:$0xff]  ;;  %v5041_v0 = vadd.f32 %v11595_v1, %v5012_v21  ;;  %v11600_v21 = vld [vmem:[#allocation60_spill] sm:$0xff] }
 0x8f1   : > { %6522 = vmatpush.msra.mxu3 %v6035_v22  ;;  %6551 = vmatpush.msrb.mxu0 %v6083_v4  ;;  %v6173_v22 = vld [vmem:[#allocation20 + $0xb28] sm:$0xff]  ;;  %v10729_v4 = vpop.f32.mrf.mxu1  ;;  %v5090_v10 = vadd.f32 %v11600_v21, %v10734_v50 }
 0x8f2   : > { %6580 = vmatpush.msrb.mxu1 %v6131_v7  ;;  %6609 = vmatpush.msrb.mxu2 %v6179_v63  ;;  %v4954_v54 = vadd.f32 %v11594_v52, %v4925_v44  ;;  %v6170_v63 = vld [vmem:[#allocation20 + $0xb10] sm:$0xff]  ;;  %v4896_v23 = vadd.f32 %v11597_v2, %v4867_v42  ;;  %v11599_v13 = vld [vmem:[#allocation57_spill] sm:$0xff]  ;;  %v10756_v52 = vperm.slane %v10582_v3, 6 }
 0x8f3   : > { %6523 = vmatpush.msra.mxu3 %v6032_v12  ;;  %6552 = vmatpush.msrb.mxu0 %v6080_v36  ;;  %v6023_v12 = vld [vmem:[#allocation20 + $0x678] sm:$0xff]  ;;  %v5070_v44 = vadd.f32 %v11599_v13, %v5041_v0  ;;  %v6116_v42 = vld [vmem:[#allocation20 + $0x960] sm:$0xff]  ;;  %v6017_v0 = vld [vmem:[#allocation20 + $0x648] sm:$0xff] }
 0x8f4   : > { %6581 = vmatpush.msrb.mxu1 %v6128_v43  ;;  %6610 = vmatpush.msrb.mxu2 %v6176_v37  ;;  %v10731_v7 = vpop.f32.mrf.mxu3  ;;  %v6119_v36 = vld [vmem:[#allocation20 + $0x978] sm:$0xff]  ;;  %v11596_v43 = vld [vmem:[#allocation46_spill] sm:$0xff]  ;;  %v11602_v1 = vld [vmem:[#allocation61_spill] sm:$0xff] }
 0x8f5   : > { %6422 = vmatmul.f32.gmra.mxu3 %v10710_v14  ;;  %6451 = vmatmul.f32.gmra.mxu0 %v10716_v11  ;;  %v4809_v37 = vadd.f32 %v11596_v43, %v4780_v15  ;;  %v6068_v15 = vld [vmem:[#allocation20 + $0x7e0] sm:$0xff]  ;;  %v10766_v43 = vmax.f32 %v5070_v44, 0.0  ;;  %v6113_v2 = vld [vmem:[#allocation20 + $0x948] sm:$0xff]  ;;  %v6014_v13 = vld [vmem:[#allocation20 + $0x630] sm:$0xff] }
 0x8f6   : > { %6480 = vmatmul.f32.gmra.mxu1 %v10714_v55  ;;  %6509 = vmatmul.f32.gmra.mxu2 %v10719_v60  ;;  %v10738_v17 = vpop.f32.mrf.mxu2  ;;  %v6107_v60 = vld [vmem:[#allocation20 + $0x918] sm:$0xff]  ;;  %v11610_v55 = vld [vmem:[#allocation74_spill] sm:$0xff] }
 0x8f7   : > { %6524 = vmatpush.msra.mxu3 %v6029_v49  ;;  %6553 = vmatpush.msrb.mxu0 %v6077_v38  ;;  %v11598_v49 = vld [vmem:[#allocation56_spill] sm:$0xff]  ;;  %11603 = vst [vmem:[#allocation33_spill] sm:$0xff] %v10766_v43 }
 0x8f8   : > { %6582 = vmatpush.msrb.mxu1 %v6125_v35  ;;  %6611 = vmatpush.msrb.mxu2 %v6173_v22  ;;  %v4983_v53 = vadd.f32 %v11598_v49, %v4954_v54  ;;  %v6167_v38 = vld [vmem:[#allocation20 + $0xaf8] sm:$0xff]  ;;  %v6020_v35 = vld [vmem:[#allocation20 + $0x660] sm:$0xff]  ;;  %v10751_v22 = vperm.slane %v10582_v3, 7  ;;  %v11604_v3 = vld [vmem:[#allocation58_spill] sm:$0xff] }
 0x8f9   : > { %6525 = vmatpush.msra.mxu3 %v6026_v45  ;;  %6554 = vmatpush.msrb.mxu0 %v6074_v18  ;;  %v10753_v45 = vpop.f32.mrf.mxu0  ;;  %v6164_v18 = vld [vmem:[#allocation20 + $0xae0] sm:$0xff]  ;;  %v11605_v49 = vld [vmem:[#allocation75_spill] sm:$0xff]  ;;  %v10777_v44 = vpop.f32.mrf.mxu1 }
 0x8fa   : > { %6583 = vmatpush.msrb.mxu1 %v6122_v41  ;;  %6612 = vmatpush.msrb.mxu2 %v6170_v63  ;;  %v10758_v41 = vmax.f32 %v4809_v37, 0.0  ;;  %v10760_v54 = vmax.f32 %v4983_v53, 0.0  ;;  %v5177_v63 = vadd.f32 %v11602_v1, %v10745_v31  ;;  %v6065_v37 = vld [vmem:[#allocation20 + $0x7c8] sm:$0xff]  ;;  %v5264_v53 = vadd.f32 %v11605_v49, %v10756_v52  ;;  %v6011_v1 = vld [vmem:[#allocation20 + $0x618] sm:$0xff] }
 0x8fb   : > { %6526 = vmatpush.msra.mxu3 %v6023_v12  ;;  %6555 = vmatpush.msrb.mxu0 %v6071_v9  ;;  %v10764_v12 = vmax.f32 %v4896_v23, 0.0  ;;  %v5119_v9 = vadd.f32 %v11604_v3, %v5090_v10  ;;  %v6161_v23 = vld [vmem:[#allocation20 + $0xac8] sm:$0xff]  ;;  %v6110_v10 = vld [vmem:[#allocation20 + $0x930] sm:$0xff] }
 0x8fc   : > { %6584 = vmatpush.msrb.mxu1 %v6119_v36  ;;  %6613 = vmatpush.msrb.mxu2 %v6167_v38  ;;  %11601 = vst [vmem:[#allocation48_spill] sm:$0xff] %v10760_v54  ;;  %v5351_v36 = vadd.f32 %v10568_v47, %v10751_v22  ;;  %v11606_v38 = vld [vmem:[#allocation76_spill] sm:$0xff]  ;;  %v6062_v47 = vld [vmem:[#allocation20 + $0x7b0] sm:$0xff] }
 0x8fd   : > { %6527 = vmatpush.msra.mxu3 %v6020_v35  ;;  %6556 = vmatpush.msrb.mxu0 %v6068_v15  ;;  %v5206_v35 = vadd.f32 %v11606_v38, %v5177_v63  ;;  %v11607_v15 = vld [vmem:[#allocation77_spill] sm:$0xff]  ;;  %v11608_v3 = vld [vmem:[#allocation59_spill] sm:$0xff] }
 0x8fe   : > { %6585 = vmatpush.msrb.mxu1 %v6116_v42  ;;  %6614 = vmatpush.msrb.mxu2 %v6164_v18  ;;  %v10779_v21 = vpop.f32.mrf.mxu3  ;;  %v5293_v42 = vadd.f32 %v11607_v15, %v5264_v53  ;;  %v6158_v18 = vld [vmem:[#allocation20 + $0xab0] sm:$0xff]  ;;  %v5148_v49 = vadd.f32 %v11608_v3, %v5119_v9  ;;  %v5380_v38 = vadd.f32 %v10573_v62, %v5351_v36  ;;  %v6008_v53 = vld [vmem:[#allocation20 + $0x600] sm:$0xff] }
 0x8ff   : > { %6425 = vmatmul.f32.gmra.mxu3 %v10758_v41  ;;  %6454 = vmatmul.f32.gmra.mxu0 %v10764_v12  ;;  %v5235_v6 = vadd.f32 %v11610_v55, %v5206_v35  ;;  %v6056_v62 = vld [vmem:[#allocation20 + $0x780] sm:$0xff] }
 0x900   : > { %6483 = vmatmul.f32.gmra.mxu1 %v10760_v54  ;;  %6512 = vmatmul.f32.gmra.mxu2 %v10766_v43  ;;  %v10783_v63 = vpop.f32.mrf.mxu2  ;;  %v6059_v54 = vld [vmem:[#allocation20 + $0x798] sm:$0xff]  ;;  %v5409_v15 = vadd.f32 %v10578_v30, %v5380_v38  ;;  %v6104_v9 = vld [vmem:[#allocation20 + $0x900] sm:$0xff]  ;;  %v10796_v35 = vmax.f32 %v5148_v49, 0.0  ;;  %v11612_v30 = vld [vmem:[#allocation62_spill] sm:$0xff] }
 0x901   : > { %6528 = vmatpush.msra.mxu3 %v6017_v0  ;;  %6557 = vmatpush.msrb.mxu0 %v6065_v37  ;;  %v11609_v0 = vld [vmem:[#allocation64_spill] sm:$0xff]  ;;  %v5322_v37 = vadd.f32 %v10576_v46, %v5293_v42  ;;  %v5354_v46 = vadd.f32 %v10580_v34, %v10751_v22  ;;  %v6293_v34 = vld [vmem:[#allocation20 + $0xee8] sm:$0xff] }
 0x902   : > { %6586 = vmatpush.msrb.mxu1 %v6113_v2  ;;  %6615 = vmatpush.msrb.mxu2 %v6161_v23  ;;  %v5093_v43 = vadd.f32 %v11609_v0, %v10734_v50  ;;  %v6155_v2 = vld [vmem:[#allocation20 + $0xa98] sm:$0xff]  ;;  %v11611_v23 = vld [vmem:[#allocation65_spill] sm:$0xff]  ;;  %v10808_v49 = vmax.f32 %v5409_v15, 0.0  ;;  %v11619_v15 = vld [vmem:[#allocation78_spill] sm:$0xff] }
 0x903   : > { %6529 = vmatpush.msra.mxu3 %v6014_v13  ;;  %6558 = vmatpush.msrb.mxu0 %v6062_v47  ;;  %v10792_v36 = vpop.f32.mrf.mxu0  ;;  %v5180_v13 = vadd.f32 %v11611_v23, %v10745_v31  ;;  %v6152_v55 = vld [vmem:[#allocation20 + $0xa80] sm:$0xff]  ;;  %v11620_v23 = vld [vmem:[#allocation63_spill] sm:$0xff] }
 0x904   : > { %6587 = vmatpush.msrb.mxu1 %v6110_v10  ;;  %6616 = vmatpush.msrb.mxu2 %v6158_v18  ;;  %v5122_v47 = vadd.f32 %v11612_v30, %v5093_v43  ;;  %v10801_v10 = vmax.f32 %v5235_v6, 0.0  ;;  %v11614_v42 = vld [vmem:[#allocation80_spill] sm:$0xff]  ;;  %11617 = vst [vmem:[#allocation51_spill] sm:$0xff] %v10808_v49  ;;  %v6242_v6 = vld [vmem:[#allocation20 + $0xd50] sm:$0xff]  ;;  %v10813_v43 = vpop.f32.mrf.mxu1  ;;  %v11618_v0 = vld [vmem:[#allocation81_spill] sm:$0xff] }
 0x905   : > { %6530 = vmatpush.msra.mxu3 %v6011_v1  ;;  %6559 = vmatpush.msrb.mxu0 %v6059_v54  ;;  %v5209_v18 = vadd.f32 %v11614_v42, %v5180_v13  ;;  %v10804_v1 = vmax.f32 %v5322_v37, 0.0  ;;  %v6245_v54 = vld [vmem:[#allocation20 + $0xd68] sm:$0xff]  ;;  %v11621_v30 = vld [vmem:[#allocation68_spill] sm:$0xff] }
 0x906   : > { %6588 = vmatpush.msrb.mxu1 %v6107_v60  ;;  %6617 = vmatpush.msrb.mxu2 %v6155_v2  ;;  %11613 = vst [vmem:[#allocation54_spill] sm:$0xff] %v10801_v10  ;;  %v11616_v60 = vld [vmem:[#allocation79_spill] sm:$0xff]  ;;  %v5383_v2 = vadd.f32 %v10587_v26, %v5354_v46  ;;  %v5151_v13 = vadd.f32 %v11620_v23, %v5122_v47  ;;  %v11622_v46 = vld [vmem:[#allocation69_spill] sm:$0xff] }
 0x907   : > { %6531 = vmatpush.msra.mxu3 %v6008_v53  ;;  %11615 = vst [vmem:[#allocation50_spill] sm:$0xff] %v10804_v1  ;;  %6560 = vmatpush.msrb.mxu0 %v6056_v62  ;;  %v5267_v3 = vadd.f32 %v11616_v60, %v10756_v52  ;;  %v6290_v53 = vld [vmem:[#allocation20 + $0xed0] sm:$0xff]  ;;  %v5238_v62 = vadd.f32 %v11619_v15, %v5209_v18  ;;  %v6287_v26 = vld [vmem:[#allocation20 + $0xeb8] sm:$0xff] }
 0x908   : > { %6589 = vmatpush.msrb.mxu1 %v6104_v9  ;;  %6618 = vmatpush.msrb.mxu2 %v6152_v55  ;;  %v10815_v38 = vpop.f32.mrf.mxu3  ;;  %v6239_v9 = vld [vmem:[#allocation20 + $0xd38] sm:$0xff]  ;;  %v5096_v42 = vadd.f32 %v11621_v30, %v10734_v50  ;;  %v10835_v23 = vmax.f32 %v5151_v13, 0.0  ;;  %v6230_v13 = vld [vmem:[#allocation20 + $0xcf0] sm:$0xff] }
 0x909   : > { %6532 = vmatmul.f32.vlgmr.msra.gmra.mxu3 %v10796_v35  ;;  %6561 = vmatmul.f32.vlgmr.msrb.gmra.mxu0 %v10801_v10  ;;  %v5296_v37 = vadd.f32 %v11618_v0, %v5267_v3  ;;  %v5412_v3 = vadd.f32 %v10595_v56, %v5383_v2  ;;  %v6236_v0 = vld [vmem:[#allocation20 + $0xd20] sm:$0xff]  ;;  %v11626_v56 = vld [vmem:[#allocation66_spill] sm:$0xff] }
 0x90a   : > { %6590 = vmatmul.f32.vlgmr.msrb.gmra.mxu1 %v10804_v1  ;;  %6619 = vmatmul.f32.vlgmr.msrb.gmra.mxu2 %v10808_v49  ;;  %v10822_v55 = vpop.f32.mrf.mxu2  ;;  %11624 = vst [vmem:[#allocation52_spill] sm:$0xff] %v10835_v23  ;;  %v6227_v1 = vld [vmem:[#allocation20 + $0xcd8] sm:$0xff]  ;;  %v6278_v10 = vld [vmem:[#allocation20 + $0xe70] sm:$0xff] }
 0x90b   : > { %6632 = vmatpush.msrb.mxu3 %v6245_v54  ;;  %6661 = vmatpush.msra.mxu0 %v6293_v34  ;;  %v5325_v60 = vadd.f32 %v10593_v39, %v5296_v37  ;;  %v5183_v54 = vadd.f32 %v11622_v46, %v10745_v31  ;;  %v11623_v34 = vld [vmem:[#allocation89_spill] sm:$0xff]  ;;  %v10837_v39 = vmax.f32 %v5238_v62, 0.0  ;;  %v11627_v37 = vld [vmem:[#allocation83_spill] sm:$0xff]  ;;  %v11630_v62 = vld [vmem:[#allocation84_spill] sm:$0xff] }
 0x90c   : > { %v5357_v15 = vadd.f32 %v11623_v34, %v10751_v22  ;;  %v5270_v2 = vadd.f32 %v11627_v37, %v10756_v52 }
 0x90d   : > { %6633 = vmatpush.msrb.mxu3 %v6242_v6  ;;  %6662 = vmatpush.msra.mxu0 %v6290_v53  ;;  %v10830_v18 = vpop.f32.mrf.mxu0  ;;  %v5212_v47 = vadd.f32 %v10552_v40, %v5183_v54  ;;  %11625 = vst [vmem:[#allocation55_spill] sm:$0xff] %v10837_v39  ;;  %v5125_v6 = vadd.f32 %v11626_v56, %v5096_v42  ;;  %v10842_v30 = vmax.f32 %v5325_v60, 0.0  ;;  %v10844_v53 = vmax.f32 %v5412_v3, 0.0  ;;  %v6284_v40 = vld [vmem:[#allocation20 + $0xea0] sm:$0xff]  ;;  %v6281_v42 = vld [vmem:[#allocation20 + $0xe88] sm:$0xff]  ;;  %v10855_v37 = vpop.f32.mrf.mxu1 }
 0x90e   : > { %v5299_v46 = vadd.f32 %v11630_v62, %v5270_v2  ;;  %v6389_v60 = vld [vmem:[#allocation20 + $0x11e8] sm:$0xff]  ;;  %v11631_v3 = vld [vmem:[#allocation72_spill] sm:$0xff]  ;;  %v5386_v56 = vadd.f32 %v10621_v33, %v5357_v15  ;;  %v6338_v2 = vld [vmem:[#allocation20 + $0x1050] sm:$0xff] }
 0x90f   : > { %6634 = vmatpush.msrb.mxu3 %v6239_v9  ;;  %6663 = vmatpush.msra.mxu0 %v6287_v26  ;;  %11628 = vst [vmem:[#allocation46_spill] sm:$0xff] %v10842_v30  ;;  %v6233_v9 = vld [vmem:[#allocation20 + $0xd08] sm:$0xff]  ;;  %v5099_v54 = vadd.f32 %v11631_v3, %v10734_v50  ;;  %v6386_v62 = vld [vmem:[#allocation20 + $0x11d0] sm:$0xff]  ;;  %v10864_v15 = vld [vmem:[#allocation18 + $0x8] sm:$0xf] }
 0x910   : > { %11629 = vst [vmem:[#allocation49_spill] sm:$0xff] %v10844_v53  ;;  %v6341_v26 = vld [vmem:[#allocation20 + $0x1068] sm:$0xff]  ;;  %6719 = vmatpush.msra.mxu2 %v6389_v60  ;;  %v5415_v33 = vadd.f32 %v10627_v5, %v5386_v56  ;;  %v6383_v3 = vld [vmem:[#allocation20 + $0x11b8] sm:$0xff] }
 0x911   : > { %6635 = vmatpush.msrb.mxu3 %v6236_v0  ;;  %6564 = vmatmul.f32.gmra.mxu0 %v10837_v39  ;;  %v11632_v0 = vld [vmem:[#allocation82_spill] sm:$0xff]  ;;  %v11634_v39 = vld [vmem:[#allocation67_spill] sm:$0xff]  ;;  %v11635_v50 = vld [vmem:[#allocation73_spill] sm:$0xff] }
 0x912   : > { %6535 = vmatmul.f32.gmra.mxu3 %v10835_v23  ;;  %6593 = vmatmul.f32.gmra.mxu1 %v10842_v30  ;;  %v5241_v34 = vadd.f32 %v11632_v0, %v5212_v47  ;;  %v10857_v49 = vpop.f32.mrf.mxu3  ;;  %v11633_v30 = vld [vmem:[#allocation90_spill] sm:$0xff]  ;;  %v5154_v16 = vadd.f32 %v11634_v39, %v5125_v6  ;;  %v5186_v47 = vadd.f32 %v11635_v50, %v10745_v31  ;;  %v10879_v0 = vperm.slane %v10864_v15, 0 }
 0x913   : > { %6622 = vmatmul.f32.gmra.mxu2 %v10844_v53  ;;  %6636 = vmatpush.msrb.mxu3 %v6233_v9  ;;  %v5328_v53 = vadd.f32 %v11633_v30, %v5299_v46  ;;  %v6224_v30 = vld [vmem:[#allocation20 + $0xcc0] sm:$0xff]  ;;  %v11636_v39 = vld [vmem:[#allocation70_spill] sm:$0xff]  ;;  %v11637_v46 = vld [vmem:[#allocation87_spill] sm:$0xff]  ;;  %v5360_v31 = vadd.f32 %v10636_v59, %v10751_v22  ;;  %v10885_v59 = vmax.f32 %v5415_v33, 0.0 }
 0x914   : > { %6664 = vmatpush.msra.mxu0 %v6284_v40  ;;  %6690 = vmatpush.msra.mxu1 %v6341_v26  ;;  %v10866_v9 = vpop.f32.mrf.mxu2  ;;  %v6335_v40 = vld [vmem:[#allocation20 + $0x1038] sm:$0xff]  ;;  %v5128_v6 = vadd.f32 %v11636_v39, %v5099_v54  ;;  %v5215_v26 = vadd.f32 %v11637_v46, %v5186_v47  ;;  %v10872_v5 = vmax.f32 %v5241_v34, 0.0  ;;  %v10881_v56 = vmax.f32 %v5154_v16, 0.0  ;;  %v6221_v54 = vld [vmem:[#allocation20 + $0xca8] sm:$0xff]  ;;  %v6218_v16 = vld [vmem:[#allocation20 + $0xc90] sm:$0xff] }
 0x915   : > { %6637 = vmatpush.msrb.mxu3 %v6230_v13  ;;  %6720 = vmatpush.msra.mxu2 %v6386_v62  ;;  %v11639_v13 = vld [vmem:[#allocation86_spill] sm:$0xff]  ;;  %v10876_v60 = vmax.f32 %v5328_v53, 0.0  ;;  %11642 = vst [vmem:[#allocation61_spill] sm:$0xff] %v10885_v59  ;;  %v6275_v22 = vld [vmem:[#allocation20 + $0xe58] sm:$0xff]  ;;  %v6380_v53 = vld [vmem:[#allocation20 + $0x11a0] sm:$0xff]  ;;  %v5389_v50 = vadd.f32 %v10657_v32, %v5360_v31 }
 0x916   : > { %6665 = vmatpush.msra.mxu0 %v6281_v42  ;;  %6691 = vmatpush.msra.mxu1 %v6338_v2  ;;  %11638 = vst [vmem:[#allocation56_spill] sm:$0xff] %v10872_v5  ;;  %v5273_v42 = vadd.f32 %v11639_v13, %v10756_v52  ;;  %v11643_v52 = vld [vmem:[#allocation88_spill] sm:$0xff]  ;;  %v11644_v34 = vld [vmem:[#allocation85_spill] sm:$0xff]  ;;  %v11645_v39 = vld [vmem:[#allocation71_spill] sm:$0xff] }
 0x917   : > { %6638 = vmatpush.msrb.mxu3 %v6227_v1  ;;  %11640 = vst [vmem:[#allocation57_spill] sm:$0xff] %v10876_v60  ;;  %v10883_v2 = vpop.f32.mrf.mxu0  ;;  %6721 = vmatpush.msra.mxu2 %v6383_v3  ;;  %v5244_v62 = vadd.f32 %v11644_v34, %v5215_v26  ;;  %v6272_v47 = vld [vmem:[#allocation20 + $0xe40] sm:$0xff]  ;;  %v6329_v33 = vld [vmem:[#allocation20 + $0x1008] sm:$0xff]  ;;  %v5438_v3 = vadd.f32 %v10695_v28, %v10879_v0  ;;  %v10899_v31 = vpop.f32.mrf.mxu1  ;;  %v10904_v28 = vperm.slane %v10864_v15, 1  ;;  %v6374_v34 = vld [vmem:[#allocation20 + $0x1170] sm:$0xff] }
 0x918   : > { %6666 = vmatpush.msra.mxu0 %v6278_v10  ;;  %11641 = vst [vmem:[#allocation60_spill] sm:$0xff] %v10881_v56  ;;  %6692 = vmatpush.msra.mxu1 %v6335_v40  ;;  %v6332_v10 = vld [vmem:[#allocation20 + $0x1020] sm:$0xff]  ;;  %v5302_v1 = vadd.f32 %v11643_v52, %v5273_v42  ;;  %v5157_v46 = vadd.f32 %v11645_v39, %v5128_v6  ;;  %v6377_v13 = vld [vmem:[#allocation20 + $0x1188] sm:$0xff]  ;;  %v6203_v39 = vld [vmem:[#allocation20 + $0xc18] sm:$0xff] }
 0x919   : > { %6639 = vmatpush.msrb.mxu3 %v6224_v30  ;;  %6567 = vmatmul.f32.gmra.mxu0 %v10872_v5  ;;  %v6215_v30 = vld [vmem:[#allocation20 + $0xc78] sm:$0xff]  ;;  %v5418_v26 = vadd.f32 %v10663_v19, %v5389_v50  ;;  %v6269_v32 = vld [vmem:[#allocation20 + $0xe28] sm:$0xff]  ;;  %v10906_v6 = vmax.f32 %v5244_v62, 0.0  ;;  %v6206_v62 = vld [vmem:[#allocation20 + $0xc30] sm:$0xff] }
 0x91a   : > { %6538 = vmatmul.f32.gmra.mxu3 %v10881_v56  ;;  %6596 = vmatmul.f32.gmra.mxu1 %v10876_v60  ;;  %v5331_v40 = vadd.f32 %v10660_v25, %v5302_v1  ;;  %v6212_v25 = vld [vmem:[#allocation20 + $0xc60] sm:$0xff]  ;;  %v10913_v52 = vmax.f32 %v5157_v46, 0.0  ;;  %v6209_v1 = vld [vmem:[#allocation20 + $0xc48] sm:$0xff] }
 0x91b   : > { %6625 = vmatmul.f32.gmra.mxu2 %v10885_v59  ;;  %6640 = vmatpush.msrb.mxu3 %v6221_v54  ;;  %v6326_v54 = vld [vmem:[#allocation20 + $0xff0] sm:$0xff]  ;;  %11646 = vst [vmem:[#allocation58_spill] sm:$0xff] %v10906_v6  ;;  %v6320_v46 = vld [vmem:[#allocation20 + $0xfc0] sm:$0xff] }
 0x91c   : > { %6667 = vmatpush.msra.mxu0 %v6275_v22  ;;  %6693 = vmatpush.msra.mxu1 %v6332_v10  ;;  %v10901_v42 = vpop.f32.mrf.mxu3  ;;  %v10910_v19 = vmax.f32 %v5331_v40, 0.0  ;;  %v5467_v10 = vadd.f32 %v10672_v29, %v5438_v3  ;;  %11647 = vst [vmem:[#allocation75_spill] sm:$0xff] %v10913_v52  ;;  %v6323_v29 = vld [vmem:[#allocation20 + $0xfd8] sm:$0xff] }
 0x91d   : > { %6641 = vmatpush.msrb.mxu3 %v6218_v16  ;;  %6722 = vmatpush.msra.mxu2 %v6380_v53  ;;  %v10915_v16 = vmax.f32 %v5418_v26, 0.0  ;;  %v6266_v53 = vld [vmem:[#allocation20 + $0xe10] sm:$0xff]  ;;  %v6371_v40 = vld [vmem:[#allocation20 + $0x1158] sm:$0xff] }
 0x91e   : > { %6668 = vmatpush.msra.mxu0 %v6272_v47  ;;  %6694 = vmatpush.msra.mxu1 %v6329_v33  ;;  %v10908_v22 = vpop.f32.mrf.mxu2  ;;  %v5525_v47 = vadd.f32 %v10699_v51, %v10904_v28  ;;  %v6263_v33 = vld [vmem:[#allocation20 + $0xdf8] sm:$0xff]  ;;  %v5496_v3 = vadd.f32 %v10693_v58, %v5467_v10  ;;  %v6368_v51 = vld [vmem:[#allocation20 + $0x1140] sm:$0xff] }
 0x91f   : > { %6642 = vmatpush.msrb.mxu3 %v6215_v30  ;;  %6723 = vmatpush.msra.mxu2 %v6377_v13  ;;  %v5441_v30 = vadd.f32 %v10731_v7, %v10879_v0  ;;  %v6260_v13 = vld [vmem:[#allocation20 + $0xde0] sm:$0xff] }
 0x920   : > { %6669 = vmatpush.msra.mxu0 %v6269_v32  ;;  %6695 = vmatpush.msra.mxu1 %v6326_v54  ;;  %v5554_v26 = vadd.f32 %v10857_v49, %v5525_v47  ;;  %v6200_v32 = vld [vmem:[#allocation20 + $0xc00] sm:$0xff]  ;;  %v6317_v54 = vld [vmem:[#allocation20 + $0xfa8] sm:$0xff]  ;;  %v10933_v7 = vmax.f32 %v5496_v3, 0.0  ;;  %v6314_v47 = vld [vmem:[#allocation20 + $0xf90] sm:$0xff] }
 0x921   : > { %6643 = vmatpush.msrb.mxu3 %v6212_v25  ;;  %6570 = vmatmul.f32.gmra.mxu0 %v10906_v6  ;;  %v10920_v50 = vpop.f32.mrf.mxu0  ;;  %v6257_v25 = vld [vmem:[#allocation20 + $0xdc8] sm:$0xff]  ;;  %v10929_v58 = vpop.f32.mrf.mxu1  ;;  %v6251_v3 = vld [vmem:[#allocation20 + $0xd98] sm:$0xff] }
 0x922   : > { %6541 = vmatmul.f32.gmra.mxu3 %v10913_v52  ;;  %6599 = vmatmul.f32.gmra.mxu1 %v10910_v19  ;;  %11648 = vst [vmem:[#allocation76_spill] sm:$0xff] %v10933_v7  ;;  %v6365_v49 = vld [vmem:[#allocation20 + $0x1128] sm:$0xff] }
 0x923   : > { %6628 = vmatmul.f32.gmra.mxu2 %v10915_v16  ;;  %6644 = vmatpush.msrb.mxu3 %v6209_v1  ;;  %v5470_v1 = vadd.f32 %v10708_v57, %v5441_v30  ;;  %v5528_v57 = vadd.f32 %v10738_v17, %v10904_v28  ;;  %v6311_v30 = vld [vmem:[#allocation20 + $0xf78] sm:$0xff] }
 0x924   : > { %6670 = vmatpush.msra.mxu0 %v6266_v53  ;;  %6724 = vmatpush.msra.mxu2 %v6374_v34  ;;  %v5862_v53 = vld [vmem:[#allocation20 + $0x170] sm:$0xff]  ;;  %v5583_v34 = vadd.f32 %v10830_v18, %v5554_v26  ;;  %v5444_v18 = vadd.f32 %v10779_v21, %v10879_v0  ;;  %v6359_v26 = vld [vmem:[#allocation20 + $0x10f8] sm:$0xff] }
 0x925   : > { %6645 = vmatpush.msrb.mxu3 %v6206_v62  ;;  %6696 = vmatpush.msra.mxu1 %v6323_v29  ;;  %v6254_v62 = vld [vmem:[#allocation20 + $0xdb0] sm:$0xff]  ;;  %v5557_v17 = vadd.f32 %v10901_v42, %v5528_v57  ;;  %v5531_v57 = vadd.f32 %v10783_v63, %v10904_v28 }
 0x926   : > { %6671 = vmatpush.msra.mxu0 %v6263_v33  ;;  %6725 = vmatpush.msra.mxu2 %v6371_v40  ;;  %v10931_v10 = vpop.f32.mrf.mxu3  ;;  %v5859_v33 = vld [vmem:[#allocation20 + $0x158] sm:$0xff]  ;;  %v6362_v40 = vld [vmem:[#allocation20 + $0x1110] sm:$0xff] }
 0x927   : > { %6646 = vmatpush.msrb.mxu3 %v6203_v39  ;;  %6697 = vmatpush.msra.mxu1 %v6320_v46  ;;  %v5856_v39 = vld [vmem:[#allocation20 + $0x140] sm:$0xff]  ;;  %v5499_v46 = vadd.f32 %v10729_v4, %v5470_v1  ;;  %v5910_v21 = vld [vmem:[#allocation20 + $0x2f0] sm:$0xff]  ;;  %v5473_v4 = vadd.f32 %v10753_v45, %v5444_v18  ;;  %v5586_v42 = vadd.f32 %v10883_v2, %v5557_v17  ;;  %v5847_v45 = vld [vmem:[#allocation20 + $0xf8] sm:$0xff] }
 0x928   : > { %6672 = vmatpush.msra.mxu0 %v6260_v13  ;;  %6726 = vmatpush.msra.mxu2 %v6368_v51  ;;  %v10937_v29 = vpop.f32.mrf.mxu2  ;;  %v10947_v51 = vmax.f32 %v5583_v34, 0.0  ;;  %v5907_v34 = vld [vmem:[#allocation20 + $0x2d8] sm:$0xff]  ;;  %v6302_v2 = vld [vmem:[#allocation20 + $0xf30] sm:$0xff]  ;;  %v5447_v18 = vadd.f32 %v10815_v38, %v10879_v0  ;;  %v5901_v17 = vld [vmem:[#allocation20 + $0x2a8] sm:$0xff] }
 0x929   : > { %6647 = vmatpush.msrb.mxu3 %v6200_v32  ;;  %6698 = vmatpush.msra.mxu1 %v6317_v54  ;;  %v6248_v32 = vld [vmem:[#allocation20 + $0xd80] sm:$0xff]  ;;  %v10951_v1 = vmax.f32 %v5499_v46, 0.0  ;;  %v6350_v63 = vld [vmem:[#allocation20 + $0x10b0] sm:$0xff]  ;;  %v6299_v38 = vld [vmem:[#allocation20 + $0xf18] sm:$0xff] }
 0x92a   : > { %6648 = vmatmul.f32.vlgmr.msrb.gmra.mxu3 %v10933_v7  ;;  %6673 = vmatpush.msra.mxu0 %v6257_v25  ;;  %11649 = vst [vmem:[#allocation77_spill] sm:$0xff] %v10947_v51  ;;  %v6308_v54 = vld [vmem:[#allocation20 + $0xf60] sm:$0xff]  ;;  %v5853_v25 = vld [vmem:[#allocation20 + $0x128] sm:$0xff] }
 0x92b   : > { %6748 = vmatpush.msra.mxu3 %v5862_v53  ;;  %6727 = vmatpush.msra.mxu2 %v6365_v49  ;;  %v10945_v13 = vpop.f32.mrf.mxu0  ;;  %11650 = vst [vmem:[#allocation59_spill] sm:$0xff] %v10951_v1  ;;  %v5850_v53 = vld [vmem:[#allocation20 + $0x110] sm:$0xff]  ;;  %v6356_v49 = vld [vmem:[#allocation20 + $0x10e0] sm:$0xff]  ;;  %v5841_v0 = vld [vmem:[#allocation20 + $0xc8] sm:$0xff] }
 0x92c   : > { %6674 = vmatpush.msra.mxu0 %v6254_v62  ;;  %6699 = vmatpush.msra.mxu1 %v6314_v47  ;;  %v10955_v62 = vpop.f32.mrf.mxu1  ;;  %v5844_v46 = vld [vmem:[#allocation20 + $0xe0] sm:$0xff] }
 0x92d   : > { %6749 = vmatpush.msra.mxu3 %v5859_v33  ;;  %6728 = vmatpush.msra.mxu2 %v6362_v40  ;;  %v6305_v33 = vld [vmem:[#allocation20 + $0xf48] sm:$0xff] }
 0x92e   : > { %6675 = vmatpush.msra.mxu0 %v6251_v3  ;;  %6700 = vmatpush.msra.mxu1 %v6311_v30  ;;  %v6353_v40 = vld [vmem:[#allocation20 + $0x10c8] sm:$0xff]  ;;  %v5904_v3 = vld [vmem:[#allocation20 + $0x2c0] sm:$0xff] }
 0x92f   : > { %6750 = vmatpush.msra.mxu3 %v5856_v39  ;;  %6729 = vmatpush.msra.mxu2 %v6359_v26  ;;  %v10967_v39 = vperm.slane %v10864_v15, 2  ;;  %v5502_v26 = vadd.f32 %v10777_v44, %v5473_v4  ;;  %v5476_v44 = vadd.f32 %v10792_v36, %v5447_v18 }
 0x930   : > { %6676 = vmatpush.msra.mxu0 %v6248_v32  ;;  %6701 = vmatpush.msra.mxu1 %v6308_v54  ;;  %v10957_v47 = vpop.f32.mrf.mxu3  ;;  %v10971_v32 = vperm.slane %v10864_v15, 3  ;;  %v10973_v54 = vmax.f32 %v5586_v42, 0.0  ;;  %v6347_v42 = vld [vmem:[#allocation20 + $0x1098] sm:$0xff] }
 0x931   : > { %6751 = vmatpush.msra.mxu3 %v5853_v25  ;;  %6677 = vmatmul.f32.vlgmr.msra.gmra.mxu0 %v10947_v51  ;;  %v5560_v25 = vadd.f32 %v10931_v10, %v5531_v57  ;;  %v5612_v15 = vadd.f32 %v10855_v37, %v10967_v39  ;;  %v10979_v4 = vmax.f32 %v5502_v26, 0.0  ;;  %v5835_v37 = vld [vmem:[#allocation20 + $0x98] sm:$0xff]  ;;  %v5534_v57 = vadd.f32 %v10822_v55, %v10904_v28  ;;  %v5832_v26 = vld [vmem:[#allocation20 + $0x80] sm:$0xff] }
 0x932   : > { %6651 = vmatmul.f32.gmra.mxu3 %v10951_v1  ;;  %6777 = vmatpush.msrb.mxu0 %v5910_v21  ;;  %v10962_v30 = vpop.f32.mrf.mxu2  ;;  %11651 = vst [vmem:[#allocation64_spill] sm:$0xff] %v10973_v54 }
 0x933   : > { %6752 = vmatpush.msra.mxu3 %v5850_v53  ;;  %6730 = vmatpush.msra.mxu2 %v6356_v49  ;;  %v5898_v53 = vld [vmem:[#allocation20 + $0x290] sm:$0xff]  ;;  %11652 = vst [vmem:[#allocation74_spill] sm:$0xff] %v10979_v4  ;;  %v5641_v36 = vadd.f32 %v10866_v9, %v5612_v15  ;;  %v5563_v55 = vadd.f32 %v10957_v47, %v5534_v57  ;;  %v5952_v57 = vld [vmem:[#allocation20 + $0x440] sm:$0xff] }
 0x934   : > { %6778 = vmatpush.msrb.mxu0 %v5907_v34  ;;  %6702 = vmatpush.msra.mxu1 %v6305_v33  ;;  %v5838_v49 = vld [vmem:[#allocation20 + $0xb0] sm:$0xff]  ;;  %v5589_v34 = vadd.f32 %v10920_v50, %v5560_v25  ;;  %v5895_v33 = vld [vmem:[#allocation20 + $0x278] sm:$0xff]  ;;  %v5505_v50 = vadd.f32 %v10813_v43, %v5476_v44  ;;  %v5889_v25 = vld [vmem:[#allocation20 + $0x248] sm:$0xff] }
 0x935   : > { %6753 = vmatpush.msra.mxu3 %v5847_v45  ;;  %6731 = vmatpush.msra.mxu2 %v6353_v40  ;;  %v5698_v21 = vpop.f32.mrf.mxu0  ;;  %v6296_v45 = vld [vmem:[#allocation20 + $0xf00] sm:$0xff]  ;;  %v5886_v43 = vld [vmem:[#allocation20 + $0x230] sm:$0xff]  ;;  %v5592_v47 = vadd.f32 %v10945_v13, %v5563_v55 }
 0x936   : > { %6779 = vmatpush.msrb.mxu0 %v5904_v3  ;;  %6703 = vmatpush.msra.mxu1 %v6302_v2  ;;  %v5699_v10 = vadd.f32 %v5698_v21, %v10971_v32  ;;  %v6344_v40 = vld [vmem:[#allocation20 + $0x1080] sm:$0xff]  ;;  %v5727_v2 = vpop.f32.mrf.mxu1  ;;  %v10994_v44 = vmax.f32 %v5505_v50, 0.0  ;;  %v5826_v15 = vld [vmem:[#allocation20 + $0x50] sm:$0xff]  ;;  %v5949_v50 = vld [vmem:[#allocation20 + $0x428] sm:$0xff] }
 0x937   : > { %6754 = vmatpush.msra.mxu3 %v5844_v46  ;;  %6732 = vmatpush.msra.mxu2 %v6350_v63  ;;  %v5892_v3 = vld [vmem:[#allocation20 + $0x260] sm:$0xff]  ;;  %v5958_v46 = vld [vmem:[#allocation20 + $0x470] sm:$0xff] }
 0x938   : > { %6780 = vmatpush.msrb.mxu0 %v5901_v17  ;;  %6704 = vmatpush.msra.mxu1 %v6299_v38  ;;  %v5728_v63 = vadd.f32 %v5727_v2, %v5699_v10  ;;  %v6006_v17 = vld [vmem:[#allocation20 + $0x5f0] sm:$0xff]  ;;  %v10989_v38 = vmax.f32 %v5589_v34, 0.0  ;;  %11653 = vst [vmem:[#allocation65_spill] sm:$0xff] %v10994_v44  ;;  %v5955_v34 = vld [vmem:[#allocation20 + $0x458] sm:$0xff]  ;;  %v5820_v13 = vld [vmem:[#allocation20 + $0x20] sm:$0xff] }
 0x939   : > { %6755 = vmatpush.msra.mxu3 %v5841_v0  ;;  %6680 = vmatmul.f32.gmra.mxu0 %v10973_v54  ;;  %v5669_v18 = vpop.f32.mrf.mxu3  ;;  %v5829_v0 = vld [vmem:[#allocation20 + $0x68] sm:$0xff]  ;;  %v6000_v2 = vld [vmem:[#allocation20 + $0x5c0] sm:$0xff]  ;;  %v6054_v55 = vld [vmem:[#allocation20 + $0x770] sm:$0xff] }
 0x93a   : > { %6654 = vmatmul.f32.gmra.mxu3 %v10979_v4  ;;  %6781 = vmatpush.msrb.mxu0 %v5898_v53  ;;  %v5670_v9 = vadd.f32 %v5669_v18, %v5641_v36  ;;  %v11007_v18 = vmax.f32 %v5592_v47, 0.0 }
 0x93b   : > { %6756 = vmatpush.msra.mxu3 %v5838_v49  ;;  %6733 = vmatpush.msra.mxu2 %v6347_v42  ;;  %v5883_v42 = vld [vmem:[#allocation20 + $0x218] sm:$0xff] }
 0x93c   : > { %6782 = vmatpush.msrb.mxu0 %v5895_v33  ;;  %6705 = vmatpush.msra.mxu1 %v6296_v45  ;;  %v10992_v21 = vmax.f32 %v5670_v9, 0.0  ;;  %v5615_v33 = vadd.f32 %v10899_v31, %v10967_v39  ;;  %v5823_v45 = vld [vmem:[#allocation20 + $0x38] sm:$0xff]  ;;  %v5877_v31 = vld [vmem:[#allocation20 + $0x1e8] sm:$0xff] }
 0x93d   : > { %6757 = vmatpush.msra.mxu3 %v5835_v37  ;;  %v5756_v28 = vpop.f32.mrf.mxu2  ;;  %6734 = vmatpush.msra.mxu2 %v6344_v40  ;;  %v6003_v37 = vld [vmem:[#allocation20 + $0x5d8] sm:$0xff]  ;;  %v5880_v40 = vld [vmem:[#allocation20 + $0x200] sm:$0xff] }
 0x93e   : > { %6783 = vmatpush.msrb.mxu0 %v5892_v3  ;;  %v5757_v53 = vadd.f32 %v5756_v28, %v5728_v63  ;;  %6806 = vmatpush.msrb.mxu1 %v5958_v46  ;;  %v5644_v3 = vadd.f32 %v10908_v22, %v5615_v33  ;;  %v5817_v63 = vld [vmem:[#allocation20 + $0x8] sm:$0xff]  ;;  %v5618_v33 = vadd.f32 %v10929_v58, %v10967_v39 }
 0x93f   : > { %6758 = vmatpush.msra.mxu3 %v5832_v26  ;;  %6835 = vmatpush.msrb.mxu2 %v6006_v17 }
 0x940   : > { %6784 = vmatpush.msrb.mxu0 %v5889_v25  ;;  %v10996_v49 = vmax.f32 %v5757_v53, 0.0  ;;  %v5701_v10 = vpop.f32.mrf.mxu0  ;;  %6706 = vmatmul.f32.vlgmr.msra.gmra.mxu1 %v10992_v21  ;;  %v5874_v25 = vld [vmem:[#allocation20 + $0x1d0] sm:$0xff]  ;;  %v5997_v53 = vld [vmem:[#allocation20 + $0x5a8] sm:$0xff] }
 0x941   : > { %6759 = vmatpush.msra.mxu3 %v5829_v0  ;;  %6683 = vmatmul.f32.gmra.mxu0 %v10989_v38  ;;  %v5702_v36 = vadd.f32 %v5701_v10, %v10971_v32  ;;  %v5730_v46 = vpop.f32.mrf.mxu1 }
 0x942   : > { %6657 = vmatmul.f32.gmra.mxu3 %v10994_v44  ;;  %6785 = vmatpush.msrb.mxu0 %v5886_v43  ;;  %v5871_v43 = vld [vmem:[#allocation20 + $0x1b8] sm:$0xff] }
 0x943   : > { %6760 = vmatpush.msra.mxu3 %v5826_v15  ;;  %6735 = vmatmul.f32.vlgmr.msra.gmra.mxu2 %v10996_v49  ;;  %v5731_v9 = vadd.f32 %v5730_v46, %v5702_v36  ;;  %v6051_v15 = vld [vmem:[#allocation20 + $0x758] sm:$0xff]  ;;  %v5994_v36 = vld [vmem:[#allocation20 + $0x590] sm:$0xff] }
 0x944   : > { %6786 = vmatpush.msrb.mxu0 %v5883_v42  ;;  %6807 = vmatpush.msrb.mxu1 %v5955_v34  ;;  %v5868_v42 = vld [vmem:[#allocation20 + $0x1a0] sm:$0xff]  ;;  %v5946_v34 = vld [vmem:[#allocation20 + $0x410] sm:$0xff] }
 0x945   : > { %6761 = vmatpush.msra.mxu3 %v5823_v45  ;;  %v5672_v26 = vpop.f32.mrf.mxu3  ;;  %6836 = vmatpush.msrb.mxu2 %v6003_v37  ;;  %v6048_v45 = vld [vmem:[#allocation20 + $0x740] sm:$0xff]  ;;  %v5865_v37 = vld [vmem:[#allocation20 + $0x188] sm:$0xff] }
 0x946   : > { %6787 = vmatpush.msrb.mxu0 %v5880_v40  ;;  %v5673_v17 = vadd.f32 %v5672_v26, %v5644_v3  ;;  %6808 = vmatpush.msrb.mxu1 %v5952_v57  ;;  %v5943_v57 = vld [vmem:[#allocation20 + $0x3f8] sm:$0xff]  ;;  %v5647_v3 = vadd.f32 %v10937_v29, %v5618_v33  ;;  %v5940_v29 = vld [vmem:[#allocation20 + $0x3e0] sm:$0xff] }
 0x947   : > { %6762 = vmatpush.msra.mxu3 %v5820_v13  ;;  %v5759_v22 = vpop.f32.mrf.mxu2  ;;  %6837 = vmatpush.msrb.mxu2 %v6000_v2  ;;  %v6045_v13 = vld [vmem:[#allocation20 + $0x728] sm:$0xff]  ;;  %v6102_v2 = vld [vmem:[#allocation20 + $0x8f0] sm:$0xff] }
 0x948   : > { %6788 = vmatpush.msrb.mxu0 %v5877_v31  ;;  %v11009_v28 = vmax.f32 %v5673_v17, 0.0  ;;  %v5760_v0 = vadd.f32 %v5759_v22, %v5731_v9  ;;  %6809 = vmatpush.msrb.mxu1 %v5949_v50  ;;  %v6042_v31 = vld [vmem:[#allocation20 + $0x710] sm:$0xff]  ;;  %v5991_v50 = vld [vmem:[#allocation20 + $0x578] sm:$0xff]  ;;  %v5988_v22 = vld [vmem:[#allocation20 + $0x560] sm:$0xff] }
 0x949   : > { %6763 = vmatpush.msra.mxu3 %v5817_v63  ;;  %6686 = vmatmul.f32.gmra.mxu0 %v11007_v18  ;;  %v6099_v9 = vld [vmem:[#allocation20 + $0x8d8] sm:$0xff] }
 0x94a   : > { %6764 = vmatmul.f32.vlgmr.msra.gmra.mxu3 %v10638_v24  ;;  %6789 = vmatpush.msrb.mxu0 %v5874_v25  ;;  %v11013_v10 = vmax.f32 %v5760_v0, 0.0  ;;  %v5704_v47 = vpop.f32.mrf.mxu0  ;;  %v6039_v25 = vld [vmem:[#allocation20 + $0x6f8] sm:$0xff] }
 0x94b   : > { %6864 = vmatpush.msrb.mxu3 %v6054_v55  ;;  %6838 = vmatpush.msrb.mxu2 %v5997_v53  ;;  %v5705_v40 = vadd.f32 %v5704_v47, %v10971_v32  ;;  %v5733_v46 = vpop.f32.mrf.mxu1  ;;  %v6096_v55 = vld [vmem:[#allocation20 + $0x8c0] sm:$0xff]  ;;  %v5937_v53 = vld [vmem:[#allocation20 + $0x3c8] sm:$0xff] }
 0x94c   : > { %6790 = vmatpush.msrb.mxu0 %v5871_v43  ;;  %6709 = vmatmul.f32.gmra.mxu1 %v11009_v28  ;;  %v6036_v43 = vld [vmem:[#allocation20 + $0x6e0] sm:$0xff]  ;;  %v5985_v47 = vld [vmem:[#allocation20 + $0x548] sm:$0xff] }
 0x94d   : > { %6865 = vmatpush.msrb.mxu3 %v6051_v15  ;;  %6738 = vmatmul.f32.gmra.mxu2 %v11013_v10  ;;  %v5734_v63 = vadd.f32 %v5733_v46, %v5705_v40 }
 0x94e   : > { %6791 = vmatpush.msrb.mxu0 %v5868_v42  ;;  %6810 = vmatpush.msrb.mxu1 %v5946_v34  ;;  %v6093_v42 = vld [vmem:[#allocation20 + $0x8a8] sm:$0xff] }
 0x94f   : > { %6866 = vmatpush.msrb.mxu3 %v6048_v45  ;;  %6839 = vmatpush.msrb.mxu2 %v5994_v36  ;;  %v6033_v34 = vld [vmem:[#allocation20 + $0x6c8] sm:$0xff]  ;;  %v6090_v36 = vld [vmem:[#allocation20 + $0x890] sm:$0xff] }
 0x950   : > { %v5675_v58 = vpop.f32.mrf.mxu3  ;;  %6792 = vmatpush.msrb.mxu0 %v5865_v37  ;;  %6811 = vmatpush.msrb.mxu1 %v5943_v57  ;;  %v6030_v37 = vld [vmem:[#allocation20 + $0x6b0] sm:$0xff]  ;;  %v6087_v57 = vld [vmem:[#allocation20 + $0x878] sm:$0xff] }
 0x951   : > { %v5676_v26 = vadd.f32 %v5675_v58, %v5647_v3  ;;  %6867 = vmatpush.msrb.mxu3 %v6045_v13  ;;  %6793 = vmatmul.f32.vlgmr.msrb.gmra.mxu0 %v10642_v8  ;;  %v5762_v17 = vpop.f32.mrf.mxu2  ;;  %v5934_v3 = vld [vmem:[#allocation20 + $0x3b0] sm:$0xff]  ;;  %v5621_v13 = vadd.f32 %v10955_v62, %v10967_v39  ;;  %v6081_v39 = vld [vmem:[#allocation20 + $0x848] sm:$0xff] }
 0x952   : > { %6767 = vmatmul.f32.gmra.mxu3 %v10674_v61  ;;  %6893 = vmatpush.msra.mxu0 %v6102_v2  ;;  %v5763_v0 = vadd.f32 %v5762_v17, %v5734_v63  ;;  %v6027_v2 = vld [vmem:[#allocation20 + $0x698] sm:$0xff]  ;;  %v5982_v58 = vld [vmem:[#allocation20 + $0x530] sm:$0xff] }
 0x953   : > { %6868 = vmatpush.msrb.mxu3 %v6042_v31  ;;  %6840 = vmatpush.msrb.mxu2 %v5991_v50  ;;  %v11023_v15 = vmax.f32 %v5676_v26, 0.0  ;;  %v6084_v31 = vld [vmem:[#allocation20 + $0x860] sm:$0xff]  ;;  %v5931_v26 = vld [vmem:[#allocation20 + $0x398] sm:$0xff]  ;;  %v5650_v50 = vadd.f32 %v10962_v30, %v5621_v13  ;;  %v6018_v30 = vld [vmem:[#allocation20 + $0x650] sm:$0xff] }
 0x954   : > { %6894 = vmatpush.msra.mxu0 %v6099_v9  ;;  %6812 = vmatpush.msrb.mxu1 %v5940_v29  ;;  %v5707_v33 = vpop.f32.mrf.mxu0  ;;  %v11025_v45 = vmax.f32 %v5763_v0, 0.0  ;;  %v5979_v17 = vld [vmem:[#allocation20 + $0x518] sm:$0xff]  ;;  %v5928_v29 = vld [vmem:[#allocation20 + $0x380] sm:$0xff]  ;;  %v6078_v0 = vld [vmem:[#allocation20 + $0x830] sm:$0xff] }
 0x955   : > { %6869 = vmatpush.msrb.mxu3 %v6039_v25  ;;  %6841 = vmatpush.msrb.mxu2 %v5988_v22  ;;  %v5708_v40 = vadd.f32 %v5707_v33, %v10971_v32  ;;  %v5736_v63 = vpop.f32.mrf.mxu1  ;;  %v6024_v32 = vld [vmem:[#allocation20 + $0x680] sm:$0xff]  ;;  %v6021_v25 = vld [vmem:[#allocation20 + $0x668] sm:$0xff] }
 0x956   : > { %6895 = vmatpush.msra.mxu0 %v6096_v55  ;;  %6813 = vmatpush.msrb.mxu1 %v5937_v53  ;;  %v5976_v53 = vld [vmem:[#allocation20 + $0x500] sm:$0xff]  ;;  %v5973_v33 = vld [vmem:[#allocation20 + $0x4e8] sm:$0xff] }
 0x957   : > { %6870 = vmatpush.msrb.mxu3 %v6036_v43  ;;  %6842 = vmatpush.msrb.mxu2 %v5985_v47  ;;  %v5737_v62 = vadd.f32 %v5736_v63, %v5708_v40  ;;  %v6075_v43 = vld [vmem:[#allocation20 + $0x818] sm:$0xff]  ;;  %v5925_v47 = vld [vmem:[#allocation20 + $0x368] sm:$0xff]  ;;  %v6012_v40 = vld [vmem:[#allocation20 + $0x620] sm:$0xff] }
 0x958   : > { %6896 = vmatpush.msra.mxu0 %v6093_v42  ;;  %6712 = vmatmul.f32.gmra.mxu1 %v11023_v15  ;;  %v6009_v13 = vld [vmem:[#allocation20 + $0x608] sm:$0xff]  ;;  %v6243_v63 = vld [vmem:[#allocation20 + $0xd58] sm:$0xff] }
 0x959   : > { %6871 = vmatpush.msrb.mxu3 %v6033_v34  ;;  %6796 = vmatmul.f32.gmra.mxu0 %v10680_v48  ;;  %v6015_v34 = vld [vmem:[#allocation20 + $0x638] sm:$0xff] }
 0x95a   : > { %6770 = vmatmul.f32.gmra.mxu3 %v10710_v14  ;;  %6897 = vmatpush.msra.mxu0 %v6090_v36  ;;  %v5678_v46 = vpop.f32.mrf.mxu3 }
 0x95b   : > { %6872 = vmatpush.msrb.mxu3 %v6030_v37  ;;  %6741 = vmatmul.f32.gmra.mxu2 %v11025_v45  ;;  %v5765_v9 = vpop.f32.mrf.mxu2  ;;  %v5679_v22 = vadd.f32 %v5678_v46, %v5650_v50  ;;  %v6072_v37 = vld [vmem:[#allocation20 + $0x800] sm:$0xff]  ;;  %v5919_v46 = vld [vmem:[#allocation20 + $0x338] sm:$0xff]  ;;  %v6066_v50 = vld [vmem:[#allocation20 + $0x7d0] sm:$0xff] }
 0x95c   : > { %6898 = vmatpush.msra.mxu0 %v6087_v57  ;;  %6814 = vmatpush.msrb.mxu1 %v5934_v3  ;;  %v5766_v55 = vadd.f32 %v5765_v9, %v5737_v62  ;;  %v5922_v57 = vld [vmem:[#allocation20 + $0x350] sm:$0xff]  ;;  %v5964_v9 = vld [vmem:[#allocation20 + $0x4a0] sm:$0xff] }
 0x95d   : > { %6873 = vmatpush.msrb.mxu3 %v6027_v2  ;;  %6843 = vmatpush.msrb.mxu2 %v5982_v58  ;;  %v11037_v42 = vmax.f32 %v5679_v22, 0.0  ;;  %v5970_v3 = vld [vmem:[#allocation20 + $0x4d0] sm:$0xff]  ;;  %v6069_v2 = vld [vmem:[#allocation20 + $0x7e8] sm:$0xff]  ;;  %v6240_v62 = vld [vmem:[#allocation20 + $0xd40] sm:$0xff] }
 0x95e   : > { %6899 = vmatpush.msra.mxu0 %v6084_v31  ;;  %6815 = vmatpush.msrb.mxu1 %v5931_v26  ;;  %v11039_v36 = vmax.f32 %v5766_v55, 0.0  ;;  %v6246_v58 = vld [vmem:[#allocation20 + $0xd70] sm:$0xff]  ;;  %v5967_v26 = vld [vmem:[#allocation20 + $0x4b8] sm:$0xff]  ;;  %v11047_v22 = vpop.f32.mrf.mxu0  ;;  %v6237_v55 = vld [vmem:[#allocation20 + $0xd28] sm:$0xff] }
 0x95f   : > { %6874 = vmatpush.msrb.mxu3 %v6024_v32  ;;  %6844 = vmatpush.msrb.mxu2 %v5979_v17  ;;  %v5916_v32 = vld [vmem:[#allocation20 + $0x320] sm:$0xff]  ;;  %v6063_v17 = vld [vmem:[#allocation20 + $0x7b8] sm:$0xff] }
 0x960   : > { %6900 = vmatpush.msra.mxu0 %v6081_v39  ;;  %6816 = vmatpush.msrb.mxu1 %v5928_v29  ;;  %v5913_v39 = vld [vmem:[#allocation20 + $0x308] sm:$0xff] }
 0x961   : > { %6875 = vmatpush.msrb.mxu3 %v6021_v25  ;;  %6799 = vmatmul.f32.gmra.mxu0 %v10716_v11  ;;  %v5961_v29 = vld [vmem:[#allocation20 + $0x488] sm:$0xff]  ;;  %v6060_v25 = vld [vmem:[#allocation20 + $0x7a0] sm:$0xff] }
 0x962   : > { %6773 = vmatmul.f32.gmra.mxu3 %v10758_v41  ;;  %6901 = vmatpush.msra.mxu0 %v6078_v0  ;;  %v6057_v0 = vld [vmem:[#allocation20 + $0x788] sm:$0xff] }
 0x963   : > { %6876 = vmatpush.msrb.mxu3 %v6018_v30  ;;  %6845 = vmatpush.msrb.mxu2 %v5976_v53  ;;  %v6150_v30 = vld [vmem:[#allocation20 + $0xa70] sm:$0xff] }
 0x964   : > { %6902 = vmatpush.msra.mxu0 %v6075_v43  ;;  %6817 = vmatpush.msrb.mxu1 %v5925_v47  ;;  %v11043_v31 = vpop.f32.mrf.mxu3  ;;  %v6198_v53 = vld [vmem:[#allocation20 + $0xbf0] sm:$0xff] }
 0x965   : > { %6877 = vmatpush.msrb.mxu3 %v6015_v34  ;;  %6846 = vmatpush.msrb.mxu2 %v5973_v33  ;;  %v6234_v43 = vld [vmem:[#allocation20 + $0xd10] sm:$0xff]  ;;  %v6147_v34 = vld [vmem:[#allocation20 + $0xa58] sm:$0xff] }
 0x966   : > { %6903 = vmatpush.msra.mxu0 %v6072_v37  ;;  %6715 = vmatmul.f32.gmra.mxu1 %v11037_v42  ;;  %v6195_v33 = vld [vmem:[#allocation20 + $0xbd8] sm:$0xff] }
 0x967   : > { %6878 = vmatpush.msrb.mxu3 %v6012_v40  ;;  %6744 = vmatmul.f32.gmra.mxu2 %v11039_v36  ;;  %v6231_v37 = vld [vmem:[#allocation20 + $0xcf8] sm:$0xff]  ;;  %v6294_v40 = vld [vmem:[#allocation20 + $0xef0] sm:$0xff] }
 0x968   : > { %6818 = vmatpush.msrb.mxu1 %v5922_v57  ;;  %6847 = vmatpush.msrb.mxu2 %v5970_v3  ;;  %v6144_v57 = vld [vmem:[#allocation20 + $0xa40] sm:$0xff]  ;;  %v11654_v3 = vld [vmem:[#allocation54_spill] sm:$0xff] }
 0x969   : > { %6879 = vmatpush.msrb.mxu3 %v6009_v13  ;;  %6904 = vmatpush.msra.mxu0 %v6069_v2  ;;  %v6192_v13 = vld [vmem:[#allocation20 + $0xbc0] sm:$0xff] }
 0x96a   : > { %6880 = vmatmul.f32.vlgmr.msrb.gmra.mxu3 %v10796_v35  ;;  %6802 = vmatmul.f32.gmra.mxu0 %v10764_v12  ;;  %v6228_v2 = vld [vmem:[#allocation20 + $0xce0] sm:$0xff] }
 0x96b   : > { %6980 = vmatpush.msra.mxu3 %v6246_v58  ;;  %6819 = vmatpush.msrb.mxu1 %v5919_v46  ;;  %v6291_v58 = vld [vmem:[#allocation20 + $0xed8] sm:$0xff]  ;;  %v6141_v46 = vld [vmem:[#allocation20 + $0xa28] sm:$0xff] }
 0x96c   : > { %6848 = vmatpush.msrb.mxu2 %v5967_v26  ;;  %6905 = vmatpush.msra.mxu0 %v6066_v50  ;;  %v6189_v26 = vld [vmem:[#allocation20 + $0xba8] sm:$0xff] }
 0x96d   : > { %6981 = vmatpush.msra.mxu3 %v6243_v63  ;;  %6820 = vmatpush.msrb.mxu1 %v5916_v32  ;;  %v6225_v50 = vld [vmem:[#allocation20 + $0xcc8] sm:$0xff]  ;;  %v11055_v63 = vpop.f32.mrf.mxu1  ;;  %v11057_v32 = vpop.f32.mrf.mxu0 }
 0x96e   : > { %6849 = vmatpush.msrb.mxu2 %v5964_v9  ;;  %6906 = vmatpush.msra.mxu0 %v6063_v17  ;;  %v11052_v47 = vpop.f32.mrf.mxu3  ;;  %v6288_v9 = vld [vmem:[#allocation20 + $0xec0] sm:$0xff]  ;;  %v6138_v17 = vld [vmem:[#allocation20 + $0xa10] sm:$0xff] }
 0x96f   : > { %6982 = vmatpush.msra.mxu3 %v6240_v62  ;;  %6821 = vmatpush.msrb.mxu1 %v5913_v39  ;;  %v6186_v62 = vld [vmem:[#allocation20 + $0xb90] sm:$0xff]  ;;  %v11655_v39 = vld [vmem:[#allocation92_spill] sm:$0xff] }
 0x970   : > { %6850 = vmatpush.msrb.mxu2 %v5961_v29  ;;  %6907 = vmatpush.msra.mxu0 %v6060_v25  ;;  %v6222_v29 = vld [vmem:[#allocation20 + $0xcb0] sm:$0xff]  ;;  %v6285_v25 = vld [vmem:[#allocation20 + $0xea8] sm:$0xff] }
 0x971   : > { %6983 = vmatpush.msra.mxu3 %v6237_v55  ;;  %6822 = vmatmul.f32.vlgmr.msrb.gmra.mxu1 %v10644_v27  ;;  %v11656_v55 = vld [vmem:[#allocation93_spill] sm:$0xff] }
 0x972   : > { %6851 = vmatmul.f32.vlgmr.msrb.gmra.mxu2 %v10647_v20  ;;  %6883 = vmatmul.f32.gmra.mxu3 %v10835_v23  ;;  %v5896_v23 = vld [vmem:[#allocation20 + $0x280] sm:$0xff] }
 0x973   : > { %6908 = vmatpush.msra.mxu0 %v6057_v0  ;;  %6922 = vmatpush.msra.mxu1 %v6150_v30  ;;  %v6135_v30 = vld [vmem:[#allocation20 + $0x9f8] sm:$0xff] }
 0x974   : > { %6951 = vmatpush.msra.mxu2 %v6198_v53  ;;  %6984 = vmatpush.msra.mxu3 %v6234_v43  ;;  %v6183_v53 = vld [vmem:[#allocation20 + $0xb78] sm:$0xff] }
 0x975   : > { %6909 = vmatmul.f32.vlgmr.msra.gmra.mxu0 %v11654_v3  ;;  %6923 = vmatpush.msra.mxu1 %v6147_v34  ;;  %v6219_v43 = vld [vmem:[#allocation20 + $0xc98] sm:$0xff]  ;;  %v6282_v34 = vld [vmem:[#allocation20 + $0xe90] sm:$0xff] }
 0x976   : > { %6952 = vmatpush.msra.mxu2 %v6195_v33  ;;  %6985 = vmatpush.msra.mxu3 %v6231_v37  ;;  %v6132_v33 = vld [vmem:[#allocation20 + $0x9e0] sm:$0xff]  ;;  %v11064_v37 = vpop.f32.mrf.mxu2 }
 0x977   : > { %7009 = vmatpush.msrb.mxu0 %v6294_v40  ;;  %6924 = vmatpush.msra.mxu1 %v6144_v57  ;;  %v11657_v40 = vld [vmem:[#allocation55_spill] sm:$0xff]  ;;  %v6180_v57 = vld [vmem:[#allocation20 + $0xb60] sm:$0xff] }
 0x978   : > { %6953 = vmatpush.msra.mxu2 %v6192_v13  ;;  %6986 = vmatpush.msra.mxu3 %v6228_v2  ;;  %v11062_v0 = vpop.f32.mrf.mxu3  ;;  %v6216_v13 = vld [vmem:[#allocation20 + $0xc80] sm:$0xff]  ;;  %v6279_v2 = vld [vmem:[#allocation20 + $0xe78] sm:$0xff] }
 0x979   : > { %7010 = vmatpush.msrb.mxu0 %v6291_v58  ;;  %6925 = vmatpush.msra.mxu1 %v6141_v46  ;;  %v6129_v58 = vld [vmem:[#allocation20 + $0x9c8] sm:$0xff] }
 0x97a   : > { %6954 = vmatpush.msra.mxu2 %v6189_v26  ;;  %6987 = vmatpush.msra.mxu3 %v6225_v50  ;;  %v6177_v46 = vld [vmem:[#allocation20 + $0xb48] sm:$0xff]  ;;  %v11067_v50 = vpop.f32.mrf.mxu1 }
 0x97b   : > { %7011 = vmatpush.msrb.mxu0 %v6288_v9  ;;  %6825 = vmatmul.f32.gmra.mxu1 %v11655_v39  ;;  %v6213_v26 = vld [vmem:[#allocation20 + $0xc68] sm:$0xff]  ;;  %v11069_v9 = vpop.f32.mrf.mxu0 }
 0x97c   : > { %6854 = vmatmul.f32.gmra.mxu2 %v11656_v55  ;;  %6886 = vmatmul.f32.gmra.mxu3 %v10881_v56 }
 0x97d   : > { %6926 = vmatpush.msra.mxu1 %v6138_v17  ;;  %6955 = vmatpush.msra.mxu2 %v6186_v62  ;;  %v6276_v17 = vld [vmem:[#allocation20 + $0xe60] sm:$0xff]  ;;  %v6126_v62 = vld [vmem:[#allocation20 + $0x9b0] sm:$0xff] }
 0x97e   : > { %6988 = vmatpush.msra.mxu3 %v6222_v29  ;;  %7012 = vmatpush.msrb.mxu0 %v6285_v25  ;;  %v6174_v29 = vld [vmem:[#allocation20 + $0xb30] sm:$0xff] }
 0x97f   : > { %6912 = vmatmul.f32.gmra.mxu0 %v11657_v40  ;;  %6927 = vmatpush.msra.mxu1 %v6135_v30  ;;  %v11658_v25 = vld [vmem:[#allocation47_spill] sm:$0xff] }
 0x980   : > { %6956 = vmatpush.msra.mxu2 %v6183_v53  ;;  %6989 = vmatpush.msra.mxu3 %v6219_v43  ;;  %v6210_v30 = vld [vmem:[#allocation20 + $0xc50] sm:$0xff]  ;;  %v6273_v53 = vld [vmem:[#allocation20 + $0xe48] sm:$0xff] }
 0x981   : > { %7013 = vmatpush.msrb.mxu0 %v6282_v34  ;;  %6928 = vmatpush.msra.mxu1 %v6132_v33  ;;  %v11659_v43 = vld [vmem:[#allocation53_spill] sm:$0xff]  ;;  %v6123_v33 = vld [vmem:[#allocation20 + $0x998] sm:$0xff] }
 0x982   : > { %6957 = vmatpush.msra.mxu2 %v6180_v57  ;;  %6990 = vmatpush.msra.mxu3 %v6216_v13  ;;  %v11074_v34 = vpop.f32.mrf.mxu3  ;;  %v6171_v57 = vld [vmem:[#allocation20 + $0xb18] sm:$0xff] }
 0x983   : > { %7014 = vmatpush.msrb.mxu0 %v6279_v2  ;;  %6929 = vmatpush.msra.mxu1 %v6129_v58  ;;  %v6207_v13 = vld [vmem:[#allocation20 + $0xc38] sm:$0xff]  ;;  %v6270_v2 = vld [vmem:[#allocation20 + $0xe30] sm:$0xff]  ;;  %v6120_v58 = vld [vmem:[#allocation20 + $0x980] sm:$0xff] }
 0x984   : > { %6958 = vmatpush.msra.mxu2 %v6177_v46  ;;  %6991 = vmatpush.msra.mxu3 %v6213_v26  ;;  %v11076_v46 = vpop.f32.mrf.mxu2  ;;  %v6168_v26 = vld [vmem:[#allocation20 + $0xb00] sm:$0xff] }
 0x985   : > { %7015 = vmatpush.msrb.mxu0 %v6276_v17  ;;  %6828 = vmatmul.f32.gmra.mxu1 %v11658_v25  ;;  %v6204_v17 = vld [vmem:[#allocation20 + $0xc20] sm:$0xff]  ;;  %v11079_v25 = vpop.f32.mrf.mxu1 }
 0x986   : > { %6857 = vmatmul.f32.gmra.mxu2 %v11659_v43  ;;  %6889 = vmatmul.f32.gmra.mxu3 %v10913_v52  ;;  %v6267_v52 = vld [vmem:[#allocation20 + $0xe18] sm:$0xff]  ;;  %v6117_v43 = vld [vmem:[#allocation20 + $0x968] sm:$0xff] }
 0x987   : > { %6930 = vmatpush.msra.mxu1 %v6126_v62  ;;  %6959 = vmatpush.msra.mxu2 %v6174_v29  ;;  %v6165_v62 = vld [vmem:[#allocation20 + $0xae8] sm:$0xff] }
 0x988   : > { %6992 = vmatpush.msra.mxu3 %v6210_v30  ;;  %7016 = vmatpush.msrb.mxu0 %v6273_v53  ;;  %v6201_v29 = vld [vmem:[#allocation20 + $0xc08] sm:$0xff]  ;;  %v11081_v30 = vpop.f32.mrf.mxu0  ;;  %v6264_v53 = vld [vmem:[#allocation20 + $0xe00] sm:$0xff] }
 0x989   : > { %6915 = vmatmul.f32.gmra.mxu0 %v10872_v5  ;;  %6931 = vmatpush.msra.mxu1 %v6123_v33  ;;  %v6114_v33 = vld [vmem:[#allocation20 + $0x950] sm:$0xff]  ;;  %v11661_v5 = vld [vmem:[#allocation33_spill] sm:$0xff] }
 0x98a   : > { %6960 = vmatpush.msra.mxu2 %v6171_v57  ;;  %6993 = vmatpush.msra.mxu3 %v6207_v13  ;;  %v6162_v57 = vld [vmem:[#allocation20 + $0xad0] sm:$0xff]  ;;  %v11660_v13 = vld [vmem:[#allocation48_spill] sm:$0xff] }
 0x98b   : > { %7017 = vmatpush.msrb.mxu0 %v6270_v2  ;;  %6932 = vmatpush.msra.mxu1 %v6120_v58  ;;  %v6261_v2 = vld [vmem:[#allocation20 + $0xde8] sm:$0xff]  ;;  %v5863_v58 = vld [vmem:[#allocation20 + $0x178] sm:$0xff] }
 0x98c   : > { %6961 = vmatpush.msra.mxu2 %v6168_v26  ;;  %6994 = vmatpush.msra.mxu3 %v6204_v17  ;;  %v11086_v40 = vpop.f32.mrf.mxu3  ;;  %v6111_v26 = vld [vmem:[#allocation20 + $0x938] sm:$0xff]  ;;  %v5860_v17 = vld [vmem:[#allocation20 + $0x160] sm:$0xff] }
 0x98d   : > { %7018 = vmatpush.msrb.mxu0 %v6267_v52  ;;  %6933 = vmatpush.msra.mxu1 %v6117_v43  ;;  %v6159_v52 = vld [vmem:[#allocation20 + $0xab8] sm:$0xff]  ;;  %v6258_v43 = vld [vmem:[#allocation20 + $0xdd0] sm:$0xff]  ;;  %v11091_v56 = vpop.f32.mrf.mxu1 }
 0x98e   : > { %6962 = vmatpush.msra.mxu2 %v6165_v62  ;;  %6995 = vmatpush.msra.mxu3 %v6201_v29  ;;  %v6108_v62 = vld [vmem:[#allocation20 + $0x920] sm:$0xff]  ;;  %v11088_v29 = vpop.f32.mrf.mxu2 }
 0x98f   : > { %7019 = vmatpush.msrb.mxu0 %v6264_v53  ;;  %6831 = vmatmul.f32.gmra.mxu1 %v11660_v13  ;;  %v6156_v53 = vld [vmem:[#allocation20 + $0xaa0] sm:$0xff]  ;;  %v6105_v13 = vld [vmem:[#allocation20 + $0x908] sm:$0xff] }
 0x990   : > { %6860 = vmatmul.f32.gmra.mxu2 %v11661_v5  ;;  %6996 = vmatmul.f32.vlgmr.msra.gmra.mxu3 %v10933_v7  ;;  %v6255_v5 = vld [vmem:[#allocation20 + $0xdb8] sm:$0xff]  ;;  %v5857_v7 = vld [vmem:[#allocation20 + $0x148] sm:$0xff] }
 0x991   : > { %6934 = vmatpush.msra.mxu1 %v6114_v33  ;;  %6963 = vmatpush.msra.mxu2 %v6162_v57  ;;  %v6153_v33 = vld [vmem:[#allocation20 + $0xa88] sm:$0xff]  ;;  %v6252_v57 = vld [vmem:[#allocation20 + $0xda0] sm:$0xff] }
 0x992   : > { %7020 = vmatpush.msrb.mxu0 %v6261_v2  ;;  %7096 = vmatpush.msrb.mxu3 %v5863_v58  ;;  %v11093_v2 = vpop.f32.mrf.mxu0  ;;  %v5854_v58 = vld [vmem:[#allocation20 + $0x130] sm:$0xff] }
 0x993   : > { %6918 = vmatmul.f32.gmra.mxu0 %v10906_v6  ;;  %6935 = vmatpush.msra.mxu1 %v6111_v26  ;;  %v6249_v26 = vld [vmem:[#allocation20 + $0xd88] sm:$0xff]  ;;  %v11663_v6 = vld [vmem:[#allocation51_spill] sm:$0xff] }
 0x994   : > { %6964 = vmatpush.msra.mxu2 %v6159_v52  ;;  %7021 = vmatpush.msrb.mxu0 %v6258_v43  ;;  %v6342_v52 = vld [vmem:[#allocation20 + $0x1070] sm:$0xff] }
 0x995   : > { %7097 = vmatpush.msrb.mxu3 %v5860_v17  ;;  %6936 = vmatpush.msra.mxu1 %v6108_v62  ;;  %v11662_v43 = vld [vmem:[#allocation50_spill] sm:$0xff]  ;;  %v5851_v62 = vld [vmem:[#allocation20 + $0x118] sm:$0xff]  ;;  %v11098_v55 = vpop.f32.mrf.mxu3  ;;  %v11103_v39 = vpop.f32.mrf.mxu1 }
 0x996   : > { %6965 = vmatpush.msra.mxu2 %v6156_v53  ;;  %7022 = vmatpush.msrb.mxu0 %v6255_v5  ;;  %v6390_v17 = vld [vmem:[#allocation20 + $0x11f0] sm:$0xff]  ;;  %v6339_v53 = vld [vmem:[#allocation20 + $0x1058] sm:$0xff] }
 0x997   : > { %7098 = vmatpush.msrb.mxu3 %v5857_v7  ;;  %6937 = vmatpush.msra.mxu1 %v6105_v13  ;;  %v6387_v5 = vld [vmem:[#allocation20 + $0x11d8] sm:$0xff]  ;;  %v5848_v7 = vld [vmem:[#allocation20 + $0x100] sm:$0xff] }
 0x998   : > { %6966 = vmatpush.msra.mxu2 %v6153_v33  ;;  %7023 = vmatpush.msrb.mxu0 %v6252_v57  ;;  %v5911_v13 = vld [vmem:[#allocation20 + $0x2f8] sm:$0xff]  ;;  %v6336_v33 = vld [vmem:[#allocation20 + $0x1040] sm:$0xff]  ;;  %v11100_v57 = vpop.f32.mrf.mxu2 }
 0x999   : > { %7099 = vmatpush.msrb.mxu3 %v5854_v58  ;;  %6938 = vmatmul.f32.vlgmr.msra.gmra.mxu1 %v11662_v43  ;;  %v6384_v58 = vld [vmem:[#allocation20 + $0x11c0] sm:$0xff]  ;;  %v6333_v43 = vld [vmem:[#allocation20 + $0x1028] sm:$0xff] }
 0x99a   : > { %6967 = vmatmul.f32.vlgmr.msra.gmra.mxu2 %v11663_v6  ;;  %6999 = vmatmul.f32.gmra.mxu3 %v10951_v1  ;;  %v5845_v6 = vld [vmem:[#allocation20 + $0xe8] sm:$0xff]  ;;  %v5908_v1 = vld [vmem:[#allocation20 + $0x2e0] sm:$0xff] }
 0x99b   : > { %7024 = vmatpush.msrb.mxu0 %v6249_v26  ;;  %7038 = vmatpush.msrb.mxu1 %v6342_v52  ;;  %v6381_v26 = vld [vmem:[#allocation20 + $0x11a8] sm:$0xff]  ;;  %v5842_v52 = vld [vmem:[#allocation20 + $0xd0] sm:$0xff] }
 0x99c   : > { %7067 = vmatpush.msrb.mxu2 %v6390_v17  ;;  %7100 = vmatpush.msrb.mxu3 %v5851_v62  ;;  %v11105_v17 = vpop.f32.mrf.mxu0  ;;  %v5905_v62 = vld [vmem:[#allocation20 + $0x2c8] sm:$0xff] }
 0x99d   : > { %7025 = vmatmul.f32.vlgmr.msrb.gmra.mxu0 %v10947_v51  ;;  %7039 = vmatpush.msrb.mxu1 %v6339_v53  ;;  %v6330_v53 = vld [vmem:[#allocation20 + $0x1010] sm:$0xff]  ;;  %v11665_v51 = vld [vmem:[#allocation49_spill] sm:$0xff]  ;;  %v11110_v3 = vpop.f32.mrf.mxu3 }
 0x99e   : > { %7068 = vmatpush.msrb.mxu2 %v6387_v5  ;;  %7101 = vmatpush.msrb.mxu3 %v5848_v7  ;;  %v6378_v5 = vld [vmem:[#allocation20 + $0x1190] sm:$0xff] }
 0x99f   : > { %7125 = vmatpush.msra.mxu0 %v5911_v13  ;;  %7040 = vmatpush.msrb.mxu1 %v6336_v33  ;;  %v11664_v7 = vld [vmem:[#allocation46_spill] sm:$0xff]  ;;  %v5839_v13 = vld [vmem:[#allocation20 + $0xb8] sm:$0xff] }
 0x9a0   : > { %7069 = vmatpush.msrb.mxu2 %v6384_v58  ;;  %7102 = vmatpush.msrb.mxu3 %v5845_v6  ;;  %v5902_v33 = vld [vmem:[#allocation20 + $0x2b0] sm:$0xff]  ;;  %v6327_v58 = vld [vmem:[#allocation20 + $0xff8] sm:$0xff]  ;;  %v6392_v6 = vld [vmem:[#allocation21] sm:$0x7] }
 0x9a1   : > { %7126 = vmatpush.msra.mxu0 %v5908_v1  ;;  %7041 = vmatpush.msrb.mxu1 %v6333_v43  ;;  %v6375_v1 = vld [vmem:[#allocation20 + $0x1178] sm:$0xff]  ;;  %v5836_v43 = vld [vmem:[#allocation20 + $0xa0] sm:$0xff] }
 0x9a2   : > { %7070 = vmatpush.msrb.mxu2 %v6381_v26  ;;  %7103 = vmatpush.msrb.mxu3 %v5842_v52  ;;  %v5899_v26 = vld [vmem:[#allocation20 + $0x298] sm:$0xff]  ;;  %v6324_v52 = vld [vmem:[#allocation20 + $0xfe0] sm:$0xff] }
 0x9a3   : > { %7127 = vmatpush.msra.mxu0 %v5905_v62  ;;  %6941 = vmatmul.f32.gmra.mxu1 %v11664_v7  ;;  %v11112_v62 = vpop.f32.mrf.mxu2  ;;  %v5833_v7 = vld [vmem:[#allocation20 + $0x88] sm:$0xff] }
 0x9a4   : > { %6970 = vmatmul.f32.gmra.mxu2 %v11665_v51  ;;  %7002 = vmatmul.f32.gmra.mxu3 %v10979_v4  ;;  %v6372_v51 = vld [vmem:[#allocation20 + $0x1160] sm:$0xff]  ;;  %v11115_v4 = vperm.slane %v6392_v6, 0  ;;  %v11119_v20 = vpop.f32.mrf.mxu0  ;;  %v6318_v6 = vld [vmem:[#allocation20 + $0xfb0] sm:$0xff] }
 0x9a5   : > { %7042 = vmatpush.msrb.mxu1 %v6330_v53  ;;  %7071 = vmatpush.msrb.mxu2 %v6378_v5  ;;  %v6321_v53 = vld [vmem:[#allocation20 + $0xfc8] sm:$0xff] }
 0x9a6   : > { %7104 = vmatpush.msrb.mxu3 %v5839_v13  ;;  %7128 = vmatpush.msra.mxu0 %v5902_v33  ;;  %v6369_v5 = vld [vmem:[#allocation20 + $0x1148] sm:$0xff]  ;;  %v5830_v13 = vld [vmem:[#allocation20 + $0x70] sm:$0xff]  ;;  %v11117_v33 = vpop.f32.mrf.mxu1 }
 0x9a7   : > { %7028 = vmatmul.f32.gmra.mxu0 %v10973_v54  ;;  %7043 = vmatpush.msrb.mxu1 %v6327_v58  ;;  %v5893_v54 = vld [vmem:[#allocation20 + $0x268] sm:$0xff]  ;;  %v6418_v58 = vadd.f32 %v11043_v31, %v11115_v4  ;;  %v5824_v31 = vld [vmem:[#allocation20 + $0x40] sm:$0xff] }
 0x9a8   : > { %7072 = vmatpush.msrb.mxu2 %v6375_v1  ;;  %7105 = vmatpush.msrb.mxu3 %v5836_v43  ;;  %v6366_v1 = vld [vmem:[#allocation20 + $0x1130] sm:$0xff]  ;;  %v5827_v43 = vld [vmem:[#allocation20 + $0x58] sm:$0xff] }
 0x9a9   : > { %7129 = vmatpush.msra.mxu0 %v5899_v26  ;;  %7044 = vmatpush.msrb.mxu1 %v6324_v52  ;;  %v5890_v26 = vld [vmem:[#allocation20 + $0x250] sm:$0xff]  ;;  %v6447_v52 = vadd.f32 %v11047_v22, %v6418_v58 }
 0x9aa   : > { %7073 = vmatpush.msrb.mxu2 %v6372_v51  ;;  %7106 = vmatpush.msrb.mxu3 %v5833_v7  ;;  %v11126_v51 = vpop.f32.mrf.mxu3  ;;  %v6363_v7 = vld [vmem:[#allocation20 + $0x1118] sm:$0xff] }
 0x9ab   : > { %7130 = vmatpush.msra.mxu0 %v5896_v23  ;;  %7045 = vmatpush.msrb.mxu1 %v6321_v53  ;;  %v6315_v23 = vld [vmem:[#allocation20 + $0xf98] sm:$0xff]  ;;  %v6312_v53 = vld [vmem:[#allocation20 + $0xf80] sm:$0xff]  ;;  %v6476_v22 = vadd.f32 %v11055_v63, %v6447_v52  ;;  %v5878_v63 = vld [vmem:[#allocation20 + $0x1f0] sm:$0xff] }
 0x9ac   : > { %7074 = vmatpush.msrb.mxu2 %v6369_v5  ;;  %7107 = vmatpush.msrb.mxu3 %v5830_v13  ;;  %v11129_v5 = vpop.f32.mrf.mxu2  ;;  %v6360_v13 = vld [vmem:[#allocation20 + $0x1100] sm:$0xff]  ;;  %v6055_v52 = vld [vmem:[#allocation20 + $0x778] sm:$0xff] }
 0x9ad   : > { %7131 = vmatpush.msra.mxu0 %v5893_v54  ;;  %6944 = vmatmul.f32.gmra.mxu1 %v10876_v60  ;;  %v5887_v54 = vld [vmem:[#allocation20 + $0x238] sm:$0xff]  ;;  %v5818_v60 = vld [vmem:[#allocation20 + $0x10] sm:$0xff] }
 0x9ae   : > { %6973 = vmatmul.f32.gmra.mxu2 %v10885_v59  ;;  %7005 = vmatmul.f32.gmra.mxu3 %v10994_v44  ;;  %v5821_v44 = vld [vmem:[#allocation20 + $0x28] sm:$0xff]  ;;  %v5884_v59 = vld [vmem:[#allocation20 + $0x220] sm:$0xff]  ;;  %v11133_v58 = vpop.f32.mrf.mxu1 }
 0x9af   : > { %7046 = vmatpush.msrb.mxu1 %v6318_v6  ;;  %7075 = vmatpush.msrb.mxu2 %v6366_v1  ;;  %v6309_v6 = vld [vmem:[#allocation20 + $0xf68] sm:$0xff] }
 0x9b0   : > { %7108 = vmatpush.msrb.mxu3 %v5827_v43  ;;  %7132 = vmatpush.msra.mxu0 %v5890_v26  ;;  %v6357_v1 = vld [vmem:[#allocation20 + $0x10e8] sm:$0xff]  ;;  %v11135_v43 = vpop.f32.mrf.mxu0 }
 0x9b1   : > { %7031 = vmatmul.f32.gmra.mxu0 %v10989_v38  ;;  %7047 = vmatpush.msrb.mxu1 %v6315_v23  ;;  %v5881_v26 = vld [vmem:[#allocation20 + $0x208] sm:$0xff]  ;;  %v6421_v23 = vadd.f32 %v11052_v47, %v11115_v4  ;;  %v6351_v47 = vld [vmem:[#allocation20 + $0x10b8] sm:$0xff] }
 0x9b2   : > { %7076 = vmatpush.msrb.mxu2 %v6363_v7  ;;  %7109 = vmatpush.msrb.mxu3 %v5824_v31  ;;  %v6306_v7 = vld [vmem:[#allocation20 + $0xf50] sm:$0xff] }
 0x9b3   : > { %7133 = vmatpush.msra.mxu0 %v5887_v54  ;;  %7048 = vmatpush.msrb.mxu1 %v6312_v53  ;;  %v6354_v31 = vld [vmem:[#allocation20 + $0x10d0] sm:$0xff]  ;;  %v6505_v54 = vadd.f32 %v11064_v37, %v6476_v22  ;;  %v6450_v53 = vadd.f32 %v11057_v32, %v6421_v23  ;;  %v5872_v22 = vld [vmem:[#allocation20 + $0x1c0] sm:$0xff]  ;;  %v6345_v32 = vld [vmem:[#allocation20 + $0x1088] sm:$0xff] }
 0x9b4   : > { %7077 = vmatpush.msrb.mxu2 %v6360_v13  ;;  %7110 = vmatpush.msrb.mxu3 %v5821_v44  ;;  %v6303_v44 = vld [vmem:[#allocation20 + $0xf38] sm:$0xff]  ;;  %v11147_v37 = vpop.f32.mrf.mxu2 }
 0x9b5   : > { %7134 = vmatpush.msra.mxu0 %v5884_v59  ;;  %7049 = vmatpush.msrb.mxu1 %v6309_v6  ;;  %v11143_v59 = vpop.f32.mrf.mxu3  ;;  %v6534_v13 = vadd.f32 %v11086_v40, %v6505_v54  ;;  %v6052_v6 = vld [vmem:[#allocation20 + $0x760] sm:$0xff]  ;;  %v5869_v40 = vld [vmem:[#allocation20 + $0x1a8] sm:$0xff]  ;;  %v6479_v23 = vadd.f32 %v11067_v50, %v6450_v53  ;;  %v6046_v54 = vld [vmem:[#allocation20 + $0x730] sm:$0xff] }
 0x9b6   : > { %7078 = vmatpush.msrb.mxu2 %v6357_v1  ;;  %7111 = vmatpush.msrb.mxu3 %v5818_v60  ;;  %v5875_v60 = vld [vmem:[#allocation20 + $0x1d8] sm:$0xff]  ;;  %v6300_v1 = vld [vmem:[#allocation20 + $0xf20] sm:$0xff] }
 0x9b7   : > { %7135 = vmatpush.msra.mxu0 %v5881_v26  ;;  %6947 = vmatmul.f32.gmra.mxu1 %v10910_v19  ;;  %v6049_v26 = vld [vmem:[#allocation20 + $0x748] sm:$0xff]  ;;  %v6007_v50 = vld [vmem:[#allocation20 + $0x5f8] sm:$0xff] }
 0x9b8   : > { %6976 = vmatmul.f32.gmra.mxu2 %v10915_v16  ;;  %7112 = vmatmul.f32.vlgmr.msrb.gmra.mxu3 %v10638_v24  ;;  %v6348_v24 = vld [vmem:[#allocation20 + $0x10a0] sm:$0xff]  ;;  %v6043_v53 = vld [vmem:[#allocation20 + $0x718] sm:$0xff] }
 0x9b9   : > { %7050 = vmatpush.msrb.mxu1 %v6306_v7  ;;  %7079 = vmatpush.msrb.mxu2 %v6354_v31  ;;  %v11150_v7 = vpop.f32.mrf.mxu0  ;;  %v6297_v31 = vld [vmem:[#allocation20 + $0xf08] sm:$0xff] }
 0x9ba   : > { %7136 = vmatpush.msra.mxu0 %v5878_v63  ;;  %7212 = vmatpush.msra.mxu3 %v6055_v52  ;;  %v6563_v63 = vadd.f32 %v11093_v2, %v6534_v13  ;;  %v11154_v52 = vpop.f32.mrf.mxu1  ;;  %v6508_v2 = vadd.f32 %v11076_v46, %v6479_v23  ;;  %v6103_v46 = vld [vmem:[#allocation20 + $0x8f8] sm:$0xff]  ;;  %v6100_v23 = vld [vmem:[#allocation20 + $0x8e0] sm:$0xff] }
 0x9bb   : > { %7034 = vmatmul.f32.gmra.mxu0 %v11007_v18  ;;  %7051 = vmatpush.msrb.mxu1 %v6303_v44  ;;  %v6424_v44 = vadd.f32 %v11062_v0, %v11115_v4  ;;  %v5956_v0 = vld [vmem:[#allocation20 + $0x460] sm:$0xff] }
 0x9bc   : > { %7080 = vmatpush.msrb.mxu2 %v6351_v47  ;;  %7137 = vmatpush.msra.mxu0 %v5875_v60  ;;  %v5866_v47 = vld [vmem:[#allocation20 + $0x190] sm:$0xff]  ;;  %v5959_v60 = vld [vmem:[#allocation20 + $0x478] sm:$0xff]  ;;  %v6592_v13 = vadd.f32 %v11103_v39, %v6563_v63  ;;  %v11167_v39 = vpop.f32.mrf.mxu2 }
 0x9bd   : > { %7213 = vmatpush.msra.mxu3 %v6052_v6  ;;  %7052 = vmatpush.msrb.mxu1 %v6300_v1  ;;  %v11163_v6 = vpop.f32.mrf.mxu3  ;;  %v6004_v1 = vld [vmem:[#allocation20 + $0x5e0] sm:$0xff] }
 0x9be   : > { %7081 = vmatpush.msrb.mxu2 %v6348_v24  ;;  %7138 = vmatpush.msra.mxu0 %v5872_v22  ;;  %v6040_v24 = vld [vmem:[#allocation20 + $0x700] sm:$0xff]  ;;  %v6453_v22 = vadd.f32 %v11069_v9, %v6424_v44  ;;  %v5950_v9 = vld [vmem:[#allocation20 + $0x430] sm:$0xff] }
 0x9bf   : > { %7214 = vmatpush.msra.mxu3 %v6049_v26  ;;  %7053 = vmatpush.msrb.mxu1 %v6297_v31  ;;  %v6537_v26 = vadd.f32 %v11098_v55, %v6508_v2  ;;  %v5953_v31 = vld [vmem:[#allocation20 + $0x448] sm:$0xff]  ;;  %v6034_v44 = vld [vmem:[#allocation20 + $0x6d0] sm:$0xff]  ;;  %v5947_v2 = vld [vmem:[#allocation20 + $0x418] sm:$0xff] }
 0x9c0   : > { %7082 = vmatpush.msrb.mxu2 %v6345_v32  ;;  %7139 = vmatpush.msra.mxu0 %v5869_v40  ;;  %v6037_v32 = vld [vmem:[#allocation20 + $0x6e8] sm:$0xff]  ;;  %v6621_v40 = vadd.f32 %v11112_v62, %v6592_v13  ;;  %v5995_v13 = vld [vmem:[#allocation20 + $0x598] sm:$0xff] }
 0x9c1   : > { %7215 = vmatpush.msra.mxu3 %v6046_v54  ;;  %7054 = vmatmul.f32.vlgmr.msrb.gmra.mxu1 %v10992_v21  ;;  %v11171_v63 = vpop.f32.mrf.mxu0  ;;  %v5998_v54 = vld [vmem:[#allocation20 + $0x5b0] sm:$0xff]  ;;  %v6097_v62 = vld [vmem:[#allocation20 + $0x8c8] sm:$0xff] }
 0x9c2   : > { %7083 = vmatmul.f32.vlgmr.msrb.gmra.mxu2 %v10996_v49  ;;  %7115 = vmatmul.f32.gmra.mxu3 %v10674_v61  ;;  %v6001_v61 = vld [vmem:[#allocation20 + $0x5c8] sm:$0xff]  ;;  %v6707_v55 = vpop.f32.mrf.mxu1 }
 0x9c3   : > { %7140 = vmatpush.msra.mxu0 %v5866_v47  ;;  %7154 = vmatpush.msra.mxu1 %v5959_v60  ;;  %v6482_v47 = vadd.f32 %v11079_v25, %v6453_v22  ;;  %v6650_v60 = vadd.f32 %v11143_v59, %v6621_v40  ;;  %v6031_v25 = vld [vmem:[#allocation20 + $0x6b8] sm:$0xff]  ;;  %v6088_v40 = vld [vmem:[#allocation20 + $0x880] sm:$0xff] }
 0x9c4   : > { %7183 = vmatpush.msra.mxu2 %v6007_v50  ;;  %7216 = vmatpush.msra.mxu3 %v6043_v53  ;;  %v6427_v50 = vadd.f32 %v11074_v34, %v11115_v4  ;;  %v5944_v34 = vld [vmem:[#allocation20 + $0x400] sm:$0xff] }
 0x9c5   : > { %7141 = vmatmul.f32.vlgmr.msra.gmra.mxu0 %v10642_v8  ;;  %7155 = vmatpush.msra.mxu1 %v5956_v0  ;;  %v6566_v8 = vadd.f32 %v11105_v17, %v6537_v26  ;;  %v6679_v53 = vadd.f32 %v11150_v7, %v6650_v60  ;;  %v6094_v17 = vld [vmem:[#allocation20 + $0x8b0] sm:$0xff]  ;;  %v6511_v59 = vadd.f32 %v11088_v29, %v6482_v47  ;;  %v11184_v4 = vpop.f32.mrf.mxu3  ;;  %v6091_v29 = vld [vmem:[#allocation20 + $0x898] sm:$0xff] }
 0x9c6   : > { %7184 = vmatpush.msra.mxu2 %v6004_v1  ;;  %7217 = vmatpush.msra.mxu3 %v6040_v24  ;;  %v5992_v1 = vld [vmem:[#allocation20 + $0x580] sm:$0xff]  ;;  %v6736_v22 = vpop.f32.mrf.mxu2  ;;  %v6456_v26 = vadd.f32 %v11081_v30, %v6427_v50  ;;  %v5938_v30 = vld [vmem:[#allocation20 + $0x3d0] sm:$0xff] }
 0x9c7   : > { %7241 = vmatpush.msrb.mxu0 %v6103_v46  ;;  %7156 = vmatpush.msra.mxu1 %v5953_v31  ;;  %v6595_v0 = vadd.f32 %v11117_v33, %v6566_v8  ;;  %v6708_v7 = vadd.f32 %v6707_v55, %v6679_v53  ;;  %v6028_v24 = vld [vmem:[#allocation20 + $0x6a0] sm:$0xff]  ;;  %v6540_v46 = vadd.f32 %v11110_v3, %v6511_v59  ;;  %v5941_v33 = vld [vmem:[#allocation20 + $0x3e8] sm:$0xff]  ;;  %v11666_v3 = vld [vmem:[#allocation35_spill] sm:$0xff] }
 0x9c8   : > { %7185 = vmatpush.msra.mxu2 %v6001_v61  ;;  %7218 = vmatpush.msra.mxu3 %v6037_v32  ;;  %v6025_v61 = vld [vmem:[#allocation20 + $0x688] sm:$0xff] }
 0x9c9   : > { %7242 = vmatpush.msrb.mxu0 %v6100_v23  ;;  %7157 = vmatpush.msra.mxu1 %v5950_v9  ;;  %v6737_v31 = vadd.f32 %v6736_v22, %v6708_v7  ;;  %v6624_v32 = vadd.f32 %v11129_v5, %v6595_v0  ;;  %v11190_v23 = vpop.f32.mrf.mxu0  ;;  %v6569_v47 = vadd.f32 %v11119_v20, %v6540_v46  ;;  %v6085_v8 = vld [vmem:[#allocation20 + $0x868] sm:$0xff]  ;;  %v6019_v20 = vld [vmem:[#allocation20 + $0x658] sm:$0xff] }
 0x9ca   : > { %7186 = vmatpush.msra.mxu2 %v5998_v54  ;;  %7219 = vmatpush.msra.mxu3 %v6034_v44  ;;  %v6710_v55 = vpop.f32.mrf.mxu1  ;;  %v5986_v54 = vld [vmem:[#allocation20 + $0x550] sm:$0xff]  ;;  %v6013_v7 = vld [vmem:[#allocation20 + $0x628] sm:$0xff] }
 0x9cb   : > { %7243 = vmatpush.msrb.mxu0 %v6097_v62  ;;  %7057 = vmatmul.f32.gmra.mxu1 %v11009_v28  ;;  %v7444_v9 = vadd.f32 %v6737_v31, %v11666_v3  ;;  %v6022_v44 = vld [vmem:[#allocation20 + $0x670] sm:$0xff]  ;;  %v6653_v5 = vadd.f32 %v11163_v6, %v6624_v32  ;;  %v5935_v62 = vld [vmem:[#allocation20 + $0x3b8] sm:$0xff]  ;;  %v6598_v53 = vadd.f32 %v11133_v58, %v6569_v47  ;;  %v5917_v47 = vld [vmem:[#allocation20 + $0x328] sm:$0xff] }
 0x9cc   : > { %7086 = vmatmul.f32.gmra.mxu2 %v11013_v10  ;;  %7118 = vmatmul.f32.gmra.mxu3 %v10710_v14  ;;  %v5989_v14 = vld [vmem:[#allocation20 + $0x568] sm:$0xff]  ;;  %v6082_v6 = vld [vmem:[#allocation20 + $0x850] sm:$0xff]  ;;  %v5923_v32 = vld [vmem:[#allocation20 + $0x358] sm:$0xff] }
 0x9cd   : > { %7158 = vmatpush.msra.mxu1 %v5947_v2  ;;  %7187 = vmatpush.msra.mxu2 %v5995_v13  ;;  %7456 = vst [vmem:[%s11198_s25] sm:$0xff] %v7444_v9  ;;  %v6682_v60 = vadd.f32 %v11171_v63, %v6653_v5  ;;  %v11207_v2 = vpop.f32.mrf.mxu3  ;;  %v5932_v63 = vld [vmem:[#allocation20 + $0x3a0] sm:$0xff]  ;;  %v6010_v31 = vld [vmem:[#allocation20 + $0x610] sm:$0xff]  ;;  %v6247_v3 = vld [vmem:[#allocation20 + $0xd78] sm:$0xff] }
 0x9ce   : > { %7220 = vmatpush.msra.mxu3 %v6031_v25  ;;  %7244 = vmatpush.msrb.mxu0 %v6094_v17  ;;  %v5980_v25 = vld [vmem:[#allocation20 + $0x520] sm:$0xff] }
 0x9cf   : > { %7144 = vmatmul.f32.gmra.mxu0 %v10680_v48  ;;  %7159 = vmatpush.msra.mxu1 %v5944_v34  ;;  %v6485_v48 = vadd.f32 %v11091_v56, %v6456_v26  ;;  %v5983_v56 = vld [vmem:[#allocation20 + $0x538] sm:$0xff]  ;;  %v6711_v13 = vadd.f32 %v6710_v55, %v6682_v60  ;;  %v6016_v17 = vld [vmem:[#allocation20 + $0x640] sm:$0xff]  ;;  %v5929_v34 = vld [vmem:[#allocation20 + $0x388] sm:$0xff] }
 0x9d0   : > { %7188 = vmatpush.msra.mxu2 %v5992_v1  ;;  %7221 = vmatpush.msra.mxu3 %v6028_v24  ;;  %v6739_v59 = vpop.f32.mrf.mxu2  ;;  %v6627_v1 = vadd.f32 %v11147_v37, %v6598_v53  ;;  %v6076_v24 = vld [vmem:[#allocation20 + $0x820] sm:$0xff]  ;;  %v5926_v26 = vld [vmem:[#allocation20 + $0x370] sm:$0xff]  ;;  %v6073_v37 = vld [vmem:[#allocation20 + $0x808] sm:$0xff] }
 0x9d1   : > { %7245 = vmatpush.msrb.mxu0 %v6091_v29  ;;  %7160 = vmatpush.msra.mxu1 %v5941_v33  ;;  %v6514_v50 = vadd.f32 %v11100_v57, %v6485_v48  ;;  %v6079_v57 = vld [vmem:[#allocation20 + $0x838] sm:$0xff]  ;;  %v6740_v58 = vadd.f32 %v6739_v59, %v6711_v13  ;;  %v11212_v22 = vpop.f32.mrf.mxu0  ;;  %v5974_v33 = vld [vmem:[#allocation20 + $0x4f0] sm:$0xff]  ;;  %v5920_v9 = vld [vmem:[#allocation20 + $0x340] sm:$0xff] }
 0x9d2   : > { %7189 = vmatpush.msra.mxu2 %v5989_v14  ;;  %7222 = vmatpush.msra.mxu3 %v6025_v61  ;;  %v6656_v14 = vadd.f32 %v11184_v4, %v6627_v1  ;;  %v6244_v48 = vld [vmem:[#allocation20 + $0xd60] sm:$0xff]  ;;  %v6241_v60 = vld [vmem:[#allocation20 + $0xd48] sm:$0xff]  ;;  %v5962_v53 = vld [vmem:[#allocation20 + $0x490] sm:$0xff] }
 0x9d3   : > { %7246 = vmatpush.msrb.mxu0 %v6088_v40  ;;  %7161 = vmatpush.msra.mxu1 %v5938_v30  ;;  %v6543_v0 = vadd.f32 %v11126_v51, %v6514_v50  ;;  %v11667_v51 = vld [vmem:[#allocation38_spill] sm:$0xff]  ;;  %v5971_v40 = vld [vmem:[#allocation20 + $0x4d8] sm:$0xff]  ;;  %v6232_v1 = vld [vmem:[#allocation20 + $0xd00] sm:$0xff] }
 0x9d4   : > { %7190 = vmatpush.msra.mxu2 %v5986_v54  ;;  %7223 = vmatpush.msra.mxu3 %v6022_v44  ;;  %v7447_v46 = vadd.f32 %v6740_v58, %v11667_v51  ;;  %v6685_v61 = vadd.f32 %v11190_v23, %v6656_v14  ;;  %v6070_v30 = vld [vmem:[#allocation20 + $0x7f0] sm:$0xff]  ;;  %v5968_v23 = vld [vmem:[#allocation20 + $0x4c0] sm:$0xff]  ;;  %v6067_v54 = vld [vmem:[#allocation20 + $0x7d8] sm:$0xff] }
 0x9d5   : > { %7247 = vmatpush.msrb.mxu0 %v6085_v8  ;;  %7060 = vmatmul.f32.gmra.mxu1 %v11023_v15  ;;  %v6713_v29 = vpop.f32.mrf.mxu1  ;;  %v11223_v4 = vpop.f32.mrf.mxu3  ;;  %v6064_v8 = vld [vmem:[#allocation20 + $0x7c0] sm:$0xff]  ;;  %v6238_v13 = vld [vmem:[#allocation20 + $0xd30] sm:$0xff]  ;;  %v6199_v59 = vld [vmem:[#allocation20 + $0xbf8] sm:$0xff] }
 0x9d6   : > { %7089 = vmatmul.f32.gmra.mxu2 %v11025_v45  ;;  %7121 = vmatmul.f32.gmra.mxu3 %v10758_v41  ;;  %v5977_v41 = vld [vmem:[#allocation20 + $0x508] sm:$0xff]  ;;  %7459 = vst [vmem:[%s11198_s25 + $0x18] sm:$0xff] %v7447_v46  ;;  %v6714_v55 = vadd.f32 %v6713_v29, %v6685_v61  ;;  %v6148_v58 = vld [vmem:[#allocation20 + $0xa60] sm:$0xff] }
 0x9d7   : > { %7162 = vmatpush.msra.mxu1 %v5935_v62  ;;  %7191 = vmatpush.msra.mxu2 %v5983_v56  ;;  %v5914_v56 = vld [vmem:[#allocation20 + $0x310] sm:$0xff]  ;;  %v6193_v46 = vld [vmem:[#allocation20 + $0xbc8] sm:$0xff]  ;;  %v11672_v14 = vld [vmem:[#allocation44_spill] sm:$0xff] }
 0x9d8   : > { %7224 = vmatpush.msra.mxu3 %v6019_v20  ;;  %7248 = vmatpush.msrb.mxu0 %v6082_v6  ;;  %v11668_v20 = vld [vmem:[#allocation41_spill] sm:$0xff]  ;;  %v11671_v51 = vld [vmem:[#allocation54_spill] sm:$0xff] }
 0x9d9   : > { %7147 = vmatmul.f32.gmra.mxu0 %v10716_v11  ;;  %7163 = vmatpush.msra.mxu1 %v5932_v63  ;;  %v6572_v11 = vadd.f32 %v11135_v43, %v6543_v0  ;;  %v11227_v62 = vpop.f32.mrf.mxu0  ;;  %v6061_v63 = vld [vmem:[#allocation20 + $0x7a8] sm:$0xff]  ;;  %v6235_v0 = vld [vmem:[#allocation20 + $0xd18] sm:$0xff] }
 0x9da   : > { %7192 = vmatpush.msra.mxu2 %v5980_v25  ;;  %7225 = vmatpush.msra.mxu3 %v6016_v17  ;;  %v6058_v25 = vld [vmem:[#allocation20 + $0x790] sm:$0xff]  ;;  %v6151_v17 = vld [vmem:[#allocation20 + $0xa78] sm:$0xff]  ;;  %v6229_v29 = vld [vmem:[#allocation20 + $0xce8] sm:$0xff] }
 0x9db   : > { %7249 = vmatpush.msrb.mxu0 %v6079_v57  ;;  %7164 = vmatpush.msra.mxu1 %v5929_v34  ;;  %v6601_v43 = vadd.f32 %v11154_v52, %v6572_v11  ;;  %v5965_v52 = vld [vmem:[#allocation20 + $0x4a8] sm:$0xff]  ;;  %v11669_v57 = vld [vmem:[#allocation91_spill] sm:$0xff] }
 0x9dc   : > { %7193 = vmatpush.msra.mxu2 %v5977_v41  ;;  %7226 = vmatpush.msra.mxu3 %v6013_v7  ;;  %v6196_v7 = vld [vmem:[#allocation20 + $0xbe0] sm:$0xff]  ;;  %v6142_v11 = vld [vmem:[#allocation20 + $0xa30] sm:$0xff] }
 0x9dd   : > { %7250 = vmatpush.msrb.mxu0 %v6076_v24  ;;  %7165 = vmatpush.msra.mxu1 %v5926_v26  ;;  %v11236_v34 = vpop.f32.mrf.mxu3  ;;  %v6145_v26 = vld [vmem:[#allocation20 + $0xa48] sm:$0xff] }
 0x9de   : > { %7194 = vmatpush.msra.mxu2 %v5974_v33  ;;  %7227 = vmatpush.msra.mxu3 %v6010_v31  ;;  %v6742_v44 = vpop.f32.mrf.mxu2  ;;  %v6292_v33 = vld [vmem:[#allocation20 + $0xee0] sm:$0xff] }
 0x9df   : > { %7251 = vmatpush.msrb.mxu0 %v6073_v37  ;;  %7063 = vmatmul.f32.gmra.mxu1 %v11037_v42  ;;  %v6743_v5 = vadd.f32 %v6742_v44, %v6714_v55  ;;  %v6223_v55 = vld [vmem:[#allocation20 + $0xcb8] sm:$0xff] }
 0x9e0   : > { %7092 = vmatmul.f32.gmra.mxu2 %v11039_v36  ;;  %7228 = vmatmul.f32.vlgmr.msra.gmra.mxu3 %v10796_v35  ;;  %v6630_v35 = vadd.f32 %v11167_v39, %v6601_v43  ;;  %v6187_v43 = vld [vmem:[#allocation20 + $0xb98] sm:$0xff] }
 0x9e1   : > { %7166 = vmatpush.msra.mxu1 %v5923_v32  ;;  %7195 = vmatpush.msra.mxu2 %v5971_v40  ;;  %v7450_v6 = vadd.f32 %v6743_v5, %v11668_v20  ;;  %v11239_v31 = vpop.f32.mrf.mxu0  ;;  %v6190_v32 = vld [vmem:[#allocation20 + $0xbb0] sm:$0xff]  ;;  %v11675_v44 = vld [vmem:[#allocation60_spill] sm:$0xff]  ;;  %v6181_v20 = vld [vmem:[#allocation20 + $0xb68] sm:$0xff] }
 0x9e2   : > { %7252 = vmatpush.msrb.mxu0 %v6070_v30  ;;  %7328 = vmatpush.msrb.mxu3 %v6247_v3  ;;  %v6226_v40 = vld [vmem:[#allocation20 + $0xcd0] sm:$0xff]  ;;  %v6289_v30 = vld [vmem:[#allocation20 + $0xec8] sm:$0xff]  ;;  %v6139_v3 = vld [vmem:[#allocation20 + $0xa18] sm:$0xff] }
 0x9e3   : > { %7150 = vmatmul.f32.gmra.mxu0 %v10764_v12  ;;  %7167 = vmatpush.msra.mxu1 %v5920_v9  ;;  %v6716_v50 = vpop.f32.mrf.mxu1  ;;  %v6659_v12 = vadd.f32 %v11207_v2, %v6630_v35  ;;  %7462 = vst [vmem:[%s11198_s25 + $0x30] sm:$0xff] %v7450_v6  ;;  %v11670_v2 = vld [vmem:[#allocation52_spill] sm:$0xff]  ;;  %v6217_v6 = vld [vmem:[#allocation20 + $0xc88] sm:$0xff] }
 0x9e4   : > { %7196 = vmatpush.msra.mxu2 %v5968_v23  ;;  %7253 = vmatpush.msrb.mxu0 %v6067_v54  ;;  %v11673_v9 = vld [vmem:[#allocation92_spill] sm:$0xff]  ;;  %v6286_v23 = vld [vmem:[#allocation20 + $0xeb0] sm:$0xff]  ;;  %v11674_v54 = vld [vmem:[#allocation93_spill] sm:$0xff] }
 0x9e5   : > { %7329 = vmatpush.msrb.mxu3 %v6244_v48  ;;  %7168 = vmatpush.msra.mxu1 %v5917_v47  ;;  %v6688_v39 = vadd.f32 %v11212_v22, %v6659_v12  ;;  %v6295_v22 = vld [vmem:[#allocation20 + $0xef8] sm:$0xff]  ;;  %v11248_v48 = vpop.f32.mrf.mxu3  ;;  %v6136_v47 = vld [vmem:[#allocation20 + $0xa00] sm:$0xff] }
 0x9e6   : > { %7197 = vmatpush.msra.mxu2 %v5965_v52  ;;  %7254 = vmatpush.msrb.mxu0 %v6064_v8  ;;  %v6184_v5 = vld [vmem:[#allocation20 + $0xb80] sm:$0xff]  ;;  %v6283_v35 = vld [vmem:[#allocation20 + $0xe98] sm:$0xff] }
 0x9e7   : > { %7330 = vmatpush.msrb.mxu3 %v6241_v60  ;;  %7169 = vmatpush.msra.mxu1 %v5914_v56  ;;  %v6717_v41 = vadd.f32 %v6716_v50, %v6688_v39  ;;  %v6220_v52 = vld [vmem:[#allocation20 + $0xca0] sm:$0xff]  ;;  %v6133_v60 = vld [vmem:[#allocation20 + $0x9e8] sm:$0xff]  ;;  %v11676_v56 = vld [vmem:[#allocation55_spill] sm:$0xff] }
 0x9e8   : > { %7198 = vmatpush.msra.mxu2 %v5962_v53  ;;  %7255 = vmatpush.msrb.mxu0 %v6061_v63  ;;  %v6280_v50 = vld [vmem:[#allocation20 + $0xe80] sm:$0xff]  ;;  %v6130_v63 = vld [vmem:[#allocation20 + $0x9d0] sm:$0xff] }
 0x9e9   : > { %7331 = vmatpush.msrb.mxu3 %v6238_v13  ;;  %7170 = vmatmul.f32.vlgmr.msra.gmra.mxu1 %v10644_v27  ;;  %v11253_v53 = vpop.f32.mrf.mxu0  ;;  %v6178_v13 = vld [vmem:[#allocation20 + $0xb50] sm:$0xff] }
 0x9ea   : > { %7199 = vmatmul.f32.vlgmr.msra.gmra.mxu2 %v11669_v57  ;;  %7231 = vmatmul.f32.gmra.mxu3 %v11670_v2  ;;  %v6745_v24 = vpop.f32.mrf.mxu2  ;;  %v6214_v39 = vld [vmem:[#allocation20 + $0xc70] sm:$0xff]  ;;  %v6211_v57 = vld [vmem:[#allocation20 + $0xc58] sm:$0xff] }
 0x9eb   : > { %7256 = vmatpush.msrb.mxu0 %v6058_v25  ;;  %7270 = vmatpush.msrb.mxu1 %v6151_v17  ;;  %v6746_v27 = vadd.f32 %v6745_v24, %v6717_v41  ;;  %v6277_v25 = vld [vmem:[#allocation20 + $0xe68] sm:$0xff]  ;;  %v6127_v17 = vld [vmem:[#allocation20 + $0x9b8] sm:$0xff]  ;;  %v6274_v2 = vld [vmem:[#allocation20 + $0xe50] sm:$0xff] }
 0x9ec   : > { %7299 = vmatpush.msrb.mxu2 %v6199_v59  ;;  %7332 = vmatpush.msrb.mxu3 %v6235_v0  ;;  %v6175_v59 = vld [vmem:[#allocation20 + $0xb38] sm:$0xff]  ;;  %v6172_v24 = vld [vmem:[#allocation20 + $0xb20] sm:$0xff] }
 0x9ed   : > { %7257 = vmatmul.f32.vlgmr.msrb.gmra.mxu0 %v11671_v51  ;;  %7271 = vmatpush.msrb.mxu1 %v6148_v58  ;;  %v7453_v37 = vadd.f32 %v6746_v27, %v11672_v14  ;;  %v11677_v0 = vld [vmem:[#allocation47_spill] sm:$0xff]  ;;  %v11678_v58 = vld [vmem:[#allocation53_spill] sm:$0xff] }
 0x9ee   : > { %7300 = vmatpush.msrb.mxu2 %v6196_v7  ;;  %7333 = vmatpush.msrb.mxu3 %v6232_v1  ;;  %v11242_v61 = vpop.f32.mrf.mxu1  ;;  %v11679_v41 = vld [vmem:[#allocation75_spill] sm:$0xff]  ;;  %v11260_v7 = vpop.f32.mrf.mxu3  ;;  %v6124_v1 = vld [vmem:[#allocation20 + $0x9a0] sm:$0xff]  ;;  %v6121_v51 = vld [vmem:[#allocation20 + $0x988] sm:$0xff] }
 0x9ef   : > { %7357 = vmatpush.msra.mxu0 %v6295_v22  ;;  %7272 = vmatpush.msrb.mxu1 %v6145_v26  ;;  %7465 = vst [vmem:[%s11198_s25 + $0x48] sm:$0xff] %v7453_v37  ;;  %v6208_v22 = vld [vmem:[#allocation20 + $0xc40] sm:$0xff]  ;;  %v6271_v27 = vld [vmem:[#allocation20 + $0xe38] sm:$0xff]  ;;  %v6118_v37 = vld [vmem:[#allocation20 + $0x970] sm:$0xff] }
 0x9f0   : > { %7301 = vmatpush.msrb.mxu2 %v6193_v46  ;;  %7334 = vmatpush.msrb.mxu3 %v6229_v29  ;;  %v11680_v46 = vld [vmem:[#allocation56_spill] sm:$0xff]  ;;  %v6169_v29 = vld [vmem:[#allocation20 + $0xb08] sm:$0xff] }
 0x9f1   : > { %7358 = vmatpush.msra.mxu0 %v6292_v33  ;;  %7273 = vmatpush.msrb.mxu1 %v6142_v11  ;;  %v6205_v33 = vld [vmem:[#allocation20 + $0xc28] sm:$0xff]  ;;  %v6268_v11 = vld [vmem:[#allocation20 + $0xe20] sm:$0xff]  ;;  %v11265_v14 = vpop.f32.mrf.mxu0 }
 0x9f2   : > { %7302 = vmatpush.msrb.mxu2 %v6190_v32  ;;  %7335 = vmatpush.msrb.mxu3 %v6226_v40  ;;  %v6166_v40 = vld [vmem:[#allocation20 + $0xaf0] sm:$0xff] }
 0x9f3   : > { %7359 = vmatpush.msra.mxu0 %v6289_v30  ;;  %7173 = vmatmul.f32.gmra.mxu1 %v11673_v9  ;;  %v6202_v30 = vld [vmem:[#allocation20 + $0xc10] sm:$0xff]  ;;  %v6163_v9 = vld [vmem:[#allocation20 + $0xad8] sm:$0xff] }
 0x9f4   : > { %7202 = vmatmul.f32.gmra.mxu2 %v11674_v54  ;;  %7234 = vmatmul.f32.gmra.mxu3 %v11675_v44  ;;  %v11682_v54 = vld [vmem:[#allocation33_spill] sm:$0xff]  ;;  %v11683_v44 = vld [vmem:[#allocation76_spill] sm:$0xff] }
 0x9f5   : > { %7274 = vmatpush.msrb.mxu1 %v6139_v3  ;;  %7303 = vmatpush.msrb.mxu2 %v6187_v43  ;;  %v11250_v8 = vpop.f32.mrf.mxu2  ;;  %v6265_v3 = vld [vmem:[#allocation20 + $0xe08] sm:$0xff]  ;;  %v6115_v43 = vld [vmem:[#allocation20 + $0x958] sm:$0xff] }
 0x9f6   : > { %7336 = vmatpush.msrb.mxu3 %v6223_v55  ;;  %7360 = vmatpush.msra.mxu0 %v6286_v23  ;;  %v11681_v55 = vld [vmem:[#allocation48_spill] sm:$0xff]  ;;  %v6262_v23 = vld [vmem:[#allocation20 + $0xdf0] sm:$0xff] }
 0x9f7   : > { %7260 = vmatmul.f32.gmra.mxu0 %v11676_v56  ;;  %7275 = vmatpush.msrb.mxu1 %v6136_v47  ;;  %v11272_v47 = vpop.f32.mrf.mxu3  ;;  %v6109_v56 = vld [vmem:[#allocation20 + $0x928] sm:$0xff] }
 0x9f8   : > { %7304 = vmatpush.msrb.mxu2 %v6184_v5  ;;  %7337 = vmatpush.msrb.mxu3 %v6220_v52  ;;  %v11255_v12 = vpop.f32.mrf.mxu1  ;;  %v6112_v5 = vld [vmem:[#allocation20 + $0x940] sm:$0xff] }
 0x9f9   : > { %7361 = vmatpush.msra.mxu0 %v6283_v35  ;;  %7276 = vmatpush.msrb.mxu1 %v6133_v60  ;;  %v6160_v52 = vld [vmem:[#allocation20 + $0xac0] sm:$0xff]  ;;  %v6259_v35 = vld [vmem:[#allocation20 + $0xdd8] sm:$0xff] }
 0x9fa   : > { %7305 = vmatpush.msrb.mxu2 %v6181_v20  ;;  %7338 = vmatpush.msrb.mxu3 %v6217_v6  ;;  %v11684_v20 = vld [vmem:[#allocation58_spill] sm:$0xff] }
 0x9fb   : > { %7362 = vmatpush.msra.mxu0 %v6280_v50  ;;  %7277 = vmatpush.msrb.mxu1 %v6130_v63  ;;  %v6157_v6 = vld [vmem:[#allocation20 + $0xaa8] sm:$0xff]  ;;  %v6256_v50 = vld [vmem:[#allocation20 + $0xdc0] sm:$0xff]  ;;  %v11277_v63 = vpop.f32.mrf.mxu0 }
 0x9fc   : > { %7306 = vmatpush.msrb.mxu2 %v6178_v13  ;;  %7339 = vmatpush.msrb.mxu3 %v6214_v39  ;;  %v6106_v13 = vld [vmem:[#allocation20 + $0x910] sm:$0xff] }
 0x9fd   : > { %7363 = vmatpush.msra.mxu0 %v6277_v25  ;;  %7176 = vmatmul.f32.gmra.mxu1 %v11677_v0  ;;  %v6154_v25 = vld [vmem:[#allocation20 + $0xa90] sm:$0xff]  ;;  %v6343_v0 = vld [vmem:[#allocation20 + $0x1078] sm:$0xff] }
 0x9fe   : > { %7205 = vmatmul.f32.gmra.mxu2 %v11678_v58  ;;  %7237 = vmatmul.f32.gmra.mxu3 %v11679_v41  ;;  %v11686_v58 = vld [vmem:[#allocation51_spill] sm:$0xff] }
 0x9ff   : > { %7278 = vmatpush.msrb.mxu1 %v6127_v17  ;;  %7307 = vmatpush.msrb.mxu2 %v6175_v59  ;;  %v11262_v26 = vpop.f32.mrf.mxu2  ;;  %v6253_v17 = vld [vmem:[#allocation20 + $0xda8] sm:$0xff]  ;;  %v6250_v59 = vld [vmem:[#allocation20 + $0xd90] sm:$0xff] }
 0xa00   : > { %7340 = vmatpush.msrb.mxu3 %v6211_v57  ;;  %7364 = vmatpush.msra.mxu0 %v6274_v2  ;;  %v6391_v57 = vld [vmem:[#allocation20 + $0x11f8] sm:$0xff]  ;;  %v11685_v2 = vld [vmem:[#allocation50_spill] sm:$0xff] }
 0xa01   : > { %7263 = vmatmul.f32.gmra.mxu0 %v11680_v46  ;;  %7279 = vmatpush.msrb.mxu1 %v6124_v1  ;;  %v11687_v41 = vld [vmem:[#allocation59_spill] sm:$0xff]  ;;  %v11284_v1 = vpop.f32.mrf.mxu3  ;;  %v6337_v46 = vld [vmem:[#allocation20 + $0x1048] sm:$0xff] }
 0xa02   : > { %7308 = vmatpush.msrb.mxu2 %v6172_v24  ;;  %7341 = vmatpush.msrb.mxu3 %v6208_v22  ;;  %v11267_v32 = vpop.f32.mrf.mxu1  ;;  %v6340_v24 = vld [vmem:[#allocation20 + $0x1060] sm:$0xff] }
 0xa03   : > { %7365 = vmatpush.msra.mxu0 %v6271_v27  ;;  %7280 = vmatpush.msrb.mxu1 %v6121_v51  ;;  %v6388_v22 = vld [vmem:[#allocation20 + $0x11e0] sm:$0xff] }
 0xa04   : > { %7309 = vmatpush.msrb.mxu2 %v6169_v29  ;;  %7342 = vmatpush.msrb.mxu3 %v6205_v33  ;;  %v11688_v51 = vld [vmem:[#allocation77_spill] sm:$0xff]  ;;  %v11289_v33 = vpop.f32.mrf.mxu0 }
 0xa05   : > { %7366 = vmatpush.msra.mxu0 %v6268_v11  ;;  %7281 = vmatpush.msrb.mxu1 %v6118_v37  ;;  %v6385_v29 = vld [vmem:[#allocation20 + $0x11c8] sm:$0xff]  ;;  %v6334_v11 = vld [vmem:[#allocation20 + $0x1030] sm:$0xff] }
 0xa06   : > { %7310 = vmatpush.msrb.mxu2 %v6166_v40  ;;  %7343 = vmatpush.msrb.mxu3 %v6202_v30  ;;  %v6382_v37 = vld [vmem:[#allocation20 + $0x11b0] sm:$0xff]  ;;  %v6331_v30 = vld [vmem:[#allocation20 + $0x1018] sm:$0xff] }
 0xa07   : > { %7367 = vmatpush.msra.mxu0 %v6265_v3  ;;  %7179 = vmatmul.f32.gmra.mxu1 %v11681_v55  ;;  %v6379_v3 = vld [vmem:[#allocation20 + $0x1198] sm:$0xff]  ;;  %v6328_v55 = vld [vmem:[#allocation20 + $0x1000] sm:$0xff] }
 0xa08   : > { %7208 = vmatmul.f32.gmra.mxu2 %v11682_v54  ;;  %7344 = vmatmul.f32.vlgmr.msrb.gmra.mxu3 %v11683_v44  ;;  %v6376_v54 = vld [vmem:[#allocation20 + $0x1180] sm:$0xff] }
 0xa09   : > { %7282 = vmatpush.msrb.mxu1 %v6115_v43  ;;  %7311 = vmatpush.msrb.mxu2 %v6163_v9  ;;  %v11274_v60 = vpop.f32.mrf.mxu2  ;;  %v11689_v43 = vld [vmem:[#allocation46_spill] sm:$0xff]  ;;  %v11690_v9 = vld [vmem:[#allocation49_spill] sm:$0xff]  ;;  %v11692_v44 = vld [vmem:[#allocation64_spill] sm:$0xff] }
 0xa0a   : > { %7368 = vmatpush.msra.mxu0 %v6262_v23  ;;  %v11691_v23 = vld [vmem:[#allocation74_spill] sm:$0xff] }
 0xa0b   : > { %7266 = vmatmul.f32.gmra.mxu0 %v11684_v20  ;;  %7283 = vmatpush.msrb.mxu1 %v6112_v5  ;;  %v11297_v5 = vpop.f32.mrf.mxu3  ;;  %v6322_v20 = vld [vmem:[#allocation20 + $0xfd0] sm:$0xff] }
 0xa0c   : > { %7312 = vmatpush.msrb.mxu2 %v6160_v52  ;;  %7369 = vmatpush.msra.mxu0 %v6259_v35  ;;  %v11279_v39 = vpop.f32.mrf.mxu1  ;;  %v6325_v52 = vld [vmem:[#allocation20 + $0xfe8] sm:$0xff] }
 0xa0d   : > { %7284 = vmatpush.msrb.mxu1 %v6109_v56  ;;  %v6373_v35 = vld [vmem:[#allocation20 + $0x1168] sm:$0xff] }
 0xa0e   : > { %7313 = vmatpush.msrb.mxu2 %v6157_v6  ;;  %7370 = vmatpush.msra.mxu0 %v6256_v50  ;;  %v6370_v6 = vld [vmem:[#allocation20 + $0x1150] sm:$0xff]  ;;  %v11301_v50 = vpop.f32.mrf.mxu0 }
 0xa0f   : > { %7285 = vmatpush.msrb.mxu1 %v6106_v13 }
 0xa10   : > { %7314 = vmatpush.msrb.mxu2 %v6154_v25  ;;  %7371 = vmatpush.msra.mxu0 %v6253_v17  ;;  %v6319_v25 = vld [vmem:[#allocation20 + $0xfb8] sm:$0xff] }
 0xa11   : > { %7286 = vmatmul.f32.vlgmr.msrb.gmra.mxu1 %v11685_v2  ;;  %7315 = vmatmul.f32.vlgmr.msrb.gmra.mxu2 %v11686_v58  ;;  %v6367_v17 = vld [vmem:[#allocation20 + $0x1138] sm:$0xff]  ;;  %v6316_v2 = vld [vmem:[#allocation20 + $0xfa0] sm:$0xff] }
 0xa12   : > { %7347 = vmatmul.f32.gmra.mxu3 %v11687_v41  ;;  %7372 = vmatpush.msra.mxu0 %v6250_v59  ;;  %v11693_v59 = vld [vmem:[#allocation57_spill] sm:$0xff]  ;;  %v11308_v41 = vld [vmem:[#allocation21] sm:$0x7] }
 0xa13   : > { %7386 = vmatpush.msra.mxu1 %v6343_v0  ;;  %7415 = vmatpush.msra.mxu2 %v6391_v57  ;;  %v11286_v27 = vpop.f32.mrf.mxu2  ;;  %v11694_v0 = vld [vmem:[#allocation61_spill] sm:$0xff] }
 0xa14   : > { %7373 = vmatmul.f32.vlgmr.msra.gmra.mxu0 %v11688_v51  ;;  %v11695_v57 = vld [vmem:[#allocation65_spill] sm:$0xff] }
 0xa15   : > { %7387 = vmatpush.msra.mxu1 %v6340_v24  ;;  %7416 = vmatpush.msra.mxu2 %v6388_v22  ;;  %v6364_v58 = vld [vmem:[#allocation20 + $0x1120] sm:$0xff]  ;;  %v11311_v24 = vperm.slane %v11308_v41, 1  ;;  %v6313_v22 = vld [vmem:[#allocation20 + $0xf88] sm:$0xff] }
 0xa16   : > { %v11291_v40 = vpop.f32.mrf.mxu1  ;;  %v6361_v51 = vld [vmem:[#allocation20 + $0x1108] sm:$0xff] }
 0xa17   : > { %7388 = vmatpush.msra.mxu1 %v6337_v46  ;;  %7417 = vmatpush.msra.mxu2 %v6385_v29  ;;  %v11314_v46 = vpop.f32.mrf.mxu3  ;;  %v6310_v29 = vld [vmem:[#allocation20 + $0xf70] sm:$0xff] }
 0xa19   : > { %7389 = vmatpush.msra.mxu1 %v6334_v11  ;;  %7418 = vmatpush.msra.mxu2 %v6382_v37  ;;  %v6358_v11 = vld [vmem:[#allocation20 + $0x10f0] sm:$0xff] }
 0xa1a   : > { %7289 = vmatmul.f32.gmra.mxu1 %v11689_v43  ;;  %7318 = vmatmul.f32.gmra.mxu2 %v11690_v9  ;;  %v6355_v43 = vld [vmem:[#allocation20 + $0x10d8] sm:$0xff] }
 0xa1b   : > { %7350 = vmatmul.f32.gmra.mxu3 %v11691_v23  ;;  %7390 = vmatpush.msra.mxu1 %v6331_v30  ;;  %v6766_v30 = vadd.f32 %v11223_v4, %v11311_v24  ;;  %v6304_v23 = vld [vmem:[#allocation20 + $0xf40] sm:$0xff] }
 0xa1c   : > { %7419 = vmatpush.msra.mxu2 %v6379_v3  ;;  %7376 = vmatmul.f32.gmra.mxu0 %v11692_v44  ;;  %v6307_v3 = vld [vmem:[#allocation20 + $0xf58] sm:$0xff]  ;;  %v6301_v44 = vld [vmem:[#allocation20 + $0xf28] sm:$0xff] }
 0xa1d   : > { %7391 = vmatpush.msra.mxu1 %v6328_v55  ;;  %v11299_v56 = vpop.f32.mrf.mxu2  ;;  %v6795_v9 = vadd.f32 %v11227_v62, %v6766_v30  ;;  %v11319_v55 = vpop.f32.mrf.mxu0  ;;  %v6349_v62 = vld [vmem:[#allocation20 + $0x10a8] sm:$0xff] }
 0xa1e   : > { %7420 = vmatpush.msra.mxu2 %v6376_v54  ;;  %v6352_v54 = vld [vmem:[#allocation20 + $0x10c0] sm:$0xff] }
 0xa1f   : > { %7392 = vmatpush.msra.mxu1 %v6325_v52  ;;  %v6824_v4 = vadd.f32 %v11242_v61, %v6795_v9 }
 0xa20   : > { %7421 = vmatpush.msra.mxu2 %v6373_v35  ;;  %v11303_v13 = vpop.f32.mrf.mxu1  ;;  %v6298_v35 = vld [vmem:[#allocation20 + $0xf10] sm:$0xff] }
 0xa21   : > { %7393 = vmatpush.msra.mxu1 %v6322_v20  ;;  %v6853_v52 = vadd.f32 %v11250_v8, %v6824_v4  ;;  %v6346_v20 = vld [vmem:[#allocation20 + $0x1090] sm:$0xff]  ;;  %v11697_v4 = vld [vmem:[#allocation37_spill] sm:$0xff] }
 0xa22   : > { %7422 = vmatpush.msra.mxu2 %v6370_v6  ;;  %7292 = vmatmul.f32.gmra.mxu1 %v11693_v59  ;;  %v6997_v6 = vpop.f32.mrf.mxu3 }
 0xa23   : > { %7321 = vmatmul.f32.gmra.mxu2 %v11694_v0  ;;  %7353 = vmatmul.f32.gmra.mxu3 %v11695_v57  ;;  %v6882_v61 = vadd.f32 %v11272_v47, %v6853_v52 }
 0xa24   : > { %7394 = vmatpush.msra.mxu1 %v6319_v25  ;;  %7423 = vmatpush.msra.mxu2 %v6367_v17 }
 0xa25   : > { %7379 = vmatmul.f32.gmra.mxu0 %v10989_v38  ;;  %v7026_v8 = vpop.f32.mrf.mxu0  ;;  %v6911_v59 = vadd.f32 %v11277_v63, %v6882_v61 }
 0xa26   : > { %7395 = vmatpush.msra.mxu1 %v6316_v2  ;;  %7424 = vmatpush.msra.mxu2 %v6364_v58 }
 0xa27   : > { %v6971_v37 = vpop.f32.mrf.mxu2 }
 0xa28   : > { %7396 = vmatpush.msra.mxu1 %v6313_v22  ;;  %7425 = vmatpush.msra.mxu2 %v6361_v51  ;;  %v6775_v51 = vadd.f32 %v11260_v7, %v11311_v24 }
 0xa2a   : > { %7397 = vmatpush.msra.mxu1 %v6310_v29  ;;  %7426 = vmatpush.msra.mxu2 %v6358_v11  ;;  %v11321_v38 = vpop.f32.mrf.mxu1  ;;  %v7000_v57 = vpop.f32.mrf.mxu3  ;;  %v11696_v11 = vld [vmem:[#allocation34_spill] sm:$0xff] }
 0xa2b   : > { %7295 = vmatmul.f32.gmra.mxu1 %v10910_v19  ;;  %7324 = vmatmul.f32.gmra.mxu2 %v10915_v16  ;;  %v6769_v16 = vadd.f32 %v11236_v34, %v11311_v24  ;;  %v6940_v34 = vadd.f32 %v11291_v40, %v6911_v59 }
 0xa2c   : > { %7398 = vmatpush.msra.mxu1 %v6307_v3  ;;  %7427 = vmatpush.msra.mxu2 %v6355_v43 }
 0xa2d   : > { %7382 = vmatmul.f32.gmra.mxu0 %v11007_v18  ;;  %v6798_v18 = vadd.f32 %v11239_v31, %v6769_v16  ;;  %v6969_v47 = vadd.f32 %v11299_v56, %v6940_v34  ;;  %v7029_v2 = vpop.f32.mrf.mxu0  ;;  %v11698_v16 = vld [vmem:[#allocation40_spill] sm:$0xff] }
 0xa2e   : > { %7399 = vmatpush.msra.mxu1 %v6304_v23  ;;  %7428 = vmatpush.msra.mxu2 %v6352_v54 }
 0xa2f   : > { %v6827_v17 = vadd.f32 %v11255_v12, %v6798_v18  ;;  %v6998_v63 = vadd.f32 %v6997_v6, %v6969_v47 }
 0xa30   : > { %7400 = vmatpush.msra.mxu1 %v6301_v44  ;;  %7429 = vmatpush.msra.mxu2 %v6349_v62 }
 0xa31   : > { %v6974_v19 = vpop.f32.mrf.mxu2  ;;  %v6856_v0 = vadd.f32 %v11262_v26, %v6827_v17 }
 0xa32   : > { %7401 = vmatpush.msra.mxu1 %v6298_v35  ;;  %7430 = vmatpush.msra.mxu2 %v6346_v20 }
 0xa33   : > { %7402 = vmatmul.f32.vlgmr.msra.gmra.mxu1 %v10992_v21  ;;  %7431 = vmatmul.f32.vlgmr.msra.gmra.mxu2 %v10996_v49  ;;  %v6772_v49 = vadd.f32 %v11248_v48, %v11311_v24  ;;  %v6885_v31 = vadd.f32 %v11284_v1, %v6856_v0  ;;  %v7003_v1 = vpop.f32.mrf.mxu3 }
 0xa34   : > { %v6948_v25 = vpop.f32.mrf.mxu1 }
 0xa35   : > { %v6801_v12 = vadd.f32 %v11253_v53, %v6772_v49  ;;  %v6914_v56 = vadd.f32 %v11289_v33, %v6885_v31 }
 0xa37   : > { %v6830_v40 = vadd.f32 %v11267_v32, %v6801_v12 }
 0xa39   : > { %v6859_v58 = vadd.f32 %v11274_v60, %v6830_v40  ;;  %v6804_v60 = vadd.f32 %v11265_v14, %v6775_v51 }
 0xa3b   : > { %7405 = vmatmul.f32.gmra.mxu1 %v11009_v28  ;;  %7434 = vmatmul.f32.gmra.mxu2 %v11013_v10  ;;  %v6977_v21 = vpop.f32.mrf.mxu2  ;;  %v6943_v28 = vadd.f32 %v11303_v13, %v6914_v56  ;;  %v7027_v10 = vadd.f32 %v7026_v8, %v6998_v63  ;;  %v6888_v32 = vadd.f32 %v11297_v5, %v6859_v58  ;;  %v7032_v13 = vpop.f32.mrf.mxu0 }
 0xa3c   : > { %v6833_v3 = vadd.f32 %v11279_v39, %v6804_v60 }
 0xa3d   : > { %v6972_v48 = vadd.f32 %v6971_v37, %v6943_v28  ;;  %v7006_v37 = vpop.f32.mrf.mxu3 }
 0xa3e   : > { %v7055_v26 = vpop.f32.mrf.mxu1  ;;  %v6862_v7 = vadd.f32 %v11286_v27, %v6833_v3 }
 0xa3f   : > { %v7056_v53 = vadd.f32 %v7055_v26, %v7027_v10  ;;  %v7001_v29 = vadd.f32 %v7000_v57, %v6972_v48 }
 0xa40   : > { %v6891_v23 = vadd.f32 %v11314_v46, %v6862_v7 }
 0xa41   : > { %v7030_v14 = vadd.f32 %v7029_v2, %v7001_v29 }
 0xa43   : > { %7408 = vmatmul.f32.gmra.mxu1 %v11023_v15  ;;  %7437 = vmatmul.f32.gmra.mxu2 %v11025_v45  ;;  %v6917_v45 = vadd.f32 %v11301_v50, %v6888_v32  ;;  %v7035_v50 = vpop.f32.mrf.mxu0 }
 0xa45   : > { %v7084_v22 = vpop.f32.mrf.mxu2  ;;  %v6946_v5 = vadd.f32 %v11321_v38, %v6917_v45  ;;  %v7113_v52 = vpop.f32.mrf.mxu3 }
 0xa46   : > { %v7085_v33 = vadd.f32 %v7084_v22, %v7056_v53 }
 0xa47   : > { %v6975_v24 = vadd.f32 %v6974_v19, %v6946_v5 }
 0xa48   : > { %v7445_v30 = vadd.f32 %v7085_v33, %v11696_v11  ;;  %v7058_v15 = vpop.f32.mrf.mxu1  ;;  %v6396_v33 = vperm.slane %v11308_v41, 2 }
 0xa49   : > { %v7059_v43 = vadd.f32 %v7058_v15, %v7030_v14  ;;  %v7004_v54 = vadd.f32 %v7003_v1, %v6975_v24 }
 0xa4a   : > { %7457 = vst [vmem:[%s11198_s25 + $0x8] sm:$0xff] %v7445_v30 }
 0xa4b   : > { %7411 = vmatmul.f32.gmra.mxu1 %v11037_v42  ;;  %7440 = vmatmul.f32.gmra.mxu2 %v11039_v36  ;;  %v6920_v36 = vadd.f32 %v11319_v55, %v6891_v23  ;;  %v7033_v62 = vadd.f32 %v7032_v13, %v7004_v54  ;;  %v7142_v46 = vpop.f32.mrf.mxu0  ;;  %v7114_v13 = vadd.f32 %v7113_v52, %v6396_v33 }
 0xa4d   : > { %v6949_v27 = vadd.f32 %v6948_v25, %v6920_v36  ;;  %v7116_v17 = vpop.f32.mrf.mxu3  ;;  %v11699_v25 = vld [vmem:[#allocation43_spill] sm:$0xff]  ;;  %v7143_v11 = vadd.f32 %v7142_v46, %v7114_v13 }
 0xa4e   : > { %v7117_v5 = vadd.f32 %v7116_v17, %v6396_v33 }
 0xa4f   : > { %v7087_v9 = vpop.f32.mrf.mxu2  ;;  %v6978_v38 = vadd.f32 %v6977_v21, %v6949_v27 }
 0xa50   : > { %v7088_v39 = vadd.f32 %v7087_v9, %v7059_v43 }
 0xa51   : > { %v7007_v19 = vadd.f32 %v7006_v37, %v6978_v38 }
 0xa52   : > { %v7448_v42 = vadd.f32 %v7088_v39, %v11697_v4  ;;  %v7061_v44 = vpop.f32.mrf.mxu1 }
 0xa53   : > { %v7062_v35 = vadd.f32 %v7061_v44, %v7033_v62  ;;  %v7036_v8 = vadd.f32 %v7035_v50, %v7007_v19  ;;  %v7145_v34 = vpop.f32.mrf.mxu0 }
 0xa54   : > { %7460 = vst [vmem:[%s11198_s25 + $0x20] sm:$0xff] %v7448_v42  ;;  %v7146_v24 = vadd.f32 %v7145_v34, %v7117_v5 }
 0xa55   : > { %v7119_v21 = vpop.f32.mrf.mxu3 }
 0xa56   : > { %v7120_v41 = vadd.f32 %v7119_v21, %v6396_v33 }
 0xa59   : > { %v7090_v20 = vpop.f32.mrf.mxu2 }
 0xa5a   : > { %v7091_v6 = vadd.f32 %v7090_v20, %v7062_v35 }
 0xa5b   : > { %v7148_v31 = vpop.f32.mrf.mxu0 }
 0xa5c   : > { %v7451_v61 = vadd.f32 %v7091_v6, %v11698_v16  ;;  %v7064_v18 = vpop.f32.mrf.mxu1  ;;  %v7149_v42 = vadd.f32 %v7148_v31, %v7120_v41 }
 0xa5d   : > { %v7065_v59 = vadd.f32 %v7064_v18, %v7036_v8  ;;  %v7122_v63 = vpop.f32.mrf.mxu3 }
 0xa5e   : > { %7463 = vst [vmem:[%s11198_s25 + $0x38] sm:$0xff] %v7451_v61  ;;  %v7123_v19 = vadd.f32 %v7122_v63, %v6396_v33 }
 0xa63   : > { %v7093_v0 = vpop.f32.mrf.mxu2  ;;  %v7151_v26 = vpop.f32.mrf.mxu0 }
 0xa64   : > { %v7094_v55 = vadd.f32 %v7093_v0, %v7065_v59  ;;  %v7152_v61 = vadd.f32 %v7151_v26, %v7123_v19 }
 0xa65   : > { %v7229_v56 = vpop.f32.mrf.mxu3 }
 0xa66   : > { %v7454_v47 = vadd.f32 %v7094_v55, %v11699_v25  ;;  %v7171_v57 = vpop.f32.mrf.mxu1 }
 0xa67   : > { %v7172_v30 = vadd.f32 %v7171_v57, %v7143_v11 }
 0xa68   : > { %7466 = vst [vmem:[%s11198_s25 + $0x50] sm:$0xff] %v7454_v47 }
 0xa6b   : > { %v7258_v28 = vpop.f32.mrf.mxu0 }
 0xa6d   : > { %v7200_v49 = vpop.f32.mrf.mxu2  ;;  %v7232_v48 = vpop.f32.mrf.mxu3 }
 0xa6e   : > { %v7201_v45 = vadd.f32 %v7200_v49, %v7172_v30 }
 0xa70   : > { %v7174_v12 = vpop.f32.mrf.mxu1  ;;  %v7230_v37 = vadd.f32 %v7229_v56, %v7201_v45  ;;  %v11702_v45 = vld [vmem:[#allocation42_spill] sm:$0xff] }
 0xa71   : > { %v7175_v43 = vadd.f32 %v7174_v12, %v7146_v24  ;;  %v11700_v12 = vld [vmem:[#allocation36_spill] sm:$0xff] }
 0xa72   : > { %v7259_v39 = vadd.f32 %v7258_v28, %v7230_v37 }
 0xa74   : > { %v7261_v53 = vpop.f32.mrf.mxu0 }
 0xa77   : > { %v7203_v2 = vpop.f32.mrf.mxu2  ;;  %v7235_v51 = vpop.f32.mrf.mxu3 }
 0xa78   : > { %v7204_v23 = vadd.f32 %v7203_v2, %v7175_v43 }
 0xa7a   : > { %v7177_v40 = vpop.f32.mrf.mxu1  ;;  %v7233_v44 = vadd.f32 %v7232_v48, %v7204_v23  ;;  %v11704_v23 = vld [vmem:[#allocation45_spill] sm:$0xff] }
 0xa7b   : > { %v7178_v62 = vadd.f32 %v7177_v40, %v7149_v42 }
 0xa7c   : > { %v7262_v20 = vadd.f32 %v7261_v53, %v7233_v44 }
 0xa7e   : > { %v7264_v29 = vpop.f32.mrf.mxu0 }
 0xa81   : > { %v7206_v58 = vpop.f32.mrf.mxu2  ;;  %v7238_v3 = vpop.f32.mrf.mxu3 }
 0xa82   : > { %v7207_v52 = vadd.f32 %v7206_v58, %v7178_v62 }
 0xa84   : > { %v7180_v10 = vpop.f32.mrf.mxu1  ;;  %v7236_v18 = vadd.f32 %v7235_v51, %v7207_v52 }
 0xa85   : > { %v7181_v59 = vadd.f32 %v7180_v10, %v7152_v61 }
 0xa86   : > { %v7265_v57 = vadd.f32 %v7264_v29, %v7236_v18 }
 0xa88   : > { %v7267_v14 = vpop.f32.mrf.mxu0 }
 0xa8b   : > { %v7209_v1 = vpop.f32.mrf.mxu2  ;;  %v7345_v54 = vpop.f32.mrf.mxu3 }
 0xa8c   : > { %v7210_v25 = vadd.f32 %v7209_v1, %v7181_v59 }
 0xa8e   : > { %v7287_v22 = vpop.f32.mrf.mxu1  ;;  %v7239_v63 = vadd.f32 %v7238_v3, %v7210_v25 }
 0xa8f   : > { %v7288_v4 = vadd.f32 %v7287_v22, %v7259_v39 }
 0xa90   : > { %v7268_v48 = vadd.f32 %v7267_v14, %v7239_v63 }
 0xa91   : > { %v7374_v27 = vpop.f32.mrf.mxu0 }
 0xa94   : > { %v7316_v32 = vpop.f32.mrf.mxu2 }
 0xa95   : > { %v7317_v36 = vadd.f32 %v7316_v32, %v7288_v4  ;;  %v7348_v16 = vpop.f32.mrf.mxu3  ;;  %v11701_v32 = vld [vmem:[#allocation39_spill] sm:$0xff] }
 0xa97   : > { %v7290_v60 = vpop.f32.mrf.mxu1  ;;  %v7346_v35 = vadd.f32 %v7345_v54, %v7317_v36 }
 0xa98   : > { %v7291_v46 = vadd.f32 %v7290_v60, %v7262_v20 }
 0xa99   : > { %v7375_v17 = vadd.f32 %v7374_v27, %v7346_v35  ;;  %v7377_v55 = vpop.f32.mrf.mxu0 }
 0xa9d   : > { %v7319_v15 = vpop.f32.mrf.mxu2 }
 0xa9e   : > { %v7320_v8 = vadd.f32 %v7319_v15, %v7291_v46  ;;  %v7351_v56 = vpop.f32.mrf.mxu3 }
 0xa9f   : > { %v7293_v7 = vpop.f32.mrf.mxu1 }
 0xaa0   : > { %v7349_v47 = vadd.f32 %v7348_v16, %v7320_v8  ;;  %v7294_v31 = vadd.f32 %v7293_v7, %v7265_v57 }
 0xaa2   : > { %v7378_v26 = vadd.f32 %v7377_v55, %v7349_v47  ;;  %v7380_v1 = vpop.f32.mrf.mxu0 }
 0xaa6   : > { %v7322_v9 = vpop.f32.mrf.mxu2  ;;  %v7354_v11 = vpop.f32.mrf.mxu3 }
 0xaa7   : > { %v7323_v40 = vadd.f32 %v7322_v9, %v7294_v31 }
 0xaa8   : > { %v7296_v50 = vpop.f32.mrf.mxu1 }
 0xaa9   : > { %v7352_v10 = vadd.f32 %v7351_v56, %v7323_v40  ;;  %v7297_v51 = vadd.f32 %v7296_v50, %v7268_v48 }
 0xaaa   : > { %v7383_v5 = vpop.f32.mrf.mxu0 }
 0xaab   : > { %v7381_v29 = vadd.f32 %v7380_v1, %v7352_v10 }
 0xaae   : > { %v7325_v38 = vpop.f32.mrf.mxu2 }
 0xaaf   : > { %v7326_v60 = vadd.f32 %v7325_v38, %v7297_v51 }
 0xab0   : > { %v7403_v6 = vpop.f32.mrf.mxu1 }
 0xab1   : > { %v7404_v0 = vadd.f32 %v7403_v6, %v7375_v17  ;;  %v7355_v15 = vadd.f32 %v7354_v11, %v7326_v60 }
 0xab3   : > { %v7384_v24 = vadd.f32 %v7383_v5, %v7355_v15 }
 0xab6   : > { %v7432_v34 = vpop.f32.mrf.mxu2 }
 0xab7   : > { %v7433_v21 = vadd.f32 %v7432_v34, %v7404_v0 }
 0xab8   : > { %v7406_v49 = vpop.f32.mrf.mxu1 }
 0xab9   : > { %v7446_v2 = vadd.f32 %v7433_v21, %v11700_v12  ;;  %v7407_v58 = vadd.f32 %v7406_v49, %v7378_v26 }
 0xabb   : > { %7458 = vst [vmem:[%s11198_s25 + $0x10] sm:$0xff] %v7446_v2 }
 0xabe   : > { %v7435_v28 = vpop.f32.mrf.mxu2 }
 0xabf   : > { %v7436_v53 = vadd.f32 %v7435_v28, %v7407_v58 }
 0xac0   : > { %v7409_v22 = vpop.f32.mrf.mxu1 }
 0xac1   : > { %v7449_v33 = vadd.f32 %v7436_v53, %v11701_v32  ;;  %v7410_v13 = vadd.f32 %v7409_v22, %v7381_v29 }
 0xac3   : > { %7461 = vst [vmem:[%s11198_s25 + $0x28] sm:$0xff] %v7449_v33 }
 0xac6   : > { %v7438_v30 = vpop.f32.mrf.mxu2 }
 0xac7   : > { %v7439_v3 = vadd.f32 %v7438_v30, %v7410_v13 }
 0xac8   : > { %v7412_v14 = vpop.f32.mrf.mxu1 }
 0xac9   : > { %v7452_v7 = vadd.f32 %v7439_v3, %v11702_v45  ;;  %v7413_v37 = vadd.f32 %v7412_v14, %v7384_v24 }
 0xacb   : > { %7464 = vst [vmem:[%s11198_s25 + $0x40] sm:$0xff] %v7452_v7 }
 0xace   : > { %v7441_v43 = vpop.f32.mrf.mxu2 }
 0xacf   : > { %v7442_v9 = vadd.f32 %v7441_v43, %v7413_v37 }
 0xad1   : > { %v7455_v39 = vadd.f32 %v7442_v9, %v11704_v23 }
 0xad3   : > { %7467 = vst [vmem:[%s11198_s25 + $0x58] sm:$0xff] %v7455_v39 }
 0xad4   : > { %8501 = shalt.err (!%p8498_p9)
}
 0xad5   : > { %s8586_s5 = smov 384   ;;  %s8587_s7 = smov 24  }
 0xad6   : > { %7835 = dma.vmem_to_hbm [thread:$0]  (%p8775_p0), %s7483_s14, 1536, %s7485_s30, %s7469_s28, %s8586_s5, %s8586_s5, %s8587_s7  }
 0xad7 PF: > { %s7499_s25 = sand.u32 1, %s8552_s21   ;;  %p11705_p10 = scmp.ge.s32.totalorder %s8564_s24, 2 }
 0xad8   : > { %s7500_s19 = scalar_lea.sflag [#allocation5], %s7499_s25 }
 0xad9   : > { %p7876_p11 = pnand %p11705_p10, %p8781_p6 }
 0xadb   : > { %p7877_p12 = pneg %p7876_p11 }
 0xadd   : > { %8547 = dma.done.wait (%p7877_p12), %s7500_s19, 1536  }
 0xade   : > { %8549 = vsyncadd (%p7877_p12), %s7500_s19, 4294965760  ;;  %p31_p2 = scmp.ge.s32.totalorder %s8755_s18, 4   ;;  %s11706_s21 = smov %s8556_s22 }
 0xadf   : > { %s11707_s22 = smov %s8560_s23  ;;  %s11708_s23 = smov %s8767_s15 }
 0xae0   : > { %s11709_s24 = smov %s8755_s18  ;;  %33 = sbr.rel (!%p31_p2) target bundleno = 20 (0x14), region = 157 }
 0xae5   :  { %7506 = vsyncpa [#allocation4], 1 }
 0xae6   :  { %7508 = vsyncpa [#allocation4 + $0x1], 1 }
 0xae7   :  { %7509 = vsyncpa [#allocation7], 1 }
 0xae8   :  { %7510 = vsyncpa [#allocation10], 1 }
 0xae9   :  { %7511 = vsyncpa [#allocation13], 1 }
 0xaea   :  { %7512 = vsyncpa [#allocation16], 1 }
 0xaeb   :  { %7513 = vsyncpa [#allocation19], 1 }
 0xaec   :  { %7514 = vsyncpa [#allocation22], 1 }
 0xaed   :  { %7515 = vsyncpa [#allocation5], 1 }
 0xaee   :  { %7517 = vsyncpa [#allocation5 + $0x1], 1 }

</bundles_post_ra>
